<compile_context>
chip_gen: v5e
topology: v5e:2x2
jax: 0.10.0
libtpu: 0.0.40
codegen_flags: <defaults>
</compile_context>

<pallas_src>
import functools

import numpy as np
import jax
import jax.numpy as jnp
from jax import lax
from jax.experimental import pallas as pl
from jax.experimental.pallas import tpu as pltpu

# Static geometry implied by the module (fc1 expects 16*5*5 => 32x32 input).
H = W = 32
K1_SPAN = 892      # conv1 evaluated on flat bases 0 .. 27*32+27
P1_SPAN = 859      # pool1 (folded): valid bases 64*ph + 2*pw, max 858
K2_SPAN = 595      # conv2 evaluated on flat bases 0 .. 64*9+2*9
P2_SPAN = 529      # pool2 (folded): valid bases 128*ph + 4*pw, max 528


# ------------------------------ fused kernel ------------------------------- #

def _fused_kernel(x_ref, w1_ref, b1_ref, w2_ref, b2_ref, sel_ref,
                  wfc1_ref, bfc1_ref, wfc2_ref, bfc2_ref, wfc3_ref, bfc3_ref,
                  out_ref, k_ref, *, n_batch):
    f32 = jnp.float32
    w1 = w1_ref[...]            # [8, 200]
    b1 = b1_ref[...]            # [8, 1]
    w2 = w2_ref[...]            # [16, 200]
    b2 = b2_ref[...]            # [16, 1]
    sel = sel_ref[...]          # [529, 32] exact 0/1 selection

    for n in range(n_batch):    # tiny static batch -> unrolled
        # ---- conv1 + ReLU on the flat (32-wide) grid ----------------------
        # K-stack the 25 shifted views; each view is one aligned 8-row tile.
        for t in range(25):
            di, dj = t // 5, t % 5
            off = 32 * di + dj
            k_ref[8 * t:8 * t + 8, :] = x_ref[n, :, off:off + K1_SPAN]
        out1 = jnp.dot(w1, k_ref[...], preferred_element_type=f32) + b1
        out1 = jnp.maximum(out1, 0.0)                                 # [8, 892]

        # ---- maxpool1 folded onto the flat axis (window offsets {0,1,32,33})
        m1 = jnp.maximum(out1[:, 0:K1_SPAN - 1], out1[:, 1:K1_SPAN])
        m1 = jnp.maximum(m1[:, 0:P1_SPAN], m1[:, 32:32 + P1_SPAN])    # [8, 859]

        # ---- conv2 + ReLU, reading the pooled grid with flat strides (64, 2)
        for t in range(25):
            di, dj = t // 5, t % 5
            off = 64 * di + 2 * dj
            k_ref[8 * t:8 * t + 8, 0:K2_SPAN] = m1[:, off:off + K2_SPAN]
        out2 = jnp.dot(w2, k_ref[:, 0:K2_SPAN], preferred_element_type=f32) + b2
        out2 = jnp.maximum(out2, 0.0)                                 # [16, 595]

        # ---- maxpool2 (window offsets {0,2,64,66} on the strided grid) -----
        m2 = jnp.maximum(out2[:, 0:K2_SPAN - 2], out2[:, 2:K2_SPAN])
        m2 = jnp.maximum(m2[:, 0:P2_SPAN], m2[:, 64:64 + P2_SPAN])    # [16, 529]

        # ---- pick the 25 valid pooled positions per channel (exact 0/1 matmul)
        # (the unused "garbage" columns are finite and multiplied by 0.0)
        p = jnp.dot(m2, sel, preferred_element_type=f32)              # [16, 32]

        # ---- fc1: torch.flatten folded into a per-channel accumulation -----
        h = bfc1_ref[...]                                             # [1, 120]
        for c in range(16):
            h = h + jnp.dot(p[c:c + 1, :], wfc1_ref[c],
                            preferred_element_type=f32)
        h = jnp.maximum(h, 0.0)

        # ---- fc2 + ReLU, fc3 ------------------------------------------------
        h = jnp.dot(h, wfc2_ref[...], preferred_element_type=f32) + bfc2_ref[...]
        h = jnp.maximum(h, 0.0)                                       # [1, 84]
        o = jnp.dot(h, wfc3_ref[...], preferred_element_type=f32) + bfc3_ref[...]
        out_ref[n, :] = o[0]                                          # [10]


# ------------------------- one-time parameter prep -------------------------- #

def prepare_params(p):
    """Repack torch-layout parameters into the kernel's layouts (done once)."""
    f32 = jnp.float32

    # conv1 [6,3,5,5] -> [8, 200], column index 8*t + c with t = 5*di + dj.
    w1 = jnp.transpose(p["conv1_w"].astype(f32), (0, 2, 3, 1)).reshape(6, 25, 3)
    w1m = jnp.zeros((8, 25, 8), f32).at[:6, :, :3].set(w1).reshape(8, 200)
    b1 = jnp.zeros((8, 1), f32).at[:6, 0].set(p["conv1_b"].astype(f32))

    # conv2 [16,6,5,5] -> [16, 200], column index 8*t + c.
    w2 = jnp.transpose(p["conv2_w"].astype(f32), (0, 2, 3, 1)).reshape(16, 25, 6)
    w2m = jnp.zeros((16, 25, 8), f32).at[:, :, :6].set(w2).reshape(16, 200)
    b2 = p["conv2_b"].astype(f32).reshape(16, 1)

    # pool2 output selection: flat column 128*ph + 4*pw -> 5*ph + pw.
    sel = np.zeros((P2_SPAN, 32), np.float32)
    for ph in range(5):
        for pw in range(5):
            sel[128 * ph + 4 * pw, 5 * ph + pw] = 1.0
    sel = jnp.asarray(sel)

    # fc1 [120, 400] (feature = 25*c + 5*h + w) -> per-channel [16, 32, 120].
    wfc1 = p["fc1_w"].astype(f32).reshape(120, 16, 25).transpose(1, 2, 0)
    wfc1 = jnp.zeros((16, 32, 120), f32).at[:, :25, :].set(wfc1)
    bfc1 = p["fc1_b"].astype(f32).reshape(1, 120)

    wfc2 = p["fc2_w"].astype(f32).T                       # [120, 84]
    bfc2 = p["fc2_b"].astype(f32).reshape(1, 84)
    wfc3 = p["fc3_w"].astype(f32).T                       # [84, 10]
    bfc3 = p["fc3_b"].astype(f32).reshape(1, 10)

    return dict(w1=w1m, b1=b1, w2=w2m, b2=b2, sel=sel,
                wfc1=wfc1, bfc1=bfc1, wfc2=wfc2, bfc2=bfc2,
                wfc3=wfc3, bfc3=bfc3)


# -------------------------------- wrapper ----------------------------------- #

def net_forward(x, prep):
    n = x.shape[0]
    assert x.shape[1:] == (3, H, W), x.shape
    # Only per-call glue: flatten spatial + zero-pad channels to a full 8-row tile.
    x8 = jnp.zeros((n, 8, H * W), jnp.float32).at[:, :3, :].set(
        x.astype(jnp.float32).reshape(n, 3, H * W))

    operands = (x8, prep["w1"], prep["b1"], prep["w2"], prep["b2"], prep["sel"],
                prep["wfc1"], prep["bfc1"], prep["wfc2"], prep["bfc2"],
                prep["wfc3"], prep["bfc3"])

    def full_spec(shape):
        return pl.BlockSpec(shape, lambda: tuple(0 for _ in shape))

    flops = 2 * n * (200 * K1_SPAN * 8 + 200 * K2_SPAN * 16 + P2_SPAN * 32 * 16
                     + 16 * 32 * 120 + 120 * 84 + 84 * 10)
    bytes_accessed = sum(int(np.prod(a.shape)) * 4 for a in operands) + n * 10 * 4

    kernel = functools.partial(_fused_kernel, n_batch=n)
    return pl.pallas_call(
        kernel,
        out_shape=jax.ShapeDtypeStruct((n, 10), jnp.float32),
        in_specs=[full_spec(a.shape) for a in operands],
        out_specs=full_spec((n, 10)),
        scratch_shapes=[pltpu.VMEM((200, K1_SPAN), jnp.float32)],
        cost_estimate=pl.CostEstimate(flops=flops, transcendentals=0,
                                      bytes_accessed=bytes_accessed),
    )(*operands)


# ---------------------------- reference (jnp) ------------------------------- #

def _ref_forward(x, p):
    def conv(x, w, b):
        y = lax.conv_general_dilated(x, w, (1, 1), "VALID",
                                     dimension_numbers=("NCHW", "OIHW", "NCHW"))
        return jax.nn.relu(y + b.reshape(1, -1, 1, 1))

    def pool(x):
        return lax.reduce_window(x, -jnp.inf, lax.max, (1, 1, 2, 2), (1, 1, 2, 2),
                                 "VALID")

    x = pool(conv(x, p["conv1_w"], p["conv1_b"]))
    x = pool(conv(x, p["conv2_w"], p["conv2_b"]))
    x = x.reshape(x.shape[0], -1)
    x = jax.nn.relu(x @ p["fc1_w"].T + p["fc1_b"])
    x = jax.nn.relu(x @ p["fc2_w"].T + p["fc2_b"])
    return x @ p["fc3_w"].T + p["fc3_b"]


# ---------------------------------- main ------------------------------------ #

def _init_params(key):
    def u(k, shape, fan_in):
        bound = 1.0 / jnp.sqrt(float(fan_in))
        return jax.random.uniform(k, shape, jnp.float32, -bound, bound)

    ks = jax.random.split(key, 10)
    return {
        "conv1_w": u(ks[0], (6, 3, 5, 5), 3 * 5 * 5),
        "conv1_b": u(ks[1], (6,), 3 * 5 * 5),
        "conv2_w": u(ks[2], (16, 6, 5, 5), 6 * 5 * 5),
        "conv2_b": u(ks[3], (16,), 6 * 5 * 5),
        "fc1_w":   u(ks[4], (120, 400), 400),
        "fc1_b":   u(ks[5], (120,), 400),
        "fc2_w":   u(ks[6], (84, 120), 120),
        "fc2_b":   u(ks[7], (84,), 120),
        "fc3_w":   u(ks[8], (10, 84), 84),
        "fc3_b":   u(ks[9], (10,), 84),
    }


if __name__ == "__main__":
    key = jax.random.PRNGKey(0)
    k_params, k_x = jax.random.split(key)
    params = _init_params(k_params)

    # batch=2, NCHW; 32x32 spatial is implied by fc1 expecting 16*5*5 features.
    x = jax.random.normal(k_x, (2, 3, 32, 32), jnp.float32)

    prep = prepare_params(params)              # one-time weight repack
    fwd = jax.jit(net_forward)

    out = jax.block_until_ready(fwd(x, prep))
    assert out.shape == (2, 10), out.shape

    ref = jax.block_until_ready(_ref_forward(x, params))
    assert jnp.allclose(out, ref, atol=1e-3, rtol=1e-3), \
        float(jnp.max(jnp.abs(out - ref)))

    print("KERNEL_OK")
</pallas_src>

<mosaic_0001>
module attributes {stable_mosaic.version = 11 : i64} {
  func.func @_fused_kernel(%arg0: memref<2x8x1024xf32, #tpu.memory_space<vmem>>, %arg1: memref<8x200xf32, #tpu.memory_space<vmem>>, %arg2: memref<8x1xf32, #tpu.memory_space<vmem>>, %arg3: memref<16x200xf32, #tpu.memory_space<vmem>>, %arg4: memref<16x1xf32, #tpu.memory_space<vmem>>, %arg5: memref<529x32xf32, #tpu.memory_space<vmem>>, %arg6: memref<16x32x120xf32, #tpu.memory_space<vmem>>, %arg7: memref<1x120xf32, #tpu.memory_space<vmem>>, %arg8: memref<120x84xf32, #tpu.memory_space<vmem>>, %arg9: memref<1x84xf32, #tpu.memory_space<vmem>>, %arg10: memref<84x10xf32, #tpu.memory_space<vmem>>, %arg11: memref<1x10xf32, #tpu.memory_space<vmem>>, %arg12: memref<2x10xf32, #tpu.memory_space<vmem>>, %arg13: memref<200x892xf32, #tpu.memory_space<vmem>>) attributes {dimension_semantics = [], scalar_prefetch = 0 : i64, scratch_operands = 1 : i64, tpu.core_type = #tpu.core_type<tc>} {
    %c0 = arith.constant 0 : index
    %c0_0 = arith.constant 0 : index
    %0 = vector.load %arg1[%c0, %c0_0] : memref<8x200xf32, #tpu.memory_space<vmem>>, vector<8x200xf32>
    %c0_1 = arith.constant 0 : index
    %c0_2 = arith.constant 0 : index
    %1 = vector.load %arg2[%c0_1, %c0_2] : memref<8x1xf32, #tpu.memory_space<vmem>>, vector<8x1xf32>
    %c0_3 = arith.constant 0 : index
    %c0_4 = arith.constant 0 : index
    %2 = vector.load %arg3[%c0_3, %c0_4] : memref<16x200xf32, #tpu.memory_space<vmem>>, vector<16x200xf32>
    %c0_5 = arith.constant 0 : index
    %c0_6 = arith.constant 0 : index
    %3 = vector.load %arg4[%c0_5, %c0_6] : memref<16x1xf32, #tpu.memory_space<vmem>>, vector<16x1xf32>
    %c0_7 = arith.constant 0 : index
    %c0_8 = arith.constant 0 : index
    %4 = vector.load %arg5[%c0_7, %c0_8] : memref<529x32xf32, #tpu.memory_space<vmem>>, vector<529x32xf32>
    %c0_9 = arith.constant 0 : index
    %c0_10 = arith.constant 0 : index
    %c0_11 = arith.constant 0 : index
    %5 = vector.load %arg0[%c0_9, %c0_10, %c0_11] : memref<2x8x1024xf32, #tpu.memory_space<vmem>>, vector<1x8x892xf32>
    %6 = vector.shape_cast %5 : vector<1x8x892xf32> to vector<8x892xf32>
    %c0_12 = arith.constant 0 : index
    %c0_13 = arith.constant 0 : index
    %7 = vector.load %arg13[%c0_12, %c0_13] : memref<200x892xf32, #tpu.memory_space<vmem>>, vector<8x892xf32>
    tpu.vector_store %arg13[%c0_12, %c0_13], %6 {strides = array<i32>} : memref<200x892xf32, #tpu.memory_space<vmem>>, vector<8x892xf32>,
    %c0_14 = arith.constant 0 : index
    %c0_15 = arith.constant 0 : index
    %c1 = arith.constant 1 : index
    %8 = vector.load %arg0[%c0_14, %c0_15, %c1] : memref<2x8x1024xf32, #tpu.memory_space<vmem>>, vector<1x8x892xf32>
    %9 = vector.shape_cast %8 : vector<1x8x892xf32> to vector<8x892xf32>
    %c8 = arith.constant 8 : index
    %c0_16 = arith.constant 0 : index
    %10 = vector.load %arg13[%c8, %c0_16] : memref<200x892xf32, #tpu.memory_space<vmem>>, vector<8x892xf32>
    tpu.vector_store %arg13[%c8, %c0_16], %9 {strides = array<i32>} : memref<200x892xf32, #tpu.memory_space<vmem>>, vector<8x892xf32>,
    %c0_17 = arith.constant 0 : index
    %c0_18 = arith.constant 0 : index
    %c2 = arith.constant 2 : index
    %11 = vector.load %arg0[%c0_17, %c0_18, %c2] : memref<2x8x1024xf32, #tpu.memory_space<vmem>>, vector<1x8x892xf32>
    %12 = vector.shape_cast %11 : vector<1x8x892xf32> to vector<8x892xf32>
    %c16 = arith.constant 16 : index
    %c0_19 = arith.constant 0 : index
    %13 = vector.load %arg13[%c16, %c0_19] : memref<200x892xf32, #tpu.memory_space<vmem>>, vector<8x892xf32>
    tpu.vector_store %arg13[%c16, %c0_19], %12 {strides = array<i32>} : memref<200x892xf32, #tpu.memory_space<vmem>>, vector<8x892xf32>,
    %c0_20 = arith.constant 0 : index
    %c0_21 = arith.constant 0 : index
    %c3 = arith.constant 3 : index
    %14 = vector.load %arg0[%c0_20, %c0_21, %c3] : memref<2x8x1024xf32, #tpu.memory_space<vmem>>, vector<1x8x892xf32>
    %15 = vector.shape_cast %14 : vector<1x8x892xf32> to vector<8x892xf32>
    %c24 = arith.constant 24 : index
    %c0_22 = arith.constant 0 : index
    %16 = vector.load %arg13[%c24, %c0_22] : memref<200x892xf32, #tpu.memory_space<vmem>>, vector<8x892xf32>
    tpu.vector_store %arg13[%c24, %c0_22], %15 {strides = array<i32>} : memref<200x892xf32, #tpu.memory_space<vmem>>, vector<8x892xf32>,
    %c0_23 = arith.constant 0 : index
    %c0_24 = arith.constant 0 : index
    %c4 = arith.constant 4 : index
    %17 = vector.load %arg0[%c0_23, %c0_24, %c4] : memref<2x8x1024xf32, #tpu.memory_space<vmem>>, vector<1x8x892xf32>
    %18 = vector.shape_cast %17 : vector<1x8x892xf32> to vector<8x892xf32>
    %c32 = arith.constant 32 : index
    %c0_25 = arith.constant 0 : index
    %19 = vector.load %arg13[%c32, %c0_25] : memref<200x892xf32, #tpu.memory_space<vmem>>, vector<8x892xf32>
    tpu.vector_store %arg13[%c32, %c0_25], %18 {strides = array<i32>} : memref<200x892xf32, #tpu.memory_space<vmem>>, vector<8x892xf32>,
    %c0_26 = arith.constant 0 : index
    %c0_27 = arith.constant 0 : index
    %c32_28 = arith.constant 32 : index
    %20 = vector.load %arg0[%c0_26, %c0_27, %c32_28] : memref<2x8x1024xf32, #tpu.memory_space<vmem>>, vector<1x8x892xf32>
    %21 = vector.shape_cast %20 : vector<1x8x892xf32> to vector<8x892xf32>
    %c40 = arith.constant 40 : index
    %c0_29 = arith.constant 0 : index
    %22 = vector.load %arg13[%c40, %c0_29] : memref<200x892xf32, #tpu.memory_space<vmem>>, vector<8x892xf32>
    tpu.vector_store %arg13[%c40, %c0_29], %21 {strides = array<i32>} : memref<200x892xf32, #tpu.memory_space<vmem>>, vector<8x892xf32>,
    %c0_30 = arith.constant 0 : index
    %c0_31 = arith.constant 0 : index
    %c33 = arith.constant 33 : index
    %23 = vector.load %arg0[%c0_30, %c0_31, %c33] : memref<2x8x1024xf32, #tpu.memory_space<vmem>>, vector<1x8x892xf32>
    %24 = vector.shape_cast %23 : vector<1x8x892xf32> to vector<8x892xf32>
    %c48 = arith.constant 48 : index
    %c0_32 = arith.constant 0 : index
    %25 = vector.load %arg13[%c48, %c0_32] : memref<200x892xf32, #tpu.memory_space<vmem>>, vector<8x892xf32>
    tpu.vector_store %arg13[%c48, %c0_32], %24 {strides = array<i32>} : memref<200x892xf32, #tpu.memory_space<vmem>>, vector<8x892xf32>,
    %c0_33 = arith.constant 0 : index
    %c0_34 = arith.constant 0 : index
    %c34 = arith.constant 34 : index
    %26 = vector.load %arg0[%c0_33, %c0_34, %c34] : memref<2x8x1024xf32, #tpu.memory_space<vmem>>, vector<1x8x892xf32>
    %27 = vector.shape_cast %26 : vector<1x8x892xf32> to vector<8x892xf32>
    %c56 = arith.constant 56 : index
    %c0_35 = arith.constant 0 : index
    %28 = vector.load %arg13[%c56, %c0_35] : memref<200x892xf32, #tpu.memory_space<vmem>>, vector<8x892xf32>
    tpu.vector_store %arg13[%c56, %c0_35], %27 {strides = array<i32>} : memref<200x892xf32, #tpu.memory_space<vmem>>, vector<8x892xf32>,
    %c0_36 = arith.constant 0 : index
    %c0_37 = arith.constant 0 : index
    %c35 = arith.constant 35 : index
    %29 = vector.load %arg0[%c0_36, %c0_37, %c35] : memref<2x8x1024xf32, #tpu.memory_space<vmem>>, vector<1x8x892xf32>
    %30 = vector.shape_cast %29 : vector<1x8x892xf32> to vector<8x892xf32>
    %c64 = arith.constant 64 : index
    %c0_38 = arith.constant 0 : index
    %31 = vector.load %arg13[%c64, %c0_38] : memref<200x892xf32, #tpu.memory_space<vmem>>, vector<8x892xf32>
    tpu.vector_store %arg13[%c64, %c0_38], %30 {strides = array<i32>} : memref<200x892xf32, #tpu.memory_space<vmem>>, vector<8x892xf32>,
    %c0_39 = arith.constant 0 : index
    %c0_40 = arith.constant 0 : index
    %c36 = arith.constant 36 : index
    %32 = vector.load %arg0[%c0_39, %c0_40, %c36] : memref<2x8x1024xf32, #tpu.memory_space<vmem>>, vector<1x8x892xf32>
    %33 = vector.shape_cast %32 : vector<1x8x892xf32> to vector<8x892xf32>
    %c72 = arith.constant 72 : index
    %c0_41 = arith.constant 0 : index
    %34 = vector.load %arg13[%c72, %c0_41] : memref<200x892xf32, #tpu.memory_space<vmem>>, vector<8x892xf32>
    tpu.vector_store %arg13[%c72, %c0_41], %33 {strides = array<i32>} : memref<200x892xf32, #tpu.memory_space<vmem>>, vector<8x892xf32>,
    %c0_42 = arith.constant 0 : index
    %c0_43 = arith.constant 0 : index
    %c64_44 = arith.constant 64 : index
    %35 = vector.load %arg0[%c0_42, %c0_43, %c64_44] : memref<2x8x1024xf32, #tpu.memory_space<vmem>>, vector<1x8x892xf32>
    %36 = vector.shape_cast %35 : vector<1x8x892xf32> to vector<8x892xf32>
    %c80 = arith.constant 80 : index
    %c0_45 = arith.constant 0 : index
    %37 = vector.load %arg13[%c80, %c0_45] : memref<200x892xf32, #tpu.memory_space<vmem>>, vector<8x892xf32>
    tpu.vector_store %arg13[%c80, %c0_45], %36 {strides = array<i32>} : memref<200x892xf32, #tpu.memory_space<vmem>>, vector<8x892xf32>,
    %c0_46 = arith.constant 0 : index
    %c0_47 = arith.constant 0 : index
    %c65 = arith.constant 65 : index
    %38 = vector.load %arg0[%c0_46, %c0_47, %c65] : memref<2x8x1024xf32, #tpu.memory_space<vmem>>, vector<1x8x892xf32>
    %39 = vector.shape_cast %38 : vector<1x8x892xf32> to vector<8x892xf32>
    %c88 = arith.constant 88 : index
    %c0_48 = arith.constant 0 : index
    %40 = vector.load %arg13[%c88, %c0_48] : memref<200x892xf32, #tpu.memory_space<vmem>>, vector<8x892xf32>
    tpu.vector_store %arg13[%c88, %c0_48], %39 {strides = array<i32>} : memref<200x892xf32, #tpu.memory_space<vmem>>, vector<8x892xf32>,
    %c0_49 = arith.constant 0 : index
    %c0_50 = arith.constant 0 : index
    %c66 = arith.constant 66 : index
    %41 = vector.load %arg0[%c0_49, %c0_50, %c66] : memref<2x8x1024xf32, #tpu.memory_space<vmem>>, vector<1x8x892xf32>
    %42 = vector.shape_cast %41 : vector<1x8x892xf32> to vector<8x892xf32>
    %c96 = arith.constant 96 : index
    %c0_51 = arith.constant 0 : index
    %43 = vector.load %arg13[%c96, %c0_51] : memref<200x892xf32, #tpu.memory_space<vmem>>, vector<8x892xf32>
    tpu.vector_store %arg13[%c96, %c0_51], %42 {strides = array<i32>} : memref<200x892xf32, #tpu.memory_space<vmem>>, vector<8x892xf32>,
    %c0_52 = arith.constant 0 : index
    %c0_53 = arith.constant 0 : index
    %c67 = arith.constant 67 : index
    %44 = vector.load %arg0[%c0_52, %c0_53, %c67] : memref<2x8x1024xf32, #tpu.memory_space<vmem>>, vector<1x8x892xf32>
    %45 = vector.shape_cast %44 : vector<1x8x892xf32> to vector<8x892xf32>
    %c104 = arith.constant 104 : index
    %c0_54 = arith.constant 0 : index
    %46 = vector.load %arg13[%c104, %c0_54] : memref<200x892xf32, #tpu.memory_space<vmem>>, vector<8x892xf32>
    tpu.vector_store %arg13[%c104, %c0_54], %45 {strides = array<i32>} : memref<200x892xf32, #tpu.memory_space<vmem>>, vector<8x892xf32>,
    %c0_55 = arith.constant 0 : index
    %c0_56 = arith.constant 0 : index
    %c68 = arith.constant 68 : index
    %47 = vector.load %arg0[%c0_55, %c0_56, %c68] : memref<2x8x1024xf32, #tpu.memory_space<vmem>>, vector<1x8x892xf32>
    %48 = vector.shape_cast %47 : vector<1x8x892xf32> to vector<8x892xf32>
    %c112 = arith.constant 112 : index
    %c0_57 = arith.constant 0 : index
    %49 = vector.load %arg13[%c112, %c0_57] : memref<200x892xf32, #tpu.memory_space<vmem>>, vector<8x892xf32>
    tpu.vector_store %arg13[%c112, %c0_57], %48 {strides = array<i32>} : memref<200x892xf32, #tpu.memory_space<vmem>>, vector<8x892xf32>,
    %c0_58 = arith.constant 0 : index
    %c0_59 = arith.constant 0 : index
    %c96_60 = arith.constant 96 : index
    %50 = vector.load %arg0[%c0_58, %c0_59, %c96_60] : memref<2x8x1024xf32, #tpu.memory_space<vmem>>, vector<1x8x892xf32>
    %51 = vector.shape_cast %50 : vector<1x8x892xf32> to vector<8x892xf32>
    %c120 = arith.constant 120 : index
    %c0_61 = arith.constant 0 : index
    %52 = vector.load %arg13[%c120, %c0_61] : memref<200x892xf32, #tpu.memory_space<vmem>>, vector<8x892xf32>
    tpu.vector_store %arg13[%c120, %c0_61], %51 {strides = array<i32>} : memref<200x892xf32, #tpu.memory_space<vmem>>, vector<8x892xf32>,
    %c0_62 = arith.constant 0 : index
    %c0_63 = arith.constant 0 : index
    %c97 = arith.constant 97 : index
    %53 = vector.load %arg0[%c0_62, %c0_63, %c97] : memref<2x8x1024xf32, #tpu.memory_space<vmem>>, vector<1x8x892xf32>
    %54 = vector.shape_cast %53 : vector<1x8x892xf32> to vector<8x892xf32>
    %c128 = arith.constant 128 : index
    %c0_64 = arith.constant 0 : index
    %55 = vector.load %arg13[%c128, %c0_64] : memref<200x892xf32, #tpu.memory_space<vmem>>, vector<8x892xf32>
    tpu.vector_store %arg13[%c128, %c0_64], %54 {strides = array<i32>} : memref<200x892xf32, #tpu.memory_space<vmem>>, vector<8x892xf32>,
    %c0_65 = arith.constant 0 : index
    %c0_66 = arith.constant 0 : index
    %c98 = arith.constant 98 : index
    %56 = vector.load %arg0[%c0_65, %c0_66, %c98] : memref<2x8x1024xf32, #tpu.memory_space<vmem>>, vector<1x8x892xf32>
    %57 = vector.shape_cast %56 : vector<1x8x892xf32> to vector<8x892xf32>
    %c136 = arith.constant 136 : index
    %c0_67 = arith.constant 0 : index
    %58 = vector.load %arg13[%c136, %c0_67] : memref<200x892xf32, #tpu.memory_space<vmem>>, vector<8x892xf32>
    tpu.vector_store %arg13[%c136, %c0_67], %57 {strides = array<i32>} : memref<200x892xf32, #tpu.memory_space<vmem>>, vector<8x892xf32>,
    %c0_68 = arith.constant 0 : index
    %c0_69 = arith.constant 0 : index
    %c99 = arith.constant 99 : index
    %59 = vector.load %arg0[%c0_68, %c0_69, %c99] : memref<2x8x1024xf32, #tpu.memory_space<vmem>>, vector<1x8x892xf32>
    %60 = vector.shape_cast %59 : vector<1x8x892xf32> to vector<8x892xf32>
    %c144 = arith.constant 144 : index
    %c0_70 = arith.constant 0 : index
    %61 = vector.load %arg13[%c144, %c0_70] : memref<200x892xf32, #tpu.memory_space<vmem>>, vector<8x892xf32>
    tpu.vector_store %arg13[%c144, %c0_70], %60 {strides = array<i32>} : memref<200x892xf32, #tpu.memory_space<vmem>>, vector<8x892xf32>,
    %c0_71 = arith.constant 0 : index
    %c0_72 = arith.constant 0 : index
    %c100 = arith.constant 100 : index
    %62 = vector.load %arg0[%c0_71, %c0_72, %c100] : memref<2x8x1024xf32, #tpu.memory_space<vmem>>, vector<1x8x892xf32>
    %63 = vector.shape_cast %62 : vector<1x8x892xf32> to vector<8x892xf32>
    %c152 = arith.constant 152 : index
    %c0_73 = arith.constant 0 : index
    %64 = vector.load %arg13[%c152, %c0_73] : memref<200x892xf32, #tpu.memory_space<vmem>>, vector<8x892xf32>
    tpu.vector_store %arg13[%c152, %c0_73], %63 {strides = array<i32>} : memref<200x892xf32, #tpu.memory_space<vmem>>, vector<8x892xf32>,
    %c0_74 = arith.constant 0 : index
    %c0_75 = arith.constant 0 : index
    %c128_76 = arith.constant 128 : index
    %65 = vector.load %arg0[%c0_74, %c0_75, %c128_76] : memref<2x8x1024xf32, #tpu.memory_space<vmem>>, vector<1x8x892xf32>
    %66 = vector.shape_cast %65 : vector<1x8x892xf32> to vector<8x892xf32>
    %c160 = arith.constant 160 : index
    %c0_77 = arith.constant 0 : index
    %67 = vector.load %arg13[%c160, %c0_77] : memref<200x892xf32, #tpu.memory_space<vmem>>, vector<8x892xf32>
    tpu.vector_store %arg13[%c160, %c0_77], %66 {strides = array<i32>} : memref<200x892xf32, #tpu.memory_space<vmem>>, vector<8x892xf32>,
    %c0_78 = arith.constant 0 : index
    %c0_79 = arith.constant 0 : index
    %c129 = arith.constant 129 : index
    %68 = vector.load %arg0[%c0_78, %c0_79, %c129] : memref<2x8x1024xf32, #tpu.memory_space<vmem>>, vector<1x8x892xf32>
    %69 = vector.shape_cast %68 : vector<1x8x892xf32> to vector<8x892xf32>
    %c168 = arith.constant 168 : index
    %c0_80 = arith.constant 0 : index
    %70 = vector.load %arg13[%c168, %c0_80] : memref<200x892xf32, #tpu.memory_space<vmem>>, vector<8x892xf32>
    tpu.vector_store %arg13[%c168, %c0_80], %69 {strides = array<i32>} : memref<200x892xf32, #tpu.memory_space<vmem>>, vector<8x892xf32>,
    %c0_81 = arith.constant 0 : index
    %c0_82 = arith.constant 0 : index
    %c130 = arith.constant 130 : index
    %71 = vector.load %arg0[%c0_81, %c0_82, %c130] : memref<2x8x1024xf32, #tpu.memory_space<vmem>>, vector<1x8x892xf32>
    %72 = vector.shape_cast %71 : vector<1x8x892xf32> to vector<8x892xf32>
    %c176 = arith.constant 176 : index
    %c0_83 = arith.constant 0 : index
    %73 = vector.load %arg13[%c176, %c0_83] : memref<200x892xf32, #tpu.memory_space<vmem>>, vector<8x892xf32>
    tpu.vector_store %arg13[%c176, %c0_83], %72 {strides = array<i32>} : memref<200x892xf32, #tpu.memory_space<vmem>>, vector<8x892xf32>,
    %c0_84 = arith.constant 0 : index
    %c0_85 = arith.constant 0 : index
    %c131 = arith.constant 131 : index
    %74 = vector.load %arg0[%c0_84, %c0_85, %c131] : memref<2x8x1024xf32, #tpu.memory_space<vmem>>, vector<1x8x892xf32>
    %75 = vector.shape_cast %74 : vector<1x8x892xf32> to vector<8x892xf32>
    %c184 = arith.constant 184 : index
    %c0_86 = arith.constant 0 : index
    %76 = vector.load %arg13[%c184, %c0_86] : memref<200x892xf32, #tpu.memory_space<vmem>>, vector<8x892xf32>
    tpu.vector_store %arg13[%c184, %c0_86], %75 {strides = array<i32>} : memref<200x892xf32, #tpu.memory_space<vmem>>, vector<8x892xf32>,
    %c0_87 = arith.constant 0 : index
    %c0_88 = arith.constant 0 : index
    %c132 = arith.constant 132 : index
    %77 = vector.load %arg0[%c0_87, %c0_88, %c132] : memref<2x8x1024xf32, #tpu.memory_space<vmem>>, vector<1x8x892xf32>
    %78 = vector.shape_cast %77 : vector<1x8x892xf32> to vector<8x892xf32>
    %c192 = arith.constant 192 : index
    %c0_89 = arith.constant 0 : index
    %79 = vector.load %arg13[%c192, %c0_89] : memref<200x892xf32, #tpu.memory_space<vmem>>, vector<8x892xf32>
    tpu.vector_store %arg13[%c192, %c0_89], %78 {strides = array<i32>} : memref<200x892xf32, #tpu.memory_space<vmem>>, vector<8x892xf32>,
    %c0_90 = arith.constant 0 : index
    %c0_91 = arith.constant 0 : index
    %80 = vector.load %arg13[%c0_90, %c0_91] : memref<200x892xf32, #tpu.memory_space<vmem>>, vector<200x892xf32>
    %cst = arith.constant dense<0.000000e+00> : vector<8x892xf32>
    %81 = tpu.matmul %0, %80, %cst {dimension_numbers = #tpu.dot_dimension_numbers<[1], [0], [0], [1], [0, 0, 1, 1], [], []>} : vector<8x200xf32>, vector<200x892xf32>, vector<8x892xf32> -> vector<8x892xf32>
    %82 = vector.broadcast %1 : vector<8x1xf32> to vector<8x892xf32>
    %83 = arith.addf %81, %82 : vector<8x892xf32>
    %cst_92 = arith.constant 0.000000e+00 : f32
    %84 = vector.broadcast %cst_92 : f32 to vector<8x892xf32>
    %85 = arith.maximumf %83, %84 : vector<8x892xf32>
    %86 = vector.extract_strided_slice %85 {offsets = [0, 0], sizes = [8, 891], strides = [1, 1]} : vector<8x892xf32> to vector<8x891xf32>
    %87 = vector.extract_strided_slice %85 {offsets = [0, 1], sizes = [8, 891], strides = [1, 1]} : vector<8x892xf32> to vector<8x891xf32>
    %88 = arith.maximumf %86, %87 : vector<8x891xf32>
    %89 = vector.extract_strided_slice %88 {offsets = [0, 0], sizes = [8, 859], strides = [1, 1]} : vector<8x891xf32> to vector<8x859xf32>
    %90 = vector.extract_strided_slice %88 {offsets = [0, 32], sizes = [8, 859], strides = [1, 1]} : vector<8x891xf32> to vector<8x859xf32>
    %91 = arith.maximumf %89, %90 : vector<8x859xf32>
    %92 = vector.extract_strided_slice %91 {offsets = [0, 0], sizes = [8, 595], strides = [1, 1]} : vector<8x859xf32> to vector<8x595xf32>
    %c0_93 = arith.constant 0 : index
    %c0_94 = arith.constant 0 : index
    %93 = vector.load %arg13[%c0_93, %c0_94] : memref<200x892xf32, #tpu.memory_space<vmem>>, vector<8x595xf32>
    tpu.vector_store %arg13[%c0_93, %c0_94], %92 {strides = array<i32>} : memref<200x892xf32, #tpu.memory_space<vmem>>, vector<8x595xf32>,
    %94 = vector.extract_strided_slice %91 {offsets = [0, 2], sizes = [8, 595], strides = [1, 1]} : vector<8x859xf32> to vector<8x595xf32>
    %c8_95 = arith.constant 8 : index
    %c0_96 = arith.constant 0 : index
    %95 = vector.load %arg13[%c8_95, %c0_96] : memref<200x892xf32, #tpu.memory_space<vmem>>, vector<8x595xf32>
    tpu.vector_store %arg13[%c8_95, %c0_96], %94 {strides = array<i32>} : memref<200x892xf32, #tpu.memory_space<vmem>>, vector<8x595xf32>,
    %96 = vector.extract_strided_slice %91 {offsets = [0, 4], sizes = [8, 595], strides = [1, 1]} : vector<8x859xf32> to vector<8x595xf32>
    %c16_97 = arith.constant 16 : index
    %c0_98 = arith.constant 0 : index
    %97 = vector.load %arg13[%c16_97, %c0_98] : memref<200x892xf32, #tpu.memory_space<vmem>>, vector<8x595xf32>
    tpu.vector_store %arg13[%c16_97, %c0_98], %96 {strides = array<i32>} : memref<200x892xf32, #tpu.memory_space<vmem>>, vector<8x595xf32>,
    %98 = vector.extract_strided_slice %91 {offsets = [0, 6], sizes = [8, 595], strides = [1, 1]} : vector<8x859xf32> to vector<8x595xf32>
    %c24_99 = arith.constant 24 : index
    %c0_100 = arith.constant 0 : index
    %99 = vector.load %arg13[%c24_99, %c0_100] : memref<200x892xf32, #tpu.memory_space<vmem>>, vector<8x595xf32>
    tpu.vector_store %arg13[%c24_99, %c0_100], %98 {strides = array<i32>} : memref<200x892xf32, #tpu.memory_space<vmem>>, vector<8x595xf32>,
    %100 = vector.extract_strided_slice %91 {offsets = [0, 8], sizes = [8, 595], strides = [1, 1]} : vector<8x859xf32> to vector<8x595xf32>
    %c32_101 = arith.constant 32 : index
    %c0_102 = arith.constant 0 : index
    %101 = vector.load %arg13[%c32_101, %c0_102] : memref<200x892xf32, #tpu.memory_space<vmem>>, vector<8x595xf32>
    tpu.vector_store %arg13[%c32_101, %c0_102], %100 {strides = array<i32>} : memref<200x892xf32, #tpu.memory_space<vmem>>, vector<8x595xf32>,
    %102 = vector.extract_strided_slice %91 {offsets = [0, 64], sizes = [8, 595], strides = [1, 1]} : vector<8x859xf32> to vector<8x595xf32>
    %c40_103 = arith.constant 40 : index
    %c0_104 = arith.constant 0 : index
    %103 = vector.load %arg13[%c40_103, %c0_104] : memref<200x892xf32, #tpu.memory_space<vmem>>, vector<8x595xf32>
    tpu.vector_store %arg13[%c40_103, %c0_104], %102 {strides = array<i32>} : memref<200x892xf32, #tpu.memory_space<vmem>>, vector<8x595xf32>,
    %104 = vector.extract_strided_slice %91 {offsets = [0, 66], sizes = [8, 595], strides = [1, 1]} : vector<8x859xf32> to vector<8x595xf32>
    %c48_105 = arith.constant 48 : index
    %c0_106 = arith.constant 0 : index
    %105 = vector.load %arg13[%c48_105, %c0_106] : memref<200x892xf32, #tpu.memory_space<vmem>>, vector<8x595xf32>
    tpu.vector_store %arg13[%c48_105, %c0_106], %104 {strides = array<i32>} : memref<200x892xf32, #tpu.memory_space<vmem>>, vector<8x595xf32>,
    %106 = vector.extract_strided_slice %91 {offsets = [0, 68], sizes = [8, 595], strides = [1, 1]} : vector<8x859xf32> to vector<8x595xf32>
    %c56_107 = arith.constant 56 : index
    %c0_108 = arith.constant 0 : index
    %107 = vector.load %arg13[%c56_107, %c0_108] : memref<200x892xf32, #tpu.memory_space<vmem>>, vector<8x595xf32>
    tpu.vector_store %arg13[%c56_107, %c0_108], %106 {strides = array<i32>} : memref<200x892xf32, #tpu.memory_space<vmem>>, vector<8x595xf32>,
    %108 = vector.extract_strided_slice %91 {offsets = [0, 70], sizes = [8, 595], strides = [1, 1]} : vector<8x859xf32> to vector<8x595xf32>
    %c64_109 = arith.constant 64 : index
    %c0_110 = arith.constant 0 : index
    %109 = vector.load %arg13[%c64_109, %c0_110] : memref<200x892xf32, #tpu.memory_space<vmem>>, vector<8x595xf32>
    tpu.vector_store %arg13[%c64_109, %c0_110], %108 {strides = array<i32>} : memref<200x892xf32, #tpu.memory_space<vmem>>, vector<8x595xf32>,
    %110 = vector.extract_strided_slice %91 {offsets = [0, 72], sizes = [8, 595], strides = [1, 1]} : vector<8x859xf32> to vector<8x595xf32>
    %c72_111 = arith.constant 72 : index
    %c0_112 = arith.constant 0 : index
    %111 = vector.load %arg13[%c72_111, %c0_112] : memref<200x892xf32, #tpu.memory_space<vmem>>, vector<8x595xf32>
    tpu.vector_store %arg13[%c72_111, %c0_112], %110 {strides = array<i32>} : memref<200x892xf32, #tpu.memory_space<vmem>>, vector<8x595xf32>,
    %112 = vector.extract_strided_slice %91 {offsets = [0, 128], sizes = [8, 595], strides = [1, 1]} : vector<8x859xf32> to vector<8x595xf32>
    %c80_113 = arith.constant 80 : index
    %c0_114 = arith.constant 0 : index
    %113 = vector.load %arg13[%c80_113, %c0_114] : memref<200x892xf32, #tpu.memory_space<vmem>>, vector<8x595xf32>
    tpu.vector_store %arg13[%c80_113, %c0_114], %112 {strides = array<i32>} : memref<200x892xf32, #tpu.memory_space<vmem>>, vector<8x595xf32>,
    %114 = vector.extract_strided_slice %91 {offsets = [0, 130], sizes = [8, 595], strides = [1, 1]} : vector<8x859xf32> to vector<8x595xf32>
    %c88_115 = arith.constant 88 : index
    %c0_116 = arith.constant 0 : index
    %115 = vector.load %arg13[%c88_115, %c0_116] : memref<200x892xf32, #tpu.memory_space<vmem>>, vector<8x595xf32>
    tpu.vector_store %arg13[%c88_115, %c0_116], %114 {strides = array<i32>} : memref<200x892xf32, #tpu.memory_space<vmem>>, vector<8x595xf32>,
    %116 = vector.extract_strided_slice %91 {offsets = [0, 132], sizes = [8, 595], strides = [1, 1]} : vector<8x859xf32> to vector<8x595xf32>
    %c96_117 = arith.constant 96 : index
    %c0_118 = arith.constant 0 : index
    %117 = vector.load %arg13[%c96_117, %c0_118] : memref<200x892xf32, #tpu.memory_space<vmem>>, vector<8x595xf32>
    tpu.vector_store %arg13[%c96_117, %c0_118], %116 {strides = array<i32>} : memref<200x892xf32, #tpu.memory_space<vmem>>, vector<8x595xf32>,
    %118 = vector.extract_strided_slice %91 {offsets = [0, 134], sizes = [8, 595], strides = [1, 1]} : vector<8x859xf32> to vector<8x595xf32>
    %c104_119 = arith.constant 104 : index
    %c0_120 = arith.constant 0 : index
    %119 = vector.load %arg13[%c104_119, %c0_120] : memref<200x892xf32, #tpu.memory_space<vmem>>, vector<8x595xf32>
    tpu.vector_store %arg13[%c104_119, %c0_120], %118 {strides = array<i32>} : memref<200x892xf32, #tpu.memory_space<vmem>>, vector<8x595xf32>,
    %120 = vector.extract_strided_slice %91 {offsets = [0, 136], sizes = [8, 595], strides = [1, 1]} : vector<8x859xf32> to vector<8x595xf32>
    %c112_121 = arith.constant 112 : index
    %c0_122 = arith.constant 0 : index
    %121 = vector.load %arg13[%c112_121, %c0_122] : memref<200x892xf32, #tpu.memory_space<vmem>>, vector<8x595xf32>
    tpu.vector_store %arg13[%c112_121, %c0_122], %120 {strides = array<i32>} : memref<200x892xf32, #tpu.memory_space<vmem>>, vector<8x595xf32>,
    %122 = vector.extract_strided_slice %91 {offsets = [0, 192], sizes = [8, 595], strides = [1, 1]} : vector<8x859xf32> to vector<8x595xf32>
    %c120_123 = arith.constant 120 : index
    %c0_124 = arith.constant 0 : index
    %123 = vector.load %arg13[%c120_123, %c0_124] : memref<200x892xf32, #tpu.memory_space<vmem>>, vector<8x595xf32>
    tpu.vector_store %arg13[%c120_123, %c0_124], %122 {strides = array<i32>} : memref<200x892xf32, #tpu.memory_space<vmem>>, vector<8x595xf32>,
    %124 = vector.extract_strided_slice %91 {offsets = [0, 194], sizes = [8, 595], strides = [1, 1]} : vector<8x859xf32> to vector<8x595xf32>
    %c128_125 = arith.constant 128 : index
    %c0_126 = arith.constant 0 : index
    %125 = vector.load %arg13[%c128_125, %c0_126] : memref<200x892xf32, #tpu.memory_space<vmem>>, vector<8x595xf32>
    tpu.vector_store %arg13[%c128_125, %c0_126], %124 {strides = array<i32>} : memref<200x892xf32, #tpu.memory_space<vmem>>, vector<8x595xf32>,
    %126 = vector.extract_strided_slice %91 {offsets = [0, 196], sizes = [8, 595], strides = [1, 1]} : vector<8x859xf32> to vector<8x595xf32>
    %c136_127 = arith.constant 136 : index
    %c0_128 = arith.constant 0 : index
    %127 = vector.load %arg13[%c136_127, %c0_128] : memref<200x892xf32, #tpu.memory_space<vmem>>, vector<8x595xf32>
    tpu.vector_store %arg13[%c136_127, %c0_128], %126 {strides = array<i32>} : memref<200x892xf32, #tpu.memory_space<vmem>>, vector<8x595xf32>,
    %128 = vector.extract_strided_slice %91 {offsets = [0, 198], sizes = [8, 595], strides = [1, 1]} : vector<8x859xf32> to vector<8x595xf32>
    %c144_129 = arith.constant 144 : index
    %c0_130 = arith.constant 0 : index
    %129 = vector.load %arg13[%c144_129, %c0_130] : memref<200x892xf32, #tpu.memory_space<vmem>>, vector<8x595xf32>
    tpu.vector_store %arg13[%c144_129, %c0_130], %128 {strides = array<i32>} : memref<200x892xf32, #tpu.memory_space<vmem>>, vector<8x595xf32>,
    %130 = vector.extract_strided_slice %91 {offsets = [0, 200], sizes = [8, 595], strides = [1, 1]} : vector<8x859xf32> to vector<8x595xf32>
    %c152_131 = arith.constant 152 : index
    %c0_132 = arith.constant 0 : index
    %131 = vector.load %arg13[%c152_131, %c0_132] : memref<200x892xf32, #tpu.memory_space<vmem>>, vector<8x595xf32>
    tpu.vector_store %arg13[%c152_131, %c0_132], %130 {strides = array<i32>} : memref<200x892xf32, #tpu.memory_space<vmem>>, vector<8x595xf32>,
    %132 = vector.extract_strided_slice %91 {offsets = [0, 256], sizes = [8, 595], strides = [1, 1]} : vector<8x859xf32> to vector<8x595xf32>
    %c160_133 = arith.constant 160 : index
    %c0_134 = arith.constant 0 : index
    %133 = vector.load %arg13[%c160_133, %c0_134] : memref<200x892xf32, #tpu.memory_space<vmem>>, vector<8x595xf32>
    tpu.vector_store %arg13[%c160_133, %c0_134], %132 {strides = array<i32>} : memref<200x892xf32, #tpu.memory_space<vmem>>, vector<8x595xf32>,
    %134 = vector.extract_strided_slice %91 {offsets = [0, 258], sizes = [8, 595], strides = [1, 1]} : vector<8x859xf32> to vector<8x595xf32>
    %c168_135 = arith.constant 168 : index
    %c0_136 = arith.constant 0 : index
    %135 = vector.load %arg13[%c168_135, %c0_136] : memref<200x892xf32, #tpu.memory_space<vmem>>, vector<8x595xf32>
    tpu.vector_store %arg13[%c168_135, %c0_136], %134 {strides = array<i32>} : memref<200x892xf32, #tpu.memory_space<vmem>>, vector<8x595xf32>,
    %136 = vector.extract_strided_slice %91 {offsets = [0, 260], sizes = [8, 595], strides = [1, 1]} : vector<8x859xf32> to vector<8x595xf32>
    %c176_137 = arith.constant 176 : index
    %c0_138 = arith.constant 0 : index
    %137 = vector.load %arg13[%c176_137, %c0_138] : memref<200x892xf32, #tpu.memory_space<vmem>>, vector<8x595xf32>
    tpu.vector_store %arg13[%c176_137, %c0_138], %136 {strides = array<i32>} : memref<200x892xf32, #tpu.memory_space<vmem>>, vector<8x595xf32>,
    %138 = vector.extract_strided_slice %91 {offsets = [0, 262], sizes = [8, 595], strides = [1, 1]} : vector<8x859xf32> to vector<8x595xf32>
    %c184_139 = arith.constant 184 : index
    %c0_140 = arith.constant 0 : index
    %139 = vector.load %arg13[%c184_139, %c0_140] : memref<200x892xf32, #tpu.memory_space<vmem>>, vector<8x595xf32>
    tpu.vector_store %arg13[%c184_139, %c0_140], %138 {strides = array<i32>} : memref<200x892xf32, #tpu.memory_space<vmem>>, vector<8x595xf32>,
    %140 = vector.extract_strided_slice %91 {offsets = [0, 264], sizes = [8, 595], strides = [1, 1]} : vector<8x859xf32> to vector<8x595xf32>
    %c192_141 = arith.constant 192 : index
    %c0_142 = arith.constant 0 : index
    %141 = vector.load %arg13[%c192_141, %c0_142] : memref<200x892xf32, #tpu.memory_space<vmem>>, vector<8x595xf32>
    tpu.vector_store %arg13[%c192_141, %c0_142], %140 {strides = array<i32>} : memref<200x892xf32, #tpu.memory_space<vmem>>, vector<8x595xf32>,
    %c0_143 = arith.constant 0 : index
    %c0_144 = arith.constant 0 : index
    %142 = vector.load %arg13[%c0_143, %c0_144] : memref<200x892xf32, #tpu.memory_space<vmem>>, vector<200x595xf32>
    %cst_145 = arith.constant dense<0.000000e+00> : vector<16x595xf32>
    %143 = tpu.matmul %2, %142, %cst_145 {dimension_numbers = #tpu.dot_dimension_numbers<[1], [0], [0], [1], [0, 0, 1, 1], [], []>} : vector<16x200xf32>, vector<200x595xf32>, vector<16x595xf32> -> vector<16x595xf32>
    %144 = vector.broadcast %3 : vector<16x1xf32> to vector<16x595xf32>
    %145 = arith.addf %143, %144 : vector<16x595xf32>
    %cst_146 = arith.constant 0.000000e+00 : f32
    %146 = vector.broadcast %cst_146 : f32 to vector<16x595xf32>
    %147 = arith.maximumf %145, %146 : vector<16x595xf32>
    %148 = vector.extract_strided_slice %147 {offsets = [0, 0], sizes = [16, 593], strides = [1, 1]} : vector<16x595xf32> to vector<16x593xf32>
    %149 = vector.extract_strided_slice %147 {offsets = [0, 2], sizes = [16, 593], strides = [1, 1]} : vector<16x595xf32> to vector<16x593xf32>
    %150 = arith.maximumf %148, %149 : vector<16x593xf32>
    %151 = vector.extract_strided_slice %150 {offsets = [0, 0], sizes = [16, 529], strides = [1, 1]} : vector<16x593xf32> to vector<16x529xf32>
    %152 = vector.extract_strided_slice %150 {offsets = [0, 64], sizes = [16, 529], strides = [1, 1]} : vector<16x593xf32> to vector<16x529xf32>
    %153 = arith.maximumf %151, %152 : vector<16x529xf32>
    %cst_147 = arith.constant dense<0.000000e+00> : vector<16x32xf32>
    %154 = tpu.matmul %153, %4, %cst_147 {dimension_numbers = #tpu.dot_dimension_numbers<[1], [0], [0], [1], [0, 0, 1, 1], [], []>} : vector<16x529xf32>, vector<529x32xf32>, vector<16x32xf32> -> vector<16x32xf32>
    %c0_148 = arith.constant 0 : index
    %c0_149 = arith.constant 0 : index
    %155 = vector.load %arg7[%c0_148, %c0_149] : memref<1x120xf32, #tpu.memory_space<vmem>>, vector<1x120xf32>
    %156 = vector.extract_strided_slice %154 {offsets = [0, 0], sizes = [1, 32], strides = [1, 1]} : vector<16x32xf32> to vector<1x32xf32>
    %c0_150 = arith.constant 0 : index
    %c0_151 = arith.constant 0 : index
    %c0_152 = arith.constant 0 : index
    %157 = vector.load %arg6[%c0_150, %c0_151, %c0_152] : memref<16x32x120xf32, #tpu.memory_space<vmem>>, vector<1x32x120xf32>
    %158 = vector.shape_cast %157 : vector<1x32x120xf32> to vector<32x120xf32>
    %cst_153 = arith.constant dense<0.000000e+00> : vector<1x120xf32>
    %159 = tpu.matmul %156, %158, %cst_153 {dimension_numbers = #tpu.dot_dimension_numbers<[1], [0], [0], [1], [0, 0, 1, 1], [], []>} : vector<1x32xf32>, vector<32x120xf32>, vector<1x120xf32> -> vector<1x120xf32>
    %160 = arith.addf %155, %159 : vector<1x120xf32>
    %161 = vector.extract_strided_slice %154 {offsets = [1, 0], sizes = [1, 32], strides = [1, 1]} : vector<16x32xf32> to vector<1x32xf32>
    %c1_154 = arith.constant 1 : index
    %c0_155 = arith.constant 0 : index
    %c0_156 = arith.constant 0 : index
    %162 = vector.load %arg6[%c1_154, %c0_155, %c0_156] : memref<16x32x120xf32, #tpu.memory_space<vmem>>, vector<1x32x120xf32>
    %163 = vector.shape_cast %162 : vector<1x32x120xf32> to vector<32x120xf32>
    %cst_157 = arith.constant dense<0.000000e+00> : vector<1x120xf32>
    %164 = tpu.matmul %161, %163, %cst_157 {dimension_numbers = #tpu.dot_dimension_numbers<[1], [0], [0], [1], [0, 0, 1, 1], [], []>} : vector<1x32xf32>, vector<32x120xf32>, vector<1x120xf32> -> vector<1x120xf32>
    %165 = arith.addf %160, %164 : vector<1x120xf32>
    %166 = vector.extract_strided_slice %154 {offsets = [2, 0], sizes = [1, 32], strides = [1, 1]} : vector<16x32xf32> to vector<1x32xf32>
    %c2_158 = arith.constant 2 : index
    %c0_159 = arith.constant 0 : index
    %c0_160 = arith.constant 0 : index
    %167 = vector.load %arg6[%c2_158, %c0_159, %c0_160] : memref<16x32x120xf32, #tpu.memory_space<vmem>>, vector<1x32x120xf32>
    %168 = vector.shape_cast %167 : vector<1x32x120xf32> to vector<32x120xf32>
    %cst_161 = arith.constant dense<0.000000e+00> : vector<1x120xf32>
    %169 = tpu.matmul %166, %168, %cst_161 {dimension_numbers = #tpu.dot_dimension_numbers<[1], [0], [0], [1], [0, 0, 1, 1], [], []>} : vector<1x32xf32>, vector<32x120xf32>, vector<1x120xf32> -> vector<1x120xf32>
    %170 = arith.addf %165, %169 : vector<1x120xf32>
    %171 = vector.extract_strided_slice %154 {offsets = [3, 0], sizes = [1, 32], strides = [1, 1]} : vector<16x32xf32> to vector<1x32xf32>
    %c3_162 = arith.constant 3 : index
    %c0_163 = arith.constant 0 : index
    %c0_164 = arith.constant 0 : index
    %172 = vector.load %arg6[%c3_162, %c0_163, %c0_164] : memref<16x32x120xf32, #tpu.memory_space<vmem>>, vector<1x32x120xf32>
    %173 = vector.shape_cast %172 : vector<1x32x120xf32> to vector<32x120xf32>
    %cst_165 = arith.constant dense<0.000000e+00> : vector<1x120xf32>
    %174 = tpu.matmul %171, %173, %cst_165 {dimension_numbers = #tpu.dot_dimension_numbers<[1], [0], [0], [1], [0, 0, 1, 1], [], []>} : vector<1x32xf32>, vector<32x120xf32>, vector<1x120xf32> -> vector<1x120xf32>
    %175 = arith.addf %170, %174 : vector<1x120xf32>
    %176 = vector.extract_strided_slice %154 {offsets = [4, 0], sizes = [1, 32], strides = [1, 1]} : vector<16x32xf32> to vector<1x32xf32>
    %c4_166 = arith.constant 4 : index
    %c0_167 = arith.constant 0 : index
    %c0_168 = arith.constant 0 : index
    %177 = vector.load %arg6[%c4_166, %c0_167, %c0_168] : memref<16x32x120xf32, #tpu.memory_space<vmem>>, vector<1x32x120xf32>
    %178 = vector.shape_cast %177 : vector<1x32x120xf32> to vector<32x120xf32>
    %cst_169 = arith.constant dense<0.000000e+00> : vector<1x120xf32>
    %179 = tpu.matmul %176, %178, %cst_169 {dimension_numbers = #tpu.dot_dimension_numbers<[1], [0], [0], [1], [0, 0, 1, 1], [], []>} : vector<1x32xf32>, vector<32x120xf32>, vector<1x120xf32> -> vector<1x120xf32>
    %180 = arith.addf %175, %179 : vector<1x120xf32>
    %181 = vector.extract_strided_slice %154 {offsets = [5, 0], sizes = [1, 32], strides = [1, 1]} : vector<16x32xf32> to vector<1x32xf32>
    %c5 = arith.constant 5 : index
    %c0_170 = arith.constant 0 : index
    %c0_171 = arith.constant 0 : index
    %182 = vector.load %arg6[%c5, %c0_170, %c0_171] : memref<16x32x120xf32, #tpu.memory_space<vmem>>, vector<1x32x120xf32>
    %183 = vector.shape_cast %182 : vector<1x32x120xf32> to vector<32x120xf32>
    %cst_172 = arith.constant dense<0.000000e+00> : vector<1x120xf32>
    %184 = tpu.matmul %181, %183, %cst_172 {dimension_numbers = #tpu.dot_dimension_numbers<[1], [0], [0], [1], [0, 0, 1, 1], [], []>} : vector<1x32xf32>, vector<32x120xf32>, vector<1x120xf32> -> vector<1x120xf32>
    %185 = arith.addf %180, %184 : vector<1x120xf32>
    %186 = vector.extract_strided_slice %154 {offsets = [6, 0], sizes = [1, 32], strides = [1, 1]} : vector<16x32xf32> to vector<1x32xf32>
    %c6 = arith.constant 6 : index
    %c0_173 = arith.constant 0 : index
    %c0_174 = arith.constant 0 : index
    %187 = vector.load %arg6[%c6, %c0_173, %c0_174] : memref<16x32x120xf32, #tpu.memory_space<vmem>>, vector<1x32x120xf32>
    %188 = vector.shape_cast %187 : vector<1x32x120xf32> to vector<32x120xf32>
    %cst_175 = arith.constant dense<0.000000e+00> : vector<1x120xf32>
    %189 = tpu.matmul %186, %188, %cst_175 {dimension_numbers = #tpu.dot_dimension_numbers<[1], [0], [0], [1], [0, 0, 1, 1], [], []>} : vector<1x32xf32>, vector<32x120xf32>, vector<1x120xf32> -> vector<1x120xf32>
    %190 = arith.addf %185, %189 : vector<1x120xf32>
    %191 = vector.extract_strided_slice %154 {offsets = [7, 0], sizes = [1, 32], strides = [1, 1]} : vector<16x32xf32> to vector<1x32xf32>
    %c7 = arith.constant 7 : index
    %c0_176 = arith.constant 0 : index
    %c0_177 = arith.constant 0 : index
    %192 = vector.load %arg6[%c7, %c0_176, %c0_177] : memref<16x32x120xf32, #tpu.memory_space<vmem>>, vector<1x32x120xf32>
    %193 = vector.shape_cast %192 : vector<1x32x120xf32> to vector<32x120xf32>
    %cst_178 = arith.constant dense<0.000000e+00> : vector<1x120xf32>
    %194 = tpu.matmul %191, %193, %cst_178 {dimension_numbers = #tpu.dot_dimension_numbers<[1], [0], [0], [1], [0, 0, 1, 1], [], []>} : vector<1x32xf32>, vector<32x120xf32>, vector<1x120xf32> -> vector<1x120xf32>
    %195 = arith.addf %190, %194 : vector<1x120xf32>
    %196 = vector.extract_strided_slice %154 {offsets = [8, 0], sizes = [1, 32], strides = [1, 1]} : vector<16x32xf32> to vector<1x32xf32>
    %c8_179 = arith.constant 8 : index
    %c0_180 = arith.constant 0 : index
    %c0_181 = arith.constant 0 : index
    %197 = vector.load %arg6[%c8_179, %c0_180, %c0_181] : memref<16x32x120xf32, #tpu.memory_space<vmem>>, vector<1x32x120xf32>
    %198 = vector.shape_cast %197 : vector<1x32x120xf32> to vector<32x120xf32>
    %cst_182 = arith.constant dense<0.000000e+00> : vector<1x120xf32>
    %199 = tpu.matmul %196, %198, %cst_182 {dimension_numbers = #tpu.dot_dimension_numbers<[1], [0], [0], [1], [0, 0, 1, 1], [], []>} : vector<1x32xf32>, vector<32x120xf32>, vector<1x120xf32> -> vector<1x120xf32>
    %200 = arith.addf %195, %199 : vector<1x120xf32>
    %201 = vector.extract_strided_slice %154 {offsets = [9, 0], sizes = [1, 32], strides = [1, 1]} : vector<16x32xf32> to vector<1x32xf32>
    %c9 = arith.constant 9 : index
    %c0_183 = arith.constant 0 : index
    %c0_184 = arith.constant 0 : index
    %202 = vector.load %arg6[%c9, %c0_183, %c0_184] : memref<16x32x120xf32, #tpu.memory_space<vmem>>, vector<1x32x120xf32>
    %203 = vector.shape_cast %202 : vector<1x32x120xf32> to vector<32x120xf32>
    %cst_185 = arith.constant dense<0.000000e+00> : vector<1x120xf32>
    %204 = tpu.matmul %201, %203, %cst_185 {dimension_numbers = #tpu.dot_dimension_numbers<[1], [0], [0], [1], [0, 0, 1, 1], [], []>} : vector<1x32xf32>, vector<32x120xf32>, vector<1x120xf32> -> vector<1x120xf32>
    %205 = arith.addf %200, %204 : vector<1x120xf32>
    %206 = vector.extract_strided_slice %154 {offsets = [10, 0], sizes = [1, 32], strides = [1, 1]} : vector<16x32xf32> to vector<1x32xf32>
    %c10 = arith.constant 10 : index
    %c0_186 = arith.constant 0 : index
    %c0_187 = arith.constant 0 : index
    %207 = vector.load %arg6[%c10, %c0_186, %c0_187] : memref<16x32x120xf32, #tpu.memory_space<vmem>>, vector<1x32x120xf32>
    %208 = vector.shape_cast %207 : vector<1x32x120xf32> to vector<32x120xf32>
    %cst_188 = arith.constant dense<0.000000e+00> : vector<1x120xf32>
    %209 = tpu.matmul %206, %208, %cst_188 {dimension_numbers = #tpu.dot_dimension_numbers<[1], [0], [0], [1], [0, 0, 1, 1], [], []>} : vector<1x32xf32>, vector<32x120xf32>, vector<1x120xf32> -> vector<1x120xf32>
    %210 = arith.addf %205, %209 : vector<1x120xf32>
    %211 = vector.extract_strided_slice %154 {offsets = [11, 0], sizes = [1, 32], strides = [1, 1]} : vector<16x32xf32> to vector<1x32xf32>
    %c11 = arith.constant 11 : index
    %c0_189 = arith.constant 0 : index
    %c0_190 = arith.constant 0 : index
    %212 = vector.load %arg6[%c11, %c0_189, %c0_190] : memref<16x32x120xf32, #tpu.memory_space<vmem>>, vector<1x32x120xf32>
    %213 = vector.shape_cast %212 : vector<1x32x120xf32> to vector<32x120xf32>
    %cst_191 = arith.constant dense<0.000000e+00> : vector<1x120xf32>
    %214 = tpu.matmul %211, %213, %cst_191 {dimension_numbers = #tpu.dot_dimension_numbers<[1], [0], [0], [1], [0, 0, 1, 1], [], []>} : vector<1x32xf32>, vector<32x120xf32>, vector<1x120xf32> -> vector<1x120xf32>
    %215 = arith.addf %210, %214 : vector<1x120xf32>
    %216 = vector.extract_strided_slice %154 {offsets = [12, 0], sizes = [1, 32], strides = [1, 1]} : vector<16x32xf32> to vector<1x32xf32>
    %c12 = arith.constant 12 : index
    %c0_192 = arith.constant 0 : index
    %c0_193 = arith.constant 0 : index
    %217 = vector.load %arg6[%c12, %c0_192, %c0_193] : memref<16x32x120xf32, #tpu.memory_space<vmem>>, vector<1x32x120xf32>
    %218 = vector.shape_cast %217 : vector<1x32x120xf32> to vector<32x120xf32>
    %cst_194 = arith.constant dense<0.000000e+00> : vector<1x120xf32>
    %219 = tpu.matmul %216, %218, %cst_194 {dimension_numbers = #tpu.dot_dimension_numbers<[1], [0], [0], [1], [0, 0, 1, 1], [], []>} : vector<1x32xf32>, vector<32x120xf32>, vector<1x120xf32> -> vector<1x120xf32>
    %220 = arith.addf %215, %219 : vector<1x120xf32>
    %221 = vector.extract_strided_slice %154 {offsets = [13, 0], sizes = [1, 32], strides = [1, 1]} : vector<16x32xf32> to vector<1x32xf32>
    %c13 = arith.constant 13 : index
    %c0_195 = arith.constant 0 : index
    %c0_196 = arith.constant 0 : index
    %222 = vector.load %arg6[%c13, %c0_195, %c0_196] : memref<16x32x120xf32, #tpu.memory_space<vmem>>, vector<1x32x120xf32>
    %223 = vector.shape_cast %222 : vector<1x32x120xf32> to vector<32x120xf32>
    %cst_197 = arith.constant dense<0.000000e+00> : vector<1x120xf32>
    %224 = tpu.matmul %221, %223, %cst_197 {dimension_numbers = #tpu.dot_dimension_numbers<[1], [0], [0], [1], [0, 0, 1, 1], [], []>} : vector<1x32xf32>, vector<32x120xf32>, vector<1x120xf32> -> vector<1x120xf32>
    %225 = arith.addf %220, %224 : vector<1x120xf32>
    %226 = vector.extract_strided_slice %154 {offsets = [14, 0], sizes = [1, 32], strides = [1, 1]} : vector<16x32xf32> to vector<1x32xf32>
    %c14 = arith.constant 14 : index
    %c0_198 = arith.constant 0 : index
    %c0_199 = arith.constant 0 : index
    %227 = vector.load %arg6[%c14, %c0_198, %c0_199] : memref<16x32x120xf32, #tpu.memory_space<vmem>>, vector<1x32x120xf32>
    %228 = vector.shape_cast %227 : vector<1x32x120xf32> to vector<32x120xf32>
    %cst_200 = arith.constant dense<0.000000e+00> : vector<1x120xf32>
    %229 = tpu.matmul %226, %228, %cst_200 {dimension_numbers = #tpu.dot_dimension_numbers<[1], [0], [0], [1], [0, 0, 1, 1], [], []>} : vector<1x32xf32>, vector<32x120xf32>, vector<1x120xf32> -> vector<1x120xf32>
    %230 = arith.addf %225, %229 : vector<1x120xf32>
    %231 = vector.extract_strided_slice %154 {offsets = [15, 0], sizes = [1, 32], strides = [1, 1]} : vector<16x32xf32> to vector<1x32xf32>
    %c15 = arith.constant 15 : index
    %c0_201 = arith.constant 0 : index
    %c0_202 = arith.constant 0 : index
    %232 = vector.load %arg6[%c15, %c0_201, %c0_202] : memref<16x32x120xf32, #tpu.memory_space<vmem>>, vector<1x32x120xf32>
    %233 = vector.shape_cast %232 : vector<1x32x120xf32> to vector<32x120xf32>
    %cst_203 = arith.constant dense<0.000000e+00> : vector<1x120xf32>
    %234 = tpu.matmul %231, %233, %cst_203 {dimension_numbers = #tpu.dot_dimension_numbers<[1], [0], [0], [1], [0, 0, 1, 1], [], []>} : vector<1x32xf32>, vector<32x120xf32>, vector<1x120xf32> -> vector<1x120xf32>
    %235 = arith.addf %230, %234 : vector<1x120xf32>
    %cst_204 = arith.constant 0.000000e+00 : f32
    %236 = vector.broadcast %cst_204 : f32 to vector<1x120xf32>
    %237 = arith.maximumf %235, %236 : vector<1x120xf32>
    %c0_205 = arith.constant 0 : index
    %c0_206 = arith.constant 0 : index
    %238 = vector.load %arg8[%c0_205, %c0_206] : memref<120x84xf32, #tpu.memory_space<vmem>>, vector<120x84xf32>
    %cst_207 = arith.constant dense<0.000000e+00> : vector<1x84xf32>
    %239 = tpu.matmul %237, %238, %cst_207 {dimension_numbers = #tpu.dot_dimension_numbers<[1], [0], [0], [1], [0, 0, 1, 1], [], []>} : vector<1x120xf32>, vector<120x84xf32>, vector<1x84xf32> -> vector<1x84xf32>
    %c0_208 = arith.constant 0 : index
    %c0_209 = arith.constant 0 : index
    %240 = vector.load %arg9[%c0_208, %c0_209] : memref<1x84xf32, #tpu.memory_space<vmem>>, vector<1x84xf32>
    %241 = arith.addf %239, %240 : vector<1x84xf32>
    %cst_210 = arith.constant 0.000000e+00 : f32
    %242 = vector.broadcast %cst_210 : f32 to vector<1x84xf32>
    %243 = arith.maximumf %241, %242 : vector<1x84xf32>
    %c0_211 = arith.constant 0 : index
    %c0_212 = arith.constant 0 : index
    %244 = vector.load %arg10[%c0_211, %c0_212] : memref<84x10xf32, #tpu.memory_space<vmem>>, vector<84x10xf32>
    %cst_213 = arith.constant dense<0.000000e+00> : vector<1x10xf32>
    %245 = tpu.matmul %243, %244, %cst_213 {dimension_numbers = #tpu.dot_dimension_numbers<[1], [0], [0], [1], [0, 0, 1, 1], [], []>} : vector<1x84xf32>, vector<84x10xf32>, vector<1x10xf32> -> vector<1x10xf32>
    %c0_214 = arith.constant 0 : index
    %c0_215 = arith.constant 0 : index
    %246 = vector.load %arg11[%c0_214, %c0_215] : memref<1x10xf32, #tpu.memory_space<vmem>>, vector<1x10xf32>
    %247 = arith.addf %245, %246 : vector<1x10xf32>
    %248 = vector.shape_cast %247 : vector<1x10xf32> to vector<10xf32>
    %c0_216 = arith.constant 0 : index
    %c0_217 = arith.constant 0 : index
    %249 = vector.load %arg12[%c0_216, %c0_217] : memref<2x10xf32, #tpu.memory_space<vmem>>, vector<1x10xf32>
    %250 = vector.shape_cast %249 : vector<1x10xf32> to vector<10xf32>
    %251 = vector.shape_cast %248 : vector<10xf32> to vector<1x10xf32>
    tpu.vector_store %arg12[%c0_216, %c0_217], %251 {strides = array<i32>} : memref<2x10xf32, #tpu.memory_space<vmem>>, vector<1x10xf32>,
    %c1_218 = arith.constant 1 : index
    %c0_219 = arith.constant 0 : index
    %c0_220 = arith.constant 0 : index
    %252 = vector.load %arg0[%c1_218, %c0_219, %c0_220] : memref<2x8x1024xf32, #tpu.memory_space<vmem>>, vector<1x8x892xf32>
    %253 = vector.shape_cast %252 : vector<1x8x892xf32> to vector<8x892xf32>
    %c0_221 = arith.constant 0 : index
    %c0_222 = arith.constant 0 : index
    %254 = vector.load %arg13[%c0_221, %c0_222] : memref<200x892xf32, #tpu.memory_space<vmem>>, vector<8x892xf32>
    tpu.vector_store %arg13[%c0_221, %c0_222], %253 {strides = array<i32>} : memref<200x892xf32, #tpu.memory_space<vmem>>, vector<8x892xf32>,
    %c1_223 = arith.constant 1 : index
    %c0_224 = arith.constant 0 : index
    %c1_225 = arith.constant 1 : index
    %255 = vector.load %arg0[%c1_223, %c0_224, %c1_225] : memref<2x8x1024xf32, #tpu.memory_space<vmem>>, vector<1x8x892xf32>
    %256 = vector.shape_cast %255 : vector<1x8x892xf32> to vector<8x892xf32>
    %c8_226 = arith.constant 8 : index
    %c0_227 = arith.constant 0 : index
    %257 = vector.load %arg13[%c8_226, %c0_227] : memref<200x892xf32, #tpu.memory_space<vmem>>, vector<8x892xf32>
    tpu.vector_store %arg13[%c8_226, %c0_227], %256 {strides = array<i32>} : memref<200x892xf32, #tpu.memory_space<vmem>>, vector<8x892xf32>,
    %c1_228 = arith.constant 1 : index
    %c0_229 = arith.constant 0 : index
    %c2_230 = arith.constant 2 : index
    %258 = vector.load %arg0[%c1_228, %c0_229, %c2_230] : memref<2x8x1024xf32, #tpu.memory_space<vmem>>, vector<1x8x892xf32>
    %259 = vector.shape_cast %258 : vector<1x8x892xf32> to vector<8x892xf32>
    %c16_231 = arith.constant 16 : index
    %c0_232 = arith.constant 0 : index
    %260 = vector.load %arg13[%c16_231, %c0_232] : memref<200x892xf32, #tpu.memory_space<vmem>>, vector<8x892xf32>
    tpu.vector_store %arg13[%c16_231, %c0_232], %259 {strides = array<i32>} : memref<200x892xf32, #tpu.memory_space<vmem>>, vector<8x892xf32>,
    %c1_233 = arith.constant 1 : index
    %c0_234 = arith.constant 0 : index
    %c3_235 = arith.constant 3 : index
    %261 = vector.load %arg0[%c1_233, %c0_234, %c3_235] : memref<2x8x1024xf32, #tpu.memory_space<vmem>>, vector<1x8x892xf32>
    %262 = vector.shape_cast %261 : vector<1x8x892xf32> to vector<8x892xf32>
    %c24_236 = arith.constant 24 : index
    %c0_237 = arith.constant 0 : index
    %263 = vector.load %arg13[%c24_236, %c0_237] : memref<200x892xf32, #tpu.memory_space<vmem>>, vector<8x892xf32>
    tpu.vector_store %arg13[%c24_236, %c0_237], %262 {strides = array<i32>} : memref<200x892xf32, #tpu.memory_space<vmem>>, vector<8x892xf32>,
    %c1_238 = arith.constant 1 : index
    %c0_239 = arith.constant 0 : index
    %c4_240 = arith.constant 4 : index
    %264 = vector.load %arg0[%c1_238, %c0_239, %c4_240] : memref<2x8x1024xf32, #tpu.memory_space<vmem>>, vector<1x8x892xf32>
    %265 = vector.shape_cast %264 : vector<1x8x892xf32> to vector<8x892xf32>
    %c32_241 = arith.constant 32 : index
    %c0_242 = arith.constant 0 : index
    %266 = vector.load %arg13[%c32_241, %c0_242] : memref<200x892xf32, #tpu.memory_space<vmem>>, vector<8x892xf32>
    tpu.vector_store %arg13[%c32_241, %c0_242], %265 {strides = array<i32>} : memref<200x892xf32, #tpu.memory_space<vmem>>, vector<8x892xf32>,
    %c1_243 = arith.constant 1 : index
    %c0_244 = arith.constant 0 : index
    %c32_245 = arith.constant 32 : index
    %267 = vector.load %arg0[%c1_243, %c0_244, %c32_245] : memref<2x8x1024xf32, #tpu.memory_space<vmem>>, vector<1x8x892xf32>
    %268 = vector.shape_cast %267 : vector<1x8x892xf32> to vector<8x892xf32>
    %c40_246 = arith.constant 40 : index
    %c0_247 = arith.constant 0 : index
    %269 = vector.load %arg13[%c40_246, %c0_247] : memref<200x892xf32, #tpu.memory_space<vmem>>, vector<8x892xf32>
    tpu.vector_store %arg13[%c40_246, %c0_247], %268 {strides = array<i32>} : memref<200x892xf32, #tpu.memory_space<vmem>>, vector<8x892xf32>,
    %c1_248 = arith.constant 1 : index
    %c0_249 = arith.constant 0 : index
    %c33_250 = arith.constant 33 : index
    %270 = vector.load %arg0[%c1_248, %c0_249, %c33_250] : memref<2x8x1024xf32, #tpu.memory_space<vmem>>, vector<1x8x892xf32>
    %271 = vector.shape_cast %270 : vector<1x8x892xf32> to vector<8x892xf32>
    %c48_251 = arith.constant 48 : index
    %c0_252 = arith.constant 0 : index
    %272 = vector.load %arg13[%c48_251, %c0_252] : memref<200x892xf32, #tpu.memory_space<vmem>>, vector<8x892xf32>
    tpu.vector_store %arg13[%c48_251, %c0_252], %271 {strides = array<i32>} : memref<200x892xf32, #tpu.memory_space<vmem>>, vector<8x892xf32>,
    %c1_253 = arith.constant 1 : index
    %c0_254 = arith.constant 0 : index
    %c34_255 = arith.constant 34 : index
    %273 = vector.load %arg0[%c1_253, %c0_254, %c34_255] : memref<2x8x1024xf32, #tpu.memory_space<vmem>>, vector<1x8x892xf32>
    %274 = vector.shape_cast %273 : vector<1x8x892xf32> to vector<8x892xf32>
    %c56_256 = arith.constant 56 : index
    %c0_257 = arith.constant 0 : index
    %275 = vector.load %arg13[%c56_256, %c0_257] : memref<200x892xf32, #tpu.memory_space<vmem>>, vector<8x892xf32>
    tpu.vector_store %arg13[%c56_256, %c0_257], %274 {strides = array<i32>} : memref<200x892xf32, #tpu.memory_space<vmem>>, vector<8x892xf32>,
    %c1_258 = arith.constant 1 : index
    %c0_259 = arith.constant 0 : index
    %c35_260 = arith.constant 35 : index
    %276 = vector.load %arg0[%c1_258, %c0_259, %c35_260] : memref<2x8x1024xf32, #tpu.memory_space<vmem>>, vector<1x8x892xf32>
    %277 = vector.shape_cast %276 : vector<1x8x892xf32> to vector<8x892xf32>
    %c64_261 = arith.constant 64 : index
    %c0_262 = arith.constant 0 : index
    %278 = vector.load %arg13[%c64_261, %c0_262] : memref<200x892xf32, #tpu.memory_space<vmem>>, vector<8x892xf32>
    tpu.vector_store %arg13[%c64_261, %c0_262], %277 {strides = array<i32>} : memref<200x892xf32, #tpu.memory_space<vmem>>, vector<8x892xf32>,
    %c1_263 = arith.constant 1 : index
    %c0_264 = arith.constant 0 : index
    %c36_265 = arith.constant 36 : index
    %279 = vector.load %arg0[%c1_263, %c0_264, %c36_265] : memref<2x8x1024xf32, #tpu.memory_space<vmem>>, vector<1x8x892xf32>
    %280 = vector.shape_cast %279 : vector<1x8x892xf32> to vector<8x892xf32>
    %c72_266 = arith.constant 72 : index
    %c0_267 = arith.constant 0 : index
    %281 = vector.load %arg13[%c72_266, %c0_267] : memref<200x892xf32, #tpu.memory_space<vmem>>, vector<8x892xf32>
    tpu.vector_store %arg13[%c72_266, %c0_267], %280 {strides = array<i32>} : memref<200x892xf32, #tpu.memory_space<vmem>>, vector<8x892xf32>,
    %c1_268 = arith.constant 1 : index
    %c0_269 = arith.constant 0 : index
    %c64_270 = arith.constant 64 : index
    %282 = vector.load %arg0[%c1_268, %c0_269, %c64_270] : memref<2x8x1024xf32, #tpu.memory_space<vmem>>, vector<1x8x892xf32>
    %283 = vector.shape_cast %282 : vector<1x8x892xf32> to vector<8x892xf32>
    %c80_271 = arith.constant 80 : index
    %c0_272 = arith.constant 0 : index
    %284 = vector.load %arg13[%c80_271, %c0_272] : memref<200x892xf32, #tpu.memory_space<vmem>>, vector<8x892xf32>
    tpu.vector_store %arg13[%c80_271, %c0_272], %283 {strides = array<i32>} : memref<200x892xf32, #tpu.memory_space<vmem>>, vector<8x892xf32>,
    %c1_273 = arith.constant 1 : index
    %c0_274 = arith.constant 0 : index
    %c65_275 = arith.constant 65 : index
    %285 = vector.load %arg0[%c1_273, %c0_274, %c65_275] : memref<2x8x1024xf32, #tpu.memory_space<vmem>>, vector<1x8x892xf32>
    %286 = vector.shape_cast %285 : vector<1x8x892xf32> to vector<8x892xf32>
    %c88_276 = arith.constant 88 : index
    %c0_277 = arith.constant 0 : index
    %287 = vector.load %arg13[%c88_276, %c0_277] : memref<200x892xf32, #tpu.memory_space<vmem>>, vector<8x892xf32>
    tpu.vector_store %arg13[%c88_276, %c0_277], %286 {strides = array<i32>} : memref<200x892xf32, #tpu.memory_space<vmem>>, vector<8x892xf32>,
    %c1_278 = arith.constant 1 : index
    %c0_279 = arith.constant 0 : index
    %c66_280 = arith.constant 66 : index
    %288 = vector.load %arg0[%c1_278, %c0_279, %c66_280] : memref<2x8x1024xf32, #tpu.memory_space<vmem>>, vector<1x8x892xf32>
    %289 = vector.shape_cast %288 : vector<1x8x892xf32> to vector<8x892xf32>
    %c96_281 = arith.constant 96 : index
    %c0_282 = arith.constant 0 : index
    %290 = vector.load %arg13[%c96_281, %c0_282] : memref<200x892xf32, #tpu.memory_space<vmem>>, vector<8x892xf32>
    tpu.vector_store %arg13[%c96_281, %c0_282], %289 {strides = array<i32>} : memref<200x892xf32, #tpu.memory_space<vmem>>, vector<8x892xf32>,
    %c1_283 = arith.constant 1 : index
    %c0_284 = arith.constant 0 : index
    %c67_285 = arith.constant 67 : index
    %291 = vector.load %arg0[%c1_283, %c0_284, %c67_285] : memref<2x8x1024xf32, #tpu.memory_space<vmem>>, vector<1x8x892xf32>
    %292 = vector.shape_cast %291 : vector<1x8x892xf32> to vector<8x892xf32>
    %c104_286 = arith.constant 104 : index
    %c0_287 = arith.constant 0 : index
    %293 = vector.load %arg13[%c104_286, %c0_287] : memref<200x892xf32, #tpu.memory_space<vmem>>, vector<8x892xf32>
    tpu.vector_store %arg13[%c104_286, %c0_287], %292 {strides = array<i32>} : memref<200x892xf32, #tpu.memory_space<vmem>>, vector<8x892xf32>,
    %c1_288 = arith.constant 1 : index
    %c0_289 = arith.constant 0 : index
    %c68_290 = arith.constant 68 : index
    %294 = vector.load %arg0[%c1_288, %c0_289, %c68_290] : memref<2x8x1024xf32, #tpu.memory_space<vmem>>, vector<1x8x892xf32>
    %295 = vector.shape_cast %294 : vector<1x8x892xf32> to vector<8x892xf32>
    %c112_291 = arith.constant 112 : index
    %c0_292 = arith.constant 0 : index
    %296 = vector.load %arg13[%c112_291, %c0_292] : memref<200x892xf32, #tpu.memory_space<vmem>>, vector<8x892xf32>
    tpu.vector_store %arg13[%c112_291, %c0_292], %295 {strides = array<i32>} : memref<200x892xf32, #tpu.memory_space<vmem>>, vector<8x892xf32>,
    %c1_293 = arith.constant 1 : index
    %c0_294 = arith.constant 0 : index
    %c96_295 = arith.constant 96 : index
    %297 = vector.load %arg0[%c1_293, %c0_294, %c96_295] : memref<2x8x1024xf32, #tpu.memory_space<vmem>>, vector<1x8x892xf32>
    %298 = vector.shape_cast %297 : vector<1x8x892xf32> to vector<8x892xf32>
    %c120_296 = arith.constant 120 : index
    %c0_297 = arith.constant 0 : index
    %299 = vector.load %arg13[%c120_296, %c0_297] : memref<200x892xf32, #tpu.memory_space<vmem>>, vector<8x892xf32>
    tpu.vector_store %arg13[%c120_296, %c0_297], %298 {strides = array<i32>} : memref<200x892xf32, #tpu.memory_space<vmem>>, vector<8x892xf32>,
    %c1_298 = arith.constant 1 : index
    %c0_299 = arith.constant 0 : index
    %c97_300 = arith.constant 97 : index
    %300 = vector.load %arg0[%c1_298, %c0_299, %c97_300] : memref<2x8x1024xf32, #tpu.memory_space<vmem>>, vector<1x8x892xf32>
    %301 = vector.shape_cast %300 : vector<1x8x892xf32> to vector<8x892xf32>
    %c128_301 = arith.constant 128 : index
    %c0_302 = arith.constant 0 : index
    %302 = vector.load %arg13[%c128_301, %c0_302] : memref<200x892xf32, #tpu.memory_space<vmem>>, vector<8x892xf32>
    tpu.vector_store %arg13[%c128_301, %c0_302], %301 {strides = array<i32>} : memref<200x892xf32, #tpu.memory_space<vmem>>, vector<8x892xf32>,
    %c1_303 = arith.constant 1 : index
    %c0_304 = arith.constant 0 : index
    %c98_305 = arith.constant 98 : index
    %303 = vector.load %arg0[%c1_303, %c0_304, %c98_305] : memref<2x8x1024xf32, #tpu.memory_space<vmem>>, vector<1x8x892xf32>
    %304 = vector.shape_cast %303 : vector<1x8x892xf32> to vector<8x892xf32>
    %c136_306 = arith.constant 136 : index
    %c0_307 = arith.constant 0 : index
    %305 = vector.load %arg13[%c136_306, %c0_307] : memref<200x892xf32, #tpu.memory_space<vmem>>, vector<8x892xf32>
    tpu.vector_store %arg13[%c136_306, %c0_307], %304 {strides = array<i32>} : memref<200x892xf32, #tpu.memory_space<vmem>>, vector<8x892xf32>,
    %c1_308 = arith.constant 1 : index
    %c0_309 = arith.constant 0 : index
    %c99_310 = arith.constant 99 : index
    %306 = vector.load %arg0[%c1_308, %c0_309, %c99_310] : memref<2x8x1024xf32, #tpu.memory_space<vmem>>, vector<1x8x892xf32>
    %307 = vector.shape_cast %306 : vector<1x8x892xf32> to vector<8x892xf32>
    %c144_311 = arith.constant 144 : index
    %c0_312 = arith.constant 0 : index
    %308 = vector.load %arg13[%c144_311, %c0_312] : memref<200x892xf32, #tpu.memory_space<vmem>>, vector<8x892xf32>
    tpu.vector_store %arg13[%c144_311, %c0_312], %307 {strides = array<i32>} : memref<200x892xf32, #tpu.memory_space<vmem>>, vector<8x892xf32>,
    %c1_313 = arith.constant 1 : index
    %c0_314 = arith.constant 0 : index
    %c100_315 = arith.constant 100 : index
    %309 = vector.load %arg0[%c1_313, %c0_314, %c100_315] : memref<2x8x1024xf32, #tpu.memory_space<vmem>>, vector<1x8x892xf32>
    %310 = vector.shape_cast %309 : vector<1x8x892xf32> to vector<8x892xf32>
    %c152_316 = arith.constant 152 : index
    %c0_317 = arith.constant 0 : index
    %311 = vector.load %arg13[%c152_316, %c0_317] : memref<200x892xf32, #tpu.memory_space<vmem>>, vector<8x892xf32>
    tpu.vector_store %arg13[%c152_316, %c0_317], %310 {strides = array<i32>} : memref<200x892xf32, #tpu.memory_space<vmem>>, vector<8x892xf32>,
    %c1_318 = arith.constant 1 : index
    %c0_319 = arith.constant 0 : index
    %c128_320 = arith.constant 128 : index
    %312 = vector.load %arg0[%c1_318, %c0_319, %c128_320] : memref<2x8x1024xf32, #tpu.memory_space<vmem>>, vector<1x8x892xf32>
    %313 = vector.shape_cast %312 : vector<1x8x892xf32> to vector<8x892xf32>
    %c160_321 = arith.constant 160 : index
    %c0_322 = arith.constant 0 : index
    %314 = vector.load %arg13[%c160_321, %c0_322] : memref<200x892xf32, #tpu.memory_space<vmem>>, vector<8x892xf32>
    tpu.vector_store %arg13[%c160_321, %c0_322], %313 {strides = array<i32>} : memref<200x892xf32, #tpu.memory_space<vmem>>, vector<8x892xf32>,
    %c1_323 = arith.constant 1 : index
    %c0_324 = arith.constant 0 : index
    %c129_325 = arith.constant 129 : index
    %315 = vector.load %arg0[%c1_323, %c0_324, %c129_325] : memref<2x8x1024xf32, #tpu.memory_space<vmem>>, vector<1x8x892xf32>
    %316 = vector.shape_cast %315 : vector<1x8x892xf32> to vector<8x892xf32>
    %c168_326 = arith.constant 168 : index
    %c0_327 = arith.constant 0 : index
    %317 = vector.load %arg13[%c168_326, %c0_327] : memref<200x892xf32, #tpu.memory_space<vmem>>, vector<8x892xf32>
    tpu.vector_store %arg13[%c168_326, %c0_327], %316 {strides = array<i32>} : memref<200x892xf32, #tpu.memory_space<vmem>>, vector<8x892xf32>,
    %c1_328 = arith.constant 1 : index
    %c0_329 = arith.constant 0 : index
    %c130_330 = arith.constant 130 : index
    %318 = vector.load %arg0[%c1_328, %c0_329, %c130_330] : memref<2x8x1024xf32, #tpu.memory_space<vmem>>, vector<1x8x892xf32>
    %319 = vector.shape_cast %318 : vector<1x8x892xf32> to vector<8x892xf32>
    %c176_331 = arith.constant 176 : index
    %c0_332 = arith.constant 0 : index
    %320 = vector.load %arg13[%c176_331, %c0_332] : memref<200x892xf32, #tpu.memory_space<vmem>>, vector<8x892xf32>
    tpu.vector_store %arg13[%c176_331, %c0_332], %319 {strides = array<i32>} : memref<200x892xf32, #tpu.memory_space<vmem>>, vector<8x892xf32>,
    %c1_333 = arith.constant 1 : index
    %c0_334 = arith.constant 0 : index
    %c131_335 = arith.constant 131 : index
    %321 = vector.load %arg0[%c1_333, %c0_334, %c131_335] : memref<2x8x1024xf32, #tpu.memory_space<vmem>>, vector<1x8x892xf32>
    %322 = vector.shape_cast %321 : vector<1x8x892xf32> to vector<8x892xf32>
    %c184_336 = arith.constant 184 : index
    %c0_337 = arith.constant 0 : index
    %323 = vector.load %arg13[%c184_336, %c0_337] : memref<200x892xf32, #tpu.memory_space<vmem>>, vector<8x892xf32>
    tpu.vector_store %arg13[%c184_336, %c0_337], %322 {strides = array<i32>} : memref<200x892xf32, #tpu.memory_space<vmem>>, vector<8x892xf32>,
    %c1_338 = arith.constant 1 : index
    %c0_339 = arith.constant 0 : index
    %c132_340 = arith.constant 132 : index
    %324 = vector.load %arg0[%c1_338, %c0_339, %c132_340] : memref<2x8x1024xf32, #tpu.memory_space<vmem>>, vector<1x8x892xf32>
    %325 = vector.shape_cast %324 : vector<1x8x892xf32> to vector<8x892xf32>
    %c192_341 = arith.constant 192 : index
    %c0_342 = arith.constant 0 : index
    %326 = vector.load %arg13[%c192_341, %c0_342] : memref<200x892xf32, #tpu.memory_space<vmem>>, vector<8x892xf32>
    tpu.vector_store %arg13[%c192_341, %c0_342], %325 {strides = array<i32>} : memref<200x892xf32, #tpu.memory_space<vmem>>, vector<8x892xf32>,
    %c0_343 = arith.constant 0 : index
    %c0_344 = arith.constant 0 : index
    %327 = vector.load %arg13[%c0_343, %c0_344] : memref<200x892xf32, #tpu.memory_space<vmem>>, vector<200x892xf32>
    %cst_345 = arith.constant dense<0.000000e+00> : vector<8x892xf32>
    %328 = tpu.matmul %0, %327, %cst_345 {dimension_numbers = #tpu.dot_dimension_numbers<[1], [0], [0], [1], [0, 0, 1, 1], [], []>} : vector<8x200xf32>, vector<200x892xf32>, vector<8x892xf32> -> vector<8x892xf32>
    %329 = vector.broadcast %1 : vector<8x1xf32> to vector<8x892xf32>
    %330 = arith.addf %328, %329 : vector<8x892xf32>
    %cst_346 = arith.constant 0.000000e+00 : f32
    %331 = vector.broadcast %cst_346 : f32 to vector<8x892xf32>
    %332 = arith.maximumf %330, %331 : vector<8x892xf32>
    %333 = vector.extract_strided_slice %332 {offsets = [0, 0], sizes = [8, 891], strides = [1, 1]} : vector<8x892xf32> to vector<8x891xf32>
    %334 = vector.extract_strided_slice %332 {offsets = [0, 1], sizes = [8, 891], strides = [1, 1]} : vector<8x892xf32> to vector<8x891xf32>
    %335 = arith.maximumf %333, %334 : vector<8x891xf32>
    %336 = vector.extract_strided_slice %335 {offsets = [0, 0], sizes = [8, 859], strides = [1, 1]} : vector<8x891xf32> to vector<8x859xf32>
    %337 = vector.extract_strided_slice %335 {offsets = [0, 32], sizes = [8, 859], strides = [1, 1]} : vector<8x891xf32> to vector<8x859xf32>
    %338 = arith.maximumf %336, %337 : vector<8x859xf32>
    %339 = vector.extract_strided_slice %338 {offsets = [0, 0], sizes = [8, 595], strides = [1, 1]} : vector<8x859xf32> to vector<8x595xf32>
    %c0_347 = arith.constant 0 : index
    %c0_348 = arith.constant 0 : index
    %340 = vector.load %arg13[%c0_347, %c0_348] : memref<200x892xf32, #tpu.memory_space<vmem>>, vector<8x595xf32>
    tpu.vector_store %arg13[%c0_347, %c0_348], %339 {strides = array<i32>} : memref<200x892xf32, #tpu.memory_space<vmem>>, vector<8x595xf32>,
    %341 = vector.extract_strided_slice %338 {offsets = [0, 2], sizes = [8, 595], strides = [1, 1]} : vector<8x859xf32> to vector<8x595xf32>
    %c8_349 = arith.constant 8 : index
    %c0_350 = arith.constant 0 : index
    %342 = vector.load %arg13[%c8_349, %c0_350] : memref<200x892xf32, #tpu.memory_space<vmem>>, vector<8x595xf32>
    tpu.vector_store %arg13[%c8_349, %c0_350], %341 {strides = array<i32>} : memref<200x892xf32, #tpu.memory_space<vmem>>, vector<8x595xf32>,
    %343 = vector.extract_strided_slice %338 {offsets = [0, 4], sizes = [8, 595], strides = [1, 1]} : vector<8x859xf32> to vector<8x595xf32>
    %c16_351 = arith.constant 16 : index
    %c0_352 = arith.constant 0 : index
    %344 = vector.load %arg13[%c16_351, %c0_352] : memref<200x892xf32, #tpu.memory_space<vmem>>, vector<8x595xf32>
    tpu.vector_store %arg13[%c16_351, %c0_352], %343 {strides = array<i32>} : memref<200x892xf32, #tpu.memory_space<vmem>>, vector<8x595xf32>,
    %345 = vector.extract_strided_slice %338 {offsets = [0, 6], sizes = [8, 595], strides = [1, 1]} : vector<8x859xf32> to vector<8x595xf32>
    %c24_353 = arith.constant 24 : index
    %c0_354 = arith.constant 0 : index
    %346 = vector.load %arg13[%c24_353, %c0_354] : memref<200x892xf32, #tpu.memory_space<vmem>>, vector<8x595xf32>
    tpu.vector_store %arg13[%c24_353, %c0_354], %345 {strides = array<i32>} : memref<200x892xf32, #tpu.memory_space<vmem>>, vector<8x595xf32>,
    %347 = vector.extract_strided_slice %338 {offsets = [0, 8], sizes = [8, 595], strides = [1, 1]} : vector<8x859xf32> to vector<8x595xf32>
    %c32_355 = arith.constant 32 : index
    %c0_356 = arith.constant 0 : index
    %348 = vector.load %arg13[%c32_355, %c0_356] : memref<200x892xf32, #tpu.memory_space<vmem>>, vector<8x595xf32>
    tpu.vector_store %arg13[%c32_355, %c0_356], %347 {strides = array<i32>} : memref<200x892xf32, #tpu.memory_space<vmem>>, vector<8x595xf32>,
    %349 = vector.extract_strided_slice %338 {offsets = [0, 64], sizes = [8, 595], strides = [1, 1]} : vector<8x859xf32> to vector<8x595xf32>
    %c40_357 = arith.constant 40 : index
    %c0_358 = arith.constant 0 : index
    %350 = vector.load %arg13[%c40_357, %c0_358] : memref<200x892xf32, #tpu.memory_space<vmem>>, vector<8x595xf32>
    tpu.vector_store %arg13[%c40_357, %c0_358], %349 {strides = array<i32>} : memref<200x892xf32, #tpu.memory_space<vmem>>, vector<8x595xf32>,
    %351 = vector.extract_strided_slice %338 {offsets = [0, 66], sizes = [8, 595], strides = [1, 1]} : vector<8x859xf32> to vector<8x595xf32>
    %c48_359 = arith.constant 48 : index
    %c0_360 = arith.constant 0 : index
    %352 = vector.load %arg13[%c48_359, %c0_360] : memref<200x892xf32, #tpu.memory_space<vmem>>, vector<8x595xf32>
    tpu.vector_store %arg13[%c48_359, %c0_360], %351 {strides = array<i32>} : memref<200x892xf32, #tpu.memory_space<vmem>>, vector<8x595xf32>,
    %353 = vector.extract_strided_slice %338 {offsets = [0, 68], sizes = [8, 595], strides = [1, 1]} : vector<8x859xf32> to vector<8x595xf32>
    %c56_361 = arith.constant 56 : index
    %c0_362 = arith.constant 0 : index
    %354 = vector.load %arg13[%c56_361, %c0_362] : memref<200x892xf32, #tpu.memory_space<vmem>>, vector<8x595xf32>
    tpu.vector_store %arg13[%c56_361, %c0_362], %353 {strides = array<i32>} : memref<200x892xf32, #tpu.memory_space<vmem>>, vector<8x595xf32>,
    %355 = vector.extract_strided_slice %338 {offsets = [0, 70], sizes = [8, 595], strides = [1, 1]} : vector<8x859xf32> to vector<8x595xf32>
    %c64_363 = arith.constant 64 : index
    %c0_364 = arith.constant 0 : index
    %356 = vector.load %arg13[%c64_363, %c0_364] : memref<200x892xf32, #tpu.memory_space<vmem>>, vector<8x595xf32>
    tpu.vector_store %arg13[%c64_363, %c0_364], %355 {strides = array<i32>} : memref<200x892xf32, #tpu.memory_space<vmem>>, vector<8x595xf32>,
    %357 = vector.extract_strided_slice %338 {offsets = [0, 72], sizes = [8, 595], strides = [1, 1]} : vector<8x859xf32> to vector<8x595xf32>
    %c72_365 = arith.constant 72 : index
    %c0_366 = arith.constant 0 : index
    %358 = vector.load %arg13[%c72_365, %c0_366] : memref<200x892xf32, #tpu.memory_space<vmem>>, vector<8x595xf32>
    tpu.vector_store %arg13[%c72_365, %c0_366], %357 {strides = array<i32>} : memref<200x892xf32, #tpu.memory_space<vmem>>, vector<8x595xf32>,
    %359 = vector.extract_strided_slice %338 {offsets = [0, 128], sizes = [8, 595], strides = [1, 1]} : vector<8x859xf32> to vector<8x595xf32>
    %c80_367 = arith.constant 80 : index
    %c0_368 = arith.constant 0 : index
    %360 = vector.load %arg13[%c80_367, %c0_368] : memref<200x892xf32, #tpu.memory_space<vmem>>, vector<8x595xf32>
    tpu.vector_store %arg13[%c80_367, %c0_368], %359 {strides = array<i32>} : memref<200x892xf32, #tpu.memory_space<vmem>>, vector<8x595xf32>,
    %361 = vector.extract_strided_slice %338 {offsets = [0, 130], sizes = [8, 595], strides = [1, 1]} : vector<8x859xf32> to vector<8x595xf32>
    %c88_369 = arith.constant 88 : index
    %c0_370 = arith.constant 0 : index
    %362 = vector.load %arg13[%c88_369, %c0_370] : memref<200x892xf32, #tpu.memory_space<vmem>>, vector<8x595xf32>
    tpu.vector_store %arg13[%c88_369, %c0_370], %361 {strides = array<i32>} : memref<200x892xf32, #tpu.memory_space<vmem>>, vector<8x595xf32>,
    %363 = vector.extract_strided_slice %338 {offsets = [0, 132], sizes = [8, 595], strides = [1, 1]} : vector<8x859xf32> to vector<8x595xf32>
    %c96_371 = arith.constant 96 : index
    %c0_372 = arith.constant 0 : index
    %364 = vector.load %arg13[%c96_371, %c0_372] : memref<200x892xf32, #tpu.memory_space<vmem>>, vector<8x595xf32>
    tpu.vector_store %arg13[%c96_371, %c0_372], %363 {strides = array<i32>} : memref<200x892xf32, #tpu.memory_space<vmem>>, vector<8x595xf32>,
    %365 = vector.extract_strided_slice %338 {offsets = [0, 134], sizes = [8, 595], strides = [1, 1]} : vector<8x859xf32> to vector<8x595xf32>
    %c104_373 = arith.constant 104 : index
    %c0_374 = arith.constant 0 : index
    %366 = vector.load %arg13[%c104_373, %c0_374] : memref<200x892xf32, #tpu.memory_space<vmem>>, vector<8x595xf32>
    tpu.vector_store %arg13[%c104_373, %c0_374], %365 {strides = array<i32>} : memref<200x892xf32, #tpu.memory_space<vmem>>, vector<8x595xf32>,
    %367 = vector.extract_strided_slice %338 {offsets = [0, 136], sizes = [8, 595], strides = [1, 1]} : vector<8x859xf32> to vector<8x595xf32>
    %c112_375 = arith.constant 112 : index
    %c0_376 = arith.constant 0 : index
    %368 = vector.load %arg13[%c112_375, %c0_376] : memref<200x892xf32, #tpu.memory_space<vmem>>, vector<8x595xf32>
    tpu.vector_store %arg13[%c112_375, %c0_376], %367 {strides = array<i32>} : memref<200x892xf32, #tpu.memory_space<vmem>>, vector<8x595xf32>,
    %369 = vector.extract_strided_slice %338 {offsets = [0, 192], sizes = [8, 595], strides = [1, 1]} : vector<8x859xf32> to vector<8x595xf32>
    %c120_377 = arith.constant 120 : index
    %c0_378 = arith.constant 0 : index
    %370 = vector.load %arg13[%c120_377, %c0_378] : memref<200x892xf32, #tpu.memory_space<vmem>>, vector<8x595xf32>
    tpu.vector_store %arg13[%c120_377, %c0_378], %369 {strides = array<i32>} : memref<200x892xf32, #tpu.memory_space<vmem>>, vector<8x595xf32>,
    %371 = vector.extract_strided_slice %338 {offsets = [0, 194], sizes = [8, 595], strides = [1, 1]} : vector<8x859xf32> to vector<8x595xf32>
    %c128_379 = arith.constant 128 : index
    %c0_380 = arith.constant 0 : index
    %372 = vector.load %arg13[%c128_379, %c0_380] : memref<200x892xf32, #tpu.memory_space<vmem>>, vector<8x595xf32>
    tpu.vector_store %arg13[%c128_379, %c0_380], %371 {strides = array<i32>} : memref<200x892xf32, #tpu.memory_space<vmem>>, vector<8x595xf32>,
    %373 = vector.extract_strided_slice %338 {offsets = [0, 196], sizes = [8, 595], strides = [1, 1]} : vector<8x859xf32> to vector<8x595xf32>
    %c136_381 = arith.constant 136 : index
    %c0_382 = arith.constant 0 : index
    %374 = vector.load %arg13[%c136_381, %c0_382] : memref<200x892xf32, #tpu.memory_space<vmem>>, vector<8x595xf32>
    tpu.vector_store %arg13[%c136_381, %c0_382], %373 {strides = array<i32>} : memref<200x892xf32, #tpu.memory_space<vmem>>, vector<8x595xf32>,
    %375 = vector.extract_strided_slice %338 {offsets = [0, 198], sizes = [8, 595], strides = [1, 1]} : vector<8x859xf32> to vector<8x595xf32>
    %c144_383 = arith.constant 144 : index
    %c0_384 = arith.constant 0 : index
    %376 = vector.load %arg13[%c144_383, %c0_384] : memref<200x892xf32, #tpu.memory_space<vmem>>, vector<8x595xf32>
    tpu.vector_store %arg13[%c144_383, %c0_384], %375 {strides = array<i32>} : memref<200x892xf32, #tpu.memory_space<vmem>>, vector<8x595xf32>,
    %377 = vector.extract_strided_slice %338 {offsets = [0, 200], sizes = [8, 595], strides = [1, 1]} : vector<8x859xf32> to vector<8x595xf32>
    %c152_385 = arith.constant 152 : index
    %c0_386 = arith.constant 0 : index
    %378 = vector.load %arg13[%c152_385, %c0_386] : memref<200x892xf32, #tpu.memory_space<vmem>>, vector<8x595xf32>
    tpu.vector_store %arg13[%c152_385, %c0_386], %377 {strides = array<i32>} : memref<200x892xf32, #tpu.memory_space<vmem>>, vector<8x595xf32>,
    %379 = vector.extract_strided_slice %338 {offsets = [0, 256], sizes = [8, 595], strides = [1, 1]} : vector<8x859xf32> to vector<8x595xf32>
    %c160_387 = arith.constant 160 : index
    %c0_388 = arith.constant 0 : index
    %380 = vector.load %arg13[%c160_387, %c0_388] : memref<200x892xf32, #tpu.memory_space<vmem>>, vector<8x595xf32>
    tpu.vector_store %arg13[%c160_387, %c0_388], %379 {strides = array<i32>} : memref<200x892xf32, #tpu.memory_space<vmem>>, vector<8x595xf32>,
    %381 = vector.extract_strided_slice %338 {offsets = [0, 258], sizes = [8, 595], strides = [1, 1]} : vector<8x859xf32> to vector<8x595xf32>
    %c168_389 = arith.constant 168 : index
    %c0_390 = arith.constant 0 : index
    %382 = vector.load %arg13[%c168_389, %c0_390] : memref<200x892xf32, #tpu.memory_space<vmem>>, vector<8x595xf32>
    tpu.vector_store %arg13[%c168_389, %c0_390], %381 {strides = array<i32>} : memref<200x892xf32, #tpu.memory_space<vmem>>, vector<8x595xf32>,
    %383 = vector.extract_strided_slice %338 {offsets = [0, 260], sizes = [8, 595], strides = [1, 1]} : vector<8x859xf32> to vector<8x595xf32>
    %c176_391 = arith.constant 176 : index
    %c0_392 = arith.constant 0 : index
    %384 = vector.load %arg13[%c176_391, %c0_392] : memref<200x892xf32, #tpu.memory_space<vmem>>, vector<8x595xf32>
    tpu.vector_store %arg13[%c176_391, %c0_392], %383 {strides = array<i32>} : memref<200x892xf32, #tpu.memory_space<vmem>>, vector<8x595xf32>,
    %385 = vector.extract_strided_slice %338 {offsets = [0, 262], sizes = [8, 595], strides = [1, 1]} : vector<8x859xf32> to vector<8x595xf32>
    %c184_393 = arith.constant 184 : index
    %c0_394 = arith.constant 0 : index
    %386 = vector.load %arg13[%c184_393, %c0_394] : memref<200x892xf32, #tpu.memory_space<vmem>>, vector<8x595xf32>
    tpu.vector_store %arg13[%c184_393, %c0_394], %385 {strides = array<i32>} : memref<200x892xf32, #tpu.memory_space<vmem>>, vector<8x595xf32>,
    %387 = vector.extract_strided_slice %338 {offsets = [0, 264], sizes = [8, 595], strides = [1, 1]} : vector<8x859xf32> to vector<8x595xf32>
    %c192_395 = arith.constant 192 : index
    %c0_396 = arith.constant 0 : index
    %388 = vector.load %arg13[%c192_395, %c0_396] : memref<200x892xf32, #tpu.memory_space<vmem>>, vector<8x595xf32>
    tpu.vector_store %arg13[%c192_395, %c0_396], %387 {strides = array<i32>} : memref<200x892xf32, #tpu.memory_space<vmem>>, vector<8x595xf32>,
    %c0_397 = arith.constant 0 : index
    %c0_398 = arith.constant 0 : index
    %389 = vector.load %arg13[%c0_397, %c0_398] : memref<200x892xf32, #tpu.memory_space<vmem>>, vector<200x595xf32>
    %cst_399 = arith.constant dense<0.000000e+00> : vector<16x595xf32>
    %390 = tpu.matmul %2, %389, %cst_399 {dimension_numbers = #tpu.dot_dimension_numbers<[1], [0], [0], [1], [0, 0, 1, 1], [], []>} : vector<16x200xf32>, vector<200x595xf32>, vector<16x595xf32> -> vector<16x595xf32>
    %391 = vector.broadcast %3 : vector<16x1xf32> to vector<16x595xf32>
    %392 = arith.addf %390, %391 : vector<16x595xf32>
    %cst_400 = arith.constant 0.000000e+00 : f32
    %393 = vector.broadcast %cst_400 : f32 to vector<16x595xf32>
    %394 = arith.maximumf %392, %393 : vector<16x595xf32>
    %395 = vector.extract_strided_slice %394 {offsets = [0, 0], sizes = [16, 593], strides = [1, 1]} : vector<16x595xf32> to vector<16x593xf32>
    %396 = vector.extract_strided_slice %394 {offsets = [0, 2], sizes = [16, 593], strides = [1, 1]} : vector<16x595xf32> to vector<16x593xf32>
    %397 = arith.maximumf %395, %396 : vector<16x593xf32>
    %398 = vector.extract_strided_slice %397 {offsets = [0, 0], sizes = [16, 529], strides = [1, 1]} : vector<16x593xf32> to vector<16x529xf32>
    %399 = vector.extract_strided_slice %397 {offsets = [0, 64], sizes = [16, 529], strides = [1, 1]} : vector<16x593xf32> to vector<16x529xf32>
    %400 = arith.maximumf %398, %399 : vector<16x529xf32>
    %cst_401 = arith.constant dense<0.000000e+00> : vector<16x32xf32>
    %401 = tpu.matmul %400, %4, %cst_401 {dimension_numbers = #tpu.dot_dimension_numbers<[1], [0], [0], [1], [0, 0, 1, 1], [], []>} : vector<16x529xf32>, vector<529x32xf32>, vector<16x32xf32> -> vector<16x32xf32>
    %c0_402 = arith.constant 0 : index
    %c0_403 = arith.constant 0 : index
    %402 = vector.load %arg7[%c0_402, %c0_403] : memref<1x120xf32, #tpu.memory_space<vmem>>, vector<1x120xf32>
    %403 = vector.extract_strided_slice %401 {offsets = [0, 0], sizes = [1, 32], strides = [1, 1]} : vector<16x32xf32> to vector<1x32xf32>
    %c0_404 = arith.constant 0 : index
    %c0_405 = arith.constant 0 : index
    %c0_406 = arith.constant 0 : index
    %404 = vector.load %arg6[%c0_404, %c0_405, %c0_406] : memref<16x32x120xf32, #tpu.memory_space<vmem>>, vector<1x32x120xf32>
    %405 = vector.shape_cast %404 : vector<1x32x120xf32> to vector<32x120xf32>
    %cst_407 = arith.constant dense<0.000000e+00> : vector<1x120xf32>
    %406 = tpu.matmul %403, %405, %cst_407 {dimension_numbers = #tpu.dot_dimension_numbers<[1], [0], [0], [1], [0, 0, 1, 1], [], []>} : vector<1x32xf32>, vector<32x120xf32>, vector<1x120xf32> -> vector<1x120xf32>
    %407 = arith.addf %402, %406 : vector<1x120xf32>
    %408 = vector.extract_strided_slice %401 {offsets = [1, 0], sizes = [1, 32], strides = [1, 1]} : vector<16x32xf32> to vector<1x32xf32>
    %c1_408 = arith.constant 1 : index
    %c0_409 = arith.constant 0 : index
    %c0_410 = arith.constant 0 : index
    %409 = vector.load %arg6[%c1_408, %c0_409, %c0_410] : memref<16x32x120xf32, #tpu.memory_space<vmem>>, vector<1x32x120xf32>
    %410 = vector.shape_cast %409 : vector<1x32x120xf32> to vector<32x120xf32>
    %cst_411 = arith.constant dense<0.000000e+00> : vector<1x120xf32>
    %411 = tpu.matmul %408, %410, %cst_411 {dimension_numbers = #tpu.dot_dimension_numbers<[1], [0], [0], [1], [0, 0, 1, 1], [], []>} : vector<1x32xf32>, vector<32x120xf32>, vector<1x120xf32> -> vector<1x120xf32>
    %412 = arith.addf %407, %411 : vector<1x120xf32>
    %413 = vector.extract_strided_slice %401 {offsets = [2, 0], sizes = [1, 32], strides = [1, 1]} : vector<16x32xf32> to vector<1x32xf32>
    %c2_412 = arith.constant 2 : index
    %c0_413 = arith.constant 0 : index
    %c0_414 = arith.constant 0 : index
    %414 = vector.load %arg6[%c2_412, %c0_413, %c0_414] : memref<16x32x120xf32, #tpu.memory_space<vmem>>, vector<1x32x120xf32>
    %415 = vector.shape_cast %414 : vector<1x32x120xf32> to vector<32x120xf32>
    %cst_415 = arith.constant dense<0.000000e+00> : vector<1x120xf32>
    %416 = tpu.matmul %413, %415, %cst_415 {dimension_numbers = #tpu.dot_dimension_numbers<[1], [0], [0], [1], [0, 0, 1, 1], [], []>} : vector<1x32xf32>, vector<32x120xf32>, vector<1x120xf32> -> vector<1x120xf32>
    %417 = arith.addf %412, %416 : vector<1x120xf32>
    %418 = vector.extract_strided_slice %401 {offsets = [3, 0], sizes = [1, 32], strides = [1, 1]} : vector<16x32xf32> to vector<1x32xf32>
    %c3_416 = arith.constant 3 : index
    %c0_417 = arith.constant 0 : index
    %c0_418 = arith.constant 0 : index
    %419 = vector.load %arg6[%c3_416, %c0_417, %c0_418] : memref<16x32x120xf32, #tpu.memory_space<vmem>>, vector<1x32x120xf32>
    %420 = vector.shape_cast %419 : vector<1x32x120xf32> to vector<32x120xf32>
    %cst_419 = arith.constant dense<0.000000e+00> : vector<1x120xf32>
    %421 = tpu.matmul %418, %420, %cst_419 {dimension_numbers = #tpu.dot_dimension_numbers<[1], [0], [0], [1], [0, 0, 1, 1], [], []>} : vector<1x32xf32>, vector<32x120xf32>, vector<1x120xf32> -> vector<1x120xf32>
    %422 = arith.addf %417, %421 : vector<1x120xf32>
    %423 = vector.extract_strided_slice %401 {offsets = [4, 0], sizes = [1, 32], strides = [1, 1]} : vector<16x32xf32> to vector<1x32xf32>
    %c4_420 = arith.constant 4 : index
    %c0_421 = arith.constant 0 : index
    %c0_422 = arith.constant 0 : index
    %424 = vector.load %arg6[%c4_420, %c0_421, %c0_422] : memref<16x32x120xf32, #tpu.memory_space<vmem>>, vector<1x32x120xf32>
    %425 = vector.shape_cast %424 : vector<1x32x120xf32> to vector<32x120xf32>
    %cst_423 = arith.constant dense<0.000000e+00> : vector<1x120xf32>
    %426 = tpu.matmul %423, %425, %cst_423 {dimension_numbers = #tpu.dot_dimension_numbers<[1], [0], [0], [1], [0, 0, 1, 1], [], []>} : vector<1x32xf32>, vector<32x120xf32>, vector<1x120xf32> -> vector<1x120xf32>
    %427 = arith.addf %422, %426 : vector<1x120xf32>
    %428 = vector.extract_strided_slice %401 {offsets = [5, 0], sizes = [1, 32], strides = [1, 1]} : vector<16x32xf32> to vector<1x32xf32>
    %c5_424 = arith.constant 5 : index
    %c0_425 = arith.constant 0 : index
    %c0_426 = arith.constant 0 : index
    %429 = vector.load %arg6[%c5_424, %c0_425, %c0_426] : memref<16x32x120xf32, #tpu.memory_space<vmem>>, vector<1x32x120xf32>
    %430 = vector.shape_cast %429 : vector<1x32x120xf32> to vector<32x120xf32>
    %cst_427 = arith.constant dense<0.000000e+00> : vector<1x120xf32>
    %431 = tpu.matmul %428, %430, %cst_427 {dimension_numbers = #tpu.dot_dimension_numbers<[1], [0], [0], [1], [0, 0, 1, 1], [], []>} : vector<1x32xf32>, vector<32x120xf32>, vector<1x120xf32> -> vector<1x120xf32>
    %432 = arith.addf %427, %431 : vector<1x120xf32>
    %433 = vector.extract_strided_slice %401 {offsets = [6, 0], sizes = [1, 32], strides = [1, 1]} : vector<16x32xf32> to vector<1x32xf32>
    %c6_428 = arith.constant 6 : index
    %c0_429 = arith.constant 0 : index
    %c0_430 = arith.constant 0 : index
    %434 = vector.load %arg6[%c6_428, %c0_429, %c0_430] : memref<16x32x120xf32, #tpu.memory_space<vmem>>, vector<1x32x120xf32>
    %435 = vector.shape_cast %434 : vector<1x32x120xf32> to vector<32x120xf32>
    %cst_431 = arith.constant dense<0.000000e+00> : vector<1x120xf32>
    %436 = tpu.matmul %433, %435, %cst_431 {dimension_numbers = #tpu.dot_dimension_numbers<[1], [0], [0], [1], [0, 0, 1, 1], [], []>} : vector<1x32xf32>, vector<32x120xf32>, vector<1x120xf32> -> vector<1x120xf32>
    %437 = arith.addf %432, %436 : vector<1x120xf32>
    %438 = vector.extract_strided_slice %401 {offsets = [7, 0], sizes = [1, 32], strides = [1, 1]} : vector<16x32xf32> to vector<1x32xf32>
    %c7_432 = arith.constant 7 : index
    %c0_433 = arith.constant 0 : index
    %c0_434 = arith.constant 0 : index
    %439 = vector.load %arg6[%c7_432, %c0_433, %c0_434] : memref<16x32x120xf32, #tpu.memory_space<vmem>>, vector<1x32x120xf32>
    %440 = vector.shape_cast %439 : vector<1x32x120xf32> to vector<32x120xf32>
    %cst_435 = arith.constant dense<0.000000e+00> : vector<1x120xf32>
    %441 = tpu.matmul %438, %440, %cst_435 {dimension_numbers = #tpu.dot_dimension_numbers<[1], [0], [0], [1], [0, 0, 1, 1], [], []>} : vector<1x32xf32>, vector<32x120xf32>, vector<1x120xf32> -> vector<1x120xf32>
    %442 = arith.addf %437, %441 : vector<1x120xf32>
    %443 = vector.extract_strided_slice %401 {offsets = [8, 0], sizes = [1, 32], strides = [1, 1]} : vector<16x32xf32> to vector<1x32xf32>
    %c8_436 = arith.constant 8 : index
    %c0_437 = arith.constant 0 : index
    %c0_438 = arith.constant 0 : index
    %444 = vector.load %arg6[%c8_436, %c0_437, %c0_438] : memref<16x32x120xf32, #tpu.memory_space<vmem>>, vector<1x32x120xf32>
    %445 = vector.shape_cast %444 : vector<1x32x120xf32> to vector<32x120xf32>
    %cst_439 = arith.constant dense<0.000000e+00> : vector<1x120xf32>
    %446 = tpu.matmul %443, %445, %cst_439 {dimension_numbers = #tpu.dot_dimension_numbers<[1], [0], [0], [1], [0, 0, 1, 1], [], []>} : vector<1x32xf32>, vector<32x120xf32>, vector<1x120xf32> -> vector<1x120xf32>
    %447 = arith.addf %442, %446 : vector<1x120xf32>
    %448 = vector.extract_strided_slice %401 {offsets = [9, 0], sizes = [1, 32], strides = [1, 1]} : vector<16x32xf32> to vector<1x32xf32>
    %c9_440 = arith.constant 9 : index
    %c0_441 = arith.constant 0 : index
    %c0_442 = arith.constant 0 : index
    %449 = vector.load %arg6[%c9_440, %c0_441, %c0_442] : memref<16x32x120xf32, #tpu.memory_space<vmem>>, vector<1x32x120xf32>
    %450 = vector.shape_cast %449 : vector<1x32x120xf32> to vector<32x120xf32>
    %cst_443 = arith.constant dense<0.000000e+00> : vector<1x120xf32>
    %451 = tpu.matmul %448, %450, %cst_443 {dimension_numbers = #tpu.dot_dimension_numbers<[1], [0], [0], [1], [0, 0, 1, 1], [], []>} : vector<1x32xf32>, vector<32x120xf32>, vector<1x120xf32> -> vector<1x120xf32>
    %452 = arith.addf %447, %451 : vector<1x120xf32>
    %453 = vector.extract_strided_slice %401 {offsets = [10, 0], sizes = [1, 32], strides = [1, 1]} : vector<16x32xf32> to vector<1x32xf32>
    %c10_444 = arith.constant 10 : index
    %c0_445 = arith.constant 0 : index
    %c0_446 = arith.constant 0 : index
    %454 = vector.load %arg6[%c10_444, %c0_445, %c0_446] : memref<16x32x120xf32, #tpu.memory_space<vmem>>, vector<1x32x120xf32>
    %455 = vector.shape_cast %454 : vector<1x32x120xf32> to vector<32x120xf32>
    %cst_447 = arith.constant dense<0.000000e+00> : vector<1x120xf32>
    %456 = tpu.matmul %453, %455, %cst_447 {dimension_numbers = #tpu.dot_dimension_numbers<[1], [0], [0], [1], [0, 0, 1, 1], [], []>} : vector<1x32xf32>, vector<32x120xf32>, vector<1x120xf32> -> vector<1x120xf32>
    %457 = arith.addf %452, %456 : vector<1x120xf32>
    %458 = vector.extract_strided_slice %401 {offsets = [11, 0], sizes = [1, 32], strides = [1, 1]} : vector<16x32xf32> to vector<1x32xf32>
    %c11_448 = arith.constant 11 : index
    %c0_449 = arith.constant 0 : index
    %c0_450 = arith.constant 0 : index
    %459 = vector.load %arg6[%c11_448, %c0_449, %c0_450] : memref<16x32x120xf32, #tpu.memory_space<vmem>>, vector<1x32x120xf32>
    %460 = vector.shape_cast %459 : vector<1x32x120xf32> to vector<32x120xf32>
    %cst_451 = arith.constant dense<0.000000e+00> : vector<1x120xf32>
    %461 = tpu.matmul %458, %460, %cst_451 {dimension_numbers = #tpu.dot_dimension_numbers<[1], [0], [0], [1], [0, 0, 1, 1], [], []>} : vector<1x32xf32>, vector<32x120xf32>, vector<1x120xf32> -> vector<1x120xf32>
    %462 = arith.addf %457, %461 : vector<1x120xf32>
    %463 = vector.extract_strided_slice %401 {offsets = [12, 0], sizes = [1, 32], strides = [1, 1]} : vector<16x32xf32> to vector<1x32xf32>
    %c12_452 = arith.constant 12 : index
    %c0_453 = arith.constant 0 : index
    %c0_454 = arith.constant 0 : index
    %464 = vector.load %arg6[%c12_452, %c0_453, %c0_454] : memref<16x32x120xf32, #tpu.memory_space<vmem>>, vector<1x32x120xf32>
    %465 = vector.shape_cast %464 : vector<1x32x120xf32> to vector<32x120xf32>
    %cst_455 = arith.constant dense<0.000000e+00> : vector<1x120xf32>
    %466 = tpu.matmul %463, %465, %cst_455 {dimension_numbers = #tpu.dot_dimension_numbers<[1], [0], [0], [1], [0, 0, 1, 1], [], []>} : vector<1x32xf32>, vector<32x120xf32>, vector<1x120xf32> -> vector<1x120xf32>
    %467 = arith.addf %462, %466 : vector<1x120xf32>
    %468 = vector.extract_strided_slice %401 {offsets = [13, 0], sizes = [1, 32], strides = [1, 1]} : vector<16x32xf32> to vector<1x32xf32>
    %c13_456 = arith.constant 13 : index
    %c0_457 = arith.constant 0 : index
    %c0_458 = arith.constant 0 : index
    %469 = vector.load %arg6[%c13_456, %c0_457, %c0_458] : memref<16x32x120xf32, #tpu.memory_space<vmem>>, vector<1x32x120xf32>
    %470 = vector.shape_cast %469 : vector<1x32x120xf32> to vector<32x120xf32>
    %cst_459 = arith.constant dense<0.000000e+00> : vector<1x120xf32>
    %471 = tpu.matmul %468, %470, %cst_459 {dimension_numbers = #tpu.dot_dimension_numbers<[1], [0], [0], [1], [0, 0, 1, 1], [], []>} : vector<1x32xf32>, vector<32x120xf32>, vector<1x120xf32> -> vector<1x120xf32>
    %472 = arith.addf %467, %471 : vector<1x120xf32>
    %473 = vector.extract_strided_slice %401 {offsets = [14, 0], sizes = [1, 32], strides = [1, 1]} : vector<16x32xf32> to vector<1x32xf32>
    %c14_460 = arith.constant 14 : index
    %c0_461 = arith.constant 0 : index
    %c0_462 = arith.constant 0 : index
    %474 = vector.load %arg6[%c14_460, %c0_461, %c0_462] : memref<16x32x120xf32, #tpu.memory_space<vmem>>, vector<1x32x120xf32>
    %475 = vector.shape_cast %474 : vector<1x32x120xf32> to vector<32x120xf32>
    %cst_463 = arith.constant dense<0.000000e+00> : vector<1x120xf32>
    %476 = tpu.matmul %473, %475, %cst_463 {dimension_numbers = #tpu.dot_dimension_numbers<[1], [0], [0], [1], [0, 0, 1, 1], [], []>} : vector<1x32xf32>, vector<32x120xf32>, vector<1x120xf32> -> vector<1x120xf32>
    %477 = arith.addf %472, %476 : vector<1x120xf32>
    %478 = vector.extract_strided_slice %401 {offsets = [15, 0], sizes = [1, 32], strides = [1, 1]} : vector<16x32xf32> to vector<1x32xf32>
    %c15_464 = arith.constant 15 : index
    %c0_465 = arith.constant 0 : index
    %c0_466 = arith.constant 0 : index
    %479 = vector.load %arg6[%c15_464, %c0_465, %c0_466] : memref<16x32x120xf32, #tpu.memory_space<vmem>>, vector<1x32x120xf32>
    %480 = vector.shape_cast %479 : vector<1x32x120xf32> to vector<32x120xf32>
    %cst_467 = arith.constant dense<0.000000e+00> : vector<1x120xf32>
    %481 = tpu.matmul %478, %480, %cst_467 {dimension_numbers = #tpu.dot_dimension_numbers<[1], [0], [0], [1], [0, 0, 1, 1], [], []>} : vector<1x32xf32>, vector<32x120xf32>, vector<1x120xf32> -> vector<1x120xf32>
    %482 = arith.addf %477, %481 : vector<1x120xf32>
    %cst_468 = arith.constant 0.000000e+00 : f32
    %483 = vector.broadcast %cst_468 : f32 to vector<1x120xf32>
    %484 = arith.maximumf %482, %483 : vector<1x120xf32>
    %c0_469 = arith.constant 0 : index
    %c0_470 = arith.constant 0 : index
    %485 = vector.load %arg8[%c0_469, %c0_470] : memref<120x84xf32, #tpu.memory_space<vmem>>, vector<120x84xf32>
    %cst_471 = arith.constant dense<0.000000e+00> : vector<1x84xf32>
    %486 = tpu.matmul %484, %485, %cst_471 {dimension_numbers = #tpu.dot_dimension_numbers<[1], [0], [0], [1], [0, 0, 1, 1], [], []>} : vector<1x120xf32>, vector<120x84xf32>, vector<1x84xf32> -> vector<1x84xf32>
    %c0_472 = arith.constant 0 : index
    %c0_473 = arith.constant 0 : index
    %487 = vector.load %arg9[%c0_472, %c0_473] : memref<1x84xf32, #tpu.memory_space<vmem>>, vector<1x84xf32>
    %488 = arith.addf %486, %487 : vector<1x84xf32>
    %cst_474 = arith.constant 0.000000e+00 : f32
    %489 = vector.broadcast %cst_474 : f32 to vector<1x84xf32>
    %490 = arith.maximumf %488, %489 : vector<1x84xf32>
    %c0_475 = arith.constant 0 : index
    %c0_476 = arith.constant 0 : index
    %491 = vector.load %arg10[%c0_475, %c0_476] : memref<84x10xf32, #tpu.memory_space<vmem>>, vector<84x10xf32>
    %cst_477 = arith.constant dense<0.000000e+00> : vector<1x10xf32>
    %492 = tpu.matmul %490, %491, %cst_477 {dimension_numbers = #tpu.dot_dimension_numbers<[1], [0], [0], [1], [0, 0, 1, 1], [], []>} : vector<1x84xf32>, vector<84x10xf32>, vector<1x10xf32> -> vector<1x10xf32>
    %c0_478 = arith.constant 0 : index
    %c0_479 = arith.constant 0 : index
    %493 = vector.load %arg11[%c0_478, %c0_479] : memref<1x10xf32, #tpu.memory_space<vmem>>, vector<1x10xf32>
    %494 = arith.addf %492, %493 : vector<1x10xf32>
    %495 = vector.shape_cast %494 : vector<1x10xf32> to vector<10xf32>
    %c1_480 = arith.constant 1 : index
    %c0_481 = arith.constant 0 : index
    %496 = vector.load %arg12[%c1_480, %c0_481] : memref<2x10xf32, #tpu.memory_space<vmem>>, vector<1x10xf32>
    %497 = vector.shape_cast %496 : vector<1x10xf32> to vector<10xf32>
    %498 = vector.shape_cast %495 : vector<10xf32> to vector<1x10xf32>
    tpu.vector_store %arg12[%c1_480, %c0_481], %498 {strides = array<i32>} : memref<2x10xf32, #tpu.memory_space<vmem>>, vector<1x10xf32>,
    return
  }
}

</mosaic_0001>

<bundles_post_ra>
// kernel: net_forward.1
= control target key start
LH: loop header
LB: loop body
LE: loop exit
PB: predicated region body
PF: predicated region fallthrough
CT: control target
= control target key end

     0   :  { %s12032_s0 = inlined_call_operand.vmem [shape: f32[2,8,1024], index: 0, kind: input, shape index: {}]   ;;  %s12033_s1 = inlined_call_operand.vmem [shape: f32[8,200], index: 1, kind: input, shape index: {}]   ;;  %s12034_s2 = inlined_call_operand.vmem [shape: f32[8,1], index: 2, kind: input, shape index: {}]   ;;  %s12035_s3 = inlined_call_operand.vmem [shape: f32[16,200], index: 3, kind: input, shape index: {}]   ;;  %s12036_s4 = inlined_call_operand.vmem [shape: f32[16,1], index: 4, kind: input, shape index: {}]   ;;  %s12037_s5 = inlined_call_operand.vmem [shape: f32[529,32], index: 5, kind: input, shape index: {}]   ;;  %s12038_s6 = inlined_call_operand.vmem [shape: f32[16,32,120], index: 6, kind: input, shape index: {}]   ;;  %s12039_s7 = inlined_call_operand.vmem [shape: f32[1,120], index: 7, kind: input, shape index: {}]   ;;  %s12040_s8 = inlined_call_operand.vmem [shape: f32[120,84], index: 8, kind: input, shape index: {}]   ;;  %s12041_s9 = inlined_call_operand.vmem [shape: f32[1,84], index: 9, kind: input, shape index: {}]   ;;  %s12042_s10 = inlined_call_operand.vmem [shape: f32[84,10], index: 10, kind: input, shape index: {}]   ;;  %s12043_s11 = inlined_call_operand.vmem [shape: f32[1,10], index: 11, kind: input, shape index: {}]   ;;  %s12044_s12 = inlined_call_operand.hbm [shape: f32[2,10], index: 12, kind: output, shape index: {}]  }
   0x1   :  { %12157 = sst [smem:[#allocation26_spill]] %s12035_s3 }
   0x2   :  { %12158 = sst [smem:[#allocation27_spill]] %s12037_s5 }
   0x3   :  { %12159 = sst [smem:[#allocation28_spill]] %s12039_s7 }
   0x4   :  { %12160 = sst [smem:[#allocation29_spill]] %s12041_s9 }
   0x5   :  { %12161 = sst [smem:[#allocation30_spill]] %s12043_s11 }
   0x6   :  { %12162 = sst [smem:[#allocation31_spill]] %s12044_s12 }
   0x7   :  { %v7405_v0 = vld [vmem:[%s12032_s0 + $0x8] sm:$0xff] }
   0x8   :  { %17 = vsyncpa [#allocation4], 0  ;;  %s12061_s23 = smov 32   ;;  %s12120_s24 = smov 60   ;;  %v7416_v1 = vld [vmem:[%s12032_s0 + $0x10] sm:$0xff]  ;;  %v7451_v2 = vld [vmem:[%s12032_s0 + $0x18] sm:$0xff] }
   0x9   :  { %886 = vrot.lane.b32.xlu0 %v7405_v0, %s12061_s23  ;;  %832 = vrot.lane.b32.xlu2 %v7405_v0, %s12120_s24  ;;  %s12118_s25 = smov 124   ;;  %s12087_s28 = smov 61   ;;  %v7462_v3 = vld [vmem:[%s12032_s0] sm:$0xff]  ;;  %vm900_vm0 = vcmask 261120   ;;  %vm131_vm1 = vcmask 1014784   ;;  %vm846_vm2 = vcmask 490496  }
   0xa   :  { %1310 = vrot.lane.b32.xlu1 %v7405_v0, %s12118_s25  ;;  %s12083_s29 = smov 125   ;;  %s12110_s30 = smov 126   ;;  %vm259_vm3 = vcmask 1022976   ;;  %vm792_vm4 = vcmask 498688   ;;  %vm210_vm5 = vcmask 1031168   ;;  %vm738_vm6 = vcmask 506880  }
   0xb   :  { %s12116_s13 = smov 62   ;;  %s12102_s14 = smov 127   ;;  %vm161_vm7 = vcmask 1039360   ;;  %vm684_vm8 = vcmask 515072   ;;  %vm630_vm9 = vcmask 523264   ;;  %v7617_v39 = vld [vmem:[%s12032_s0 + $0x20] sm:$0xff] }
   0xc   :  { %s12073_s15 = smov 63   ;;  %s12065_s18 = smov 64   ;;  %v7622_v40 = vld [vmem:[%s12032_s0 + $0x28] sm:$0xff]  ;;  %vm12104_vm10 = vcmask 228352   ;;  %vm12096_vm11 = vcmask 752640   ;;  %vm12095_vm12 = vcmask 236544  }
   0xd   :  { %s12053_s21 = smov 28   ;;  %s12063_s22 = smov 92   ;;  %vm12055_vm13 = vcmask 760832   ;;  %vm12058_vm14 = vcmask 244736   ;;  %v7699_v63 = vld [vmem:[%s12032_s0 + $0x30] sm:$0xff]  ;;  %vm12056_vm15 = vcmask 769024  }
   0xe   :  { %s12051_s26 = smov 29   ;;  %s12085_s27 = smov 93  }
   0xf   :  { %s12049_s16 = smov 30   ;;  %s12045_s17 = smov 94  }
  0x10   :  { %s12047_s19 = smov 31   ;;  %s12114_s20 = smov 95  }
  0x11   :  { %888 = vrot.lane.b32.xlu0 %v7416_v1, %s12061_s23  ;;  %834 = vrot.lane.b32.xlu2 %v7416_v1, %s12120_s24  ;;  %s12257_s11 = smov 126   ;;  %s12262_s12 = smov 60  }
  0x12   :  { %1312 = vrot.lane.b32.xlu1 %v7416_v1, %s12118_s25  ;;  %s12362_s7 = sld [smem:[#allocation30_spill]] }
  0x19   :  { %778 = vrot.lane.b32.xlu2 %v7405_v0, %s12087_s28  ;;  %1262 = vrot.lane.b32.xlu0 %v7405_v0, %s12083_s29 }
  0x1a   :  { %1264 = vrot.lane.b32.xlu1 %v7416_v1, %s12083_s29 }
  0x21   :  { %780 = vrot.lane.b32.xlu0 %v7416_v1, %s12087_s28  ;;  %1216 = vrot.lane.b32.xlu2 %v7416_v1, %s12110_s30 }
  0x22   :  { %1214 = vrot.lane.b32.xlu1 %v7405_v0, %s12110_s30 }
  0x29   :  { %724 = vrot.lane.b32.xlu0 %v7405_v0, %s12116_s13  ;;  %1166 = vrot.lane.b32.xlu2 %v7405_v0, %s12102_s14 }
  0x2a   :  { %726 = vrot.lane.b32.xlu1 %v7416_v1, %s12116_s13 }
  0x31   :  { %1168 = vrot.lane.b32.xlu0 %v7416_v1, %s12102_s14  ;;  %672 = vrot.lane.b32.xlu2 %v7416_v1, %s12073_s15 }
  0x32   :  { %670 = vrot.lane.b32.xlu1 %v7405_v0, %s12073_s15 }
  0x39   :  { %1314 = vrot.lane.b32.xlu0 %v7451_v2, %s12118_s25  ;;  %618 = vrot.lane.b32.xlu2 %v7416_v1, %s12065_s18 }
  0x3a   :  { %616 = vrot.lane.b32.xlu1 %v7405_v0, %s12065_s18 }
  0x41   :  { %1266 = vrot.lane.b32.xlu0 %v7451_v2, %s12083_s29  ;;  %1102 = vrot.lane.b32.xlu2 %v7405_v0, %s12053_s21 }
  0x42   :  { %1100 = vrot.lane.b32.xlu1 %v7462_v3, %s12053_s21 }
  0x49   :  { %562 = vrot.lane.b32.xlu0 %v7405_v0, %s12063_s22  ;;  %890 = vrot.lane.b32.xlu2 %v7451_v2, %s12061_s23 }
  0x4a   :  { %564 = vrot.lane.b32.xlu1 %v7416_v1, %s12063_s22 }
  0x51   :  { %1218 = vrot.lane.b32.xlu0 %v7451_v2, %s12110_s30  ;;  %1048 = vrot.lane.b32.xlu2 %v7405_v0, %s12051_s26 }
  0x52   :  { %1046 = vrot.lane.b32.xlu1 %v7462_v3, %s12051_s26 }
  0x59   :  { %508 = vrot.lane.b32.xlu0 %v7405_v0, %s12085_s27  ;;  %836 = vrot.lane.b32.xlu2 %v7451_v2, %s12120_s24 }
  0x5a   :  { %510 = vrot.lane.b32.xlu1 %v7416_v1, %s12085_s27 }
  0x61   :  { %1170 = vrot.lane.b32.xlu0 %v7451_v2, %s12102_s14  ;;  %994 = vrot.lane.b32.xlu2 %v7405_v0, %s12049_s16 }
  0x62   :  { %992 = vrot.lane.b32.xlu1 %v7462_v3, %s12049_s16 }
  0x63   :  { %v7494_v4 = vpop.permute.xlu2 %832 }
  0x69   :  { %454 = vrot.lane.b32.xlu0 %v7405_v0, %s12045_s17  ;;  %782 = vrot.lane.b32.xlu2 %v7451_v2, %s12087_s28 }
  0x6a   :  { %456 = vrot.lane.b32.xlu1 %v7416_v1, %s12045_s17  ;;  %s12112_s17 = smov 96  }
  0x6b   :  { %v7502_v5 = vpop.permute.xlu2 %834 }
  0x6c   :  { %v848_v15 = vsel %vm846_vm2, %v7494_v4, %v7502_v5 }
  0x71   :  { %938 = vrot.lane.b32.xlu0 %v7462_v3, %s12047_s19  ;;  %400 = vrot.lane.b32.xlu2 %v7405_v0, %s12114_s20 }
  0x72   :  { %940 = vrot.lane.b32.xlu1 %v7405_v0, %s12047_s19 }
  0x73   :  { %v7510_v6 = vpop.permute.xlu2 %778 }
  0x79   :  { %402 = vrot.lane.b32.xlu0 %v7416_v1, %s12114_s20  ;;  %1104 = vrot.lane.b32.xlu2 %v7416_v1, %s12053_s21  ;;  %s12163_s21 = smov 94  }
  0x7a   :  { %728 = vrot.lane.b32.xlu1 %v7451_v2, %s12116_s13 }
  0x7b   :  { %v7518_v7 = vpop.permute.xlu0 %886  ;;  %v7520_v8 = vpop.permute.xlu2 %1216 }
  0x7c   :  { %v1311_v9 = vpop.permute.xlu1 %1310 }
  0x81   :  { %346 = vrot.lane.b32.xlu0 %v7405_v0, %s12112_s17  ;;  %674 = vrot.lane.b32.xlu2 %v7451_v2, %s12073_s15 }
  0x82   :  { %348 = vrot.lane.b32.xlu1 %v7416_v1, %s12112_s17 }
  0x83   :  { %v889_v10 = vpop.permute.xlu0 %888  ;;  %v1167_v11 = vpop.permute.xlu2 %1166 }
  0x84   :  { %v902_v12 = vsel %vm900_vm0, %v7518_v7, %v889_v10  ;;  %v7530_v13 = vpop.permute.xlu1 %1312 }
  0x85   :  { %v1324_v14 = vsel %vm131_vm1, %v1311_v9, %v7530_v13  ;;  %1568 = vmatpush.msra.mxu2 %v902_v12 }
  0x86   :  { %1555 = vmatpush.msra.mxu3 %v1324_v14 }
  0x87   :  { %1569 = vmatpush.msra.mxu2 %v848_v15 }
  0x89   :  { %1050 = vrot.lane.b32.xlu0 %v7416_v1, %s12051_s26  ;;  %298 = vrot.lane.b32.xlu2 %v7416_v1, %s12118_s25  ;;  %s12106_s26 = smov 58  }
  0x8a   :  { %296 = vrot.lane.b32.xlu1 %v7405_v0, %s12118_s25 }
  0x8b   :  { %v1263_v16 = vpop.permute.xlu0 %1262  ;;  %v7543_v17 = vpop.permute.xlu2 %672 }
  0x8c   :  { %v7545_v18 = vpop.permute.xlu1 %1264 }
  0x8d   :  { %v1276_v19 = vsel %vm259_vm3, %v1263_v16, %v7545_v18 }
  0x8e   :  { %1556 = vmatpush.msra.mxu3 %v1276_v19 }
  0x91   :  { %620 = vrot.lane.b32.xlu0 %v7451_v2, %s12065_s18  ;;  %996 = vrot.lane.b32.xlu2 %v7416_v1, %s12049_s16  ;;  %s12167_s16 = smov 28  }
  0x92   :  { %884 = vrot.lane.b32.xlu1 %v7462_v3, %s12061_s23 }
  0x93   :  { %v7555_v20 = vpop.permute.xlu0 %780  ;;  %v7557_v21 = vpop.permute.xlu2 %618 }
  0x94   :  { %v794_v22 = vsel %vm792_vm4, %v7510_v6, %v7555_v20  ;;  %v1215_v23 = vpop.permute.xlu1 %1214 }
  0x95   :  { %v1228_v24 = vsel %vm210_vm5, %v1215_v23, %v7520_v8  ;;  %1570 = vmatpush.msra.mxu2 %v794_v22 }
  0x96   :  { %1557 = vmatpush.msra.mxu3 %v1228_v24 }
  0x99   :  { %247 = vrot.lane.b32.xlu0 %v7405_v0, %s12083_s29  ;;  %566 = vrot.lane.b32.xlu2 %v7451_v2, %s12063_s22 }
  0x9a   :  { %249 = vrot.lane.b32.xlu1 %v7416_v1, %s12083_s29 }
  0x9b   :  { %v7570_v25 = vpop.permute.xlu0 %724  ;;  %v7572_v26 = vpop.permute.xlu2 %1102 }
  0x9c   :  { %v7574_v27 = vpop.permute.xlu1 %726 }
  0x9d   :  { %v740_v28 = vsel %vm738_vm6, %v7570_v25, %v7574_v27 }
  0x9e   :  { %1571 = vmatpush.msra.mxu2 %v740_v28 }
  0xa1   :  { %830 = vrot.lane.b32.xlu0 %v7462_v3, %s12120_s24  ;;  %198 = vrot.lane.b32.xlu2 %v7405_v0, %s12110_s30 }
  0xa2   :  { %942 = vrot.lane.b32.xlu1 %v7416_v1, %s12047_s19  ;;  %s12187_s19 = smov 64  }
  0xa3   :  { %v7585_v29 = vpop.permute.xlu0 %1168  ;;  %v7587_v30 = vpop.permute.xlu2 %890 }
  0xa4   :  { %v7589_v31 = vpop.permute.xlu1 %670  ;;  %v1180_v32 = vsel %vm161_vm7, %v1167_v11, %v7585_v29  ;;  %v903_v33 = vsel %vm900_vm0, %v889_v10, %v7587_v30 }
  0xa5   :  { %v686_v34 = vsel %vm684_vm8, %v7589_v31, %v7543_v17  ;;  %1558 = vmatpush.msra.mxu3 %v1180_v32  ;;  %1608 = vmatpush.msra.mxu1 %v903_v33 }
  0xa6   :  { %1572 = vmatpush.msra.mxu2 %v686_v34 }
  0xa7   :  { %1559 = vmatpush.msra.mxu3 %v7405_v0 }
  0xa9   :  { %200 = vrot.lane.b32.xlu0 %v7416_v1, %s12110_s30  ;;  %776 = vrot.lane.b32.xlu2 %v7462_v3, %s12087_s28 }
  0xaa   :  { %512 = vrot.lane.b32.xlu1 %v7451_v2, %s12085_s27 }
  0xab   :  { %v7605_v35 = vpop.permute.xlu0 %1314  ;;  %v7607_v36 = vpop.permute.xlu2 %1048 }
  0xac   :  { %v7609_v37 = vpop.permute.xlu1 %616  ;;  %v1325_v16 = vsel %vm131_vm1, %v7530_v13, %v7605_v35 }
  0xad   :  { %v632_v38 = vsel %vm630_vm9, %v7609_v37, %v7557_v21 }
  0xae   :  { %1573 = vmatpush.msra.mxu2 %v632_v38 }
  0xb1   :  { %892 = vrot.lane.b32.xlu0 %v7617_v39, %s12061_s23  ;;  %149 = vrot.lane.b32.xlu2 %v7405_v0, %s12102_s14 }
  0xb2   :  { %894 = vrot.lane.b32.xlu1 %v7622_v40, %s12061_s23 }
  0xb3   :  { %v7630_v41 = vpop.permute.xlu0 %1266  ;;  %v7632_v42 = vpop.permute.xlu2 %836 }
  0xb4   :  { %v1101_v43 = vpop.permute.xlu1 %1100  ;;  %v849_v44 = vsel %vm846_vm2, %v7502_v5, %v7632_v42  ;;  %v1277_v19 = vsel %vm259_vm3, %v7545_v18, %v7630_v41 }
  0xb5   :  { %v1117_v45 = vsel %vm12104_vm10, %v1101_v43, %v7572_v26  ;;  %1609 = vmatpush.msra.mxu1 %v849_v44 }
  0xb6   :  { %1560 = vmatpush.msra.mxu3 %v1117_v45 }
  0xb9   :  { %151 = vrot.lane.b32.xlu0 %v7416_v1, %s12102_s14  ;;  %722 = vrot.lane.b32.xlu2 %v7462_v3, %s12116_s13 }
  0xba   :  { %458 = vrot.lane.b32.xlu1 %v7451_v2, %s12163_s21 }
  0xbb   :  { %v7645_v46 = vpop.permute.xlu0 %562  ;;  %v7647_v47 = vpop.permute.xlu2 %994 }
  0xbc   :  { %v7649_v48 = vpop.permute.xlu1 %564 }
  0xbd   :  { %v578_v49 = vsel %vm12096_vm11, %v7645_v46, %v7649_v48 }
  0xbe   :  { %1574 = vmatpush.msra.mxu2 %v578_v49 }
  0xc1   :  { %838 = vrot.lane.b32.xlu0 %v7617_v39, %s12120_s24  ;;  %404 = vrot.lane.b32.xlu2 %v7451_v2, %s12114_s20 }
  0xc2   :  { %840 = vrot.lane.b32.xlu1 %v7622_v40, %s12120_s24 }
  0xc3   :  { %v7660_v50 = vpop.permute.xlu0 %1218  ;;  %v7662_v51 = vpop.permute.xlu2 %782 }
  0xc4   :  { %v1047_v52 = vpop.permute.xlu1 %1046  ;;  %v795_v53 = vsel %vm792_vm4, %v7555_v20, %v7662_v51  ;;  %v1229_v13 = vsel %vm210_vm5, %v7520_v8, %v7660_v50 }
  0xc5   :  { %v1063_v54 = vsel %vm12095_vm12, %v1047_v52, %v7607_v36  ;;  %1610 = vmatpush.msra.mxu1 %v795_v53 }
  0xc6   :  { %1561 = vmatpush.msra.mxu3 %v1063_v54 }
  0xc9   :  { %668 = vrot.lane.b32.xlu0 %v7462_v3, %s12073_s15  ;;  %786 = vrot.lane.b32.xlu2 %v7622_v40, %s12087_s28 }
  0xca   :  { %784 = vrot.lane.b32.xlu1 %v7617_v39, %s12087_s28 }
  0xcb   :  { %v7675_v55 = vpop.permute.xlu0 %508  ;;  %v7677_v56 = vpop.permute.xlu2 %400 }
  0xcc   :  { %v7679_v57 = vpop.permute.xlu1 %510 }
  0xcd   :  { %v524_v58 = vsel %vm12055_vm13, %v7675_v55, %v7679_v57  ;;  %vm12059_vm13 = vcmask 252928  }
  0xce   :  { %1575 = vmatpush.msra.mxu2 %v524_v58 }
  0xd1   :  { %350 = vrot.lane.b32.xlu0 %v7451_v2, %s12112_s17  ;;  %730 = vrot.lane.b32.xlu2 %v7617_v39, %s12116_s13 }
  0xd2   :  { %614 = vrot.lane.b32.xlu1 %v7462_v3, %s12065_s18 }
  0xd3   :  { %v7690_v59 = vpop.permute.xlu0 %1170  ;;  %v7692_v60 = vpop.permute.xlu2 %1104 }
  0xd4   :  { %v993_v61 = vpop.permute.xlu1 %992  ;;  %v1181_v24 = vsel %vm161_vm7, %v7585_v29, %v7690_v59  ;;  %v1118_v32 = vsel %vm12104_vm10, %v7572_v26, %v7692_v60 }
  0xd5   :  { %v1009_v62 = vsel %vm12058_vm14, %v993_v61, %v7647_v47 }
  0xd6   :  { %1562 = vmatpush.msra.mxu3 %v1009_v62 }
  0xd9   :  { %732 = vrot.lane.b32.xlu0 %v7622_v40, %s12116_s13  ;;  %1316 = vrot.lane.b32.xlu2 %v7617_v39, %s12118_s25 }
  0xda   :  { %896 = vrot.lane.b32.xlu1 %v7699_v63, %s12061_s23 }
  0xdb   :  { %v7707_v0 = vpop.permute.xlu0 %454  ;;  %v7709_v5 = vpop.permute.xlu2 %674 }
  0xdc   :  { %v7711_v9 = vpop.permute.xlu1 %456  ;;  %v687_v8 = vsel %vm684_vm8, %v7543_v17, %v7709_v5 }
  0xdd   :  { %v470_v10 = vsel %vm12056_vm15, %v7707_v0, %v7711_v9  ;;  %vm12057_vm15 = vcmask 777216  }
  0xde   :  { %1576 = vmatpush.msra.mxu2 %v470_v10 }
  0xe1   :  { %300 = vrot.lane.b32.xlu0 %v7451_v2, %s12118_s25  ;;  %676 = vrot.lane.b32.xlu2 %v7617_v39, %s12073_s15 }
  0xe2   :  { %560 = vrot.lane.b32.xlu1 %v7462_v3, %s12063_s22 }
  0xe3   :  { %v939_v11 = vpop.permute.xlu0 %938  ;;  %v7722_v12 = vpop.permute.xlu2 %298 }
  0xe4   :  { %v7724_v14 = vpop.permute.xlu1 %940 }
  0xe5   :  { %v955_v15 = vsel %vm12059_vm13, %v939_v11, %v7724_v14 }
  0xe6   :  { %1563 = vmatpush.msra.mxu3 %v955_v15 }
  0xe8   :  { %1595 = vmatpush.msrb.mxu3 %v1325_v16  ;;  %v7850_v16 = vld [vmem:[%s12033_s1 + $0x8] sm:$0xff] }
  0xe9   :  { %678 = vrot.lane.b32.xlu0 %v7622_v40, %s12073_s15  ;;  %1268 = vrot.lane.b32.xlu2 %v7617_v39, %s12083_s29 }
  0xea   :  { %842 = vrot.lane.b32.xlu1 %v7699_v63, %s12120_s24  ;;  %1596 = vmatpush.msrb.mxu3 %v1277_v19 }
  0xeb   :  { %v7743_v20 = vpop.permute.xlu0 %402  ;;  %v7745_v22 = vpop.permute.xlu2 %996 }
  0xec   :  { %v7747_v18 = vpop.permute.xlu1 %728  ;;  %v416_v23 = vsel %vm12057_vm15, %v7677_v56, %v7743_v20  ;;  %1597 = vmatpush.msrb.mxu3 %v1229_v13  ;;  %vm12097_vm15 = vcmask 785408   ;;  %v1010_v44 = vsel %vm12058_vm14, %v7647_v47, %v7745_v22  ;;  %vm12060_vm14 = vcmask 588800  }
  0xed   :  { %v741_v28 = vsel %vm738_vm6, %v7574_v27, %v7747_v18  ;;  %1577 = vmatpush.msra.mxu2 %v416_v23  ;;  %6727 = vmatmul.msk.f32.vlgmr.msra.gmra.mxu3 %vm12060_vm14, %v7850_v16 }
  0xee   :  { %1598 = vmatpush.msrb.mxu3 %v1181_v24  ;;  %1611 = vmatpush.msra.mxu1 %v741_v28 }
  0xf0   :  { %1599 = vmatpush.msrb.mxu3 %v7416_v1  ;;  %1612 = vmatpush.msra.mxu1 %v687_v8 }
  0xf1   :  { %251 = vrot.lane.b32.xlu0 %v7451_v2, %s12083_s29  ;;  %622 = vrot.lane.b32.xlu2 %v7617_v39, %s12065_s18 }
  0xf2   :  { %506 = vrot.lane.b32.xlu1 %v7462_v3, %s12085_s27  ;;  %1600 = vmatpush.msrb.mxu3 %v1118_v32 }
  0xf3   :  { %v7771_v27 = vpop.permute.xlu0 %346  ;;  %v7773_v17 = vpop.permute.xlu2 %566 }
  0xf4   :  { %v7775_v1 = vpop.permute.xlu1 %348  ;;  %v579_v53 = vsel %vm12096_vm11, %v7649_v48, %v7773_v17 }
  0xf5   :  { %v362_v26 = vsel %vm12097_vm15, %v7771_v27, %v7775_v1 }
  0xf6   :  { %1578 = vmatpush.msra.mxu2 %v362_v26 }
  0xf9   :  { %624 = vrot.lane.b32.xlu0 %v7622_v40, %s12065_s18  ;;  %1220 = vrot.lane.b32.xlu2 %v7617_v39, %s12110_s30 }
  0xfa   :  { %788 = vrot.lane.b32.xlu1 %v7699_v63, %s12087_s28 }
  0xfb   :  { %v7786_v29 = vpop.permute.xlu0 %1050  ;;  %v7788_v33 = vpop.permute.xlu2 %198 }
  0xfc   :  { %v7790_v34 = vpop.permute.xlu1 %296  ;;  %v1064_v38 = vsel %vm12095_vm12, %v7607_v36, %v7786_v29 }
  0xfd   :  { %v309_v43 = vsel %vm131_vm1, %v7790_v34, %v7722_v12  ;;  %1601 = vmatpush.msrb.mxu3 %v1064_v38 }
  0xfe   :  { %1579 = vmatpush.msra.mxu2 %v309_v43 }
  0xff   :  { %1602 = vmatpush.msrb.mxu3 %v1010_v44 }
 0x101   :  { %202 = vrot.lane.b32.xlu0 %v7451_v2, %s12110_s30  ;;  %568 = vrot.lane.b32.xlu2 %v7617_v39, %s12063_s22 }
 0x102   :  { %452 = vrot.lane.b32.xlu1 %v7462_v3, %s12163_s21 }
 0x103   :  { %v7807_v36 = vpop.permute.xlu0 %620  ;;  %v777_v45 = vpop.permute.xlu2 %776 }
 0x104   :  { %v885_v49 = vpop.permute.xlu1 %884  ;;  %v633_v52 = vsel %vm630_vm9, %v7557_v21, %v7807_v36  ;;  %v793_v15 = vsel %vm792_vm4, %v777_v45, %v7510_v6 }
 0x105   :  { %v901_v47 = vsel %vm900_vm0, %v885_v49, %v7518_v7  ;;  %1613 = vmatpush.msra.mxu1 %v633_v52 }
 0x106   :  { %1528 = vmatpush.msra.mxu0 %v901_v47 }
 0x107   :  { %1614 = vmatpush.msra.mxu1 %v579_v53 }
 0x109   :  { %570 = vrot.lane.b32.xlu0 %v7622_v40, %s12063_s22  ;;  %1172 = vrot.lane.b32.xlu2 %v7617_v39, %s12102_s14 }
 0x10a   :  { %734 = vrot.lane.b32.xlu1 %v7699_v63, %s12116_s13 }
 0x10b   :  { %v7823_v21 = vpop.permute.xlu0 %247  ;;  %v7825_v54 = vpop.permute.xlu2 %149 }
 0x10c   :  { %v7827_v7 = vpop.permute.xlu1 %249 }
 0x10d   :  { %v261_v48 = vsel %vm259_vm3, %v7823_v21, %v7827_v7 }
 0x10e   :  { %1580 = vmatpush.msra.mxu2 %v261_v48 }
 0x111   :  { %1318 = vrot.lane.b32.xlu0 %v7622_v40, %s12118_s25  ;;  %398 = vrot.lane.b32.xlu2 %v7462_v3, %s12114_s20 }
 0x112   :  { %153 = vrot.lane.b32.xlu1 %v7451_v2, %s12102_s14 }
 0x113   :  { %v831_v58 = vpop.permute.xlu0 %830  ;;  %v723_v61 = vpop.permute.xlu2 %722 }
 0x114   :  { %v7838_v62 = vpop.permute.xlu1 %942  ;;  %v847_v10 = vsel %vm846_vm2, %v831_v58, %v7494_v4  ;;  %v739_v4 = vsel %vm738_vm6, %v723_v61, %v7570_v25  ;;  %v7962_v58 = vld [vmem:[%s12032_s0 + $0x18] sm:$0xff]  ;;  %v7967_v61 = vld [vmem:[%s12032_s0] sm:$0xff] }
 0x115   :  { %v956_v11 = vsel %vm12059_vm13, %v7724_v14, %v7838_v62  ;;  %1529 = vmatpush.msra.mxu0 %v847_v10  ;;  %vm12164_vm13 = vcmask 760832   ;;  %12171 = vst [vmem:[#allocation9_spill] sm:$0xff] %v7962_v58 }
 0x116   :  { %1603 = vmatpush.msrb.mxu3 %v956_v11 }
 0x117   :  { %1530 = vmatpush.msra.mxu0 %v793_v15  ;;  %6728 = vmatmul.msk.f32.vlgmr.msrb.gmra.mxu3 %vm12060_vm14, %v7850_v16  ;;  %vm12169_vm14 = vcmask 777216  }
 0x119   :  { %514 = vrot.lane.b32.xlu0 %v7617_v39, %s12085_s27  ;;  %680 = vrot.lane.b32.xlu2 %v7699_v63, %s12073_s15 }
 0x11a   :  { %516 = vrot.lane.b32.xlu1 %v7622_v40, %s12085_s27  ;;  %1531 = vmatpush.msra.mxu0 %v739_v4 }
 0x11b   :  { %v7862_v6 = vpop.permute.xlu0 %200  ;;  %v7864_v14 = vpop.permute.xlu2 %404 }
 0x11c   :  { %v7866_v19 = vpop.permute.xlu1 %512  ;;  %v212_v25 = vsel %vm210_vm5, %v7788_v33, %v7862_v6 }
 0x11d   :  { %v525_v13 = vsel %vm12164_vm13, %v7679_v57, %v7866_v19  ;;  %1581 = vmatpush.msra.mxu2 %v212_v25  ;;  %vm12168_vm13 = vcmask 769024  }
 0x11e   :  { %1615 = vmatpush.msra.mxu1 %v525_v13 }
 0x121   :  { %1270 = vrot.lane.b32.xlu0 %v7622_v40, %s12083_s29  ;;  %460 = vrot.lane.b32.xlu2 %v7617_v39, %s12163_s21 }
 0x122   :  { %344 = vrot.lane.b32.xlu1 %v7462_v3, %s12112_s17 }
 0x123   :  { %v7882_v23 = vpop.permute.xlu0 %892  ;;  %v7884_v24 = vpop.permute.xlu2 %786 }
 0x124   :  { %12165 = vst [vmem:[#allocation6_spill] sm:$0xff] %v7884_v24  ;;  %v7886_v28 = vpop.permute.xlu1 %894 }
 0x125   :  { %12166 = vst [vmem:[#allocation7_spill] sm:$0xff] %v7886_v28  ;;  %v7891_v57 = vsel %vm900_vm0, %v7882_v23, %v7886_v28 }
 0x126   :  { %919 = vst [vmem:[#allocation2 + $0x368] sm:$0xff] %v7891_v57 }
 0x129   :  { %462 = vrot.lane.b32.xlu0 %v7622_v40, %s12163_s21  ;;  %1106 = vrot.lane.b32.xlu2 %v7451_v2, %s12167_s16  ;;  %v417_v2 = vsel %vm12169_vm14, %v7743_v20, %v7864_v14  ;;  %vm12178_vm14 = vcmask 760832  }
 0x12a   :  { %626 = vrot.lane.b32.xlu1 %v7699_v63, %s12065_s18  ;;  %s12172_s18 = smov 29  }
 0x12b   :  { %v7900_v8 = vpop.permute.xlu0 %151  ;;  %v7902_v32 = vpop.permute.xlu2 %730 }
 0x12c   :  { %v7904_v26 = vpop.permute.xlu1 %458  ;;  %v163_v38 = vsel %vm161_vm7, %v7825_v54, %v7900_v8 }
 0x12d   :  { %v471_v43 = vsel %vm12168_vm13, %v7711_v9, %v7904_v26  ;;  %1582 = vmatpush.msra.mxu2 %v163_v38 }
 0x12e   :  { %1616 = vmatpush.msra.mxu1 %v471_v43 }
 0x130   :  { %1617 = vmatpush.msra.mxu1 %v417_v2 }
 0x131   :  { %1222 = vrot.lane.b32.xlu0 %v7622_v40, %s12110_s30  ;;  %406 = vrot.lane.b32.xlu2 %v7617_v39, %s12114_s20 }
 0x132   :  { %294 = vrot.lane.b32.xlu1 %v7462_v3, %s12118_s25  ;;  %v7939_v3 = vld [vmem:[%s12032_s0 + $0x38] sm:$0xff] }
 0x133   :  { %v7921_v44 = vpop.permute.xlu0 %838  ;;  %v7923_v45 = vpop.permute.xlu2 %1316 }
 0x134   :  { %v7925_v9 = vpop.permute.xlu1 %840  ;;  %v1326_v20 = vsel %vm131_vm1, %v7605_v35, %v7923_v45 }
 0x135   :  { %12170 = vst [vmem:[#allocation8_spill] sm:$0xff] %v7925_v9  ;;  %v7933_v49 = vsel %vm846_vm2, %v7921_v44, %v7925_v9  ;;  %1635 = vmatpush.msra.mxu3 %v1326_v20 }
 0x136   :  { %865 = vst [vmem:[#allocation2 + $0x330] sm:$0xff] %v7933_v49 }
 0x139   :  { %408 = vrot.lane.b32.xlu0 %v7622_v40, %s12114_s20  ;;  %898 = vrot.lane.b32.xlu2 %v7939_v3, %s12061_s23  ;;  %s12175_s23 = smov 30  }
 0x13a   :  { %572 = vrot.lane.b32.xlu1 %v7699_v63, %s12063_s22  ;;  %s12177_s22 = smov 31  }
 0x13b   :  { %v669_v35 = vpop.permute.xlu0 %668  ;;  %v7947_v52 = vpop.permute.xlu2 %676 }
 0x13c   :  { %v7949_v47 = vpop.permute.xlu1 %784  ;;  %v685_v53 = vsel %vm684_vm8, %v669_v35, %v7589_v31 }
 0x13d   :  { %v7956_v48 = vsel %vm792_vm4, %v7949_v47, %v7884_v24  ;;  %1532 = vmatpush.msra.mxu0 %v685_v53 }
 0x13e   :  { %811 = vst [vmem:[#allocation2 + $0x2f8] sm:$0xff] %v7956_v48 }
 0x141   :  { %1052 = vrot.lane.b32.xlu0 %v7962_v58, %s12172_s18  ;;  %245 = vrot.lane.b32.xlu2 %v7967_v61, %s12083_s29 }
 0x142   :  { %1174 = vrot.lane.b32.xlu1 %v7622_v40, %s12102_s14 }
 0x143   :  { %v7975_v31 = vpop.permute.xlu0 %350  ;;  %v7977_v10 = vpop.permute.xlu2 %1268 }
 0x144   :  { %v615_v11 = vpop.permute.xlu1 %614  ;;  %v363_v15 = vsel %vm12097_vm15, %v7775_v1, %v7975_v31  ;;  %v1278_v4 = vsel %vm259_vm3, %v7630_v41, %v7977_v10 }
 0x145   :  { %v631_v25 = vsel %vm630_vm9, %v615_v11, %v7609_v37  ;;  %1618 = vmatpush.msra.mxu1 %v363_v15  ;;  %1636 = vmatpush.msra.mxu3 %v1278_v4 }
 0x146   :  { %1533 = vmatpush.msra.mxu0 %v631_v25 }
 0x149   :  { %352 = vrot.lane.b32.xlu0 %v7617_v39, %s12112_s17  ;;  %518 = vrot.lane.b32.xlu2 %v7699_v63, %s12085_s27 }
 0x14a   :  { %354 = vrot.lane.b32.xlu1 %v7622_v40, %s12112_s17 }
 0x14b   :  { %v7993_v1 = vpop.permute.xlu0 %732  ;;  %v7995_v13 = vpop.permute.xlu2 %622 }
 0x14c   :  { %12173 = vst [vmem:[#allocation10_spill] sm:$0xff] %v7993_v1  ;;  %v7997_v41 = vpop.permute.xlu1 %896  ;;  %v8002_v37 = vsel %vm738_vm6, %v7902_v32, %v7993_v1  ;;  %v8103_v1 = vld [vmem:[%s12032_s0 + $0x20] sm:$0xff] }
 0x14d   :  { %12174 = vst [vmem:[#allocation11_spill] sm:$0xff] %v7997_v41 }
 0x14e   :  { %757 = vst [vmem:[#allocation2 + $0x2c0] sm:$0xff] %v8002_v37 }
 0x14f   :  { %129 = vst [vmem:[#allocation2 + $0x20] sm:$0xff] %v8103_v1 }
 0x151   :  { %844 = vrot.lane.b32.xlu0 %v7939_v3, %s12120_s24  ;;  %196 = vrot.lane.b32.xlu2 %v7967_v61, %s12110_s30 }
 0x152   :  { %998 = vrot.lane.b32.xlu1 %v7962_v58, %s12175_s23 }
 0x153   :  { %v8011_v38 = vpop.permute.xlu0 %300  ;;  %v8013_v43 = vpop.permute.xlu2 %1220 }
 0x154   :  { %v561_v2 = vpop.permute.xlu1 %560  ;;  %v310_v20 = vsel %vm131_vm1, %v7722_v12, %v8011_v38  ;;  %v1230_v35 = vsel %vm210_vm5, %v7660_v50, %v8013_v43 }
 0x155   :  { %v577_v53 = vsel %vm12096_vm11, %v561_v2, %v7645_v46  ;;  %1619 = vmatpush.msra.mxu1 %v310_v20  ;;  %1637 = vmatpush.msra.mxu3 %v1230_v35 }
 0x156   :  { %1534 = vmatpush.msra.mxu0 %v577_v53  ;;  %v119_v53 = vld [vmem:[%s12032_s0 + $0x8] sm:$0xff] }
 0x157   :  { %1583 = vmatpush.msra.mxu2 %v119_v53 }
 0x159   :  { %302 = vrot.lane.b32.xlu0 %v7617_v39, %s12118_s25  ;;  %464 = vrot.lane.b32.xlu2 %v7699_v63, %s12163_s21 }
 0x15a   :  { %304 = vrot.lane.b32.xlu1 %v7622_v40, %s12118_s25 }
 0x15b   :  { %v8029_v12 = vpop.permute.xlu0 %678  ;;  %v8031_v11 = vpop.permute.xlu2 %568 }
 0x15c   :  { %12176 = vst [vmem:[#allocation12_spill] sm:$0xff] %v8029_v12  ;;  %v8033_v50 = vpop.permute.xlu1 %842  ;;  %v8038_v46 = vsel %vm684_vm8, %v7947_v52, %v8029_v12 }
 0x15d   :  { %703 = vst [vmem:[#allocation2 + $0x288] sm:$0xff] %v8038_v46 }
 0x161   :  { %790 = vrot.lane.b32.xlu0 %v7939_v3, %s12087_s28  ;;  %1108 = vrot.lane.b32.xlu2 %v7617_v39, %s12167_s16  ;;  %s12098_s28 = smov 122  }
 0x162   :  { %944 = vrot.lane.b32.xlu1 %v7962_v58, %s12177_s22 }
 0x163   :  { %v8047_v15 = vpop.permute.xlu0 %251  ;;  %v8049_v4 = vpop.permute.xlu2 %1172 }
 0x164   :  { %v507_v25 = vpop.permute.xlu1 %506  ;;  %v262_v2 = vsel %vm259_vm3, %v7827_v7, %v8047_v15  ;;  %v1182_v20 = vsel %vm161_vm7, %v7690_v59, %v8049_v4 }
 0x165   :  { %v523_v35 = vsel %vm12178_vm14, %v507_v25, %v7675_v55  ;;  %1620 = vmatpush.msra.mxu1 %v262_v2  ;;  %1638 = vmatpush.msra.mxu3 %v1182_v20  ;;  %v8082_v2 = vld [vmem:[%s12032_s0 + $0x28] sm:$0xff]  ;;  %vm12181_vm14 = vcmask 777216  }
 0x166   :  { %1535 = vmatpush.msra.mxu0 %v523_v35  ;;  %1149 = vst [vmem:[#allocation2 + $0x480] sm:$0xff] %v8082_v2 }
 0x167   :  { %1639 = vmatpush.msra.mxu3 %v7962_v58 }
 0x169   :  { %1320 = vrot.lane.b32.xlu0 %v7699_v63, %s12118_s25  ;;  %253 = vrot.lane.b32.xlu2 %v7617_v39, %s12083_s29 }
 0x16a   :  { %147 = vrot.lane.b32.xlu1 %v7967_v61, %s12102_s14 }
 0x16b   :  { %v8069_v55 = vpop.permute.xlu0 %624  ;;  %v399_v59 = vpop.permute.xlu2 %398 }
 0x16c   :  { %12179 = vst [vmem:[#allocation13_spill] sm:$0xff] %v8069_v55  ;;  %v8071_v7 = vpop.permute.xlu1 %788  ;;  %v8076_v25 = vsel %vm630_vm9, %v7995_v13, %v8069_v55  ;;  %v415_v24 = vsel %vm12181_vm14, %v399_v59, %v7677_v56  ;;  %vm12189_vm14 = vcmask 769024  }
 0x16d   :  { %12180 = vst [vmem:[#allocation14_spill] sm:$0xff] %v8071_v7 }
 0x16e   :  { %649 = vst [vmem:[#allocation2 + $0x250] sm:$0xff] %v8076_v25 }
 0x171   :  { %255 = vrot.lane.b32.xlu0 %v7622_v40, %s12083_s29  ;;  %736 = vrot.lane.b32.xlu2 %v7939_v3, %s12116_s13 }
 0x172   :  { %410 = vrot.lane.b32.xlu1 %v7699_v63, %s12114_s20 }
 0x173   :  { %v8091_v20 = vpop.permute.xlu0 %202  ;;  %v8093_v35 = vpop.permute.xlu2 %680 }
 0x174   :  { %v453_v53 = vpop.permute.xlu1 %452  ;;  %v213_v55 = vsel %vm210_vm5, %v7862_v6, %v8091_v20 }
 0x175   :  { %v469_v12 = vsel %vm12168_vm13, %v453_v53, %v7707_v0  ;;  %1621 = vmatpush.msra.mxu1 %v213_v55  ;;  %vm12186_vm13 = vcmask 760832  }
 0x176   :  { %1536 = vmatpush.msra.mxu0 %v469_v12 }
 0x178   :  { %1537 = vmatpush.msra.mxu0 %v415_v24 }
 0x179   :  { %1054 = vrot.lane.b32.xlu0 %v7617_v39, %s12172_s18  ;;  %204 = vrot.lane.b32.xlu2 %v7617_v39, %s12110_s30 }
 0x17a   :  { %1272 = vrot.lane.b32.xlu1 %v7699_v63, %s12083_s29 }
 0x17b   :  { %v8114_v0 = vpop.permute.xlu0 %570  ;;  %v8116_v6 = vpop.permute.xlu2 %460 }
 0x17c   :  { %12182 = vst [vmem:[#allocation15_spill] sm:$0xff] %v8114_v0  ;;  %v8118_v12 = vpop.permute.xlu1 %734  ;;  %v8123_v56 = vsel %vm12096_vm11, %v8031_v11, %v8114_v0 }
 0x17d   :  { %12183 = vst [vmem:[#allocation16_spill] sm:$0xff] %v8118_v12 }
 0x17e   :  { %595 = vst [vmem:[#allocation2 + $0x218] sm:$0xff] %v8123_v56 }
 0x181   :  { %206 = vrot.lane.b32.xlu0 %v7622_v40, %s12110_s30  ;;  %682 = vrot.lane.b32.xlu2 %v7939_v3, %s12073_s15  ;;  %s12190_s15 = smov 92  }
 0x182   :  { %356 = vrot.lane.b32.xlu1 %v7699_v63, %s12112_s17 }
 0x183   :  { %v8132_v24 = vpop.permute.xlu0 %1318  ;;  %v8134_v55 = vpop.permute.xlu2 %1106 }
 0x184   :  { %v8136_v59 = vpop.permute.xlu1 %153  ;;  %v1327_v53 = vsel %vm131_vm1, %v7923_v45, %v8132_v24  ;;  %v1119_v40 = vsel %vm12104_vm10, %v7692_v60, %v8134_v55 }
 0x185   :  { %12184 = vst [vmem:[#allocation17_spill] sm:$0xff] %v8136_v59  ;;  %v164_v0 = vsel %vm161_vm7, %v7900_v8, %v8136_v59  ;;  %1640 = vmatpush.msra.mxu3 %v1119_v40  ;;  %1675 = vmatpush.msrb.mxu2 %v1327_v53 }
 0x186   :  { %1622 = vmatpush.msra.mxu1 %v164_v0 }
 0x189   :  { %1000 = vrot.lane.b32.xlu0 %v7617_v39, %s12175_s23  ;;  %155 = vrot.lane.b32.xlu2 %v7617_v39, %s12102_s14  ;;  %v8172_v39 = vld [vmem:[%s12032_s0 + $0x30] sm:$0xff] }
 0x18a   :  { %1224 = vrot.lane.b32.xlu1 %v7699_v63, %s12110_s30  ;;  %132 = vst.msk [vmem:[#allocation2 + $0x30] sm:$0xff] %vm131_vm1, %v8172_v39 }
 0x18b   :  { %v8153_v45 = vpop.permute.xlu0 %514  ;;  %v8155_v9 = vpop.permute.xlu2 %406 }
 0x18c   :  { %v8157_v60 = vpop.permute.xlu1 %516 }
 0x18d   :  { %12185 = vst [vmem:[#allocation18_spill] sm:$0xff] %v8157_v60  ;;  %v8162_v8 = vsel %vm12186_vm13, %v8153_v45, %v8157_v60  ;;  %vm12195_vm13 = vcmask 777216  }
 0x18e   :  { %541 = vst [vmem:[#allocation2 + $0x1e0] sm:$0xff] %v8162_v8 }
 0x191   :  { %157 = vrot.lane.b32.xlu0 %v8082_v2, %s12102_s14  ;;  %628 = vrot.lane.b32.xlu2 %v7939_v3, %s12187_s19 }
 0x192   :  { %306 = vrot.lane.b32.xlu1 %v7699_v63, %s12118_s25 }
 0x193   :  { %v8178_v0 = vpop.permute.xlu0 %1270  ;;  %v899_v53 = vpop.permute.xlu2 %898 }
 0x194   :  { %v345_v40 = vpop.permute.xlu1 %344  ;;  %v1279_v60 = vsel %vm259_vm3, %v7977_v10, %v8178_v0  ;;  %v907_v28 = vsel %vm900_vm0, %v7997_v41, %v899_v53 }
 0x195   :  { %v361_v58 = vsel %vm12097_vm15, %v345_v40, %v7771_v27  ;;  %921 = vst.msk [vmem:[#allocation2 + $0x378] sm:$0xff] %vm131_vm1, %v907_v28  ;;  %1676 = vmatpush.msrb.mxu2 %v1279_v60 }
 0x196   :  { %1538 = vmatpush.msra.mxu0 %v361_v58 }
 0x199   :  { %946 = vrot.lane.b32.xlu0 %v8103_v1, %s12177_s22  ;;  %1322 = vrot.lane.b32.xlu2 %v7939_v3, %s12118_s25 }
 0x19a   :  { %1176 = vrot.lane.b32.xlu1 %v7699_v63, %s12102_s14 }
 0x19b   :  { %v8194_v10 = vpop.permute.xlu0 %462  ;;  %v246_v59 = vpop.permute.xlu2 %245 }
 0x19c   :  { %12188 = vst [vmem:[#allocation19_spill] sm:$0xff] %v8194_v10  ;;  %v8196_v53 = vpop.permute.xlu1 %626  ;;  %v8201_v27 = vsel %vm12189_vm14, %v8116_v6, %v8194_v10  ;;  %v260_v41 = vsel %vm259_vm3, %v246_v59, %v7823_v21  ;;  %vm12197_vm14 = vcmask 244736  }
 0x19d   :  { %487 = vst [vmem:[#allocation2 + $0x1a8] sm:$0xff] %v8201_v27 }
 0x1a1   :  { %257 = vrot.lane.b32.xlu0 %v7699_v63, %s12083_s29  ;;  %1274 = vrot.lane.b32.xlu2 %v7939_v3, %s12083_s29  ;;  %s12249_s29 = smov 61  }
 0x1a2   :  { %574 = vrot.lane.b32.xlu1 %v7939_v3, %s12190_s15 }
 0x1a3   :  { %v8210_v28 = vpop.permute.xlu0 %1222  ;;  %v8212_v58 = vpop.permute.xlu2 %518 }
 0x1a4   :  { %12191 = vst [vmem:[#allocation20_spill] sm:$0xff] %v8210_v28  ;;  %v295_v60 = vpop.permute.xlu1 %294  ;;  %v1231_v40 = vsel %vm210_vm5, %v8013_v43, %v8210_v28 }
 0x1a5   :  { %12192 = vst [vmem:[#allocation21_spill] sm:$0xff] %v8212_v58  ;;  %v308_v10 = vsel %vm131_vm1, %v295_v60, %v7790_v34  ;;  %1677 = vmatpush.msrb.mxu2 %v1231_v40  ;;  %v8260_v60 = vld [vmem:[%s12033_s1] sm:$0xff] }
 0x1a6   :  { %1539 = vmatpush.msra.mxu0 %v308_v10  ;;  %1584 = vmatmul.f32.vlgmr.msra.gmra.mxu2 %v8260_v60 }
 0x1a8   :  { %1540 = vmatpush.msra.mxu0 %v260_v41 }
 0x1a9   :  { %208 = vrot.lane.b32.xlu0 %v7699_v63, %s12110_s30  ;;  %1110 = vrot.lane.b32.xlu2 %v8082_v2, %s12167_s16 }
 0x1aa   :  { %520 = vrot.lane.b32.xlu1 %v7939_v3, %s12085_s27  ;;  %s12100_s27 = smov 120  }
 0x1ab   :  { %v8227_v58 = vpop.permute.xlu0 %408  ;;  %v197_v43 = vpop.permute.xlu2 %196 }
 0x1ac   :  { %12193 = vst [vmem:[#allocation22_spill] sm:$0xff] %v8227_v58  ;;  %v8229_v28 = vpop.permute.xlu1 %572  ;;  %v8234_v34 = vsel %vm12195_vm13, %v8155_v9, %v8227_v58  ;;  %v211_v21 = vsel %vm210_vm5, %v197_v43, %v7788_v33  ;;  %vm12199_vm13 = vcmask 252928  }
 0x1ad   :  { %12194 = vst [vmem:[#allocation23_spill] sm:$0xff] %v8229_v28  ;;  %1541 = vmatpush.msra.mxu0 %v211_v21 }
 0x1ae   :  { %433 = vst [vmem:[#allocation2 + $0x170] sm:$0xff] %v8234_v34 }
 0x1b1   :  { %1226 = vrot.lane.b32.xlu0 %v7939_v3, %s12110_s30  ;;  %466 = vrot.lane.b32.xlu2 %v7939_v3, %s12163_s21 }
 0x1b2   :  { %159 = vrot.lane.b32.xlu1 %v8172_v39, %s12102_s14 }
 0x1b3   :  { %v8245_v63 = vpop.permute.xlu0 %1052  ;;  %v8247_v41 = vpop.permute.xlu2 %464 }
 0x1b4   :  { %v8249_v59 = vpop.permute.xlu1 %1174  ;;  %v1065_v33 = vsel %vm12095_vm12, %v7786_v29, %v8245_v63  ;;  %v120_v29 = vld [vmem:[%s12032_s0 + $0x10] sm:$0xff] }
 0x1b5   :  { %v1183_v10 = vsel %vm161_vm7, %v8049_v4, %v8249_v59  ;;  %1641 = vmatpush.msra.mxu3 %v1065_v33  ;;  %1623 = vmatpush.msra.mxu1 %v120_v29 }
 0x1b6   :  { %1678 = vmatpush.msrb.mxu2 %v1183_v10  ;;  %1624 = vmatmul.f32.vlgmr.msra.gmra.mxu1 %v8260_v60 }
 0x1b8   :  { %1679 = vmatpush.msrb.mxu2 %v8103_v1 }
 0x1b9   :  { %1056 = vrot.lane.b32.xlu0 %v8082_v2, %s12172_s18  ;;  %412 = vrot.lane.b32.xlu2 %v7939_v3, %s12114_s20 }
 0x1ba   :  { %1178 = vrot.lane.b32.xlu1 %v7939_v3, %s12102_s14 }
 0x1bb   :  { %v8273_v4 = vpop.permute.xlu0 %352  ;;  %v8275_v40 = vpop.permute.xlu2 %1108 }
 0x1bc   :  { %v8277_v43 = vpop.permute.xlu1 %354  ;;  %v1120_v21 = vsel %vm12104_vm10, %v8134_v55, %v8275_v40 }
 0x1bd   :  { %12196 = vst [vmem:[#allocation24_spill] sm:$0xff] %v8277_v43  ;;  %v8286_v33 = vsel %vm12097_vm15, %v8273_v4, %v8277_v43  ;;  %1680 = vmatpush.msrb.mxu2 %v1120_v21 }
 0x1be   :  { %379 = vst [vmem:[#allocation2 + $0x138] sm:$0xff] %v8286_v33 }
 0x1c1   :  { %1002 = vrot.lane.b32.xlu0 %v8082_v2, %s12175_s23  ;;  %948 = vrot.lane.b32.xlu2 %v8082_v2, %s12177_s22 }
 0x1c2   :  { %358 = vrot.lane.b32.xlu1 %v7939_v3, %s12112_s17 }
 0x1c3   :  { %v845_v55 = vpop.permute.xlu0 %844  ;;  %v8295_v10 = vpop.permute.xlu2 %253 }
 0x1c4   :  { %v8297_v29 = vpop.permute.xlu1 %998  ;;  %v853_v43 = vsel %vm846_vm2, %v8033_v50, %v845_v55 }
 0x1c5   :  { %v1011_v21 = vsel %vm12197_vm14, %v7745_v22, %v8297_v29  ;;  %867 = vst.msk [vmem:[#allocation2 + $0x340] sm:$0xff] %vm131_vm1, %v853_v43  ;;  %vm12200_vm14 = vcmask 588800  }
 0x1c6   :  { %1642 = vmatpush.msra.mxu3 %v1011_v21 }
 0x1c9   :  { %1112 = vrot.lane.b32.xlu0 %v8172_v39, %s12167_s16  ;;  %1058 = vrot.lane.b32.xlu2 %v8172_v39, %s12172_s18 }
 0x1ca   :  { %1114 = vrot.lane.b32.xlu1 %v7939_v3, %s12167_s16 }
 0x1cb   :  { %v8311_v58 = vpop.permute.xlu0 %302  ;;  %v737_v28 = vpop.permute.xlu2 %736 }
 0x1cc   :  { %v8313_v55 = vpop.permute.xlu1 %304  ;;  %v745_v22 = vsel %vm738_vm6, %v8118_v12, %v737_v28 }
 0x1cd   :  { %12198 = vst [vmem:[#allocation25_spill] sm:$0xff] %v8313_v55  ;;  %v8320_v43 = vsel %vm131_vm1, %v8311_v58, %v8313_v55 }
 0x1ce   :  { %759 = vst.msk [vmem:[#allocation2 + $0x2d0] sm:$0xff] %vm131_vm1, %v745_v22 }
 0x1cf   :  { %325 = vst [vmem:[#allocation2 + $0x100] sm:$0xff] %v8320_v43 }
 0x1d1   :  { %1060 = vrot.lane.b32.xlu0 %v7939_v3, %s12172_s18  ;;  %1006 = vrot.lane.b32.xlu2 %v7939_v3, %s12175_s23 }
 0x1d2   :  { %1004 = vrot.lane.b32.xlu1 %v8172_v39, %s12175_s23 }
 0x1d3   :  { %v791_v21 = vpop.permute.xlu0 %790  ;;  %v8330_v28 = vpop.permute.xlu2 %204 }
 0x1d4   :  { %v8332_v12 = vpop.permute.xlu1 %944  ;;  %v799_v55 = vsel %vm792_vm4, %v8071_v7, %v791_v21 }
 0x1d5   :  { %v957_v22 = vsel %vm12199_vm13, %v7838_v62, %v8332_v12  ;;  %813 = vst.msk [vmem:[#allocation2 + $0x308] sm:$0xff] %vm131_vm1, %v799_v55  ;;  %vm12201_vm13 = vcmask 760832  }
 0x1d6   :  { %1643 = vmatpush.msra.mxu3 %v957_v22 }
 0x1d7   :  { %6729 = vmatmul.msk.f32.vlgmr.msra.gmra.mxu3 %vm12200_vm14, %v7850_v16  ;;  %vm12202_vm14 = vcmask 769024  }
 0x1d8   :  { %1688 = vmatpush.msrb.mxu3 %v7891_v57 }
 0x1d9   :  { %950 = vrot.lane.b32.xlu0 %v8172_v39, %s12177_s22 }
 0x1da   :  { %952 = vrot.lane.b32.xlu1 %v7939_v3, %s12177_s22  ;;  %1689 = vmatpush.msrb.mxu3 %v7933_v49  ;;  %v44_v49 = vld [vmem:[%s12034_s2] sm:$0xff]  ;;  %v7331_v3 = vmov 0   ;;  %s12108_s2 = smov 56  }
 0x1db   :  { %v8348_v21 = vpop.permute.xlu0 %1320  ;;  %v683_v7 = vpop.permute.xlu2 %682  ;;  %7143 = vset.pattern.permute.xlu2 %v7331_v3  ;;  %7144 = vset.pattern.permute.xlu0 %v7331_v3  ;;  %v12210_v3 = vld [vmem:[#allocation7_spill] sm:$0xff] }
 0x1dc   :  { %v1328_v62 = vsel %vm131_vm1, %v8132_v24, %v8348_v21  ;;  %v691_v55 = vsel %vm684_vm8, %v8093_v35, %v683_v7  ;;  %v148_v22 = vpop.permute.xlu1 %147  ;;  %1690 = vmatpush.msrb.mxu3 %v7956_v48  ;;  %v904_v48 = vsel %vm900_vm0, %v7587_v30, %v7882_v23  ;;  %1521 = vperm.xlu2 %7143, %v44_v49   ;;  %v12209_v49 = vld [vmem:[#allocation11_spill] sm:$0xff] }
 0x1dd   :  { %1341 = vst [vmem:[#allocation2 + $0x560] sm:$0xff] %v1328_v62  ;;  %v162_v57 = vsel %vm161_vm7, %v148_v22, %v7825_v54  ;;  %1715 = vmatpush.msrb.mxu1 %v1328_v62  ;;  %v850_v54 = vsel %vm846_vm2, %v7632_v42, %v7921_v44  ;;  %v796_v30 = vsel %vm792_vm4, %v7662_v51, %v7949_v47 }
 0x1de   :  { %705 = vst.msk [vmem:[#allocation2 + $0x298] sm:$0xff] %vm131_vm1, %v691_v55  ;;  %1691 = vmatpush.msrb.mxu3 %v8002_v37  ;;  %1542 = vmatpush.msra.mxu0 %v162_v57  ;;  %v742_v42 = vsel %vm738_vm6, %v7747_v18, %v7902_v32  ;;  %v688_v51 = vsel %vm684_vm8, %v7709_v5, %v7947_v52 }
 0x1df   :  { %v634_v44 = vsel %vm630_vm9, %v7807_v36, %v7995_v13  ;;  %v580_v18 = vsel %vm12096_vm11, %v7773_v17, %v8031_v11  ;;  %v526_v17 = vsel %vm12201_vm13, %v7866_v19, %v8153_v45  ;;  %v472_v13 = vsel %vm12202_vm14, %v7904_v26, %v8116_v6 }
 0x1e0   :  { %1692 = vmatpush.msrb.mxu3 %v8038_v46  ;;  %1543 = vmatpush.msra.mxu0 %v7967_v61  ;;  %v364_v19 = vsel %vm12097_vm15, %v7975_v31, %v8273_v4  ;;  %v214_v31 = vsel %vm210_vm5, %v8091_v20, %v8330_v28  ;;  %vm12208_vm13 = vcmask 252928  }
 0x1e1   :  { %1544 = vmatmul.f32.vlgmr.msra.gmra.mxu0 %v8260_v60 }
 0x1e2   :  { %1648 = vmatpush.msrb.mxu0 %v904_v48  ;;  %1693 = vmatpush.msrb.mxu3 %v8076_v25  ;;  %v906_v48 = vsel %vm900_vm0, %v12210_v3, %v12209_v49 }
 0x1e3   :  { %v8373_v37 = vpop.permute.xlu0 %255  ;;  %v8375_v7 = vpop.permute.xlu2 %155 }
 0x1e4   :  { %1649 = vmatpush.msrb.mxu0 %v850_v54  ;;  %v264_v23 = vsel %vm259_vm3, %v8295_v10, %v8373_v37  ;;  %v8383_v61 = vpop.permute.xlu1 %410  ;;  %1694 = vmatpush.msrb.mxu3 %v8123_v56 }
 0x1e5   :  { %277 = vst [vmem:[#allocation2 + $0xc8] sm:$0xff] %v264_v23 }
 0x1e6   :  { %1650 = vmatpush.msrb.mxu0 %v796_v30  ;;  %1695 = vmatpush.msrb.mxu3 %v8162_v8  ;;  %v12204_v8 = vld [vmem:[#allocation17_spill] sm:$0xff] }
 0x1e8   :  { %1651 = vmatpush.msrb.mxu0 %v742_v42  ;;  %1696 = vmatpush.msrb.mxu3 %v8201_v27  ;;  %v12206_v27 = vld [vmem:[#allocation20_spill] sm:$0xff] }
 0x1ea   :  { %1652 = vmatpush.msrb.mxu0 %v688_v51  ;;  %1697 = vmatpush.msrb.mxu3 %v8234_v34  ;;  %v12207_v34 = vld [vmem:[#allocation9_spill] sm:$0xff]  ;;  %v12215_v51 = vld [vmem:[#allocation16_spill] sm:$0xff] }
 0x1eb   :  { %v8398_v47 = vpop.permute.xlu0 %1054  ;;  %v629_v46 = vpop.permute.xlu2 %628 }
 0x1ec   :  { %1653 = vmatpush.msrb.mxu0 %v634_v44  ;;  %v1066_v5 = vsel %vm12095_vm12, %v8245_v63, %v8398_v47  ;;  %v637_v32 = vsel %vm630_vm9, %v8196_v53, %v629_v46  ;;  %v1273_v52 = vpop.permute.xlu1 %1272  ;;  %1698 = vmatpush.msrb.mxu3 %v8286_v33  ;;  %vm12203_vm12 = vcmask 777216   ;;  %v12216_v44 = vld [vmem:[#allocation10_spill] sm:$0xff] }
 0x1ed   :  { %651 = vst.msk [vmem:[#allocation2 + $0x260] sm:$0xff] %vm131_vm1, %v637_v32  ;;  %v1280_v36 = vsel %vm259_vm3, %v8178_v0, %v1273_v52  ;;  %1681 = vmatpush.msrb.mxu2 %v1066_v5  ;;  %v418_v11 = vsel %vm12203_vm12, %v7864_v14, %v8155_v9  ;;  %v311_v14 = vsel %vm131_vm1, %v8011_v38, %v8311_v58  ;;  %vm12205_vm12 = vcmask 244736   ;;  %v12218_v5 = vld [vmem:[#allocation23_spill] sm:$0xff] }
 0x1ee   :  { %1654 = vmatpush.msrb.mxu0 %v580_v18  ;;  %1293 = vst [vmem:[#allocation2 + $0x528] sm:$0xff] %v1280_v36  ;;  %1699 = vmatpush.msrb.mxu3 %v8320_v43  ;;  %v263_v9 = vsel %vm259_vm3, %v8047_v15, %v8295_v10  ;;  %v165_v0 = vsel %vm161_vm7, %v12204_v8, %v8375_v7 }
 0x1ef   :  { %1716 = vmatpush.msrb.mxu1 %v1280_v36  ;;  %v744_v46 = vsel %vm738_vm6, %v12216_v44, %v12215_v51  ;;  %v1441_v51 = vld [vmem:[#allocation2 + $0x308] sm:$0xff] }
 0x1f0   :  { %1655 = vmatpush.msrb.mxu0 %v526_v17  ;;  %1700 = vmatpush.msrb.mxu3 %v264_v23  ;;  %v6831_v17 = vld [vmem:[%s12032_s0 + $0x68] sm:$0xff] }
 0x1f1   :  { %3463 = vst [vmem:[#allocation2 + $0x28] sm:$0xff] %v6831_v17 }
 0x1f2   :  { %1656 = vmatpush.msrb.mxu0 %v472_v13  ;;  %v12220_v13 = vld [vmem:[#allocation13_spill] sm:$0xff] }
 0x1f3   :  { %v8422_v25 = vpop.permute.xlu0 %206  ;;  %v1323_v56 = vpop.permute.xlu2 %1322 }
 0x1f4   :  { %1657 = vmatpush.msrb.mxu0 %v418_v11  ;;  %v215_v24 = vsel %vm210_vm5, %v8330_v28, %v8422_v25  ;;  %1343 = vst.msk [vmem:[#allocation2 + $0x570] sm:$0xff] %vm131_vm1, %v1323_v56  ;;  %v8431_v26 = vpop.permute.xlu1 %356  ;;  %v1329_v58 = vsel %vm131_vm1, %v8348_v21, %v1323_v56  ;;  %v636_v11 = vsel %vm630_vm9, %v12220_v13, %v8196_v53  ;;  %v12221_v56 = vld [vmem:[#allocation15_spill] sm:$0xff]  ;;  %v1144_v53 = vld [vmem:[%s12032_s0 + $0x38] sm:$0xff] }
 0x1f5   :  { %228 = vst [vmem:[#allocation2 + $0x90] sm:$0xff] %v215_v24  ;;  %1701 = vmatpush.msrb.mxu3 %v215_v24 }
 0x1f6   :  { %1658 = vmatpush.msrb.mxu0 %v364_v19  ;;  %v582_v19 = vsel %vm12096_vm11, %v12221_v56, %v12218_v5  ;;  %1151 = vst.msk [vmem:[#allocation2 + $0x490] sm:$0xff] %vm131_vm1, %v1144_v53 }
 0x1f8   :  { %1659 = vmatpush.msrb.mxu0 %v311_v14 }
 0x1fa   :  { %1660 = vmatpush.msrb.mxu0 %v263_v9  ;;  %v12223_v9 = vld [vmem:[#allocation18_spill] sm:$0xff] }
 0x1fb   :  { %v8442_v6 = vpop.permute.xlu0 %1000  ;;  %v1275_v45 = vpop.permute.xlu2 %1274  ;;  %v1518_v28 = vld [vmem:[#allocation2 + $0x570] sm:$0xff] }
 0x1fc   :  { %1661 = vmatpush.msrb.mxu0 %v214_v31  ;;  %v1012_v38 = vsel %vm12205_vm12, %v8297_v29, %v8442_v6  ;;  %1295 = vst.msk [vmem:[#allocation2 + $0x538] sm:$0xff] %vm131_vm1, %v1275_v45  ;;  %v8451_v15 = vpop.permute.xlu1 %1224  ;;  %v1281_v63 = vsel %vm259_vm3, %v1273_v52, %v1275_v45  ;;  %vm12211_vm12 = vcmask 588800   ;;  %v12219_v52 = vld [vmem:[#allocation12_spill] sm:$0xff] }
 0x1fd   :  { %v1232_v20 = vsel %vm210_vm5, %v12206_v27, %v8451_v15  ;;  %1682 = vmatpush.msrb.mxu2 %v1012_v38  ;;  %v690_v36 = vsel %vm684_vm8, %v12219_v52, %v8093_v35  ;;  %v12222_v35 = vld [vmem:[#allocation21_spill] sm:$0xff]  ;;  %v12227_v38 = vld [vmem:[#allocation19_spill] sm:$0xff] }
 0x1fe   :  { %1662 = vmatpush.msrb.mxu0 %v165_v0  ;;  %1245 = vst [vmem:[#allocation2 + $0x4f0] sm:$0xff] %v1232_v20  ;;  %1717 = vmatpush.msrb.mxu1 %v1232_v20  ;;  %v12229_v20 = vld [vmem:[#allocation22_spill] sm:$0xff] }
 0x1ff   :  { %v1420_v52 = vld [vmem:[#allocation2 + $0x260] sm:$0xff] }
 0x200   :  { %1663 = vmatpush.msrb.mxu0 %v12207_v34  ;;  %v12231_v34 = vld [vmem:[#allocation24_spill] sm:$0xff] }
 0x201   :  { %1664 = vmatmul.f32.vlgmr.msrb.gmra.mxu0 %v8260_v60 }
 0x202   :  { %1755 = vmatpush.msra.mxu0 %v1329_v58 }
 0x203   :  { %v8461_v4 = vpop.permute.xlu0 %157  ;;  %v8463_v33 = vpop.permute.xlu2 %1110  ;;  %v1511_v21 = vld [vmem:[#allocation2 + $0x538] sm:$0xff] }
 0x204   :  { %1756 = vmatpush.msra.mxu0 %v1281_v63  ;;  %v166_v10 = vsel %vm161_vm7, %v8375_v7, %v8461_v4  ;;  %v1121_v29 = vsel %vm12104_vm10, %v8275_v40, %v8463_v33  ;;  %v8471_v43 = vpop.permute.xlu1 %306  ;;  %v12213_v7 = vld [vmem:[#allocation14_spill] sm:$0xff]  ;;  %v366_v63 = vsel %vm12097_vm15, %v12231_v34, %v8431_v26 }
 0x205   :  { %179 = vst [vmem:[#allocation2 + $0x58] sm:$0xff] %v166_v10  ;;  %1702 = vmatpush.msrb.mxu3 %v166_v10 }
 0x206   :  { %1135 = vst [vmem:[#allocation2 + $0x448] sm:$0xff] %v1121_v29 }
 0x207   :  { %327 = vst.msk [vmem:[#allocation2 + $0x110] sm:$0xff] %vm131_vm1, %v8471_v43  ;;  %1703 = vmatpush.msrb.mxu3 %v8103_v1 }
 0x208   :  { %1704 = vmatmul.f32.vlgmr.msrb.gmra.mxu3 %v8260_v60 }
 0x209   :  { %1795 = vmatpush.msra.mxu3 %v1518_v28 }
 0x20b   :  { %1796 = vmatpush.msra.mxu3 %v1511_v21  ;;  %v947_v62 = vpop.permute.xlu0 %946  ;;  %v467_v55 = vpop.permute.xlu2 %466 }
 0x20c   :  { %v958_v40 = vsel %vm12208_vm13, %v8332_v12, %v947_v62  ;;  %v475_v22 = vsel %vm12202_vm14, %v8247_v41, %v467_v55  ;;  %v8481_v57 = vpop.permute.xlu1 %1176  ;;  %v12212_v12 = vld [vmem:[#allocation8_spill] sm:$0xff]  ;;  %vm12217_vm13 = vcmask 777216   ;;  %vm12224_vm14 = vcmask 760832  }
 0x20d   :  { %489 = vst.msk [vmem:[#allocation2 + $0x1b8] sm:$0xff] %vm131_vm1, %v475_v22  ;;  %v1184_v1 = vsel %vm161_vm7, %v8249_v59, %v8481_v57  ;;  %1683 = vmatpush.msrb.mxu2 %v958_v40  ;;  %v852_v54 = vsel %vm846_vm2, %v12212_v12, %v8033_v50  ;;  %v12214_v59 = vld [vmem:[#allocation6_spill] sm:$0xff]  ;;  %v528_v31 = vsel %vm12224_vm14, %v12223_v9, %v12222_v35  ;;  %v8573_v12 = vpop.f32.mrf.mxu3 }
 0x20e   :  { %1197 = vst [vmem:[#allocation2 + $0x4b8] sm:$0xff] %v1184_v1  ;;  %1718 = vmatpush.msrb.mxu1 %v1184_v1  ;;  %6730 = vmatmul.msk.f32.vlgmr.msrb.gmra.mxu2 %vm12211_vm12, %v7850_v16  ;;  %v798_v30 = vsel %vm792_vm4, %v12214_v59, %v12213_v7  ;;  %vm12225_vm12 = vcmask 252928   ;;  %v8580_v7 = vld [vmem:[#allocation2 + $0x30] sm:$0xff] }
 0x20f   :  { %1728 = vmatpush.msra.mxu2 %v906_v48  ;;  %v1378_v34 = vld [vmem:[#allocation2 + $0x110] sm:$0xff] }
 0x210   :  { %1719 = vmatpush.msrb.mxu1 %v8082_v2 }
 0x211   :  { %1729 = vmatpush.msra.mxu2 %v852_v54 }
 0x212   :  { %1720 = vmatpush.msrb.mxu1 %v1121_v29  ;;  %v12232_v29 = vld [vmem:[#allocation25_spill] sm:$0xff] }
 0x213   :  { %v258_v23 = vpop.permute.xlu0 %257  ;;  %v413_v42 = vpop.permute.xlu2 %412  ;;  %1730 = vmatpush.msra.mxu2 %v798_v30 }
 0x214   :  { %279 = vst.msk [vmem:[#allocation2 + $0xd8] sm:$0xff] %vm131_vm1, %v258_v23  ;;  %v421_v50 = vsel %vm12217_vm13, %v8383_v61, %v413_v42  ;;  %v575_v18 = vpop.permute.xlu1 %574  ;;  %vm12226_vm13 = vmmov %vm12224_vm14  ;;  %vm12230_vm14 = vcmask 777216   ;;  %v1399_v9 = vld [vmem:[#allocation2 + $0x1b8] sm:$0xff] }
 0x215   :  { %435 = vst.msk [vmem:[#allocation2 + $0x180] sm:$0xff] %vm131_vm1, %v421_v50  ;;  %v583_v32 = vsel %vm12096_vm11, %v12218_v5, %v575_v18  ;;  %1731 = vmatpush.msra.mxu2 %v744_v46  ;;  %vm12228_vm11 = vcmask 769024   ;;  %v420_v58 = vsel %vm12230_vm14, %v12229_v20, %v8383_v61  ;;  %v6986_v61 = vld [vmem:[%s12032_s0 + $0x70] sm:$0xff]  ;;  %v1605_v46 = vpop.f32.mrf.mxu3 }
 0x216   :  { %597 = vst.msk [vmem:[#allocation2 + $0x228] sm:$0xff] %vm131_vm1, %v583_v32  ;;  %v474_v27 = vsel %vm12228_vm11, %v12227_v38, %v8247_v41  ;;  %v313_v41 = vsel %vm131_vm1, %v12232_v29, %v8471_v43  ;;  %v265_v43 = vsel %vm259_vm3, %v8373_v37, %v258_v23  ;;  %vm12233_vm11 = vcmask 236544   ;;  %v1434_v18 = vld [vmem:[#allocation2 + $0x2d0] sm:$0xff]  ;;  %v1427_v32 = vld [vmem:[#allocation2 + $0x298] sm:$0xff] }
 0x217   :  { %1732 = vmatpush.msra.mxu2 %v690_v36  ;;  %4464 = vst [vmem:[#allocation2 + $0x488] sm:$0xff] %v6986_v61  ;;  %vm12237_vm14 = vmmov %vm12233_vm11 }
 0x218   :  { %3464 = vst.msk [vmem:[#allocation2 + $0x30] sm:$0xff] %vm131_vm1, %v6986_v61 }
 0x219   :  { %1733 = vmatpush.msra.mxu2 %v636_v11 }
 0x21b   :  { %v209_v24 = vpop.permute.xlu0 %208  ;;  %v8521_v14 = vpop.permute.xlu2 %948  ;;  %1734 = vmatpush.msra.mxu2 %v582_v19 }
 0x21c   :  { %230 = vst.msk [vmem:[#allocation2 + $0xa0] sm:$0xff] %vm131_vm1, %v209_v24  ;;  %v959_v45 = vsel %vm12225_vm12, %v947_v62, %v8521_v14  ;;  %v521_v8 = vpop.permute.xlu1 %520  ;;  %v6987_v62 = vld [vmem:[%s12032_s0 + $0x78] sm:$0xff]  ;;  %v216_v55 = vsel %vm210_vm5, %v8422_v25, %v209_v24  ;;  %vm12234_vm12 = vcmask 244736  }
 0x21d   :  { %973 = vst [vmem:[#allocation2 + $0x3a0] sm:$0xff] %v959_v45  ;;  %v529_v0 = vsel %vm12226_vm13, %v12222_v35, %v521_v8  ;;  %1735 = vmatpush.msra.mxu2 %v528_v31  ;;  %vm12235_vm13 = vcmask 588800   ;;  %v1413_v11 = vld [vmem:[#allocation2 + $0x228] sm:$0xff]  ;;  %v1392_v31 = vld [vmem:[#allocation2 + $0x180] sm:$0xff] }
 0x21e   :  { %543 = vst.msk [vmem:[#allocation2 + $0x1f0] sm:$0xff] %vm131_vm1, %v529_v0 }
 0x21f   :  { %1736 = vmatpush.msra.mxu2 %v474_v27 }
 0x221   :  { %1737 = vmatpush.msra.mxu2 %v420_v58  ;;  %v7210_v58 = vld [vmem:[%s12033_s1 + $0x8] sm:$0xff] }
 0x223   :  { %v1227_v10 = vpop.permute.xlu0 %1226  ;;  %1738 = vmatpush.msra.mxu2 %v366_v63  ;;  %v1059_v22 = vpop.permute.xlu2 %1058  ;;  %v1364_v63 = vld [vmem:[#allocation2 + $0xa0] sm:$0xff] }
 0x224   :  { %v1233_v28 = vsel %vm210_vm5, %v8451_v15, %v1227_v10  ;;  %1247 = vst.msk [vmem:[#allocation2 + $0x500] sm:$0xff] %vm131_vm1, %v1227_v10  ;;  %v160_v21 = vpop.permute.xlu1 %159  ;;  %v1490_v15 = vld [vmem:[#allocation2 + $0x490] sm:$0xff] }
 0x225   :  { %181 = vst.msk [vmem:[#allocation2 + $0x68] sm:$0xff] %vm131_vm1, %v160_v21  ;;  %1739 = vmatpush.msra.mxu2 %v313_v41  ;;  %1757 = vmatpush.msra.mxu0 %v1233_v28  ;;  %v167_v40 = vsel %vm161_vm7, %v8461_v4, %v160_v21  ;;  %v1406_v35 = vld [vmem:[#allocation2 + $0x1f0] sm:$0xff] }
 0x226   :  { %4465 = vst.msk [vmem:[#allocation2 + $0x490] sm:$0xff] %vm131_vm1, %v6987_v62 }
 0x227   :  { %1740 = vmatpush.msra.mxu2 %v265_v43 }
 0x229   :  { %1741 = vmatpush.msra.mxu2 %v216_v55  ;;  %v1585_v59 = vpop.f32.mrf.mxu2 }
 0x22b   :  { %v1057_v1 = vpop.permute.xlu0 %1056  ;;  %v1504_v49 = vld [vmem:[#allocation2 + $0x500] sm:$0xff]  ;;  %1742 = vmatpush.msra.mxu2 %v167_v40  ;;  %v1007_v25 = vpop.permute.xlu2 %1006 }
 0x22c   :  { %v1067_v3 = vsel %vm12233_vm11, %v8398_v47, %v1057_v1  ;;  %v1179_v37 = vpop.permute.xlu1 %1178  ;;  %1797 = vmatpush.msra.mxu3 %v1504_v49  ;;  %v1068_v50 = vsel %vm12237_vm14, %v1057_v1, %v1059_v22  ;;  %vm12239_vm14 = vcmask 252928   ;;  %v1357_v41 = vld [vmem:[#allocation2 + $0x68] sm:$0xff] }
 0x22d   :  { %1081 = vst [vmem:[#allocation2 + $0x410] sm:$0xff] %v1067_v3  ;;  %v1185_v48 = vsel %vm161_vm7, %v8481_v57, %v1179_v37  ;;  %1743 = vmatpush.msra.mxu2 %v8082_v2  ;;  %1721 = vmatpush.msrb.mxu1 %v1067_v3 }
 0x22e   :  { %1199 = vst.msk [vmem:[#allocation2 + $0x4c8] sm:$0xff] %vm131_vm1, %v1179_v37  ;;  %1744 = vmatmul.f32.vlgmr.msra.gmra.mxu2 %v8260_v60  ;;  %1758 = vmatpush.msra.mxu0 %v1185_v48 }
 0x230   :  { %1759 = vmatpush.msra.mxu0 %v8172_v39  ;;  %v1455_v39 = vld [vmem:[#allocation2 + $0x378] sm:$0xff] }
 0x233   :  { %v1003_v4 = vpop.permute.xlu0 %1002  ;;  %v1625_v10 = vpop.f32.mrf.mxu1 }
 0x234   :  { %v1013_v47 = vsel %vm12234_vm12, %v8442_v6, %v1003_v4  ;;  %v359_v54 = vpop.permute.xlu1 %358  ;;  %v1448_v6 = vld [vmem:[#allocation2 + $0x340] sm:$0xff] }
 0x235   :  { %1027 = vst [vmem:[#allocation2 + $0x3d8] sm:$0xff] %v1013_v47  ;;  %v367_v2 = vsel %vm12097_vm15, %v8431_v26, %v359_v54  ;;  %v1497_v57 = vld [vmem:[#allocation2 + $0x4c8] sm:$0xff]  ;;  %1722 = vmatpush.msrb.mxu1 %v1013_v47 }
 0x236   :  { %381 = vst.msk [vmem:[#allocation2 + $0x148] sm:$0xff] %vm131_vm1, %v367_v2  ;;  %1798 = vmatpush.msra.mxu3 %v1497_v57  ;;  %v8585_v26 = vpop.permute.xlu2 %1521 }
 0x237   :  { %1723 = vmatpush.msrb.mxu1 %v959_v45  ;;  %12236 = vst [vmem:[#allocation17_spill] sm:$0xff] %v8585_v26  ;;  %v1586_v44 = vadd.f32 %v1585_v59, %v8585_v26  ;;  %v1626_v28 = vadd.f32 %v1625_v10, %v8585_v26 }
 0x238   :  { %6731 = vmatmul.msk.f32.vlgmr.msrb.gmra.mxu1 %vm12235_vm13, %v7850_v16  ;;  %1799 = vmatpush.msra.mxu3 %v1490_v15  ;;  %vm12238_vm13 = vmmov %vm12234_vm12 }
 0x239   :  { %1768 = vmatpush.msra.mxu1 %v1455_v39  ;;  %v8593_v5 = vadd.f32 %v1605_v46, %v1586_v44 }
 0x23b   :  { %v1113_v30 = vpop.permute.xlu0 %1112  ;;  %1769 = vmatpush.msra.mxu1 %v1448_v6 }
 0x23c   :  { %v1122_v23 = vsel %vm12104_vm10, %v8463_v33, %v1113_v30  ;;  %v1115_v42 = vpop.permute.xlu1 %1114  ;;  %v1809_v33 = vmax.f32 %v8593_v5, 0.0 }
 0x23d   :  { %v1123_v16 = vsel %vm12104_vm10, %v1113_v30, %v1115_v42  ;;  %1770 = vmatpush.msra.mxu1 %v1441_v51  ;;  %1760 = vmatpush.msra.mxu0 %v1122_v23  ;;  %v1385_v38 = vld [vmem:[#allocation2 + $0x148] sm:$0xff]  ;;  %vm12243_vm10 = vcmask 588800  }
 0x23e   :  { %1137 = vst.msk [vmem:[#allocation2 + $0x458] sm:$0xff] %vm131_vm1, %v1123_v16  ;;  %1824 = vrot.lane.b32.xlu0 %v1809_v33, %s12102_s14 }
 0x23f   :  { %1771 = vmatpush.msra.mxu1 %v1434_v18  ;;  %1761 = vmatpush.msra.mxu0 %v1068_v50 }
 0x241   :  { %1772 = vmatpush.msra.mxu1 %v1427_v32 }
 0x243   :  { %v1061_v36 = vpop.permute.xlu0 %1060  ;;  %1773 = vmatpush.msra.mxu1 %v1420_v52 }
 0x244   :  { %v1069_v17 = vsel %vm12233_vm11, %v1059_v22, %v1061_v36  ;;  %v1005_v13 = vpop.permute.xlu1 %1004  ;;  %vm12240_vm11 = vmmov %vm12239_vm14 }
 0x245   :  { %1083 = vst.msk [vmem:[#allocation2 + $0x420] sm:$0xff] %vm131_vm1, %v1069_v17  ;;  %v1014_v56 = vsel %vm12234_vm12, %v1003_v4, %v1005_v13  ;;  %v1483_v19 = vld [vmem:[#allocation2 + $0x458] sm:$0xff]  ;;  %v1015_v24 = vsel %vm12238_vm13, %v1005_v13, %v1007_v25  ;;  %1774 = vmatpush.msra.mxu1 %v1413_v11  ;;  %vm12241_vm12 = vcmask 588800  }
 0x246   :  { %1800 = vmatpush.msra.mxu3 %v1483_v19  ;;  %1029 = vst.msk [vmem:[#allocation2 + $0x3e8] sm:$0xff] %vm131_vm1, %v1015_v24  ;;  %1762 = vmatpush.msra.mxu0 %v1014_v56  ;;  %vm12242_vm13 = vmmov %vm12241_vm12 }
 0x247   :  { %1775 = vmatpush.msra.mxu1 %v1406_v35 }
 0x249   :  { %1776 = vmatpush.msra.mxu1 %v1399_v9 }
 0x24b   :  { %v951_v45 = vpop.permute.xlu0 %950  ;;  %1777 = vmatpush.msra.mxu1 %v1392_v31 }
 0x24c   :  { %v960_v8 = vsel %vm12239_vm14, %v8521_v14, %v951_v45  ;;  %v953_v53 = vpop.permute.xlu1 %952  ;;  %v1476_v0 = vld [vmem:[#allocation2 + $0x420] sm:$0xff]  ;;  %v1371_v14 = vld [vmem:[#allocation2 + $0xd8] sm:$0xff]  ;;  %vm1901_vm14 = vcmask 678912  }
 0x24d   :  { %v961_v27 = vsel %vm12240_vm11, %v951_v45, %v953_v53  ;;  %1801 = vmatpush.msra.mxu3 %v1476_v0  ;;  %v1469_v20 = vld [vmem:[#allocation2 + $0x3e8] sm:$0xff]  ;;  %1778 = vmatpush.msra.mxu1 %v1385_v38  ;;  %vm1991_vm11 = vcmask 982016  }
 0x24e   :  { %975 = vst.msk [vmem:[#allocation2 + $0x3b0] sm:$0xff] %vm131_vm1, %v961_v27  ;;  %1763 = vmatpush.msra.mxu0 %v960_v8 }
 0x24f   :  { %1802 = vmatpush.msra.mxu3 %v1469_v20  ;;  %6732 = vmatmul.msk.f32.vlgmr.msra.gmra.mxu0 %vm12241_vm12, %v7210_v58  ;;  %vm12156_vm12 = vcmask 998400  }
 0x250   :  { %1779 = vmatpush.msra.mxu1 %v1378_v34 }
 0x252   :  { %1780 = vmatpush.msra.mxu1 %v1371_v14 }
 0x254   :  { %1781 = vmatpush.msra.mxu1 %v1364_v63 }
 0x255   :  { %v1462_v29 = vld [vmem:[#allocation2 + $0x3b0] sm:$0xff] }
 0x256   :  { %1803 = vmatpush.msra.mxu3 %v1462_v29  ;;  %1782 = vmatpush.msra.mxu1 %v1357_v41 }
 0x257   :  { %6733 = vmatmul.msk.f32.vlgmr.msra.gmra.mxu3 %vm12242_vm13, %v7210_v58  ;;  %vm12155_vm13 = vcmask 457728  }
 0x258   :  { %1783 = vmatpush.msra.mxu1 %v8580_v7 }
 0x259   :  { %1784 = vmatmul.f32.vlgmr.msra.gmra.mxu1 %v8260_v60 }
 0x25a   :  { %v1645_v21 = vpop.f32.mrf.mxu3 }
 0x25b   :  { %v1646_v61 = vadd.f32 %v1645_v21, %v1626_v28 }
 0x25d   :  { %v1810_v62 = vmax.f32 %v1646_v61, 0.0 }
 0x25e   :  { %v1545_v43 = vpop.f32.mrf.mxu0 }
 0x25f   :  { %1826 = vrot.lane.b32.xlu1 %v1810_v62, %s12102_s14  ;;  %v1546_v1 = vadd.f32 %v1545_v43, %v8585_v26 }
 0x261   :  { %v1566_v3 = vadd.f32 %v8573_v12, %v1546_v1 }
 0x263   :  { %v1808_v37 = vmax.f32 %v1566_v3, 0.0 }
 0x27e   :  { %v1665_v15 = vpop.f32.mrf.mxu0 }
 0x27f   :  { %v1666_v55 = vadd.f32 %v1665_v15, %v8585_v26 }
 0x28b   :  { %v1705_v60 = vpop.f32.mrf.mxu3 }
 0x28c   :  { %v1706_v48 = vadd.f32 %v1705_v60, %v8585_v26 }
 0x291   :  { %v1685_v40 = vpop.f32.mrf.mxu2 }
 0x292   :  { %v1686_v22 = vadd.f32 %v1685_v40, %v1666_v55 }
 0x294   :  { %v1811_v49 = vmax.f32 %v1686_v22, 0.0 }
 0x296   :  { %1828 = vrot.lane.b32.xlu2 %v1811_v49, %s12102_s14 }
 0x29e   :  { %1822 = vrot.lane.b32.xlu2 %v1808_v37, %s12102_s14 }
 0x2b0   :  { %v1825_v59 = vpop.permute.xlu0 %1824 }
 0x2b1   :  { %v1745_v54 = vpop.f32.mrf.mxu2 }
 0x2b2   :  { %v1746_v2 = vadd.f32 %v1745_v54, %v8585_v26 }
 0x2b5   :  { %v1725_v25 = vpop.f32.mrf.mxu1 }
 0x2b6   :  { %v1726_v4 = vadd.f32 %v1725_v25, %v1706_v48 }
 0x2b8   :  { %v1812_v47 = vmax.f32 %v1726_v4, 0.0 }
 0x2ba   :  { %1830 = vrot.lane.b32.xlu0 %v1812_v47, %s12102_s14 }
 0x2cc   :  { %v1765_v57 = vpop.f32.mrf.mxu0 }
 0x2cd   :  { %v1766_v7 = vadd.f32 %v1765_v57, %v1746_v2 }
 0x2cf   :  { %v1813_v39 = vmax.f32 %v1766_v7, 0.0 }
 0x2d1   :  { %v1827_v6 = vpop.permute.xlu1 %1826  ;;  %1832 = vrot.lane.b32.xlu1 %v1813_v39, %s12102_s14 }
 0x2d2   :  { %v1837_v12 = vsel %vm161_vm7, %v1825_v59, %v1827_v6 }
 0x2d3   :  { %v1850_v23 = vmax.f32 %v1809_v33, %v1837_v12 }
 0x2d6   :  { %v1785_v30 = vpop.f32.mrf.mxu1 }
 0x2d7   :  { %v1786_v42 = vadd.f32 %v1785_v30, %v8585_v26 }
 0x2d9   :  { %1865 = vrot.lane.b32.xlu1 %v1850_v23, %s12112_s17 }
 0x2da   :  { %v1805_v51 = vpop.f32.mrf.mxu3 }
 0x2db   :  { %v1806_v44 = vadd.f32 %v1805_v51, %v1786_v42 }
 0x2dd   :  { %v1814_v16 = vmax.f32 %v1806_v44, 0.0 }
 0x2df   :  { %1834 = vrot.lane.b32.xlu0 %v1814_v16, %s12102_s14  ;;  %s12251_s14 = smov 93  }
 0x2f0   :  { %v1829_v46 = vpop.permute.xlu2 %1828 }
 0x2f1   :  { %v1838_v50 = vsel %vm161_vm7, %v1827_v6, %v1829_v46 }
 0x2f2   :  { %v1851_v18 = vmax.f32 %v1810_v62, %v1838_v50  ;;  %v8856_v50 = vld [vmem:[%s12032_s0 + $0x48] sm:$0xff] }
 0x2f3   :  { %4459 = vst [vmem:[#allocation2 + $0x460] sm:$0xff] %v8856_v50 }
 0x2f4   :  { %1867 = vrot.lane.b32.xlu2 %v1851_v18, %s12112_s17  ;;  %3459 = vst [vmem:[#allocation2 + $0x8] sm:$0xff] %v8856_v50 }
 0x2f8   :  { %v1823_v32 = vpop.permute.xlu2 %1822 }
 0x2f9   :  { %v1836_v52 = vsel %vm161_vm7, %v1823_v32, %v1825_v59  ;;  %v8862_v32 = vld [vmem:[%s12032_s0 + $0x50] sm:$0xff] }
 0x2fa   :  { %v1849_v5 = vmax.f32 %v1808_v37, %v1836_v52  ;;  %4460 = vst [vmem:[#allocation2 + $0x468] sm:$0xff] %v8862_v32 }
 0x2fb   :  { %3460 = vst [vmem:[#allocation2 + $0x10] sm:$0xff] %v8862_v32 }
 0x2fc   :  { %1863 = vrot.lane.b32.xlu2 %v1849_v5, %s12112_s17 }
 0x32c   :  { %v1831_v33 = vpop.permute.xlu0 %1830 }
 0x32d   :  { %v1839_v36 = vsel %vm161_vm7, %v1829_v46, %v1831_v33 }
 0x32e   :  { %v1852_v17 = vmax.f32 %v1811_v49, %v1839_v36 }
 0x330   :  { %1869 = vrot.lane.b32.xlu0 %v1852_v17, %s12112_s17 }
 0x343   :  { %v1833_v13 = vpop.permute.xlu1 %1832 }
 0x344   :  { %v1840_v11 = vsel %vm161_vm7, %v1831_v33, %v1833_v13 }
 0x345   :  { %v1853_v56 = vmax.f32 %v1812_v47, %v1840_v11 }
 0x347   :  { %1871 = vrot.lane.b32.xlu1 %v1853_v56, %s12112_s17 }
 0x34b   :  { %v1866_v45 = vpop.permute.xlu1 %1865 }
 0x34e   :  { %v1868_v19 = vpop.permute.xlu2 %1867 }
 0x34f   :  { %v1878_v53 = vsel %vm12097_vm15, %v1866_v45, %v1868_v19 }
 0x350   :  { %v8647_v27 = vmax.f32 %v1850_v23, %v1878_v53 }
 0x351   :  { %v1835_v24 = vpop.permute.xlu0 %1834 }
 0x352   :  { %v1841_v35 = vsel %vm161_vm7, %v1833_v13, %v1835_v24  ;;  %v1855_v9 = vmax.f32 %v1814_v16, %v1835_v24  ;;  %v49_v24 = vld [vmem:[%s12036_s4] sm:$0xff] }
 0x353   :  { %v1854_v31 = vmax.f32 %v1813_v39, %v1841_v35 }
 0x354   :  { %1875 = vrot.lane.b32.xlu1 %v1855_v9, %s12112_s17 }
 0x355   :  { %1873 = vrot.lane.b32.xlu0 %v1854_v31, %s12112_s17  ;;  %s12255_s17 = smov 125  }
 0x356   :  { %v1864_v8 = vpop.permute.xlu2 %1863 }
 0x357   :  { %v1877_v0 = vsel %vm12097_vm15, %v1864_v8, %v1866_v45 }
 0x358   :  { %v8645_v38 = vmax.f32 %v1849_v5, %v1877_v0 }
 0x35a   :  { %2116 = vrot.lane.b32.xlu2 %v8645_v38, %s12108_s2 }
 0x35c   :  { %1983 = vrot.lane.b32.xlu1 %v8647_v27, %s12100_s27 }
 0x35d   :  { %2088 = vrot.lane.b32.xlu0 %v8645_v38, %s12106_s26 }
 0x362   :  { %2009 = vrot.lane.b32.xlu2 %v8647_v27, %s12187_s19 }
 0x364   :  { %2090 = vrot.lane.b32.xlu1 %v8647_v27, %s12106_s26 }
 0x365   :  { %1958 = vrot.lane.b32.xlu0 %v8647_v27, %s12098_s28 }
 0x36a   :  { %1934 = vrot.lane.b32.xlu2 %v8647_v27, %s12118_s25 }
 0x36d   :  { %2118 = vrot.lane.b32.xlu0 %v8647_v27, %s12108_s2 }
 0x372   :  { %1910 = vrot.lane.b32.xlu2 %v8647_v27, %s12110_s30 }
 0x3a2   :  { %v1870_v20 = vpop.permute.xlu0 %1869 }
 0x3a3   :  { %v1879_v58 = vsel %vm12097_vm15, %v1868_v19, %v1870_v20 }
 0x3a4   :  { %v8668_v34 = vmax.f32 %v1851_v18, %v1879_v58 }
 0x3a6   :  { %1960 = vrot.lane.b32.xlu1 %v8668_v34, %s12098_s28  ;;  %2011 = vrot.lane.b32.xlu0 %v8668_v34, %s12187_s19 }
 0x3a7   :  { %1985 = vrot.lane.b32.xlu2 %v8668_v34, %s12100_s27 }
 0x3ae   :  { %1936 = vrot.lane.b32.xlu0 %v8668_v34, %s12118_s25 }
 0x3b4   :  { %v2117_v15 = vpop.permute.xlu2 %2116 }
 0x3b6   :  { %1912 = vrot.lane.b32.xlu0 %v8668_v34, %s12110_s30 }
 0x3b9   :  { %v1872_v14 = vpop.permute.xlu1 %1871 }
 0x3ba   :  { %v1880_v63 = vsel %vm12097_vm15, %v1870_v20, %v1872_v14 }
 0x3bb   :  { %v8681_v10 = vmax.f32 %v1852_v17, %v1880_v63 }
 0x3bc   :  { %v8744_v55 = vpop.permute.xlu2 %2009 }
 0x3bd   :  { %1900 = vst [vmem:[#allocation2 + $0x18] sm:$0xff] %v8681_v10  ;;  %2013 = vrot.lane.b32.xlu1 %v8681_v10, %s12187_s19  ;;  %1962 = vrot.lane.b32.xlu2 %v8681_v10, %s12098_s28 }
 0x3be   :  { %1938 = vrot.lane.b32.xlu0 %v8681_v10, %s12118_s25 }
 0x3c4   :  { %v8752_v22 = vpop.permute.xlu2 %1934 }
 0x3c5   :  { %1987 = vrot.lane.b32.xlu1 %v8681_v10, %s12100_s27 }
 0x3c6   :  { %v1876_v29 = vpop.permute.xlu1 %1875  ;;  %2061 = vrot.lane.b32.xlu0 %v8645_v38, %s12120_s24 }
 0x3c7   :  { %v8694_v41 = vmax.f32 %v1855_v9, %v1876_v29  ;;  %v1874_v28 = vpop.permute.xlu0 %1873 }
 0x3c8   :  { %v1881_v21 = vsel %vm12097_vm15, %v1872_v14, %v1874_v28  ;;  %v1882_v61 = vsel %vm12097_vm15, %v1874_v28, %v1876_v29  ;;  %vm12105_vm15 = vcmask 474112   ;;  %v8939_v28 = vld [vmem:[%s12032_s0 + $0x40] sm:$0xff] }
 0x3c9   :  { %v8698_v62 = vmax.f32 %v1853_v56, %v1881_v21  ;;  %v8700_v43 = vmax.f32 %v1854_v31, %v1882_v61  ;;  %2239 = vst.msk [vmem:[#allocation2 + $0x480] sm:$0xff] %vm1901_vm14, %v8694_v41 }
 0x3ca   :  { %3458 = vst [vmem:[#allocation2] sm:$0xff] %v8939_v28 }
 0x3cb   :  { %1989 = vrot.lane.b32.xlu2 %v8698_v62, %s12100_s27  ;;  %1902 = vst.msk [vmem:[#allocation2 + $0x20] sm:$0xff] %vm1901_vm14, %v8698_v62 }
 0x3cc   :  { %2148 = vst.msk [vmem:[#allocation2 + $0x250] sm:$0xff] %vm1901_vm14, %v8700_v43  ;;  %v8766_v3 = vpop.permute.xlu2 %1910 }
 0x3cd   :  { %2015 = vrot.lane.b32.xlu1 %v8698_v62, %s12187_s19 }
 0x3ce   :  { %2034 = vrot.lane.b32.xlu0 %v8645_v38, %s12116_s13  ;;  %v8762_v49 = vpop.permute.xlu1 %1983 }
 0x3cf   :  { %v2089_v40 = vpop.permute.xlu0 %2088 }
 0x3d3   :  { %1964 = vrot.lane.b32.xlu2 %v8698_v62, %s12098_s28 }
 0x3d5   :  { %1914 = vrot.lane.b32.xlu1 %v8681_v10, %s12110_s30 }
 0x3d6   :  { %1916 = vrot.lane.b32.xlu0 %v8698_v62, %s12110_s30  ;;  %v8774_v60 = vpop.permute.xlu1 %2090 }
 0x3d7   :  { %v8758_v1 = vpop.permute.xlu0 %1958  ;;  %v2101_v42 = vsel %vm12105_vm15, %v2089_v40, %v8774_v60 }
 0x3db   :  { %1940 = vrot.lane.b32.xlu2 %v8698_v62, %s12118_s25 }
 0x3dd   :  { %2063 = vrot.lane.b32.xlu1 %v8647_v27, %s12120_s24 }
 0x3de   :  { %1981 = vrot.lane.b32.xlu0 %v8645_v38, %s12100_s27 }
 0x3df   :  { %v8772_v37 = vpop.permute.xlu0 %2118 }
 0x3e0   :  { %v2129_v30 = vsel %vm12155_vm13, %v2117_v15, %v8772_v37 }
 0x3e3   :  { %2120 = vrot.lane.b32.xlu2 %v8668_v34, %s12108_s2 }
 0x3e5   :  { %2036 = vrot.lane.b32.xlu1 %v8647_v27, %s12116_s13 }
 0x3e6   :  { %2038 = vrot.lane.b32.xlu0 %v8668_v34, %s12116_s13 }
 0x3eb   :  { %2092 = vrot.lane.b32.xlu2 %v8668_v34, %s12106_s26 }
 0x3ed   :  { %2007 = vrot.lane.b32.xlu1 %v8645_v38, %s12187_s19 }
 0x3ee   :  { %2017 = vrot.lane.b32.xlu0 %v8700_v43, %s12187_s19 }
 0x3f3   :  { %1956 = vrot.lane.b32.xlu2 %v8645_v38, %s12098_s28 }
 0x3f5   :  { %2065 = vrot.lane.b32.xlu1 %v8668_v34, %s12120_s24 }
 0x3f6   :  { %2067 = vrot.lane.b32.xlu0 %v8681_v10, %s12120_s24 }
 0x3fb   :  { %1932 = vrot.lane.b32.xlu2 %v8645_v38, %s12118_s25 }
 0x3fd   :  { %2122 = vrot.lane.b32.xlu1 %v8681_v10, %s12108_s2 }
 0x3fe   :  { %2169 = vrot.lane.b32.xlu0 %v8700_v43, %s12098_s28 }
 0x401   :  { %v1986_v48 = vpop.permute.xlu2 %1985 }
 0x402   :  { %v8789_v54 = vsel %vm1991_vm11, %v8762_v49, %v1986_v48 }
 0x403   :  { %1908 = vrot.lane.b32.xlu2 %v8645_v38, %s12110_s30 }
 0x405   :  { %2094 = vrot.lane.b32.xlu1 %v8681_v10, %s12106_s26 }
 0x406   :  { %2149 = vrot.lane.b32.xlu0 %v8700_v43, %s12110_s30 }
 0x40b   :  { %2040 = vrot.lane.b32.xlu2 %v8681_v10, %s12116_s13 }
 0x40d   :  { %2179 = vrot.lane.b32.xlu1 %v8700_v43, %s12100_s27 }
 0x40e   :  { %2260 = vrot.lane.b32.xlu0 %v8694_v41, %s12098_s28  ;;  %s12248_s28 = smov 32  }
 0x413   :  { %2190 = vrot.lane.b32.xlu2 %v8694_v41, %s12187_s19 }
 0x415   :  { %2159 = vrot.lane.b32.xlu1 %v8700_v43, %s12118_s25 }
 0x416   :  { %2069 = vrot.lane.b32.xlu0 %v8698_v62, %s12120_s24 }
 0x417   :  { %v1963_v2 = vpop.permute.xlu2 %1962 }
 0x418   :  { %v2012_v25 = vpop.permute.xlu0 %2011  ;;  %v1961_v47 = vpop.permute.xlu1 %1960 }
 0x419   :  { %v8784_v4 = vsel %vm630_vm9, %v8744_v55, %v2012_v25  ;;  %v8796_v57 = vsel %vm12156_vm12, %v8758_v1, %v1961_v47  ;;  %v8876_v36 = vsel %vm12156_vm12, %v1961_v47, %v1963_v2 }
 0x41a   :  { %2421 = vmatpush.msrb.mxu0 %v8784_v4 }
 0x41b   :  { %2124 = vrot.lane.b32.xlu2 %v8698_v62, %s12108_s2 }
 0x41c   :  { %2422 = vmatpush.msrb.mxu0 %v8789_v54 }
 0x41d   :  { %2270 = vrot.lane.b32.xlu1 %v8694_v41, %s12100_s27  ;;  %s12250_s27 = smov 63  }
 0x41e   :  { %2126 = vrot.lane.b32.xlu0 %v8700_v43, %s12108_s2  ;;  %2423 = vmatpush.msrb.mxu0 %v8796_v57 }
 0x420   :  { %v1937_v7 = vpop.permute.xlu0 %1936 }
 0x421   :  { %v8805_v39 = vsel %vm131_vm1, %v8752_v22, %v1937_v7 }
 0x422   :  { %2424 = vmatpush.msrb.mxu0 %v8805_v39 }
 0x423   :  { %2250 = vrot.lane.b32.xlu2 %v8694_v41, %s12118_s25  ;;  %s12258_s25 = smov 127  }
 0x425   :  { %v8810_v6 = vpop.permute.xlu2 %1989  ;;  %2096 = vrot.lane.b32.xlu1 %v8698_v62, %s12106_s26 }
 0x426   :  { %2005 = vst.msk [vmem:[#allocation2 + $0x100] sm:$0xff] %vm1901_vm14, %v8810_v6  ;;  %2044 = vrot.lane.b32.xlu0 %v8700_v43, %s12116_s13 }
 0x428   :  { %v1913_v59 = vpop.permute.xlu0 %1912 }
 0x429   :  { %v8820_v12 = vsel %vm210_vm5, %v8766_v3, %v1913_v59 }
 0x42a   :  { %2425 = vmatpush.msrb.mxu0 %v8820_v12 }
 0x42b   :  { %2042 = vrot.lane.b32.xlu2 %v8698_v62, %s12116_s13 }
 0x42c   :  { %2426 = vmatpush.msrb.mxu0 %v8647_v27 }
 0x42d   :  { %v8828_v23 = vpop.permute.xlu2 %1964  ;;  %2240 = vrot.lane.b32.xlu1 %v8694_v41, %s12110_s30 }
 0x42e   :  { %1980 = vst.msk [vmem:[#allocation2 + $0xc8] sm:$0xff] %vm1901_vm14, %v8828_v23  ;;  %2208 = vrot.lane.b32.xlu0 %v8694_v41, %s12120_s24  ;;  %2427 = vmatpush.msrb.mxu0 %v2129_v30  ;;  %v8882_v17 = vsel %vm12156_vm12, %v1963_v2, %v8828_v23 }
 0x42f   :  { %v8838_v51 = vpop.permute.xlu1 %2013 }
 0x430   :  { %v8842_v44 = vsel %vm630_vm9, %v2012_v25, %v8838_v51  ;;  %v1939_v16 = vpop.permute.xlu0 %1938  ;;  %2428 = vmatpush.msrb.mxu0 %v2101_v42 }
 0x431   :  { %2467 = vmatpush.msrb.mxu3 %v8842_v44  ;;  %v8888_v13 = vsel %vm131_vm1, %v1937_v7, %v1939_v16 }
 0x433   :  { %2071 = vrot.lane.b32.xlu2 %v8700_v43, %s12120_s24 }
 0x435   :  { %v8847_v46 = vpop.permute.xlu2 %1940  ;;  %2098 = vrot.lane.b32.xlu1 %v8700_v43, %s12106_s26 }
 0x436   :  { %1955 = vst.msk [vmem:[#allocation2 + $0x90] sm:$0xff] %vm1901_vm14, %v8847_v46  ;;  %v8894_v11 = vsel %vm131_vm1, %v1939_v16, %v8847_v46 }
 0x437   :  { %v1988_v18 = vpop.permute.xlu1 %1987 }
 0x438   :  { %v8865_v52 = vsel %vm1991_vm11, %v1986_v48, %v1988_v18  ;;  %v8869_v5 = vsel %vm1991_vm11, %v1988_v18, %v8810_v6  ;;  %v2062_v33 = vpop.permute.xlu0 %2061 }
 0x439   :  { %2451 = vmatpush.msrb.mxu2 %v8865_v52  ;;  %2468 = vmatpush.msrb.mxu3 %v8865_v52 }
 0x43a   :  { %2497 = vmatpush.msrb.mxu1 %v8869_v5 }
 0x43b   :  { %2217 = vrot.lane.b32.xlu2 %v8694_v41, %s12106_s26  ;;  %2452 = vmatpush.msrb.mxu2 %v8876_v36 }
 0x43c   :  { %2469 = vmatpush.msrb.mxu3 %v8876_v36  ;;  %2498 = vmatpush.msrb.mxu1 %v8882_v17 }
 0x43d   :  { %v8896_v56 = vpop.permute.xlu2 %2120  ;;  %2226 = vrot.lane.b32.xlu1 %v8694_v41, %s12108_s2  ;;  %2453 = vmatpush.msrb.mxu2 %v8888_v13  ;;  %s12256_s2 = smov 96  }
 0x43e   :  { %2470 = vmatpush.msrb.mxu3 %v8888_v13  ;;  %2499 = vmatpush.msrb.mxu1 %v8894_v11  ;;  %v2130_v0 = vsel %vm12155_vm13, %v8772_v37, %v8896_v56 }
 0x43f   :  { %v8903_v19 = vpop.permute.xlu1 %2015 }
 0x440   :  { %v2035_v35 = vpop.permute.xlu0 %2034 }
 0x443   :  { %2407 = vperm.xlu2 %7143, %v49_v24  }
 0x445   :  { %v8908_v9 = vpop.permute.xlu2 %2092  ;;  %2199 = vrot.lane.b32.xlu1 %v8694_v41, %s12116_s13 }
 0x446   :  { %v2102_v58 = vsel %vm12105_vm15, %v8774_v60, %v8908_v9 }
 0x447   :  { %v1915_v31 = vpop.permute.xlu1 %1914 }
 0x448   :  { %v8913_v45 = vsel %vm210_vm5, %v1913_v59, %v1915_v31  ;;  %v8915_v8 = vpop.permute.xlu0 %1916 }
 0x449   :  { %v8919_v53 = vsel %vm210_vm5, %v1915_v31, %v8915_v8  ;;  %1931 = vst.msk [vmem:[#allocation2 + $0x58] sm:$0xff] %vm1901_vm14, %v8915_v8  ;;  %2454 = vmatpush.msrb.mxu2 %v8913_v45  ;;  %2471 = vmatpush.msrb.mxu3 %v8913_v45 }
 0x44a   :  { %2500 = vmatpush.msrb.mxu1 %v8919_v53 }
 0x44b   :  { %2455 = vmatpush.msrb.mxu2 %v8668_v34  ;;  %2472 = vmatpush.msrb.mxu3 %v8668_v34 }
 0x44c   :  { %2501 = vmatpush.msrb.mxu1 %v8681_v10 }
 0x44d   :  { %v1957_v20 = vpop.permute.xlu2 %1956  ;;  %2456 = vmatpush.msrb.mxu2 %v2130_v0  ;;  %2473 = vmatpush.msrb.mxu3 %v2130_v0 }
 0x44e   :  { %v1967_v2 = vsel %vm12156_vm12, %v1957_v20, %v8758_v1  ;;  %v8969_v1 = vld [vmem:[%s12035_s3] sm:$0xff] }
 0x44f   :  { %v2064_v14 = vpop.permute.xlu1 %2063  ;;  %2457 = vmatpush.msrb.mxu2 %v2102_v58  ;;  %2474 = vmatpush.msrb.mxu3 %v2102_v58 }
 0x450   :  { %v2073_v63 = vsel %vm846_vm2, %v2062_v33, %v2064_v14  ;;  %v1982_v29 = vpop.permute.xlu0 %1981 }
 0x451   :  { %2429 = vmatpush.msrb.mxu0 %v2073_v63  ;;  %v1992_v47 = vsel %vm1991_vm11, %v1982_v29, %v8762_v49 }
 0x455   :  { %v1933_v41 = vpop.permute.xlu2 %1932 }
 0x457   :  { %v2037_v21 = vpop.permute.xlu1 %2036 }
 0x458   :  { %v2046_v61 = vsel %vm738_vm6, %v2035_v35, %v2037_v21  ;;  %v8943_v15 = vpop.permute.xlu0 %2038 }
 0x459   :  { %2430 = vmatpush.msrb.mxu0 %v2046_v61  ;;  %v2047_v16 = vsel %vm738_vm6, %v2037_v21, %v8943_v15 }
 0x45d   :  { %v1909_v40 = vpop.permute.xlu2 %1908 }
 0x45e   :  { %v1918_v30 = vsel %vm210_vm5, %v1909_v40, %v8766_v3  ;;  %v8983_v3 = vsel %vm630_vm9, %v8838_v51, %v8903_v19 }
 0x45f   :  { %v2008_v37 = vpop.permute.xlu1 %2007 }
 0x460   :  { %v2019_v60 = vsel %vm630_vm9, %v2008_v37, %v8744_v55  ;;  %v2018_v48 = vpop.permute.xlu0 %2017  ;;  %v1942_v55 = vsel %vm131_vm1, %v1933_v41, %v8752_v22  ;;  %v8976_v22 = vld [vmem:[%s12035_s3 + $0x8] sm:$0xff] }
 0x461   :  { %v8949_v25 = vsel %vm630_vm9, %v8903_v19, %v2018_v48  ;;  %2431 = vmatpush.msrb.mxu0 %v2019_v60 }
 0x462   :  { %2033 = vst.msk [vmem:[#allocation2 + $0x138] sm:$0xff] %vm1901_vm14, %v8949_v25 }
 0x463   :  { %2432 = vmatpush.msrb.mxu0 %v1992_v47 }
 0x465   :  { %v8957_v7 = vpop.permute.xlu2 %2040  ;;  %2433 = vmatpush.msrb.mxu0 %v1967_v2  ;;  %v50_v2 = vld [vmem:[%s12036_s4 + $0x8] sm:$0xff]  ;;  %s12253_s4 = smov 62  }
 0x466   :  { %2412 = vperm.xlu0 %7144, %v50_v2  }
 0x467   :  { %v2066_v59 = vpop.permute.xlu1 %2065  ;;  %2434 = vmatpush.msrb.mxu0 %v1942_v55 }
 0x468   :  { %v2074_v49 = vsel %vm846_vm2, %v2064_v14, %v2066_v59  ;;  %v8964_v42 = vpop.permute.xlu0 %2067 }
 0x469   :  { %2435 = vmatpush.msrb.mxu0 %v1918_v30  ;;  %2458 = vmatpush.msrb.mxu2 %v2074_v49 }
 0x46a   :  { %2475 = vmatpush.msrb.mxu3 %v2074_v49 }
 0x46b   :  { %2436 = vmatpush.msrb.mxu0 %v8645_v38  ;;  %2459 = vmatpush.msrb.mxu2 %v2047_v16 }
 0x46c   :  { %2476 = vmatpush.msrb.mxu3 %v2047_v16  ;;  %2437 = vmatmul.f32.vlgmr.msrb.gmra.mxu0 %v8969_v1 }
 0x46d   :  { %v2191_v18 = vpop.permute.xlu2 %2190  ;;  %6734 = vmatmul.msk.f32.vlgmr.msrb.gmra.mxu2 %vm12243_vm10, %v8976_v22 }
 0x46e   :  { %v2192_v33 = vsel %vm630_vm9, %v2018_v48, %v2191_v18  ;;  %2513 = vmatpush.msra.mxu2 %v8983_v3  ;;  %2477 = vmatpush.msrb.mxu3 %v8784_v4  ;;  %v9007_v4 = vld [vmem:[%s12035_s3 + $0x18] sm:$0xff] }
 0x46f   :  { %2198 = vst.msk [vmem:[#allocation2 + $0x368] sm:$0xff] %vm1901_vm14, %v2192_v33  ;;  %v8991_v38 = vpop.permute.xlu1 %2122 }
 0x470   :  { %v2131_v24 = vsel %vm12155_vm13, %v8896_v56, %v8991_v38  ;;  %v8996_v51 = vpop.permute.xlu0 %2169  ;;  %2514 = vmatpush.msra.mxu2 %v8869_v5  ;;  %2478 = vmatpush.msrb.mxu3 %v8789_v54  ;;  %v9018_v54 = vld [vmem:[%s12032_s0 + $0x58] sm:$0xff] }
 0x471   :  { %2178 = vst.msk [vmem:[#allocation2 + $0x2f8] sm:$0xff] %vm1901_vm14, %v8996_v51  ;;  %2502 = vmatpush.msrb.mxu1 %v2131_v24  ;;  %v2171_v58 = vsel %vm12156_vm12, %v8828_v23, %v8996_v51 }
 0x472   :  { %2515 = vmatpush.msra.mxu2 %v8882_v17  ;;  %2479 = vmatpush.msrb.mxu3 %v8796_v57  ;;  %4461 = vst [vmem:[#allocation2 + $0x470] sm:$0xff] %v9018_v54  ;;  %v9023_v57 = vld [vmem:[#allocation2 + $0x18] sm:$0xff] }
 0x473   :  { %3461 = vst [vmem:[#allocation2 + $0x18] sm:$0xff] %v9018_v54 }
 0x474   :  { %2516 = vmatpush.msra.mxu2 %v8894_v11  ;;  %2480 = vmatpush.msrb.mxu3 %v8805_v39  ;;  %v9030_v39 = vld [vmem:[%s12035_s3 + $0x10] sm:$0xff]  ;;  %s7336_s3 = smov [#allocation3]  }
 0x475   :  { %v9011_v56 = vpop.permute.xlu2 %2124  ;;  %6735 = vmatmul.msk.f32.gmra.mxu2 %vm12243_vm10, %v9007_v4  ;;  %2440 = vmatmul.f32.gmra.mxu0 %v9030_v39 }
 0x476   :  { %2517 = vmatpush.msra.mxu2 %v8919_v53  ;;  %2481 = vmatpush.msrb.mxu3 %v8820_v12  ;;  %v2075_v12 = vsel %vm846_vm2, %v2066_v59, %v8964_v42  ;;  %v2359_v49 = vld [vmem:[#allocation2 + $0x368] sm:$0xff] }
 0x477   :  { %v9025_v19 = vpop.permute.xlu1 %2094 }
 0x478   :  { %v2103_v35 = vsel %vm12105_vm15, %v8908_v9, %v9025_v19  ;;  %v9036_v31 = vpop.permute.xlu0 %2149  ;;  %2518 = vmatpush.msra.mxu2 %v8681_v10  ;;  %2482 = vmatpush.msrb.mxu3 %v8647_v27  ;;  %v2048_v9 = vsel %vm738_vm6, %v8943_v15, %v8957_v7 }
 0x479   :  { %2158 = vst.msk [vmem:[#allocation2 + $0x288] sm:$0xff] %vm1901_vm14, %v9036_v31  ;;  %2483 = vmatmul.f32.vlgmr.msrb.gmra.mxu3 %v8969_v1  ;;  %2503 = vmatpush.msrb.mxu1 %v2103_v35 }
 0x47a   :  { %2519 = vmatpush.msra.mxu2 %v2131_v24 }
 0x47b   :  { %2504 = vmatpush.msrb.mxu1 %v2075_v12 }
 0x47c   :  { %2520 = vmatpush.msra.mxu2 %v2103_v35 }
 0x47d   :  { %v2251_v10 = vpop.permute.xlu2 %2250  ;;  %2505 = vmatpush.msrb.mxu1 %v2048_v9 }
 0x47e   :  { %2259 = vst.msk [vmem:[#allocation2 + $0x4f0] sm:$0xff] %vm1901_vm14, %v2251_v10  ;;  %2521 = vmatpush.msra.mxu2 %v2075_v12  ;;  %6736 = vmatmul.msk.f32.vlgmr.msrb.gmra.mxu1 %vm12243_vm10, %v8976_v22 }
 0x47f   :  { %2559 = vmatpush.msra.mxu1 %v8949_v25  ;;  %v2180_v27 = vpop.permute.xlu1 %2179 }
 0x480   :  { %v2181_v0 = vsel %vm1991_vm11, %v8810_v6, %v2180_v27  ;;  %2188 = vst.msk [vmem:[#allocation2 + $0x330] sm:$0xff] %vm1901_vm14, %v2180_v27  ;;  %v2261_v20 = vpop.permute.xlu0 %2260  ;;  %2522 = vmatpush.msra.mxu2 %v2048_v9  ;;  %v2339_v24 = vld [vmem:[#allocation2 + $0x288] sm:$0xff]  ;;  %v2309_v9 = vld [vmem:[#allocation2 + $0x138] sm:$0xff] }
 0x481   :  { %2269 = vst.msk [vmem:[#allocation2 + $0x528] sm:$0xff] %vm1901_vm14, %v2261_v20  ;;  %2543 = vmatpush.msra.mxu0 %v2181_v0  ;;  %2560 = vmatpush.msra.mxu1 %v2181_v0 }
 0x482   :  { %2523 = vmatpush.msra.mxu2 %v8842_v44  ;;  %2486 = vmatmul.f32.gmra.mxu3 %v9030_v39  ;;  %v2151_v44 = vsel %vm210_vm5, %v8915_v8, %v9036_v31  ;;  %v2132_v8 = vsel %vm12155_vm13, %v8991_v38, %v9011_v56  ;;  %v2349_v38 = vld [vmem:[#allocation2 + $0x2f8] sm:$0xff] }
 0x483   :  { %2544 = vmatpush.msra.mxu0 %v2171_v58  ;;  %2561 = vmatpush.msra.mxu1 %v2171_v58 }
 0x484   :  { %2524 = vmatpush.msra.mxu2 %v8865_v52  ;;  %v9074_v52 = vld [vmem:[#allocation2 + $0x480] sm:$0xff] }
 0x485   :  { %v2043_v6 = vpop.permute.xlu2 %2042  ;;  %v2394_v59 = vld [vmem:[#allocation2 + $0x4f0] sm:$0xff] }
 0x486   :  { %2525 = vmatpush.msra.mxu2 %v8876_v36  ;;  %6737 = vmatmul.msk.f32.gmra.mxu1 %vm12243_vm10, %v9007_v4  ;;  %v6985_v36 = vld [vmem:[%s12032_s0 + $0x68] sm:$0xff]  ;;  %v2049_v30 = vsel %vm738_vm6, %v8957_v7, %v2043_v6 }
 0x487   :  { %v2160_v14 = vpop.permute.xlu1 %2159  ;;  %4463 = vst [vmem:[#allocation2 + $0x480] sm:$0xff] %v6985_v36  ;;  %v2354_v33 = vld [vmem:[#allocation2 + $0x330] sm:$0xff] }
 0x488   :  { %v2161_v63 = vsel %vm131_vm1, %v8847_v46, %v2160_v14  ;;  %2168 = vst.msk [vmem:[#allocation2 + $0x2c0] sm:$0xff] %vm1901_vm14, %v2160_v14  ;;  %v2070_v23 = vpop.permute.xlu0 %2069  ;;  %2526 = vmatpush.msra.mxu2 %v8888_v13  ;;  %v9082_v46 = vld [vmem:[%s12032_s0 + $0x60] sm:$0xff]  ;;  %v2252_v15 = vsel %vm131_vm1, %v2160_v14, %v2251_v10  ;;  %v2399_v47 = vld [vmem:[#allocation2 + $0x528] sm:$0xff] }
 0x489   :  { %2545 = vmatpush.msra.mxu0 %v2161_v63  ;;  %2562 = vmatpush.msra.mxu1 %v2161_v63  ;;  %4462 = vst [vmem:[#allocation2 + $0x478] sm:$0xff] %v9082_v46  ;;  %v9086_v13 = vld [vmem:[#allocation2 + $0x20] sm:$0xff]  ;;  %v2076_v55 = vsel %vm846_vm2, %v8964_v42, %v2070_v23  ;;  %v2294_v63 = vld [vmem:[#allocation2 + $0x90] sm:$0xff] }
 0x48a   :  { %2527 = vmatpush.msra.mxu2 %v8913_v45  ;;  %3462 = vst [vmem:[#allocation2 + $0x20] sm:$0xff] %v9082_v46 }
 0x48b   :  { %2546 = vmatpush.msra.mxu0 %v2151_v44  ;;  %2563 = vmatpush.msra.mxu1 %v2151_v44 }
 0x48c   :  { %2528 = vmatpush.msra.mxu2 %v8668_v34 }
 0x48d   :  { %v2072_v45 = vpop.permute.xlu2 %2071  ;;  %2529 = vmatmul.f32.vlgmr.msra.gmra.mxu2 %v8969_v1  ;;  %2547 = vmatpush.msra.mxu0 %v8698_v62 }
 0x48e   :  { %v9095_v29 = vsel %vm846_vm2, %v2070_v23, %v2072_v45  ;;  %2564 = vmatpush.msra.mxu1 %v8698_v62  ;;  %v2262_v62 = vsel %vm12156_vm12, %v8996_v51, %v2261_v20  ;;  %v2304_v20 = vld [vmem:[#allocation2 + $0x100] sm:$0xff]  ;;  %v2289_v23 = vld [vmem:[#allocation2 + $0x58] sm:$0xff] }
 0x48f   :  { %2087 = vst.msk [vmem:[#allocation2 + $0x1a8] sm:$0xff] %vm1901_vm14, %v9095_v29  ;;  %v2271_v34 = vpop.permute.xlu1 %2270  ;;  %2548 = vmatpush.msra.mxu0 %v2132_v8 }
 0x490   :  { %v2272_v41 = vsel %vm1991_vm11, %v2180_v27, %v2271_v34  ;;  %2279 = vst.msk [vmem:[#allocation2 + $0x560] sm:$0xff] %vm1901_vm14, %v2271_v34  ;;  %v9102_v21 = vpop.permute.xlu0 %2126  ;;  %2565 = vmatpush.msra.mxu1 %v2132_v8 }
 0x491   :  { %v2133_v61 = vsel %vm12155_vm13, %v9011_v56, %v9102_v21  ;;  %2589 = vmatpush.msra.mxu3 %v2272_v41 }
 0x492   :  { %2143 = vst.msk [vmem:[#allocation2 + $0x218] sm:$0xff] %vm1901_vm14, %v2133_v61 }
 0x493   :  { %2590 = vmatpush.msra.mxu3 %v2262_v62 }
 0x495   :  { %2591 = vmatpush.msra.mxu3 %v2252_v15  ;;  %2532 = vmatmul.f32.gmra.mxu2 %v9030_v39  ;;  %v2218_v51 = vpop.permute.xlu2 %2217 }
 0x497   :  { %v2097_v40 = vpop.permute.xlu1 %2096  ;;  %v2404_v37 = vld [vmem:[#allocation2 + $0x560] sm:$0xff] }
 0x498   :  { %v2104_v60 = vsel %vm12105_vm15, %v9025_v19, %v2097_v40  ;;  %2635 = vmatpush.msrb.mxu2 %v2404_v37  ;;  %v9114_v48 = vpop.permute.xlu0 %2044 }
 0x499   :  { %v2050_v25 = vsel %vm738_vm6, %v2043_v6, %v9114_v48  ;;  %2549 = vmatpush.msra.mxu0 %v2104_v60  ;;  %2566 = vmatpush.msra.mxu1 %v2104_v60  ;;  %v2299_v6 = vld [vmem:[#allocation2 + $0xc8] sm:$0xff] }
 0x49a   :  { %2060 = vst.msk [vmem:[#allocation2 + $0x170] sm:$0xff] %vm1901_vm14, %v2050_v25  ;;  %2636 = vmatpush.msrb.mxu2 %v2399_v47 }
 0x49b   :  { %2550 = vmatpush.msra.mxu0 %v2076_v55  ;;  %2567 = vmatpush.msra.mxu1 %v2076_v55 }
 0x49c   :  { %2637 = vmatpush.msrb.mxu2 %v2394_v59 }
 0x49d   :  { %2551 = vmatpush.msra.mxu0 %v2049_v30  ;;  %2568 = vmatpush.msra.mxu1 %v2049_v30  ;;  %v9167_v34 = vpop.permute.xlu2 %2407 }
 0x49e   :  { %6738 = vmatmul.msk.f32.vlgmr.msra.gmra.mxu0 %vm12243_vm10, %v8976_v22  ;;  %12246 = vst [vmem:[#allocation20_spill] sm:$0xff] %v9167_v34 }
 0x49f   :  { %v2241_v16 = vpop.permute.xlu1 %2240  ;;  %2605 = vmatpush.msrb.mxu0 %v2359_v49  ;;  %2569 = vmatpush.msra.mxu1 %v8983_v3  ;;  %v2344_v3 = vld [vmem:[#allocation2 + $0x2c0] sm:$0xff] }
 0x4a0   :  { %v2242_v42 = vsel %vm210_vm5, %v9036_v31, %v2241_v16  ;;  %2249 = vst.msk [vmem:[#allocation2 + $0x4b8] sm:$0xff] %vm1901_vm14, %v2241_v16  ;;  %v2209_v18 = vpop.permute.xlu0 %2208  ;;  %v2319_v31 = vld [vmem:[#allocation2 + $0x1a8] sm:$0xff] }
 0x4a1   :  { %v2210_v7 = vsel %vm846_vm2, %v2072_v45, %v2209_v18  ;;  %2606 = vmatpush.msrb.mxu0 %v2354_v33  ;;  %2570 = vmatpush.msra.mxu1 %v8869_v5  ;;  %v2314_v12 = vld [vmem:[#allocation2 + $0x170] sm:$0xff] }
 0x4a2   :  { %2216 = vst.msk [vmem:[#allocation2 + $0x3d8] sm:$0xff] %vm1901_vm14, %v2210_v7  ;;  %2592 = vmatpush.msra.mxu3 %v2242_v42 }
 0x4a3   :  { %2607 = vmatpush.msrb.mxu0 %v2349_v38  ;;  %2571 = vmatpush.msra.mxu1 %v8882_v17 }
 0x4a4   :  { %2593 = vmatpush.msra.mxu3 %v8700_v43  ;;  %v2334_v43 = vld [vmem:[#allocation2 + $0x250] sm:$0xff] }
 0x4a5   :  { %2608 = vmatpush.msrb.mxu0 %v2344_v3  ;;  %2572 = vmatpush.msra.mxu1 %v8894_v11  ;;  %v2329_v11 = vld [vmem:[#allocation2 + $0x218] sm:$0xff] }
 0x4a6   :  { %2594 = vmatpush.msra.mxu3 %v2133_v61  ;;  %6739 = vmatmul.msk.f32.gmra.mxu0 %vm12243_vm10, %v9007_v4 }
 0x4a7   :  { %v2099_v5 = vpop.permute.xlu1 %2098  ;;  %v2389_v56 = vld [vmem:[#allocation2 + $0x4b8] sm:$0xff]  ;;  %2609 = vmatpush.msrb.mxu0 %v2339_v24  ;;  %2573 = vmatpush.msra.mxu1 %v8919_v53 }
 0x4a8   :  { %v2105_v19 = vsel %vm12105_vm15, %v2097_v40, %v2099_v5  ;;  %v2219_v17 = vsel %vm12105_vm15, %v2099_v5, %v2218_v51  ;;  %2638 = vmatpush.msrb.mxu2 %v2389_v56  ;;  %vm12244_vm15 = vmmov %vm12243_vm10 }
 0x4a9   :  { %2115 = vst.msk [vmem:[#allocation2 + $0x1e0] sm:$0xff] %vm1901_vm14, %v2105_v19  ;;  %2610 = vmatpush.msrb.mxu0 %v2334_v43  ;;  %2574 = vmatpush.msra.mxu1 %v9023_v57  ;;  %v2369_v14 = vld [vmem:[#allocation2 + $0x3d8] sm:$0xff] }
 0x4aa   :  { %2225 = vst.msk [vmem:[#allocation2 + $0x410] sm:$0xff] %vm1901_vm14, %v2219_v17  ;;  %2639 = vmatpush.msrb.mxu2 %v9074_v52  ;;  %2595 = vmatpush.msra.mxu3 %v2105_v19 }
 0x4ab   :  { %2575 = vmatmul.f32.vlgmr.msra.gmra.mxu1 %v8969_v1  ;;  %2611 = vmatpush.msrb.mxu0 %v2329_v11 }
 0x4ac   :  { %2596 = vmatpush.msra.mxu3 %v9095_v29 }
 0x4ae   :  { %2597 = vmatpush.msra.mxu3 %v2050_v25 }
 0x4af   :  { %v2227_v53 = vpop.permute.xlu1 %2226  ;;  %6740 = vmatmul.msk.f32.vlgmr.msra.gmra.mxu3 %vm12243_vm10, %v8976_v22 }
 0x4b0   :  { %v2228_v35 = vsel %vm12155_vm13, %v9102_v21, %v2227_v53  ;;  %v2324_v57 = vld [vmem:[#allocation2 + $0x1e0] sm:$0xff] }
 0x4b1   :  { %2234 = vst.msk [vmem:[#allocation2 + $0x448] sm:$0xff] %vm1901_vm14, %v2228_v35  ;;  %2612 = vmatpush.msrb.mxu0 %v2324_v57  ;;  %v2374_v58 = vld [vmem:[#allocation2 + $0x410] sm:$0xff] }
 0x4b3   :  { %2613 = vmatpush.msrb.mxu0 %v2319_v31  ;;  %2578 = vmatmul.f32.gmra.mxu1 %v9030_v39 }
 0x4b5   :  { %2614 = vmatpush.msrb.mxu0 %v2314_v12 }
 0x4b7   :  { %v2200_v10 = vpop.permute.xlu1 %2199  ;;  %2615 = vmatpush.msrb.mxu0 %v2309_v9  ;;  %6741 = vmatmul.msk.f32.gmra.mxu3 %vm12244_vm15, %v9007_v4  ;;  %vm12245_vm15 = vmmov %vm12243_vm10 }
 0x4b8   :  { %v2201_v27 = vsel %vm738_vm6, %v9114_v48, %v2200_v10  ;;  %v2379_v0 = vld [vmem:[#allocation2 + $0x448] sm:$0xff] }
 0x4b9   :  { %2207 = vst.msk [vmem:[#allocation2 + $0x3a0] sm:$0xff] %vm1901_vm14, %v2201_v27  ;;  %2640 = vmatpush.msrb.mxu2 %v2379_v0  ;;  %2616 = vmatpush.msrb.mxu0 %v2304_v20 }
 0x4bb   :  { %2641 = vmatpush.msrb.mxu2 %v2374_v58  ;;  %2617 = vmatpush.msrb.mxu0 %v2299_v6 }
 0x4bd   :  { %2642 = vmatpush.msrb.mxu2 %v2369_v14  ;;  %2618 = vmatpush.msrb.mxu0 %v2294_v63 }
 0x4bf   :  { %2619 = vmatpush.msrb.mxu0 %v2289_v23 }
 0x4c0   :  { %v2364_v44 = vld [vmem:[#allocation2 + $0x3a0] sm:$0xff] }
 0x4c1   :  { %2643 = vmatpush.msrb.mxu2 %v2364_v44  ;;  %2620 = vmatpush.msrb.mxu0 %v9086_v13 }
 0x4c2   :  { %6742 = vmatmul.msk.f32.vlgmr.msrb.gmra.mxu2 %vm12245_vm15, %v8976_v22  ;;  %2621 = vmatmul.f32.vlgmr.msrb.gmra.mxu0 %v8969_v1  ;;  %vm12154_vm15 = vcmask 1040384  }
 0x4ca   :  { %6743 = vmatmul.msk.f32.gmra.mxu2 %vm12243_vm10, %v9007_v4  ;;  %2624 = vmatmul.f32.gmra.mxu0 %v9030_v39  ;;  %vm12152_vm10 = vcmask 138240  }
 0x4d8   :  { %v9173_v25 = vpop.permute.xlu0 %2412 }
 0x4d9   :  { %12247 = vst [vmem:[#allocation9_spill] sm:$0xff] %v9173_v25 }
 0x4e9   :  { %v2438_v36 = vpop.f32.mrf.mxu0 }
 0x4ea   :  { %v2439_v48 = vadd.f32 %v2438_v36, %v9167_v34 }
 0x4f0   :  { %v2461_v52 = vpop.f32.mrf.mxu2 }
 0x4f1   :  { %v9175_v2 = vadd.f32 %v2461_v52, %v2439_v48 }
 0x4f2   :  { %v2441_v8 = vpop.f32.mrf.mxu0 }
 0x4f3   :  { %v2651_v33 = vmax.f32 %v9175_v2, 0.0  ;;  %v2442_v38 = vadd.f32 %v2441_v8, %v9173_v25 }
 0x4f8   :  { %v2464_v45 = vpop.f32.mrf.mxu2 }
 0x4f9   :  { %v9187_v56 = vadd.f32 %v2464_v45, %v2442_v38  ;;  %v81_v38 = vld [vmem:[%s12037_s5 + $0xf0] sm:$0xff] }
 0x4fb   :  { %v2507_v13 = vpop.f32.mrf.mxu1  ;;  %v2656_v53 = vmax.f32 %v9187_v56, 0.0  ;;  %v77_v56 = vld [vmem:[%s12037_s5 + $0xd0] sm:$0xff] }
 0x4fc   :  { %v2484_v29 = vpop.f32.mrf.mxu3 }
 0x4fd   :  { %v2485_v41 = vadd.f32 %v2484_v29, %v9167_v34 }
 0x4ff   :  { %v2508_v61 = vadd.f32 %v2507_v13, %v2485_v41 }
 0x501   :  { %v2652_v15 = vmax.f32 %v2508_v61, 0.0 }
 0x503   :  { %v2510_v39 = vpop.f32.mrf.mxu1 }
 0x505   :  { %v2487_v37 = vpop.f32.mrf.mxu3 }
 0x506   :  { %v2488_v30 = vadd.f32 %v2487_v37, %v9173_v25 }
 0x508   :  { %v2511_v3 = vadd.f32 %v2510_v39, %v2488_v30 }
 0x50a   :  { %v2657_v17 = vmax.f32 %v2511_v3, 0.0 }
 0x510   :  { %v2530_v21 = vpop.f32.mrf.mxu2 }
 0x511   :  { %v2531_v22 = vadd.f32 %v2530_v21, %v9167_v34 }
 0x518   :  { %v2533_v47 = vpop.f32.mrf.mxu2 }
 0x519   :  { %v2534_v49 = vadd.f32 %v2533_v47, %v9173_v25 }
 0x51b   :  { %v2553_v1 = vpop.f32.mrf.mxu0 }
 0x51c   :  { %v2554_v62 = vadd.f32 %v2553_v1, %v2531_v22 }
 0x51e   :  { %v2653_v4 = vmax.f32 %v2554_v62, 0.0 }
 0x520   :  { %v7145_v40 = vpack.i.bf16 %v2653_v4, %v2652_v15 }
 0x522   :  { %7146 = vrot.lane.b32.xlu1 %v7145_v40, %s12110_s30 }
 0x523   :  { %v2556_v42 = vpop.f32.mrf.mxu0 }
 0x524   :  { %v2557_v24 = vadd.f32 %v2556_v42, %v2534_v49 }
 0x526   :  { %v2658_v43 = vmax.f32 %v2557_v24, 0.0  ;;  %v79_v24 = vld [vmem:[%s12037_s5 + $0xe0] sm:$0xff] }
 0x528   :  { %v2576_v60 = vpop.f32.mrf.mxu1  ;;  %v7155_v57 = vpack.i.bf16 %v2658_v43, %v2657_v17 }
 0x529   :  { %v2577_v55 = vadd.f32 %v2576_v60, %v9167_v34 }
 0x530   :  { %v2579_v18 = vpop.f32.mrf.mxu1 }
 0x531   :  { %v2580_v5 = vadd.f32 %v2579_v18, %v9173_v25 }
 0x532   :  { %v2599_v59 = vpop.f32.mrf.mxu3 }
 0x533   :  { %v9180_v16 = vadd.f32 %v2599_v59, %v2577_v55 }
 0x535   :  { %v2654_v7 = vmax.f32 %v9180_v16, 0.0  ;;  %v82_v16 = vld [vmem:[%s12037_s5 + $0xf8] sm:$0xff] }
 0x536   :  { %2811 = vmatpush.msrb.mxu1 %v82_v16  ;;  %v108_v16 = vld [vmem:[%s12037_s5 + $0x1c8] sm:$0xff] }
 0x537   :  { %v7150_v51 = vpack.i.bf16 %v2651_v33, %v2654_v7 }
 0x538   :  { %2812 = vmatpush.msrb.mxu1 %v81_v38  ;;  %v107_v38 = vld [vmem:[%s12037_s5 + $0x1c0] sm:$0xff] }
 0x539   :  { %7151 = vrot.lane.b32.xlu2 %v7150_v51, %s12110_s30 }
 0x53a   :  { %v2602_v19 = vpop.f32.mrf.mxu3 }
 0x53b   :  { %v9189_v11 = vadd.f32 %v2602_v19, %v2580_v5 }
 0x53d   :  { %v2659_v35 = vmax.f32 %v9189_v11, 0.0  ;;  %v76_v11 = vld [vmem:[%s12037_s5 + $0xc8] sm:$0xff] }
 0x53f   :  { %v7160_v31 = vpack.i.bf16 %v2656_v53, %v2659_v35  ;;  %v2622_v12 = vpop.f32.mrf.mxu0 }
 0x540   :  { %v2623_v9 = vadd.f32 %v2622_v12, %v9167_v34  ;;  %v72_v12 = vld [vmem:[%s12037_s5 + $0xa8] sm:$0xff] }
 0x541   :  { %7161 = vrot.lane.b32.xlu0 %v7160_v31, %s12110_s30  ;;  %7156 = vrot.lane.b32.xlu2 %v7155_v57, %s12110_s30  ;;  %v73_v31 = vld [vmem:[%s12037_s5 + $0xb0] sm:$0xff] }
 0x545   :  { %v2645_v10 = vpop.f32.mrf.mxu2 }
 0x546   :  { %v2646_v27 = vadd.f32 %v2645_v10, %v2623_v9  ;;  %v71_v9 = vld [vmem:[%s12037_s5 + $0xa0] sm:$0xff]  ;;  %v70_v10 = vld [vmem:[%s12037_s5 + $0x98] sm:$0xff] }
 0x547   :  { %v2625_v20 = vpop.f32.mrf.mxu0 }
 0x548   :  { %v2655_v0 = vmax.f32 %v2646_v27, 0.0  ;;  %v2626_v58 = vadd.f32 %v2625_v20, %v9173_v25  ;;  %v69_v27 = vld [vmem:[%s12037_s5 + $0x90] sm:$0xff]  ;;  %v67_v20 = vld [vmem:[%s12037_s5 + $0x80] sm:$0xff] }
 0x54a   :  { %2679 = vrot.lane.b32.xlu1 %v2655_v0, %s12110_s30 }
 0x54d   :  { %v2648_v6 = vpop.f32.mrf.mxu2 }
 0x54e   :  { %v2649_v14 = vadd.f32 %v2648_v6, %v2626_v58  ;;  %v9328_v58 = vld [vmem:[%s12032_s0 + $0x48] sm:$0xff] }
 0x550   :  { %v2660_v63 = vmax.f32 %v2649_v14, 0.0 }
 0x552   :  { %2689 = vrot.lane.b32.xlu1 %v2660_v63, %s12110_s30  ;;  %s12254_s30 = smov 95  }
 0x593   :  { %v7152_v23 = vpop.permute.xlu2 %7151 }
 0x594   :  { %v7147_v44 = vpop.permute.xlu1 %7146  ;;  %v7153_v52 = vunpack.i.l.bf16 %v7152_v23 }
 0x595   :  { %v7149_v36 = vunpack.i.h.bf16 %v7147_v44  ;;  %v7148_v45 = vunpack.i.l.bf16 %v7147_v44  ;;  %v66_v44 = vld [vmem:[%s12037_s5 + $0x78] sm:$0xff] }
 0x596   :  { %2788 = vmatpush.msrb.mxu3 %v66_v44  ;;  %v84_v44 = vld [vmem:[%s12037_s5 + $0x108] sm:$0xff] }
 0x597   :  { %v2692_v8 = vsel %vm210_vm5, %v7148_v45, %v7149_v36  ;;  %v2693_v29 = vsel %vm210_vm5, %v7149_v36, %v7153_v52  ;;  %v114_v36 = vld [vmem:[%s12037_s5 + $0x1f8] sm:$0xff] }
 0x598   :  { %v9205_v41 = vmax.f32 %v2652_v15, %v2692_v8  ;;  %v9207_v13 = vmax.f32 %v2653_v4, %v2693_v29  ;;  %v7154_v4 = vunpack.i.h.bf16 %v7152_v23  ;;  %v97_v8 = vld [vmem:[%s12037_s5 + $0x170] sm:$0xff]  ;;  %2857 = vmatpush.msra.mxu0 %v114_v36  ;;  %v51_v36 = vld [vmem:[%s12037_s5] sm:$0xff] }
 0x599   :  { %v113_v29 = vld [vmem:[%s12037_s5 + $0x1f0] sm:$0xff] }
 0x59a   :  { %v7165_v21 = vpack.i.bf16 %v9207_v13, %v9205_v41  ;;  %v2691_v47 = vsel %vm210_vm5, %v7154_v4, %v7148_v45  ;;  %v65_v45 = vld [vmem:[%s12037_s5 + $0x70] sm:$0xff]  ;;  %2858 = vmatpush.msra.mxu0 %v113_v29  ;;  %v99_v29 = vld [vmem:[%s12037_s5 + $0x180] sm:$0xff] }
 0x59b   :  { %v7157_v61 = vpop.permute.xlu2 %7156  ;;  %v9225_v30 = vmax.f32 %v2651_v33, %v2691_v47  ;;  %v80_v33 = vld [vmem:[%s12037_s5 + $0xe8] sm:$0xff]  ;;  %2789 = vmatpush.msrb.mxu3 %v65_v45  ;;  %v61_v4 = vld [vmem:[%s12037_s5 + $0x50] sm:$0xff] }
 0x59c   :  { %7166 = vrot.lane.b32.xlu2 %v7165_v21, %s12187_s19  ;;  %v7159_v22 = vunpack.i.h.bf16 %v7157_v61  ;;  %v7158_v1 = vunpack.i.l.bf16 %v7157_v61  ;;  %2813 = vmatpush.msrb.mxu1 %v80_v33  ;;  %v96_v21 = vld [vmem:[%s12037_s5 + $0x168] sm:$0xff]  ;;  %v109_v47 = vld [vmem:[%s12037_s5 + $0x1d0] sm:$0xff]  ;;  %v58_v33 = vld [vmem:[%s12037_s5 + $0x38] sm:$0xff] }
 0x59d   :  { %v112_v61 = vld [vmem:[%s12037_s5 + $0x1e8] sm:$0xff] }
 0x59e   :  { %v2696_v40 = vsel %vm210_vm5, %v7158_v1, %v7159_v22  ;;  %2814 = vmatpush.msrb.mxu1 %v79_v24  ;;  %2859 = vmatpush.msra.mxu0 %v112_v61  ;;  %v57_v24 = vld [vmem:[%s12037_s5 + $0x30] sm:$0xff]  ;;  %v116_v45 = vld [vmem:[%s12037_s5 + $0x208] sm:$0xff]  ;;  %v9549_v61 = vld [vmem:[%s12032_s0 + $0x40] sm:$0xff] }
 0x59f   :  { %v9214_v60 = vmax.f32 %v2657_v17, %v2696_v40  ;;  %v62_v40 = vld [vmem:[%s12037_s5 + $0x58] sm:$0xff] }
 0x5b3   :  { %v7162_v62 = vpop.permute.xlu0 %7161 }
 0x5b4   :  { %v7163_v39 = vunpack.i.l.bf16 %v7162_v62  ;;  %v7164_v42 = vunpack.i.h.bf16 %v7162_v62  ;;  %v111_v62 = vld [vmem:[%s12037_s5 + $0x1e0] sm:$0xff] }
 0x5b5   :  { %2860 = vmatpush.msra.mxu0 %v111_v62 }
 0x5b6   :  { %v2697_v37 = vsel %vm210_vm5, %v7159_v22, %v7163_v39  ;;  %v63_v22 = vld [vmem:[%s12037_s5 + $0x60] sm:$0xff] }
 0x5b7   :  { %v9216_v15 = vmax.f32 %v2658_v43, %v2697_v37  ;;  %v78_v43 = vld [vmem:[%s12037_s5 + $0xd8] sm:$0xff] }
 0x5b8   :  { %2815 = vmatpush.msrb.mxu1 %v78_v43  ;;  %v110_v37 = vld [vmem:[%s12037_s5 + $0x1d8] sm:$0xff]  ;;  %v105_v43 = vld [vmem:[%s12037_s5 + $0x1b0] sm:$0xff] }
 0x5b9   :  { %v7175_v48 = vpack.i.bf16 %v9216_v15, %v9214_v60  ;;  %2861 = vmatpush.msra.mxu0 %v110_v37 }
 0x5ba   :  { %2816 = vmatpush.msrb.mxu1 %v77_v56  ;;  %v88_v56 = vld [vmem:[%s12037_s5 + $0x128] sm:$0xff] }
 0x5bb   :  { %7176 = vrot.lane.b32.xlu1 %v7175_v48, %s12187_s19  ;;  %v93_v48 = vld [vmem:[%s12037_s5 + $0x150] sm:$0xff]  ;;  %2862 = vmatpush.msra.mxu0 %v109_v47 }
 0x5bc   :  { %v2680_v2 = vpop.permute.xlu1 %2679  ;;  %2817 = vmatpush.msrb.mxu1 %v76_v11  ;;  %v104_v11 = vld [vmem:[%s12037_s5 + $0x1a8] sm:$0xff] }
 0x5bd   :  { %v2694_v55 = vsel %vm210_vm5, %v7153_v52, %v2680_v2  ;;  %v9223_v59 = vmax.f32 %v2655_v0, %v2680_v2  ;;  %v68_v0 = vld [vmem:[%s12037_s5 + $0x88] sm:$0xff]  ;;  %v98_v52 = vld [vmem:[%s12037_s5 + $0x178] sm:$0xff]  ;;  %2863 = vmatpush.msra.mxu0 %v108_v16 }
 0x5be   :  { %v9227_v49 = vmax.f32 %v2654_v7, %v2694_v55  ;;  %v2695_v7 = vsel %vm210_vm5, %v7164_v42, %v7158_v1  ;;  %2834 = vmatpush.msra.mxu2 %v98_v52  ;;  %v95_v1 = vld [vmem:[%s12037_s5 + $0x160] sm:$0xff]  ;;  %v60_v2 = vld [vmem:[%s12037_s5 + $0x48] sm:$0xff] }
 0x5bf   :  { %2737 = vrot.lane.b32.xlu2 %v9223_v59, %s12187_s19  ;;  %v9252_v19 = vmax.f32 %v2656_v53, %v2695_v7  ;;  %v75_v53 = vld [vmem:[%s12037_s5 + $0xc0] sm:$0xff]  ;;  %v92_v55 = vld [vmem:[%s12037_s5 + $0x148] sm:$0xff]  ;;  %v90_v7 = vld [vmem:[%s12037_s5 + $0x138] sm:$0xff]  ;;  %2864 = vmatpush.msra.mxu0 %v107_v38 }
 0x5c0   :  { %v7170_v18 = vpack.i.bf16 %v9227_v49, %v9225_v30  ;;  %2818 = vmatpush.msrb.mxu1 %v75_v53  ;;  %2835 = vmatpush.msra.mxu2 %v97_v8  ;;  %v59_v42 = vld [vmem:[%s12037_s5 + $0x40] sm:$0xff]  ;;  %v100_v52 = vld [vmem:[%s12037_s5 + $0x188] sm:$0xff] }
 0x5c1   :  { %v55_v53 = vld [vmem:[%s12037_s5 + $0x20] sm:$0xff] }
 0x5c2   :  { %7171 = vrot.lane.b32.xlu0 %v7170_v18, %s12187_s19  ;;  %2836 = vmatpush.msra.mxu2 %v96_v21  ;;  %v91_v18 = vld [vmem:[%s12037_s5 + $0x140] sm:$0xff] }
 0x5c3   :  { %v83_v8 = vld [vmem:[%s12037_s5 + $0x100] sm:$0xff] }
 0x5c4   :  { %v2690_v3 = vpop.permute.xlu1 %2689  ;;  %2837 = vmatpush.msra.mxu2 %v95_v1 }
 0x5c5   :  { %v2698_v51 = vsel %vm210_vm5, %v7163_v39, %v2690_v3  ;;  %v9248_v5 = vmax.f32 %v2660_v63, %v2690_v3  ;;  %v94_v39 = vld [vmem:[%s12037_s5 + $0x158] sm:$0xff] }
 0x5c6   :  { %v9256_v17 = vmax.f32 %v2659_v35, %v2698_v51  ;;  %v74_v35 = vld [vmem:[%s12037_s5 + $0xb8] sm:$0xff]  ;;  %2838 = vmatpush.msra.mxu2 %v94_v39  ;;  %v89_v51 = vld [vmem:[%s12037_s5 + $0x130] sm:$0xff] }
 0x5c7   :  { %4203 = vrot.lane.b32.xlu2 %v8939_v28, %s12248_s28  ;;  %2747 = vrot.lane.b32.xlu1 %v9248_v5, %s12187_s19  ;;  %v106_v3 = vld [vmem:[%s12037_s5 + $0x1b8] sm:$0xff] }
 0x5c8   :  { %v7180_v57 = vpack.i.bf16 %v9256_v17, %v9252_v19  ;;  %2819 = vmatpush.msrb.mxu1 %v74_v35  ;;  %2839 = vmatpush.msra.mxu2 %v93_v48  ;;  %v87_v35 = vld [vmem:[%s12037_s5 + $0x120] sm:$0xff] }
 0x5c9   :  { %2865 = vmatpush.msra.mxu0 %v106_v3 }
 0x5ca   :  { %7181 = vrot.lane.b32.xlu0 %v7180_v57, %s12187_s19  ;;  %2820 = vmatpush.msrb.mxu1 %v73_v31  ;;  %v56_v57 = vld [vmem:[%s12037_s5 + $0x28] sm:$0xff]  ;;  %v103_v31 = vld [vmem:[%s12037_s5 + $0x1a0] sm:$0xff] }
 0x5cb   :  { %2840 = vmatpush.msra.mxu2 %v92_v55  ;;  %2866 = vmatpush.msra.mxu0 %v105_v43 }
 0x5cc   :  { %2821 = vmatpush.msrb.mxu1 %v72_v12  ;;  %v54_v12 = vld [vmem:[%s12037_s5 + $0x18] sm:$0xff] }
 0x5cd   :  { %2841 = vmatpush.msra.mxu2 %v91_v18  ;;  %2867 = vmatpush.msra.mxu0 %v104_v11 }
 0x5ce   :  { %2822 = vmatpush.msrb.mxu1 %v71_v9  ;;  %v86_v9 = vld [vmem:[%s12037_s5 + $0x118] sm:$0xff] }
 0x5cf   :  { %4152 = vrot.lane.b32.xlu2 %v8856_v50, %s12120_s24  ;;  %4150 = vrot.lane.b32.xlu1 %v8939_v28, %s12120_s24 }
 0x5d0   :  { %2823 = vmatpush.msrb.mxu1 %v70_v10  ;;  %2842 = vmatpush.msra.mxu2 %v90_v7  ;;  %v102_v10 = vld [vmem:[%s12037_s5 + $0x198] sm:$0xff] }
 0x5d1   :  { %2868 = vmatpush.msra.mxu0 %v103_v31 }
 0x5d2   :  { %4205 = vrot.lane.b32.xlu0 %v8856_v50, %s12248_s28  ;;  %2824 = vmatpush.msrb.mxu1 %v69_v27  ;;  %v53_v27 = vld [vmem:[%s12037_s5 + $0x10] sm:$0xff] }
 0x5d3   :  { %2843 = vmatpush.msra.mxu2 %v89_v51  ;;  %2869 = vmatpush.msra.mxu0 %v102_v10 }
 0x5d4   :  { %2825 = vmatpush.msrb.mxu1 %v68_v0  ;;  %v85_v0 = vld [vmem:[%s12037_s5 + $0x110] sm:$0xff] }
 0x5d5   :  { %2844 = vmatpush.msra.mxu2 %v88_v56 }
 0x5d6   :  { %2826 = vmatpush.msrb.mxu1 %v67_v20  ;;  %v101_v20 = vld [vmem:[%s12037_s5 + $0x190] sm:$0xff] }
 0x5d7   :  { %4044 = vrot.lane.b32.xlu2 %v8939_v28, %s12116_s13  ;;  %4099 = vrot.lane.b32.xlu1 %v8856_v50, %s12249_s29 }
 0x5d8   :  { %2845 = vmatpush.msra.mxu2 %v87_v35  ;;  %2870 = vmatpush.msra.mxu0 %v101_v20 }
 0x5da   :  { %4097 = vrot.lane.b32.xlu0 %v8939_v28, %s12249_s29  ;;  %2846 = vmatpush.msra.mxu2 %v86_v9 }
 0x5db   :  { %2871 = vmatpush.msra.mxu0 %v100_v52 }
 0x5dc   :  { %2847 = vmatpush.msra.mxu2 %v85_v0 }
 0x5dd   :  { %2872 = vmatpush.msra.mxu0 %v99_v29 }
 0x5de   :  { %2848 = vmatpush.msra.mxu2 %v84_v44 }
 0x5df   :  { %3993 = vrot.lane.b32.xlu2 %v8856_v50, %s12250_s27  ;;  %3991 = vrot.lane.b32.xlu1 %v8939_v28, %s12250_s27 }
 0x5e0   :  { %2849 = vmatpush.msra.mxu2 %v83_v8 }
 0x5e2   :  { %4046 = vrot.lane.b32.xlu0 %v8856_v50, %s12116_s13 }
 0x5e7   :  { %4207 = vrot.lane.b32.xlu2 %v8862_v32, %s12248_s28  ;;  %3940 = vrot.lane.b32.xlu1 %v8856_v50, %s12187_s19  ;;  %v9345_v50 = vld [vmem:[%s12032_s0 + $0x50] sm:$0xff] }
 0x5ea   :  { %3938 = vrot.lane.b32.xlu0 %v8939_v28, %s12187_s19 }
 0x5ef   :  { %3887 = vrot.lane.b32.xlu2 %v9328_v58, %s12190_s15  ;;  %3885 = vrot.lane.b32.xlu1 %v8939_v28, %s12190_s15 }
 0x5f2   :  { %4209 = vrot.lane.b32.xlu0 %v9018_v54, %s12248_s28 }
 0x5f6   :  { %v9336_v32 = vpop.permute.xlu2 %7166 }
 0x5f7   :  { %3832 = vrot.lane.b32.xlu2 %v8939_v28, %s12251_s14  ;;  %4156 = vrot.lane.b32.xlu1 %v9018_v54, %s12120_s24  ;;  %v7169_v6 = vunpack.i.h.bf16 %v9336_v32  ;;  %v7168_v14 = vunpack.i.l.bf16 %v9336_v32 }
 0x5f9   :  { %v2750_v63 = vsel %vm630_vm9, %v7168_v14, %v7169_v6 }
 0x5fa   :  { %4154 = vrot.lane.b32.xlu0 %v9345_v50, %s12120_s24  ;;  %v2768_v23 = vmax.f32 %v9205_v41, %v2750_v63  ;;  %v64_v41 = vld [vmem:[%s12037_s5 + $0x68] sm:$0xff]  ;;  %s12252_s24 = smov 124  }
 0x5fb   :  { %2790 = vmatpush.msrb.mxu3 %v64_v41  ;;  %v115_v41 = vld [vmem:[%s12037_s5 + $0x200] sm:$0xff] }
 0x5fc   :  { %2827 = vmatmul.f32.vlgmr.msrb.gmra.mxu1 %v2768_v23  ;;  %v117_v23 = vld [vmem:[%s12037_s5 + $0x210] sm:$0x1] }
 0x5fd   :  { %2791 = vmatpush.msrb.mxu3 %v63_v22  ;;  %6744 = vmatpush.msk.msra.mxu1 %vm12154_vm15, %v117_v23 }
 0x5ff   :  { %4103 = vrot.lane.b32.xlu2 %v9018_v54, %s12249_s29  ;;  %4101 = vrot.lane.b32.xlu1 %v9345_v50, %s12249_s29 }
 0x600   :  { %2792 = vmatpush.msrb.mxu3 %v62_v40  ;;  %2894 = vmatpush.msra.mxu1 %v116_v45 }
 0x602   :  { %3834 = vrot.lane.b32.xlu0 %v9328_v58, %s12251_s14  ;;  %2793 = vmatpush.msrb.mxu3 %v61_v4 }
 0x603   :  { %2895 = vmatpush.msra.mxu1 %v115_v41 }
 0x604   :  { %2794 = vmatpush.msrb.mxu3 %v60_v2 }
 0x606   :  { %2795 = vmatpush.msrb.mxu3 %v59_v42 }
 0x607   :  { %3779 = vrot.lane.b32.xlu2 %v8939_v28, %s12163_s21  ;;  %4626 = vrot.lane.b32.xlu1 %v9345_v50, %s12252_s24 }
 0x608   :  { %2796 = vmatpush.msrb.mxu3 %v58_v33 }
 0x60a   :  { %4624 = vrot.lane.b32.xlu0 %v9328_v58, %s12252_s24  ;;  %2797 = vmatpush.msrb.mxu3 %v57_v24 }
 0x60c   :  { %2798 = vmatpush.msrb.mxu3 %v56_v57 }
 0x60e   :  { %2799 = vmatpush.msrb.mxu3 %v55_v53 }
 0x60f   :  { %4050 = vrot.lane.b32.xlu2 %v9018_v54, %s12253_s4  ;;  %4048 = vrot.lane.b32.xlu1 %v9345_v50, %s12253_s4 }
 0x610   :  { %2800 = vmatpush.msrb.mxu3 %v54_v12 }
 0x612   :  { %3781 = vrot.lane.b32.xlu0 %v9328_v58, %s12163_s21  ;;  %2801 = vmatpush.msrb.mxu3 %v53_v27 }
 0x617   :  { %3726 = vrot.lane.b32.xlu2 %v8939_v28, %s12254_s30  ;;  %4578 = vrot.lane.b32.xlu1 %v9345_v50, %s12255_s17  ;;  %v52_v28 = vld [vmem:[%s12037_s5 + $0x8] sm:$0xff] }
 0x618   :  { %2802 = vmatpush.msrb.mxu3 %v52_v28 }
 0x619   :  { %v9505_v63 = vpop.permute.xlu2 %2737 }
 0x61a   :  { %4576 = vrot.lane.b32.xlu0 %v9328_v58, %s12255_s17  ;;  %2803 = vmatpush.msrb.mxu3 %v51_v36  ;;  %v9694_v36 = vld [vmem:[%s12032_s0 + $0x60] sm:$0xff] }
 0x61c   :  { %7115 = vmatpush.msk.msra.mxu3 %vm12154_vm15, %v117_v23  ;;  %vm12276_vm15 = vcmask 769024  }
 0x61e   :  { %7116 = vmatpush.msra.mxu3 %v116_v45 }
 0x61f   :  { %3997 = vrot.lane.b32.xlu2 %v9018_v54, %s12250_s27  ;;  %3995 = vrot.lane.b32.xlu1 %v9345_v50, %s12250_s27 }
 0x620   :  { %7117 = vmatpush.msra.mxu3 %v115_v41 }
 0x621   :  { %v9541_v21 = vpop.permute.xlu2 %4203 }
 0x622   :  { %3728 = vrot.lane.b32.xlu0 %v9328_v58, %s12254_s30 }
 0x627   :  { %3673 = vrot.lane.b32.xlu2 %v9549_v61, %s12256_s2  ;;  %4530 = vrot.lane.b32.xlu1 %v9345_v50, %s12257_s11 }
 0x629   :  { %v9555_v22 = vpop.permute.xlu2 %4152 }
 0x62a   :  { %4528 = vrot.lane.b32.xlu0 %v9328_v58, %s12257_s11 }
 0x62d   :  { %v7177_v1 = vpop.permute.xlu1 %7176 }
 0x62e   :  { %v7179_v62 = vunpack.i.h.bf16 %v7177_v1  ;;  %v7178_v40 = vunpack.i.l.bf16 %v7177_v1 }
 0x62f   :  { %3944 = vrot.lane.b32.xlu2 %v9018_v54, %s12187_s19  ;;  %3942 = vrot.lane.b32.xlu1 %v9345_v50, %s12187_s19 }
 0x630   :  { %v2754_v39 = vsel %vm630_vm9, %v7178_v40, %v7179_v62 }
 0x631   :  { %v9564_v37 = vpop.permute.xlu2 %4044  ;;  %v2773_v4 = vmax.f32 %v9214_v60, %v2754_v39 }
 0x632   :  { %3675 = vrot.lane.b32.xlu0 %v9328_v58, %s12256_s2 }
 0x633   :  { %2830 = vmatmul.f32.gmra.mxu1 %v2773_v4 }
 0x634   :  { %v7172_v48 = vpop.permute.xlu0 %7171 }
 0x635   :  { %v7174_v47 = vunpack.i.h.bf16 %v7172_v48  ;;  %v7173_v2 = vunpack.i.l.bf16 %v7172_v48 }
 0x637   :  { %v2749_v55 = vsel %vm630_vm9, %v7173_v2, %v7168_v14  ;;  %v2751_v16 = vsel %vm630_vm9, %v7169_v6, %v7174_v47  ;;  %v2752_v42 = vsel %vm630_vm9, %v7174_v47, %v9505_v63  ;;  %4628 = vrot.lane.b32.xlu2 %v9018_v54, %s12252_s24  ;;  %4482 = vrot.lane.b32.xlu1 %v9345_v50, %s12258_s25 }
 0x638   :  { %v2767_v60 = vmax.f32 %v9225_v30, %v2749_v55  ;;  %v2769_v18 = vmax.f32 %v9207_v13, %v2751_v16  ;;  %v2770_v38 = vmax.f32 %v9227_v49, %v2752_v42  ;;  %v2771_v6 = vmax.f32 %v9223_v59, %v9505_v63 }
 0x639   :  { %v9584_v14 = vpop.permute.xlu2 %3993  ;;  %v2748_v32 = vpop.permute.xlu1 %2747 }
 0x63a   :  { %4480 = vrot.lane.b32.xlu0 %v9328_v58, %s12258_s25  ;;  %2804 = vmatmul.f32.vlgmr.msrb.gmra.mxu3 %v2767_v60 }
 0x63b   :  { %2850 = vmatmul.f32.vlgmr.msra.gmra.mxu2 %v2769_v18  ;;  %2873 = vmatmul.f32.vlgmr.msra.gmra.mxu0 %v2770_v38  ;;  %v2907_v18 = vld [vmem:[%s12038_s6 + $0x18] sm:$0xff] }
 0x63c   :  { %v7182_v54 = vpop.permute.xlu0 %7181  ;;  %6745 = vmatmul.msk.f32.vlgmr.msra.gmra.mxu1 %vm12152_vm10, %v2771_v6  ;;  %v6766_v38 = vld [vmem:[%s12038_s6 + $0x98] sm:$0xff] }
 0x63d   :  { %v7184_v30 = vunpack.i.h.bf16 %v7182_v54  ;;  %v7183_v13 = vunpack.i.l.bf16 %v7182_v54  ;;  %2923 = vmatpush.msrb.mxu1 %v2907_v18  ;;  %3039 = vmatpush.msrb.mxu2 %v6766_v38  ;;  %v6756_v6 = vld [vmem:[%s12038_s6 + $0x58] sm:$0xff]  ;;  %v2906_v54 = vld [vmem:[%s12038_s6 + $0x10] sm:$0xff]  ;;  %v6748_v38 = vld [vmem:[%s12038_s6 + $0x20] sm:$0xff] }
 0x63e   :  { %2981 = vmatpush.msrb.mxu3 %v6756_v6  ;;  %v6761_v6 = vld [vmem:[%s12038_s6 + $0x78] sm:$0xff] }
 0x63f   :  { %3625 = vrot.lane.b32.xlu2 %v9328_v58, %s12252_s24  ;;  %3623 = vrot.lane.b32.xlu1 %v9549_v61, %s12252_s24  ;;  %v2753_v49 = vsel %vm630_vm9, %v7183_v13, %v7178_v40  ;;  %v2755_v59 = vsel %vm630_vm9, %v7179_v62, %v7184_v30  ;;  %v2756_v33 = vsel %vm630_vm9, %v7184_v30, %v2748_v32  ;;  %v9723_v40 = vld [vmem:[%s12032_s0 + $0x68] sm:$0xff]  ;;  %v6765_v30 = vld [vmem:[%s12038_s6 + $0x90] sm:$0xff] }
 0x640   :  { %v2772_v7 = vmax.f32 %v9252_v19, %v2753_v49  ;;  %v2774_v3 = vmax.f32 %v9216_v15, %v2755_v59  ;;  %v2775_v24 = vmax.f32 %v9256_v17, %v2756_v33  ;;  %v9612_v19 = vld [vmem:[%s12032_s0 + $0x58] sm:$0xff]  ;;  %v2776_v17 = vmax.f32 %v9248_v5, %v2748_v32  ;;  %v6750_v13 = vld [vmem:[%s12038_s6 + $0x30] sm:$0xff]  ;;  %2924 = vmatpush.msrb.mxu1 %v2906_v54  ;;  %v6764_v59 = vld [vmem:[%s12038_s6 + $0x88] sm:$0xff] }
 0x641   :  { %v9601_v51 = vpop.permute.xlu2 %4207  ;;  %v9603_v43 = vpop.permute.xlu1 %4150  ;;  %v6755_v49 = vld [vmem:[%s12038_s6 + $0x50] sm:$0xff]  ;;  %3040 = vmatpush.msrb.mxu2 %v6765_v30  ;;  %v6786_v54 = vld [vmem:[%s12038_s6 + $0x118] sm:$0xff] }
 0x642   :  { %4630 = vrot.lane.b32.xlu0 %v9082_v46, %s12252_s24  ;;  %2807 = vmatmul.f32.gmra.mxu3 %v2772_v7  ;;  %v6771_v30 = vld [vmem:[%s12038_s6 + $0xb8] sm:$0xff] }
 0x643   :  { %2853 = vmatmul.f32.gmra.mxu2 %v2774_v3  ;;  %2876 = vmatmul.f32.gmra.mxu0 %v2775_v24  ;;  %v2905_v3 = vld [vmem:[%s12038_s6 + $0x8] sm:$0xff] }
 0x644   :  { %v9607_v57 = vpop.permute.xlu0 %4205  ;;  %2982 = vmatpush.msrb.mxu3 %v6755_v49  ;;  %3041 = vmatpush.msrb.mxu2 %v6764_v59  ;;  %v6760_v49 = vld [vmem:[%s12038_s6 + $0x70] sm:$0xff] }
 0x645   :  { %v4220_v15 = vsel %vm900_vm0, %v9607_v57, %v9601_v51  ;;  %2925 = vmatpush.msrb.mxu1 %v2905_v3  ;;  %v6785_v59 = vld [vmem:[%s12038_s6 + $0x110] sm:$0xff] }
 0x646   :  { %4234 = vst [vmem:[#allocation2 + $0x350] sm:$0xff] %v4220_v15  ;;  %v6749_v15 = vld [vmem:[%s12038_s6 + $0x28] sm:$0xff]  ;;  %v6770_v3 = vld [vmem:[%s12038_s6 + $0xb0] sm:$0xff] }
 0x647   :  { %4580 = vrot.lane.b32.xlu2 %v9612_v19, %s12255_s17  ;;  %3891 = vrot.lane.b32.xlu1 %v9612_v19, %s12190_s15 }
 0x649   :  { %v9622_v56 = vpop.permute.xlu2 %3887  ;;  %v9624_v11 = vpop.permute.xlu1 %4099 }
 0x64a   :  { %3889 = vrot.lane.b32.xlu0 %v9345_v50, %s12190_s15  ;;  %6746 = vmatmul.msk.f32.vlgmr.msra.gmra.mxu3 %vm12152_vm10, %v2776_v17  ;;  %v6754_v17 = vld [vmem:[%s12038_s6 + $0x48] sm:$0xff]  ;;  %vm12153_vm10 = vcmask 1043456  }
 0x64b   :  { %2983 = vmatpush.msrb.mxu3 %v6754_v17 }
 0x64c   :  { %v9629_v53 = vpop.permute.xlu0 %4097 }
 0x64f   :  { %3577 = vrot.lane.b32.xlu2 %v9328_v58, %s12255_s17  ;;  %3575 = vrot.lane.b32.xlu1 %v9549_v61, %s12255_s17 }
 0x651   :  { %v9635_v35 = vpop.permute.xlu2 %3832  ;;  %v9637_v5 = vpop.permute.xlu1 %3991 }
 0x652   :  { %4582 = vrot.lane.b32.xlu0 %v9082_v46, %s12255_s17 }
 0x654   :  { %v9641_v31 = vpop.permute.xlu0 %4046 }
 0x657   :  { %4415 = vrot.lane.b32.xlu2 %v9549_v61, %s12167_s16  ;;  %3838 = vrot.lane.b32.xlu1 %v9612_v19, %s12251_s14 }
 0x659   :  { %v9647_v12 = vpop.permute.xlu2 %4103  ;;  %v9649_v9 = vpop.permute.xlu1 %3940 }
 0x65a   :  { %3836 = vrot.lane.b32.xlu0 %v9345_v50, %s12251_s14 }
 0x65c   :  { %v9653_v10 = vpop.permute.xlu0 %3938 }
 0x65f   :  { %4534 = vrot.lane.b32.xlu2 %v9082_v46, %s12257_s11  ;;  %4532 = vrot.lane.b32.xlu1 %v9612_v19, %s12257_s11 }
 0x661   :  { %v9659_v27 = vpop.permute.xlu2 %3779  ;;  %v9661_v0 = vpop.permute.xlu1 %3885 }
 0x662   :  { %4417 = vrot.lane.b32.xlu0 %v9328_v58, %s12167_s16 }
 0x664   :  { %v9665_v20 = vpop.permute.xlu0 %4209 }
 0x667   :  { %3783 = vrot.lane.b32.xlu2 %v9345_v50, %s12163_s21  ;;  %3529 = vrot.lane.b32.xlu1 %v9328_v58, %s12257_s11 }
 0x669   :  { %v9671_v63 = vpop.permute.xlu2 %4050  ;;  %v9673_v46 = vpop.permute.xlu1 %4156 }
 0x66a   :  { %3527 = vrot.lane.b32.xlu0 %v9549_v61, %s12257_s11 }
 0x66c   :  { %v9677_v28 = vpop.permute.xlu0 %4154 }
 0x66f   :  { %4364 = vrot.lane.b32.xlu2 %v9328_v58, %s12172_s18  ;;  %4362 = vrot.lane.b32.xlu1 %v9549_v61, %s12172_s18 }
 0x671   :  { %v9683_v23 = vpop.permute.xlu2 %3726  ;;  %v9685_v44 = vpop.permute.xlu1 %4101 }
 0x672   :  { %3785 = vrot.lane.b32.xlu0 %v9612_v19, %s12163_s21 }
 0x674   :  { %v9689_v52 = vpop.permute.xlu0 %3834 }
 0x677   :  { %3479 = vrot.lane.b32.xlu2 %v9549_v61, %s12258_s25  ;;  %4486 = vrot.lane.b32.xlu1 %v9694_v36, %s12258_s25 }
 0x679   :  { %v9700_v45 = vpop.permute.xlu2 %3997  ;;  %v9702_v8 = vpop.permute.xlu1 %4626 }
 0x67a   :  { %12259 = vst [vmem:[#allocation11_spill] sm:$0xff] %v9700_v45  ;;  %4484 = vrot.lane.b32.xlu0 %v9612_v19, %s12258_s25  ;;  %v6794_v45 = vld [vmem:[%s12038_s6 + $0x148] sm:$0xff] }
 0x67c   :  { %v9706_v29 = vpop.permute.xlu0 %4624 }
 0x67f   :  { %3732 = vrot.lane.b32.xlu2 %v9612_v19, %s12254_s30  ;;  %3730 = vrot.lane.b32.xlu1 %v9345_v50, %s12254_s30  ;;  %s12368_s30 = smov 58  }
 0x681   :  { %v9712_v41 = vpop.permute.xlu2 %3673  ;;  %v9714_v1 = vpop.permute.xlu1 %4048 }
 0x682   :  { %3481 = vrot.lane.b32.xlu0 %v9328_v58, %s12258_s25 }
 0x684   :  { %v9718_v62 = vpop.permute.xlu0 %3781 }
 0x687   :  { %4309 = vrot.lane.b32.xlu2 %v9549_v61, %s12175_s23  ;;  %4213 = vrot.lane.b32.xlu1 %v9723_v40, %s12248_s28 }
 0x689   :  { %v9729_v39 = vpop.permute.xlu2 %3944  ;;  %v9731_v4 = vpop.permute.xlu1 %4578 }
 0x68a   :  { %12260 = vst [vmem:[#allocation7_spill] sm:$0xff] %v9729_v39  ;;  %4211 = vrot.lane.b32.xlu0 %v9694_v36, %s12248_s28  ;;  %v6789_v39 = vld [vmem:[%s12038_s6 + $0x128] sm:$0xff] }
 0x68c   :  { %v9735_v48 = vpop.permute.xlu0 %4576 }
 0x68f   :  { %3679 = vrot.lane.b32.xlu2 %v9612_v19, %s12256_s2  ;;  %3677 = vrot.lane.b32.xlu1 %v9345_v50, %s12256_s2  ;;  %s12308_s2 = smov 95  }
 0x691   :  { %v9741_v47 = vpop.permute.xlu2 %4628  ;;  %v9743_v2 = vpop.permute.xlu1 %3995 }
 0x692   :  { %12261 = vst [vmem:[#allocation8_spill] sm:$0xff] %v9741_v47  ;;  %v4639_v55 = vsel %vm131_vm1, %v9702_v8, %v9741_v47  ;;  %4311 = vrot.lane.b32.xlu0 %v9328_v58, %s12175_s23 }
 0x693   :  { %4652 = vst [vmem:[#allocation2 + $0x548] sm:$0xff] %v4639_v55  ;;  %v6763_v55 = vld [vmem:[%s12038_s6 + $0x80] sm:$0xff] }
 0x694   :  { %v9750_v16 = vpop.permute.xlu0 %3728  ;;  %3042 = vmatpush.msrb.mxu2 %v6763_v55  ;;  %v6759_v55 = vld [vmem:[%s12038_s6 + $0x68] sm:$0xff] }
 0x696   :  { %3155 = vmatpush.msra.mxu2 %v6786_v54  ;;  %v6783_v54 = vld [vmem:[%s12038_s6 + $0x100] sm:$0xff] }
 0x697   :  { %4256 = vrot.lane.b32.xlu2 %v9549_v61, %s12177_s22  ;;  %4160 = vrot.lane.b32.xlu1 %v9723_v40, %s12262_s12  ;;  %v6751_v61 = vld [vmem:[%s12038_s6 + $0x38] sm:$0xff] }
 0x698   :  { %2952 = vmatpush.msrb.mxu0 %v6751_v61  ;;  %v6753_v61 = vld [vmem:[%s12038_s6 + $0x40] sm:$0xff]  ;;  %3156 = vmatpush.msra.mxu2 %v6785_v59  ;;  %v2828_v59 = vpop.f32.mrf.mxu1 }
 0x699   :  { %v9756_v42 = vpop.permute.xlu2 %3625  ;;  %v9758_v60 = vpop.permute.xlu1 %4530  ;;  %2984 = vmatpush.msrb.mxu3 %v6753_v61  ;;  %v6774_v61 = vld [vmem:[%s12038_s6 + $0xc8] sm:$0xff] }
 0x69a   :  { %4158 = vrot.lane.b32.xlu0 %v9694_v36, %s12262_s12  ;;  %2953 = vmatpush.msrb.mxu0 %v6750_v13  ;;  %v6776_v13 = vld [vmem:[%s12038_s6 + $0xd8] sm:$0xff] }
 0x69b   :  { %3068 = vmatpush.msra.mxu3 %v6771_v30 }
 0x69c   :  { %v9771_v32 = vpop.permute.xlu0 %4528  ;;  %2954 = vmatpush.msrb.mxu0 %v6749_v15 }
 0x69d   :  { %3069 = vmatpush.msra.mxu3 %v6770_v3 }
 0x69e   :  { %2955 = vmatpush.msrb.mxu0 %v6748_v38  ;;  %v6769_v38 = vld [vmem:[%s12038_s6 + $0xa8] sm:$0xff] }
 0x69f   :  { %4421 = vrot.lane.b32.xlu2 %v9612_v19, %s12167_s16  ;;  %4419 = vrot.lane.b32.xlu1 %v9345_v50, %s12167_s16  ;;  %s12367_s16 = smov 56  }
 0x6a0   :  { %3097 = vmatpush.msra.mxu0 %v6776_v13  ;;  %3070 = vmatpush.msra.mxu3 %v6769_v38  ;;  %v6773_v13 = vld [vmem:[%s12038_s6 + $0xc0] sm:$0xff] }
 0x6a1   :  { %v9795_v33 = vpop.permute.xlu2 %4580  ;;  %v9797_v7 = vpop.permute.xlu1 %3942 }
 0x6a2   :  { %12263 = vst [vmem:[#allocation14_spill] sm:$0xff] %v9795_v33  ;;  %v4591_v24 = vsel %vm259_vm3, %v9731_v4, %v9795_v33  ;;  %4258 = vrot.lane.b32.xlu0 %v9328_v58, %s12177_s22  ;;  %v2904_v58 = vld [vmem:[%s12038_s6] sm:$0xff] }
 0x6a3   :  { %12264 = vst [vmem:[#allocation6_spill] sm:$0xff] %v9797_v7  ;;  %2926 = vmatpush.msrb.mxu1 %v2904_v58  ;;  %v6784_v58 = vld [vmem:[%s12038_s6 + $0x108] sm:$0xff] }
 0x6a4   :  { %4604 = vst [vmem:[#allocation2 + $0x510] sm:$0xff] %v4591_v24  ;;  %v9819_v18 = vpop.permute.xlu0 %3675  ;;  %v6775_v24 = vld [vmem:[%s12038_s6 + $0xd0] sm:$0xff]  ;;  %3157 = vmatpush.msra.mxu2 %v6784_v58 }
 0x6a5   :  { %3010 = vmatpush.msra.mxu1 %v6761_v6  ;;  %3098 = vmatpush.msra.mxu0 %v6775_v24  ;;  %v6758_v6 = vld [vmem:[%s12038_s6 + $0x60] sm:$0xff] }
 0x6a6   :  { %3158 = vmatpush.msra.mxu2 %v6783_v54 }
 0x6a7   :  { %4105 = vrot.lane.b32.xlu2 %v9694_v36, %s12249_s29  ;;  %3629 = vrot.lane.b32.xlu1 %v9612_v19, %s12252_s24 }
 0x6a8   :  { %3011 = vmatpush.msra.mxu1 %v6760_v49  ;;  %3099 = vmatpush.msra.mxu0 %v6774_v61  ;;  %v6768_v49 = vld [vmem:[%s12038_s6 + $0xa0] sm:$0xff] }
 0x6a9   :  { %v9855_v15 = vpop.permute.xlu2 %3577  ;;  %v9857_v17 = vpop.permute.xlu1 %4482  ;;  %3071 = vmatpush.msra.mxu3 %v6768_v49 }
 0x6aa   :  { %3627 = vrot.lane.b32.xlu0 %v9345_v50, %s12252_s24  ;;  %3012 = vmatpush.msra.mxu1 %v6759_v55 }
 0x6ab   :  { %3100 = vmatpush.msra.mxu0 %v6773_v13 }
 0x6ac   :  { %v9879_v30 = vpop.permute.xlu0 %4480  ;;  %3013 = vmatpush.msra.mxu1 %v6758_v6 }
 0x6af   :  { %4368 = vrot.lane.b32.xlu2 %v9612_v19, %s12172_s18  ;;  %4366 = vrot.lane.b32.xlu1 %v9345_v50, %s12172_s18 }
 0x6b0   :  { %v2831_v58 = vpop.f32.mrf.mxu1 }
 0x6b1   :  { %v9891_v3 = vpop.permute.xlu2 %4415  ;;  %v9893_v24 = vpop.permute.xlu1 %3623 }
 0x6b2   :  { %4107 = vrot.lane.b32.xlu0 %v9723_v40, %s12249_s29 }
 0x6b4   :  { %v9897_v55 = vpop.permute.xlu0 %4630 }
 0x6b5   :  { %12265 = vst [vmem:[#allocation16_spill] sm:$0xff] %v9897_v55 }
 0x6b7   :  { %4052 = vrot.lane.b32.xlu2 %v9694_v36, %s12253_s4  ;;  %3581 = vrot.lane.b32.xlu1 %v9612_v19, %s12255_s17 }
 0x6b8   :  { %v2874_v25 = vpop.f32.mrf.mxu0 }
 0x6b9   :  { %v9903_v38 = vpop.permute.xlu2 %4534  ;;  %v9905_v61 = vpop.permute.xlu1 %3891 }
 0x6ba   :  { %12266 = vst [vmem:[#allocation10_spill] sm:$0xff] %v9903_v38  ;;  %3579 = vrot.lane.b32.xlu0 %v9345_v50, %s12255_s17  ;;  %v2897_v47 = vpop.f32.mrf.mxu1 }
 0x6bb   :  { %12267 = vst [vmem:[#allocation23_spill] sm:$0xff] %v9905_v61 }
 0x6bc   :  { %v9909_v6 = vpop.permute.xlu0 %3889 }
 0x6bd   :  { %12268 = vst [vmem:[#allocation12_spill] sm:$0xff] %v9909_v6  ;;  %v2805_v54 = vpop.f32.mrf.mxu3 }
 0x6be   :  { %v2829_v13 = vadd.f32 %v2828_v59, %v2805_v54  ;;  %v2851_v49 = vpop.f32.mrf.mxu2  ;;  %v6781_v54 = vld [vmem:[%s12038_s6 + $0xf8] sm:$0xff] }
 0x6bf   :  { %4315 = vrot.lane.b32.xlu2 %v9612_v19, %s12175_s23  ;;  %4313 = vrot.lane.b32.xlu1 %v9345_v50, %s12175_s23 }
 0x6c0   :  { %v2852_v34 = vadd.f32 %v2851_v49, %v2829_v13  ;;  %v6791_v49 = vld [vmem:[%s12038_s6 + $0x138] sm:$0xff] }
 0x6c1   :  { %v9915_v26 = vpop.permute.xlu2 %3783  ;;  %v9917_v38 = vpop.permute.xlu1 %3575 }
 0x6c2   :  { %12269 = vst [vmem:[#allocation13_spill] sm:$0xff] %v9915_v26  ;;  %v2875_v33 = vadd.f32 %v2874_v25, %v2852_v34  ;;  %4054 = vrot.lane.b32.xlu0 %v9723_v40, %s12253_s4 }
 0x6c4   :  { %v9921_v55 = vadd.f32 %v2897_v47, %v2875_v33  ;;  %v9923_v59 = vpop.permute.xlu0 %4582  ;;  %v6806_v47 = vld [vmem:[%s12038_s6 + $0x198] sm:$0xff]  ;;  %v9941_v33 = vld [vmem:[%s12032_s0 + $0x50] sm:$0xff] }
 0x6c5   :  { %12270 = vst [vmem:[#allocation15_spill] sm:$0xff] %v9923_v59  ;;  %v2808_v50 = vpop.f32.mrf.mxu3 }
 0x6c6   :  { %v2832_v61 = vadd.f32 %v2831_v58, %v2808_v50  ;;  %6747 = vmatmul.msk.f32.vlgmr.msrb.gmra.mxu1 %vm900_vm0, %v9921_v55  ;;  %v2937_v13 = vrot.slane %v9921_v55, 1  ;;  %v2966_v34 = vrot.slane %v9921_v55, 2  ;;  %v3024_v25 = vrot.slane %v9921_v55, 4  ;;  %v2854_v58 = vpop.f32.mrf.mxu2 }
 0x6c7   :  { %3999 = vrot.lane.b32.xlu2 %v9694_v36, %s12250_s27  ;;  %3126 = vmatpush.msrb.mxu1 %v6781_v54  ;;  %v6796_v54 = vld [vmem:[%s12038_s6 + $0x158] sm:$0xff]  ;;  %v2995_v7 = vrot.slane %v9921_v55, 3 }
 0x6c8   :  { %6752 = vmatmul.msk.f32.vlgmr.msrb.gmra.mxu0 %vm900_vm0, %v2937_v13  ;;  %6757 = vmatmul.msk.f32.vlgmr.msrb.gmra.mxu3 %vm900_vm0, %v2966_v34  ;;  %v2855_v50 = vadd.f32 %v2854_v58, %v2832_v61  ;;  %v6780_v13 = vld [vmem:[%s12038_s6 + $0xf0] sm:$0xff]  ;;  %v6779_v58 = vld [vmem:[%s12038_s6 + $0xe8] sm:$0xff] }
 0x6c9   :  { %6767 = vmatmul.msk.f32.vlgmr.msrb.gmra.mxu2 %vm900_vm0, %v3024_v25  ;;  %v9952_v26 = vpop.permute.xlu2 %4364  ;;  %3533 = vrot.lane.b32.xlu1 %v9612_v19, %s12257_s11  ;;  %v6805_v34 = vld [vmem:[%s12038_s6 + $0x190] sm:$0xff]  ;;  %v9962_v59 = vpop.permute.xlu1 %3838 }
 0x6ca   :  { %12271 = vst [vmem:[#allocation21_spill] sm:$0xff] %v9962_v59  ;;  %3271 = vmatpush.msrb.mxu2 %v6806_v47  ;;  %3531 = vrot.lane.b32.xlu0 %v9941_v33, %s12257_s11  ;;  %v6790_v61 = vld [vmem:[%s12038_s6 + $0x130] sm:$0xff]  ;;  %v6804_v47 = vld [vmem:[%s12038_s6 + $0x188] sm:$0xff]  ;;  %v2877_v59 = vpop.f32.mrf.mxu0 }
 0x6cb   :  { %v6795_v25 = vld [vmem:[%s12038_s6 + $0x150] sm:$0xff]  ;;  %3184 = vmatpush.msrb.mxu3 %v6791_v49  ;;  %3213 = vmatpush.msrb.mxu0 %v6796_v54  ;;  %v2878_v49 = vadd.f32 %v2877_v59, %v2855_v50  ;;  %v3053_v59 = vrot.slane %v9921_v55, 5  ;;  %v3082_v50 = vrot.slane %v9921_v55, 6 }
 0x6cc   :  { %3127 = vmatpush.msrb.mxu1 %v6780_v13  ;;  %3272 = vmatpush.msrb.mxu2 %v6805_v34  ;;  %v9978_v6 = vpop.permute.xlu0 %3836  ;;  %v6778_v13 = vld [vmem:[%s12038_s6 + $0xe0] sm:$0xff] }
 0x6cd   :  { %12272 = vst [vmem:[#allocation18_spill] sm:$0xff] %v9978_v6  ;;  %3185 = vmatpush.msrb.mxu3 %v6790_v61  ;;  %3214 = vmatpush.msrb.mxu0 %v6795_v25  ;;  %v2900_v54 = vpop.f32.mrf.mxu3  ;;  %v6803_v34 = vld [vmem:[%s12038_s6 + $0x180] sm:$0xff] }
 0x6ce   :  { %3128 = vmatpush.msrb.mxu1 %v6779_v58  ;;  %3273 = vmatpush.msrb.mxu2 %v6804_v47  ;;  %v9993_v61 = vadd.f32 %v2900_v54, %v2878_v49  ;;  %v6788_v25 = vld [vmem:[%s12038_s6 + $0x120] sm:$0xff]  ;;  %v3382_v47 = vld [vmem:[%s12040_s8 + $0x70] sm:$0xff]  ;;  %v6811_v49 = vld [vmem:[%s12038_s6 + $0x1b8] sm:$0xff] }
 0x6cf   :  { %6762 = vmatmul.msk.f32.vlgmr.msra.gmra.mxu1 %vm900_vm0, %v2995_v7  ;;  %3186 = vmatpush.msrb.mxu3 %v6789_v39  ;;  %v6793_v58 = vld [vmem:[%s12038_s6 + $0x140] sm:$0xff]  ;;  %v6816_v54 = vld [vmem:[%s12038_s6 + $0x1d8] sm:$0xff] }
 0x6d0   :  { %3215 = vmatpush.msrb.mxu0 %v6794_v45  ;;  %4262 = vrot.lane.b32.xlu2 %v9612_v19, %s12177_s22  ;;  %v6801_v45 = vld [vmem:[%s12038_s6 + $0x178] sm:$0xff] }
 0x6d1   :  { %3129 = vmatpush.msrb.mxu1 %v6778_v13  ;;  %3274 = vmatpush.msrb.mxu2 %v6803_v34  ;;  %v10009_v39 = vpop.permute.xlu2 %3479  ;;  %v10011_v7 = vpop.permute.xlu1 %4532  ;;  %v6800_v13 = vld [vmem:[%s12038_s6 + $0x170] sm:$0xff] }
 0x6d2   :  { %12273 = vst [vmem:[#allocation19_spill] sm:$0xff] %v10011_v7  ;;  %6772 = vmatmul.msk.f32.vlgmr.msra.gmra.mxu3 %vm900_vm0, %v3053_v59  ;;  %6777 = vmatmul.msk.f32.vlgmr.msra.gmra.mxu0 %vm900_vm0, %v3082_v50  ;;  %v3381_v59 = vld [vmem:[%s12040_s8 + $0x68] sm:$0xff]  ;;  %v6810_v50 = vld [vmem:[%s12038_s6 + $0x1b0] sm:$0xff]  ;;  %v3379_v7 = vld [vmem:[%s12040_s8 + $0x58] sm:$0xff] }
 0x6d3   :  { %6787 = vmatmul.msk.f32.vlgmr.msra.gmra.mxu2 %vm900_vm0, %v9993_v61  ;;  %3187 = vmatpush.msrb.mxu3 %v6788_v25  ;;  %v6815_v25 = vld [vmem:[%s12038_s6 + $0x1d0] sm:$0xff] }
 0x6d4   :  { %3216 = vmatpush.msrb.mxu0 %v6793_v58  ;;  %3242 = vmatpush.msra.mxu1 %v6801_v45  ;;  %v10029_v34 = vpop.permute.xlu0 %4417  ;;  %v6799_v58 = vld [vmem:[%s12038_s6 + $0x168] sm:$0xff]  ;;  %v3380_v45 = vld [vmem:[%s12040_s8 + $0x60] sm:$0xff] }
 0x6d5   :  { %3388 = vmatpush.msra.mxu2 %v3382_v47  ;;  %3300 = vmatpush.msra.mxu3 %v6811_v49  ;;  %v6809_v47 = vld [vmem:[%s12038_s6 + $0x1a8] sm:$0xff] }
 0x6d6   :  { %3329 = vmatpush.msra.mxu0 %v6816_v54  ;;  %4260 = vrot.lane.b32.xlu1 %v9941_v33, %s12177_s22  ;;  %v6814_v49 = vld [vmem:[%s12038_s6 + $0x1c8] sm:$0xff]  ;;  %v3111_v54 = vrot.slane %v9921_v55, 7  ;;  %v6813_v55 = vld [vmem:[%s12038_s6 + $0x1c0] sm:$0xff] }
 0x6d7   :  { %4001 = vrot.lane.b32.xlu0 %v9723_v40, %s12250_s27  ;;  %3243 = vmatpush.msra.mxu1 %v6800_v13  ;;  %v6798_v13 = vld [vmem:[%s12038_s6 + $0x160] sm:$0xff] }
 0x6d8   :  { %3389 = vmatpush.msra.mxu2 %v3381_v59  ;;  %3301 = vmatpush.msra.mxu3 %v6810_v50  ;;  %v6808_v50 = vld [vmem:[%s12038_s6 + $0x1a0] sm:$0xff] }
 0x6d9   :  { %3330 = vmatpush.msra.mxu0 %v6815_v25  ;;  %3244 = vmatpush.msra.mxu1 %v6799_v58  ;;  %v10063_v6 = vpop.permute.xlu2 %3732  ;;  %v10065_v59 = vpop.permute.xlu1 %3529  ;;  %v6821_v25 = vld [vmem:[%s12038_s6 + $0x1f8] sm:$0xff] }
 0x6da   :  { %3390 = vmatpush.msra.mxu2 %v3380_v45  ;;  %3302 = vmatpush.msra.mxu3 %v6809_v47  ;;  %v3169_v45 = vrot.slane %v9993_v61, 1  ;;  %v3198_v47 = vrot.slane %v9993_v61, 2 }
 0x6db   :  { %3331 = vmatpush.msra.mxu0 %v6814_v49  ;;  %6782 = vmatmul.msk.f32.vlgmr.msrb.gmra.mxu1 %vm900_vm0, %v3111_v54  ;;  %v3418_v49 = vld [vmem:[%s12042_s10 + $0x50] sm:$0xf]  ;;  %v3256_v54 = vrot.slane %v9993_v61, 4 }
 0x6dc   :  { %3245 = vmatpush.msra.mxu1 %v6798_v13  ;;  %3391 = vmatpush.msra.mxu2 %v3379_v7  ;;  %v10077_v58 = vpop.permute.xlu0 %3527  ;;  %v3378_v7 = vld [vmem:[%s12040_s8 + $0x50] sm:$0xff] }
 0x6dd   :  { %3946 = vrot.lane.b32.xlu2 %v9694_v36, %s12187_s19  ;;  %3303 = vmatpush.msra.mxu3 %v6808_v50  ;;  %v6820_v13 = vld [vmem:[%s12038_s6 + $0x1f0] sm:$0xff]  ;;  %v4219_v50 = vsel %vm900_vm0, %v9541_v21, %v9607_v57  ;;  %v6819_v21 = vld [vmem:[%s12038_s6 + $0x1e8] sm:$0xff]  ;;  %v3376_v57 = vld [vmem:[%s12040_s8 + $0x40] sm:$0xff] }
 0x6de   :  { %3332 = vmatpush.msra.mxu0 %v6813_v55  ;;  %3358 = vmatpush.msrb.mxu1 %v6821_v25  ;;  %v3377_v55 = vld [vmem:[%s12040_s8 + $0x48] sm:$0xff] }
 0x6df   :  { %6792 = vmatmul.msk.f32.vlgmr.msrb.gmra.mxu3 %vm900_vm0, %v3169_v45  ;;  %6797 = vmatmul.msk.f32.vlgmr.msrb.gmra.mxu0 %vm900_vm0, %v3198_v47  ;;  %v3417_v25 = vld [vmem:[%s12042_s10 + $0x48] sm:$0xff] }
 0x6e0   :  { %6807 = vmatmul.msk.f32.vlgmr.msrb.gmra.mxu2 %vm900_vm0, %v3256_v54  ;;  %6824 = vmatpush.msk.msrb.mxu3 %vm12153_vm10, %v3418_v49  ;;  %v4166_v49 = vsel %vm846_vm2, %v9603_v43, %v9555_v22  ;;  %v6818_v54 = vld [vmem:[%s12038_s6 + $0x1e0] sm:$0xff]  ;;  %v4113_v43 = vsel %vm792_vm4, %v9629_v53, %v9624_v11  ;;  %v4638_v53 = vsel %vm131_vm1, %v9706_v29, %v9702_v8  ;;  %v10166_v29 = vld [vmem:[%s12032_s0 + $0x70] sm:$0xff]  ;;  %vm12274_vm10 = vcmask 752640  }
 0x6e1   :  { %3392 = vmatpush.msra.mxu2 %v3378_v7  ;;  %4833 = vmatpush.msrb.mxu0 %v4219_v50  ;;  %v10106_v45 = vpop.permute.xlu2 %4309  ;;  %v10108_v47 = vpop.permute.xlu1 %4362  ;;  %v3375_v7 = vld [vmem:[%s12040_s8 + $0x38] sm:$0xff]  ;;  %v3227_v50 = vrot.slane %v9993_v61, 3 }
 0x6e2   :  { %3359 = vmatpush.msrb.mxu1 %v6820_v13  ;;  %3485 = vrot.lane.b32.xlu1 %v9612_v19, %s12258_s25  ;;  %v3416_v19 = vld [vmem:[%s12042_s10 + $0x40] sm:$0xff] }
 0x6e3   :  { %3483 = vrot.lane.b32.xlu0 %v9941_v33, %s12258_s25  ;;  %3393 = vmatpush.msra.mxu2 %v3377_v55  ;;  %v3415_v33 = vld [vmem:[%s12042_s10 + $0x38] sm:$0xff]  ;;  %v4060_v55 = vsel %vm738_vm6, %v9564_v37, %v9641_v31  ;;  %v3414_v37 = vld [vmem:[%s12042_s10 + $0x30] sm:$0xff] }
 0x6e4   :  { %3434 = vmatpush.msrb.mxu3 %v3417_v25  ;;  %4834 = vmatpush.msrb.mxu0 %v4166_v49  ;;  %v10132_v13 = vpop.permute.xlu0 %3785  ;;  %v3285_v25 = vrot.slane %v9993_v61, 5 }
 0x6e5   :  { %3360 = vmatpush.msrb.mxu1 %v6819_v21  ;;  %3394 = vmatpush.msra.mxu2 %v3376_v57  ;;  %v3374_v21 = vld [vmem:[%s12040_s8 + $0x30] sm:$0xff]  ;;  %v3314_v57 = vrot.slane %v9993_v61, 6 }
 0x6e6   :  { %3435 = vmatpush.msrb.mxu3 %v3416_v19  ;;  %4835 = vmatpush.msrb.mxu0 %v4113_v43  ;;  %v4007_v19 = vsel %vm684_vm8, %v9637_v5, %v9584_v14  ;;  %v3413_v43 = vld [vmem:[%s12042_s10 + $0x28] sm:$0xff]  ;;  %v3372_v5 = vld [vmem:[%s12040_s8 + $0x20] sm:$0xff] }
 0x6e7   :  { %3361 = vmatpush.msrb.mxu1 %v6818_v54  ;;  %3395 = vmatpush.msra.mxu2 %v3375_v7  ;;  %v3373_v54 = vld [vmem:[%s12040_s8 + $0x28] sm:$0xff]  ;;  %v4590_v7 = vsel %vm259_vm3, %v9735_v48, %v9731_v4  ;;  %v3954_v4 = vsel %vm630_vm9, %v9653_v10, %v9649_v9  ;;  %v3412_v48 = vld [vmem:[%s12042_s10 + $0x20] sm:$0xff]  ;;  %v3901_v10 = vsel %vm12274_vm10, %v9661_v0, %v9622_v56  ;;  %v3370_v0 = vld [vmem:[%s12040_s8 + $0x10] sm:$0xff]  ;;  %vm12275_vm10 = vcmask 760832  }
 0x6e8   :  { %6802 = vmatmul.msk.f32.vlgmr.msra.gmra.mxu1 %vm900_vm0, %v3227_v50  ;;  %3436 = vmatpush.msrb.mxu3 %v3415_v33  ;;  %v4542_v50 = vsel %vm210_vm5, %v9771_v32, %v9758_v60  ;;  %v4494_v32 = vsel %vm161_vm7, %v9879_v30, %v9857_v17  ;;  %v3410_v30 = vld [vmem:[%s12042_s10 + $0x10] sm:$0xff] }
 0x6e9   :  { %4836 = vmatpush.msrb.mxu0 %v4060_v55  ;;  %4860 = vmatpush.msra.mxu1 %v4638_v53  ;;  %v10156_v49 = vpop.permute.xlu2 %3679  ;;  %v10158_v8 = vpop.permute.xlu1 %4486  ;;  %v3371_v55 = vld [vmem:[%s12040_s8 + $0x18] sm:$0xff] }
 0x6ea   :  { %3893 = vrot.lane.b32.xlu2 %v9694_v36, %s12190_s15  ;;  %6812 = vmatmul.msk.f32.vlgmr.msra.gmra.mxu3 %vm900_vm0, %v3285_v25  ;;  %v3411_v53 = vld [vmem:[%s12042_s10 + $0x18] sm:$0xff]  ;;  %v3343_v25 = vrot.slane %v9993_v61, 7 }
 0x6eb   :  { %6817 = vmatmul.msk.f32.vlgmr.msra.gmra.mxu0 %vm900_vm0, %v3314_v57  ;;  %3396 = vmatpush.msra.mxu2 %v3374_v21  ;;  %v4798_v21 = vld [vmem:[#allocation2 + $0x460] sm:$0xff] }
 0x6ec   :  { %3437 = vmatpush.msrb.mxu3 %v3414_v37  ;;  %4837 = vmatpush.msrb.mxu0 %v4007_v19  ;;  %v10181_v33 = vpop.permute.xlu0 %4484  ;;  %v3848_v19 = vsel %vm12275_vm10, %v9635_v35, %v9689_v52  ;;  %v3369_v35 = vld [vmem:[%s12040_s8 + $0x8] sm:$0xff]  ;;  %vm12277_vm10 = vcmask 228352  }
 0x6ed   :  { %4861 = vmatpush.msra.mxu1 %v4590_v7  ;;  %4215 = vrot.lane.b32.xlu1 %v10166_v29, %s12248_s28  ;;  %v4431_v7 = vsel %vm12277_vm10, %v9891_v3, %v10029_v34  ;;  %v3408_v3 = vld [vmem:[%s12042_s10] sm:$0xff]  ;;  %vm12279_vm10 = vcmask 236544  }
 0x6ee   :  { %3948 = vrot.lane.b32.xlu0 %v9723_v40, %s12187_s19  ;;  %3397 = vmatpush.msra.mxu2 %v3373_v54  ;;  %v3795_v54 = vsel %vm12276_vm15, %v9659_v27, %v9718_v62  ;;  %v3368_v27 = vld [vmem:[%s12040_s8] sm:$0xff]  ;;  %vm12278_vm15 = vcmask 777216  }
 0x6ef   :  { %3438 = vmatpush.msrb.mxu3 %v3413_v43  ;;  %4838 = vmatpush.msrb.mxu0 %v3954_v4  ;;  %v3409_v43 = vld [vmem:[%s12042_s10 + $0x8] sm:$0xff] }
 0x6f0   :  { %4862 = vmatpush.msra.mxu1 %v4542_v50  ;;  %3398 = vmatpush.msra.mxu2 %v3372_v5  ;;  %v4378_v5 = vsel %vm12279_vm10, %v10108_v47, %v9952_v26  ;;  %v10268_v50 = vld [vmem:[%s12032_s0 + $0x78] sm:$0xff]  ;;  %v4221_v47 = vsel %vm900_vm0, %v9601_v51, %v9665_v20  ;;  %vm12285_vm10 = vcmask 752640  }
 0x6f1   :  { %3439 = vmatpush.msrb.mxu3 %v3412_v48  ;;  %4839 = vmatpush.msrb.mxu0 %v3901_v10  ;;  %v10212_v57 = vpop.permute.xlu2 %4256  ;;  %v10214_v37 = vpop.permute.xlu1 %3730  ;;  %v3637_v10 = vsel %vm131_vm1, %v9893_v24, %v9756_v42  ;;  %v3589_v24 = vsel %vm259_vm3, %v9917_v38, %v9855_v15 }
 0x6f2   :  { %4863 = vmatpush.msra.mxu1 %v4494_v32  ;;  %3399 = vmatpush.msra.mxu2 %v3371_v55  ;;  %v4764_v55 = vld [vmem:[#allocation2 + $0x350] sm:$0xff]  ;;  %v4168_v32 = vsel %vm846_vm2, %v9677_v28, %v9673_v46 }
 0x6f3   :  { %6822 = vmatmul.msk.f32.vlgmr.msrb.gmra.mxu1 %vm900_vm0, %v3343_v25  ;;  %3440 = vmatpush.msrb.mxu3 %v3411_v53  ;;  %v4167_v53 = vsel %vm846_vm2, %v9555_v22, %v9677_v28  ;;  %v4114_v22 = vsel %vm792_vm4, %v9624_v11, %v9685_v44  ;;  %v4115_v28 = vsel %vm792_vm4, %v9685_v44, %v9647_v12 }
 0x6f4   :  { %4840 = vmatpush.msrb.mxu0 %v3848_v19  ;;  %4864 = vmatpush.msra.mxu1 %v4798_v21  ;;  %v10226_v61 = vpop.permute.xlu0 %3481  ;;  %v3541_v25 = vsel %vm210_vm5, %v10077_v58, %v10065_v59  ;;  %v4061_v11 = vsel %vm738_vm6, %v9641_v31, %v9714_v1  ;;  %v4062_v44 = vsel %vm738_vm6, %v9714_v1, %v9671_v63  ;;  %v12281_v19 = vld [vmem:[#allocation11_spill] sm:$0xff] }
 0x6f5   :  { %3840 = vrot.lane.b32.xlu2 %v9694_v36, %s12251_s14  ;;  %3400 = vmatpush.msra.mxu2 %v3370_v0  ;;  %v3742_v36 = vsel %vm12278_vm15, %v9683_v23, %v9750_v16  ;;  %vm12280_vm15 = vcmask 785408   ;;  %v3493_v38 = vsel %vm161_vm7, %v10009_v39, %v10226_v61  ;;  %v4658_v0 = vld [vmem:[#allocation2] sm:$0xff]  ;;  %v4008_v39 = vsel %vm684_vm8, %v9584_v14, %v9743_v2 }
 0x6f6   :  { %3441 = vmatpush.msrb.mxu3 %v3410_v30  ;;  %4841 = vmatpush.msrb.mxu0 %v3795_v54  ;;  %v3689_v23 = vsel %vm12280_vm15, %v9712_v41, %v9819_v18  ;;  %v4009_v31 = vsel %vm684_vm8, %v9743_v2, %v12281_v19  ;;  %v12282_v30 = vld [vmem:[#allocation6_spill] sm:$0xff]  ;;  %v12284_v2 = vld [vmem:[#allocation12_spill] sm:$0xff]  ;;  %vm12287_vm15 = vmmov %vm12285_vm10 }
 0x6f7   :  { %4865 = vmatpush.msra.mxu1 %v4431_v7  ;;  %4162 = vrot.lane.b32.xlu1 %v10166_v29, %s12262_s12  ;;  %v3955_v54 = vsel %vm630_vm9, %v9649_v9, %v12282_v30  ;;  %v10335_v14 = vld [vmem:[%s12032_s0 + $0x60] sm:$0xff] }
 0x6f8   :  { %3895 = vrot.lane.b32.xlu0 %v9723_v40, %s12190_s15  ;;  %3401 = vmatpush.msra.mxu2 %v3369_v35  ;;  %v12283_v35 = vld [vmem:[#allocation7_spill] sm:$0xff] }
 0x6f9   :  { %3442 = vmatpush.msrb.mxu3 %v3409_v43  ;;  %4842 = vmatpush.msrb.mxu0 %v3742_v36  ;;  %v10258_v4 = vpop.permute.xlu2 %4421  ;;  %v10260_v48 = vpop.permute.xlu1 %4213  ;;  %v3956_v7 = vsel %vm630_vm9, %v12282_v30, %v12283_v35  ;;  %v3902_v43 = vsel %vm12285_vm10, %v9622_v56, %v12284_v2  ;;  %v12286_v9 = vld [vmem:[#allocation23_spill] sm:$0xff]  ;;  %vm12290_vm10 = vcmask 244736   ;;  %v4496_v30 = vsel %vm161_vm7, %v10181_v33, %v10158_v8 }
 0x6fa   :  { %3402 = vmatpush.msra.mxu2 %v3368_v27  ;;  %4866 = vmatpush.msra.mxu1 %v4378_v5  ;;  %v3903_v27 = vsel %vm12287_vm15, %v12284_v2, %v12286_v9  ;;  %v10348_v36 = vld [vmem:[%s12033_s1] sm:$0xff]  ;;  %v12289_v5 = vld [vmem:[#allocation8_spill] sm:$0xff]  ;;  %vm12292_vm15 = vcmask 760832  }
 0x6fb   :  { %3443 = vmatpush.msrb.mxu3 %v3408_v3  ;;  %4843 = vmatpush.msrb.mxu0 %v3689_v23  ;;  %v12288_v3 = vld [vmem:[#allocation16_spill] sm:$0xff]  ;;  %vm12294_vm13 = vmmov %vm12292_vm15 }
 0x6fc   :  { %4913 = vmatpush.msrb.mxu2 %v4221_v47  ;;  %v10276_v41 = vpop.permute.xlu0 %4211  ;;  %v4640_v23 = vsel %vm131_vm1, %v12289_v5, %v12288_v3  ;;  %v12291_v47 = vld [vmem:[#allocation18_spill] sm:$0xff]  ;;  %v4827_v5 = vld [vmem:[#allocation2 + $0x548] sm:$0xff] }
 0x6fd   :  { %4873 = vmatpush.msra.mxu3 %v4764_v55  ;;  %4844 = vmatpush.msrb.mxu0 %v3637_v10  ;;  %v4223_v51 = vsel %vm900_vm0, %v10276_v41, %v10260_v48  ;;  %v12293_v55 = vld [vmem:[#allocation21_spill] sm:$0xff] }
 0x6fe   :  { %4217 = vrot.lane.b32.xlu2 %v10268_v50, %s12248_s28  ;;  %4914 = vmatpush.msrb.mxu2 %v4168_v32  ;;  %4237 = vst [vmem:[#allocation2 + $0x368] sm:$0xff] %v4223_v51  ;;  %v3850_v10 = vsel %vm12294_vm13, %v12291_v47, %v12293_v55  ;;  %v12295_v51 = vld [vmem:[#allocation15_spill] sm:$0xff]  ;;  %s12316_s28 = sld [smem:[#allocation28_spill]] }
 0x6ff   :  { %4874 = vmatpush.msra.mxu3 %v4167_v53  ;;  %4845 = vmatpush.msrb.mxu0 %v3589_v24  ;;  %v12296_v24 = vld [vmem:[#allocation14_spill] sm:$0xff] }
 0x700   :  { %4109 = vrot.lane.b32.xlu1 %v10166_v29, %s12249_s29  ;;  %4915 = vmatpush.msrb.mxu2 %v4115_v28 }
 0x701   :  { %4875 = vmatpush.msra.mxu3 %v4114_v22  ;;  %3842 = vrot.lane.b32.xlu0 %v9723_v40, %s12251_s14  ;;  %v10314_v21 = vpop.permute.xlu2 %4105  ;;  %v3678_v58 = vpop.permute.xlu1 %3677  ;;  %v12297_v22 = vld [vmem:[#allocation13_spill] sm:$0xff] }
 0x702   :  { %4846 = vmatpush.msrb.mxu0 %v3541_v25  ;;  %4916 = vmatpush.msrb.mxu2 %v4062_v44  ;;  %v12300_v25 = vld [vmem:[#allocation10_spill] sm:$0xff] }
 0x703   :  { %4876 = vmatpush.msra.mxu3 %v4061_v11 }
 0x704   :  { %4847 = vmatpush.msrb.mxu0 %v3493_v38  ;;  %4917 = vmatpush.msrb.mxu2 %v4009_v31  ;;  %v10322_v1 = vpop.permute.xlu0 %4311  ;;  %v12301_v38 = vld [vmem:[#allocation19_spill] sm:$0xff] }
 0x705   :  { %4877 = vmatpush.msra.mxu3 %v4008_v39  ;;  %v4325_v56 = vsel %vm12290_vm10, %v10106_v45, %v10322_v1  ;;  %v4592_v45 = vsel %vm259_vm3, %v12296_v24, %v12295_v51  ;;  %vm12298_vm10 = vcmask 769024   ;;  %v4544_v11 = vsel %vm210_vm5, %v12301_v38, %v12300_v25 }
 0x706   :  { %4056 = vrot.lane.b32.xlu2 %v10166_v29, %s12253_s4  ;;  %4848 = vmatpush.msrb.mxu0 %v4658_v0  ;;  %vm12299_vm13 = vmmov %vm12298_vm10 }
 0x707   :  { %4878 = vmatpush.msra.mxu3 %v3955_v54  ;;  %4918 = vmatpush.msrb.mxu2 %v3956_v7  ;;  %v3797_v28 = vsel %vm12299_vm13, %v12297_v22, %v10132_v13  ;;  %v4800_v54 = vld [vmem:[#allocation2 + $0x470] sm:$0xff] }
 0x708   :  { %3789 = vrot.lane.b32.xlu1 %v9723_v40, %s12163_s21  ;;  %4849 = vmatmul.f32.vlgmr.msrb.gmra.mxu0 %v10348_v36  ;;  %v3849_v40 = vsel %vm12292_vm15, %v9689_v52, %v12291_v47  ;;  %v3796_v52 = vsel %vm12298_vm10, %v9718_v62, %v12297_v22  ;;  %vm12302_vm15 = vcmask 777216   ;;  %v10390_v62 = vld [vmem:[%s12032_s0 + $0x68] sm:$0xff]  ;;  %vm12304_vm10 = vcmask 785408  }
 0x709   :  { %4879 = vmatpush.msra.mxu3 %v3902_v43  ;;  %4919 = vmatpush.msrb.mxu2 %v3903_v27  ;;  %v10365_v53 = vpop.permute.xlu2 %4368  ;;  %v10367_v32 = vpop.permute.xlu1 %4160  ;;  %v3743_v44 = vsel %vm12302_vm15, %v9750_v16, %v10214_v37  ;;  %vm12303_vm12 = vmmov %vm12302_vm15  ;;  %v3690_v31 = vsel %vm12304_vm10, %v9819_v18, %v3678_v58  ;;  %vm12307_vm15 = vcmask 252928   ;;  %v10426_v27 = vld [vmem:[%s12033_s1 + $0x8] sm:$0xff] }
 0x70a   :  { %3787 = vrot.lane.b32.xlu0 %v10335_v14, %s12163_s21  ;;  %4940 = vmatpush.msra.mxu0 %v4640_v23  ;;  %v3744_v0 = vsel %vm12303_vm12, %v10214_v37, %v10063_v6  ;;  %vm12305_vm13 = vmmov %vm12304_vm10  ;;  %vm12306_vm12 = vcmask 228352   ;;  %vm12309_vm10 = vcmask 588800   ;;  %v4799_v22 = vld [vmem:[#allocation2 + $0x468] sm:$0xff] }
 0x70b   :  { %4880 = vmatpush.msra.mxu3 %v3849_v40  ;;  %4920 = vmatpush.msrb.mxu2 %v3850_v10  ;;  %v3691_v16 = vsel %vm12305_vm13, %v3678_v58, %v10156_v49  ;;  %v4495_v40 = vsel %vm161_vm7, %v9857_v17, %v10181_v33  ;;  %vm12310_vm13 = vmmov %vm12306_vm12 }
 0x70c   :  { %4941 = vmatpush.msra.mxu0 %v4592_v45  ;;  %4867 = vmatpush.msra.mxu1 %v4325_v56  ;;  %v10392_v39 = vpop.permute.xlu0 %4158  ;;  %v4543_v56 = vsel %vm210_vm5, %v9758_v60, %v12301_v38 }
 0x70d   :  { %4881 = vmatpush.msra.mxu3 %v3796_v52  ;;  %4921 = vmatpush.msrb.mxu2 %v3797_v28  ;;  %v4170_v37 = vsel %vm846_vm2, %v10392_v39, %v10367_v32 }
 0x70e   :  { %4634 = vrot.lane.b32.xlu2 %v10166_v29, %s12252_s24  ;;  %4942 = vmatpush.msra.mxu0 %v4544_v11  ;;  %4184 = vst [vmem:[#allocation2 + $0x330] sm:$0xff] %v4170_v37 }
 0x70f   :  { %4882 = vmatpush.msra.mxu3 %v3743_v44  ;;  %4922 = vmatpush.msrb.mxu2 %v3744_v0 }
 0x710   :  { %4632 = vrot.lane.b32.xlu1 %v10390_v62, %s12252_s24  ;;  %4943 = vmatpush.msra.mxu0 %v4496_v30 }
 0x711   :  { %4883 = vmatpush.msra.mxu3 %v3690_v31  ;;  %4923 = vmatpush.msrb.mxu2 %v3691_v16  ;;  %v4420_v18 = vpop.permute.xlu1 %4419  ;;  %v10412_v7 = vpop.permute.xlu2 %4052 }
 0x712   :  { %4164 = vrot.lane.b32.xlu0 %v10268_v50, %s12262_s12  ;;  %4944 = vmatpush.msra.mxu0 %v4800_v54  ;;  %v4433_v58 = vsel %vm12306_vm12, %v4420_v18, %v10258_v4  ;;  %v4432_v60 = vsel %vm12310_vm13, %v10029_v34, %v4420_v18  ;;  %vm12311_vm12 = vcmask 236544  }
 0x714   :  { %4945 = vmatpush.msra.mxu0 %v4433_v58  ;;  %v10414_v2 = vpop.permute.xlu0 %4258 }
 0x715   :  { %v4272_v43 = vsel %vm12307_vm15, %v10212_v57, %v10414_v2  ;;  %v4820_v57 = vld [vmem:[#allocation2 + $0x510] sm:$0xff]  ;;  %vm12312_vm15 = vmmov %vm12311_vm12 }
 0x716   :  { %4003 = vrot.lane.b32.xlu2 %v10166_v29, %s12250_s27  ;;  %4868 = vmatpush.msra.mxu1 %v4272_v43 }
 0x717   :  { %7016 = vmatmul.msk.f32.vlgmr.msra.gmra.mxu1 %vm12309_vm10, %v10426_v27  ;;  %vm12314_vm10 = vcmask 244736  }
 0x718   :  { %3736 = vrot.lane.b32.xlu1 %v10390_v62, %s12308_s2  ;;  %4900 = vmatpush.msrb.mxu1 %v4827_v5  ;;  %vm12315_vm13 = vmmov %vm12314_vm10  ;;  %v2903_v5 = vld [vmem:[%s12316_s28] sm:$0x1] }
 0x719   :  { %v10432_v23 = vpop.permute.xlu1 %3629  ;;  %v10442_v10 = vpop.permute.xlu2 %4315 }
 0x71a   :  { %3734 = vrot.lane.b32.xlu0 %v10335_v14, %s12308_s2  ;;  %4901 = vmatpush.msrb.mxu1 %v4820_v57 }
 0x71c   :  { %v3628_v47 = vpop.permute.xlu0 %3627  ;;  %4902 = vmatpush.msrb.mxu1 %v4543_v56 }
 0x71d   :  { %v3638_v24 = vsel %vm131_vm1, %v9756_v42, %v3628_v47  ;;  %v3639_v45 = vsel %vm131_vm1, %v3628_v47, %v10432_v23 }
 0x71e   :  { %4586 = vrot.lane.b32.xlu2 %v10166_v29, %s12255_s17  ;;  %4903 = vmatpush.msrb.mxu1 %v4495_v40 }
 0x71f   :  { %4884 = vmatpush.msra.mxu3 %v3638_v24  ;;  %4924 = vmatpush.msrb.mxu2 %v3639_v45 }
 0x720   :  { %4584 = vrot.lane.b32.xlu1 %v10390_v62, %s12255_s17  ;;  %4904 = vmatpush.msrb.mxu1 %v4799_v22 }
 0x721   :  { %v4367_v17 = vpop.permute.xlu1 %4366 }
 0x722   :  { %4111 = vrot.lane.b32.xlu0 %v10268_v50, %s12249_s29  ;;  %v4379_v42 = vsel %vm12311_vm12, %v9952_v26, %v4367_v17  ;;  %v4380_v33 = vsel %vm12312_vm15, %v4367_v17, %v10365_v53  ;;  %4905 = vmatpush.msrb.mxu1 %v4432_v60  ;;  %s12313_s29 = smov 96   ;;  %v10470_v26 = vpop.permute.xlu2 %3999  ;;  %vm12317_vm12 = vcmask 252928   ;;  %v4222_v60 = vsel %vm900_vm0, %v9665_v20, %v10276_v41 }
 0x723   :  { %4946 = vmatpush.msra.mxu0 %v4380_v33  ;;  %vm12318_vm15 = vmmov %vm12317_vm12  ;;  %v4169_v33 = vsel %vm846_vm2, %v9673_v46, %v10392_v39  ;;  %v4116_v41 = vsel %vm792_vm4, %v9647_v12, %v10314_v21  ;;  %v4063_v46 = vsel %vm738_vm6, %v9671_v63, %v10412_v7  ;;  %v4010_v12 = vsel %vm684_vm8, %v12281_v19, %v10470_v26 }
 0x724   :  { %v10458_v52 = vpop.permute.xlu0 %4107  ;;  %4906 = vmatpush.msrb.mxu1 %v4379_v42 }
 0x725   :  { %v10465_v28 = vsel %vm792_vm4, %v10314_v21, %v10458_v52 }
 0x726   :  { %3950 = vrot.lane.b32.xlu2 %v10166_v29, %s12187_s19  ;;  %4131 = vst [vmem:[#allocation2 + $0x2f8] sm:$0xff] %v10465_v28 }
 0x728   :  { %3683 = vrot.lane.b32.xlu1 %v10390_v62, %s12313_s29 }
 0x729   :  { %v10474_v34 = vpop.permute.xlu1 %3581 }
 0x72a   :  { %3681 = vrot.lane.b32.xlu0 %v10335_v14, %s12313_s29  ;;  %v10486_v0 = vpop.permute.xlu2 %4262 }
 0x72c   :  { %v3580_v38 = vpop.permute.xlu0 %3579 }
 0x72d   :  { %v3590_v11 = vsel %vm259_vm3, %v9855_v15, %v3580_v38  ;;  %v3591_v44 = vsel %vm259_vm3, %v3580_v38, %v10474_v34 }
 0x72e   :  { %4538 = vrot.lane.b32.xlu2 %v10166_v29, %s12257_s11  ;;  %4885 = vmatpush.msra.mxu3 %v3590_v11 }
 0x72f   :  { %4925 = vmatpush.msrb.mxu2 %v3591_v44 }
 0x730   :  { %4536 = vrot.lane.b32.xlu1 %v10390_v62, %s12257_s11 }
 0x731   :  { %v4314_v31 = vpop.permute.xlu1 %4313 }
 0x732   :  { %4058 = vrot.lane.b32.xlu0 %v10268_v50, %s12253_s4  ;;  %v4326_v16 = vsel %vm12314_vm10, %v10322_v1, %v4314_v31  ;;  %v4327_v15 = vsel %vm12315_vm13, %v4314_v31, %v10442_v10  ;;  %vm12319_vm10 = vcmask 588800  }
 0x733   :  { %4907 = vmatpush.msrb.mxu1 %v4326_v16  ;;  %4947 = vmatpush.msra.mxu0 %v4327_v15  ;;  %vm12320_vm13 = vmmov %vm12319_vm10 }
 0x734   :  { %v10492_v37 = vpop.permute.xlu0 %4054 }
 0x735   :  { %v10499_v30 = vsel %vm738_vm6, %v10412_v7, %v10492_v37 }
 0x736   :  { %3897 = vrot.lane.b32.xlu2 %v10166_v29, %s12190_s15  ;;  %4078 = vst [vmem:[#allocation2 + $0x2c0] sm:$0xff] %v10499_v30 }
 0x737   :  { %v10506_v1 = vpop.permute.xlu2 %3946 }
 0x738   :  { %3633 = vrot.lane.b32.xlu1 %v10390_v62, %s12252_s24  ;;  %v3957_v44 = vsel %vm630_vm9, %v12283_v35, %v10506_v1 }
 0x73a   :  { %3631 = vrot.lane.b32.xlu0 %v10335_v14, %s12252_s24 }
 0x73b   :  { %v10508_v54 = vpop.permute.xlu1 %3533 }
 0x73c   :  { %v3532_v18 = vpop.permute.xlu0 %3531 }
 0x73d   :  { %v3542_v58 = vsel %vm210_vm5, %v10065_v59, %v3532_v18  ;;  %v3543_v43 = vsel %vm210_vm5, %v3532_v18, %v10508_v54 }
 0x73e   :  { %4490 = vrot.lane.b32.xlu2 %v10166_v29, %s12258_s25  ;;  %4886 = vmatpush.msra.mxu3 %v3542_v58 }
 0x73f   :  { %4926 = vmatpush.msrb.mxu2 %v3543_v43 }
 0x740   :  { %4488 = vrot.lane.b32.xlu1 %v10390_v62, %s12258_s25 }
 0x742   :  { %4005 = vrot.lane.b32.xlu0 %v10268_v50, %s12250_s27  ;;  %s12321_s27 = smov 28  }
 0x743   :  { %v2928_v57 = vpop.f32.mrf.mxu1 }
 0x744   :  { %v10525_v59 = vpop.permute.xlu2 %3893  ;;  %v2931_v56 = vadd.f32 %v2928_v57, %v2903_v5 }
 0x745   :  { %v2957_v47 = vpop.f32.mrf.mxu0 }
 0x746   :  { %3844 = vrot.lane.b32.xlu2 %v10166_v29, %s12251_s14  ;;  %v2960_v42 = vadd.f32 %v2957_v47, %v2931_v56 }
 0x748   :  { %3585 = vrot.lane.b32.xlu1 %v10390_v62, %s12255_s17  ;;  %v4261_v40 = vpop.permute.xlu1 %4260 }
 0x749   :  { %v4273_v24 = vsel %vm12317_vm12, %v10414_v2, %v4261_v40  ;;  %v4274_v45 = vsel %vm12318_vm15, %v4261_v40, %v10486_v0  ;;  %v10535_v22 = vpop.permute.xlu0 %4001  ;;  %vm12322_vm12 = vcmask 752640   ;;  %vm12323_vm15 = vcmask 760832  }
 0x74a   :  { %3583 = vrot.lane.b32.xlu0 %v10335_v14, %s12255_s17  ;;  %v10543_v17 = vsel %vm684_vm8, %v10470_v26, %v10535_v22  ;;  %4908 = vmatpush.msrb.mxu1 %v4273_v24  ;;  %v3904_v35 = vsel %vm12322_vm12, %v12286_v9, %v10525_v59 }
 0x74b   :  { %4948 = vmatpush.msra.mxu0 %v4274_v45  ;;  %4025 = vst [vmem:[#allocation2 + $0x288] sm:$0xff] %v10543_v17  ;;  %v2986_v2 = vpop.f32.mrf.mxu3  ;;  %7017 = vmatmul.msk.f32.vlgmr.msrb.gmra.mxu1 %vm12320_vm13, %v10426_v27  ;;  %vm12325_vm13 = vmmov %vm12323_vm15 }
 0x74c   :  { %4953 = vmatpush.msra.mxu1 %v4222_v60  ;;  %7018 = vmatmul.msk.f32.vlgmr.msra.gmra.mxu0 %vm12319_vm10, %v10426_v27  ;;  %v2989_v20 = vadd.f32 %v2986_v2, %v2960_v42  ;;  %v3015_v11 = vpop.f32.mrf.mxu1  ;;  %v3044_v21 = vpop.f32.mrf.mxu2  ;;  %v4660_v2 = vld [vmem:[#allocation2 + $0x10] sm:$0xff]  ;;  %vm12324_vm10 = vmmov %vm12322_vm12  ;;  %vm12326_vm12 = vcmask 769024  }
 0x74e   :  { %3537 = vrot.lane.b32.xlu2 %v10390_v62, %s12257_s11  ;;  %4954 = vmatpush.msra.mxu1 %v4169_v33  ;;  %v3018_v39 = vadd.f32 %v3015_v11, %v2989_v20 }
 0x74f   :  { %v10558_v38 = vpop.permute.xlu2 %3840  ;;  %v3102_v58 = vpop.f32.mrf.mxu0 }
 0x750   :  { %3535 = vrot.lane.b32.xlu1 %v10335_v14, %s12257_s11  ;;  %4955 = vmatpush.msra.mxu1 %v4116_v41  ;;  %v3047_v31 = vadd.f32 %v3044_v21, %v3018_v39 }
 0x752   :  { %3952 = vrot.lane.b32.xlu0 %v10268_v50, %s12187_s19  ;;  %4956 = vmatpush.msra.mxu1 %v4063_v46 }
 0x754   :  { %4957 = vmatpush.msra.mxu1 %v4010_v12  ;;  %v10573_v16 = vpop.permute.xlu1 %3485 }
 0x755   :  { %v3484_v63 = vpop.permute.xlu0 %3483  ;;  %v3073_v7 = vpop.f32.mrf.mxu3 }
 0x756   :  { %4423 = vrot.lane.b32.xlu2 %v10335_v14, %s12321_s27  ;;  %4958 = vmatpush.msra.mxu1 %v3957_v44  ;;  %v3494_v15 = vsel %vm161_vm7, %v10226_v61, %v3484_v63  ;;  %v3495_v19 = vsel %vm161_vm7, %v3484_v63, %v10573_v16  ;;  %v3076_v26 = vadd.f32 %v3073_v7, %v3047_v31  ;;  %v3160_v9 = vpop.f32.mrf.mxu2 }
 0x757   :  { %4887 = vmatpush.msra.mxu3 %v3494_v15  ;;  %4927 = vmatpush.msrb.mxu2 %v3495_v19  ;;  %v3851_v61 = vsel %vm12323_vm15, %v12293_v55, %v10558_v38  ;;  %vm12327_vm15 = vmmov %vm12326_vm12 }
 0x758   :  { %v4218_v18 = vpop.permute.xlu2 %4217  ;;  %3899 = vrot.lane.b32.xlu1 %v10268_v50, %s12190_s15  ;;  %v3105_v43 = vadd.f32 %v3102_v58, %v3076_v26  ;;  %4959 = vmatpush.msra.mxu1 %v3904_v35  ;;  %v3131_v5 = vpop.f32.mrf.mxu1 }
 0x759   :  { %4928 = vmatpush.msrb.mxu2 %v4660_v2 }
 0x75a   :  { %3791 = vrot.lane.b32.xlu0 %v10166_v29, %s12163_s21  ;;  %4960 = vmatpush.msra.mxu1 %v3851_v61  ;;  %v3134_v57 = vadd.f32 %v3131_v5, %v3105_v43 }
 0x75c   :  { %v3163_v47 = vadd.f32 %v3160_v9, %v3134_v57 }
 0x75e   :  { %3487 = vrot.lane.b32.xlu2 %v10335_v14, %s12258_s25 }
 0x75f   :  { %v4216_v40 = vpop.permute.xlu1 %4215 }
 0x760   :  { %v10593_v56 = vpop.permute.xlu2 %4056  ;;  %4636 = vrot.lane.b32.xlu1 %v10268_v50, %s12252_s24  ;;  %v10604_v24 = vsel %vm900_vm0, %v10260_v48, %v4216_v40  ;;  %v4225_v45 = vsel %vm900_vm0, %v4216_v40, %v4218_v18  ;;  %v3949_v60 = vpop.permute.xlu0 %3948 }
 0x761   :  { %v10600_v55 = vsel %vm738_vm6, %v10492_v37, %v10593_v56  ;;  %v10611_v42 = vsel %vm630_vm9, %v10506_v1, %v3949_v60  ;;  %4239 = vst.msk [vmem:[#allocation2 + $0x378] sm:$0xff] %vm131_vm1, %v4225_v45  ;;  %v3218_v48 = vpop.f32.mrf.mxu0 }
 0x762   :  { %4425 = vrot.lane.b32.xlu0 %v10390_v62, %s12321_s27  ;;  %v3189_v33 = vpop.f32.mrf.mxu3  ;;  %3972 = vst [vmem:[#allocation2 + $0x250] sm:$0xff] %v10611_v42 }
 0x763   :  { %v3192_v37 = vadd.f32 %v3189_v33, %v3163_v47  ;;  %v3276_v46 = vpop.f32.mrf.mxu2 }
 0x765   :  { %v3221_v20 = vadd.f32 %v3218_v48, %v3192_v37  ;;  %v3247_v41 = vpop.f32.mrf.mxu1 }
 0x766   :  { %3846 = vrot.lane.b32.xlu2 %v10268_v50, %s12251_s14 }
 0x767   :  { %v3250_v1 = vadd.f32 %v3247_v41, %v3221_v20 }
 0x768   :  { %v10617_v11 = vpop.permute.xlu2 %4634  ;;  %3738 = vrot.lane.b32.xlu1 %v10166_v29, %s12308_s2 }
 0x769   :  { %v4163_v39 = vpop.permute.xlu1 %4162  ;;  %v3279_v12 = vadd.f32 %v3276_v46, %v3250_v1  ;;  %v3334_v15 = vpop.f32.mrf.mxu0 }
 0x76a   :  { %3489 = vrot.lane.b32.xlu0 %v10390_v62, %s12258_s25  ;;  %v10625_v21 = vsel %vm846_vm2, %v10367_v32, %v4163_v39  ;;  %v3896_v44 = vpop.permute.xlu0 %3895 }
 0x76b   :  { %v10629_v31 = vsel %vm12324_vm10, %v10525_v59, %v3896_v44  ;;  %vm12328_vm10 = vcmask 777216  }
 0x76c   :  { %3919 = vst [vmem:[#allocation2 + $0x218] sm:$0xff] %v10629_v31 }
 0x76d   :  { %v3305_v63 = vpop.f32.mrf.mxu3 }
 0x76e   :  { %4588 = vrot.lane.b32.xlu2 %v10268_v50, %s12255_s17  ;;  %v3308_v7 = vadd.f32 %v3305_v63, %v3279_v12  ;;  %v6980_v63 = vld [vmem:[%s12032_s0 + $0x78] sm:$0xff] }
 0x770   :  { %v10634_v19 = vpop.permute.xlu2 %4003  ;;  %4372 = vrot.lane.b32.xlu1 %v10390_v62, %s12172_s18  ;;  %v3337_v59 = vadd.f32 %v3334_v15, %v3308_v7  ;;  %v3363_v26 = vpop.f32.mrf.mxu1 }
 0x771   :  { %v10641_v32 = vsel %vm684_vm8, %v10535_v22, %v10634_v19 }
 0x772   :  { %4370 = vrot.lane.b32.xlu0 %v10335_v14, %s12172_s18  ;;  %v4110_v35 = vpop.permute.xlu1 %4109  ;;  %v3366_v18 = vadd.f32 %v3363_v26, %v3337_v59 }
 0x773   :  { %v10647_v58 = vsel %vm792_vm4, %v10458_v52, %v4110_v35  ;;  %v10649_v43 = vpop.permute.xlu0 %3842 }
 0x774   :  { %v3367_v61 = vmax.f32 %v3366_v18, 0.0  ;;  %v10654_v5 = vsel %vm12325_vm13, %v10558_v38, %v10649_v43  ;;  %vm12329_vm13 = vmmov %vm12328_vm10 }
 0x775   :  { %3866 = vst [vmem:[#allocation2 + $0x1e0] sm:$0xff] %v10654_v5 }
 0x776   :  { %4317 = vrot.lane.b32.xlu2 %v10335_v14, %s12175_s23  ;;  %6823 = vmatmul.msk.f32.vlgmr.msra.gmra.mxu2 %vm1991_vm11, %v3367_v61 }
 0x778   :  { %v10660_v22 = vpop.permute.xlu2 %4586  ;;  %3793 = vrot.lane.b32.xlu1 %v10268_v50, %s12163_s21 }
 0x77a   :  { %3685 = vrot.lane.b32.xlu0 %v10166_v29, %s12313_s29  ;;  %v10666_v52 = vpop.permute.xlu1 %3789 }
 0x77c   :  { %v3788_v57 = vpop.permute.xlu0 %3787 }
 0x77d   :  { %v3798_v38 = vsel %vm12326_vm12, %v10132_v13, %v3788_v57  ;;  %v10672_v9 = vsel %vm12327_vm15, %v3788_v57, %v10666_v52  ;;  %vm12330_vm12 = vcmask 752640   ;;  %vm12331_vm15 = vcmask 785408  }
 0x77e   :  { %3813 = vst [vmem:[#allocation2 + $0x1a8] sm:$0xff] %v10672_v9  ;;  %3635 = vrot.lane.b32.xlu2 %v10166_v29, %s12252_s24  ;;  %4961 = vmatpush.msra.mxu1 %v3798_v38 }
 0x77f   :  { %4929 = vmatmul.f32.vlgmr.msrb.gmra.mxu2 %v10348_v36 }
 0x780   :  { %v10678_v47 = vpop.permute.xlu2 %3950  ;;  %4540 = vrot.lane.b32.xlu1 %v10268_v50, %s12257_s11 }
 0x781   :  { %v10684_v13 = vsel %vm630_vm9, %v3949_v60, %v10678_v47 }
 0x782   :  { %4319 = vrot.lane.b32.xlu0 %v10390_v62, %s12175_s23  ;;  %v4633_v40 = vpop.permute.xlu1 %4632 }
 0x783   :  { %v4641_v45 = vsel %vm131_vm1, %v12288_v3, %v4633_v40  ;;  %v4642_v29 = vsel %vm131_vm1, %v4633_v40, %v10617_v11 }
 0x784   :  { %4655 = vst [vmem:[#allocation2 + $0x560] sm:$0xff] %v4642_v29  ;;  %v4165_v2 = vpop.permute.xlu0 %4164  ;;  %4980 = vmatpush.msrb.mxu0 %v4641_v45  ;;  %5020 = vmatpush.msra.mxu2 %v4642_v29 }
 0x785   :  { %v4172_v33 = vsel %vm846_vm2, %v4163_v39, %v4165_v2  ;;  %v4850_v29 = vpop.f32.mrf.mxu0 }
 0x786   :  { %4186 = vst.msk [vmem:[#allocation2 + $0x340] sm:$0xff] %vm131_vm1, %v4172_v33  ;;  %4266 = vrot.lane.b32.xlu2 %v10390_v62, %s12177_s22  ;;  %v6853_v62 = vld [vmem:[%s12032_s0 + $0x70] sm:$0xff]  ;;  %s12396_s0 = sld [smem:[#allocation27_spill]] }
 0x788   :  { %v10696_v60 = vpop.permute.xlu2 %4538  ;;  %4264 = vrot.lane.b32.xlu1 %v10335_v14, %s12177_s22 }
 0x78a   :  { %3740 = vrot.lane.b32.xlu0 %v10268_v50, %s12308_s2  ;;  %v10702_v3 = vpop.permute.xlu1 %3736  ;;  %s12365_s2 = smov 122  }
 0x78c   :  { %v3735_v37 = vpop.permute.xlu0 %3734 }
 0x78d   :  { %v3745_v48 = vsel %vm12328_vm10, %v10063_v6, %v3735_v37  ;;  %v10708_v20 = vsel %vm12329_vm13, %v3735_v37, %v10702_v3  ;;  %vm12333_vm10 = vcmask 760832   ;;  %v12334_v37 = vld [vmem:[#allocation17_spill] sm:$0xff]  ;;  %vm12335_vm13 = vcmask 228352  }
 0x78e   :  { %3760 = vst [vmem:[#allocation2 + $0x170] sm:$0xff] %v10708_v20  ;;  %3687 = vrot.lane.b32.xlu2 %v10268_v50, %s12313_s29  ;;  %4962 = vmatpush.msra.mxu1 %v3745_v48  ;;  %v4851_v48 = vadd.f32 %v4850_v29, %v12334_v37  ;;  %v4661_v29 = vld [vmem:[#allocation2 + $0x18] sm:$0xff] }
 0x790   :  { %v10716_v14 = vpop.permute.xlu2 %3897  ;;  %3587 = vrot.lane.b32.xlu1 %v6853_v62, %s12255_s17 }
 0x791   :  { %v10721_v6 = vsel %vm12330_vm12, %v3896_v44, %v10716_v14 }
 0x792   :  { %4492 = vrot.lane.b32.xlu0 %v10268_v50, %s12258_s25  ;;  %v4585_v41 = vpop.permute.xlu1 %4584 }
 0x793   :  { %v4593_v1 = vsel %vm259_vm3, %v12295_v51, %v4585_v41  ;;  %v4594_v46 = vsel %vm259_vm3, %v4585_v41, %v10660_v22 }
 0x794   :  { %4607 = vst [vmem:[#allocation2 + $0x528] sm:$0xff] %v4594_v46  ;;  %v4112_v39 = vpop.permute.xlu0 %4111  ;;  %4981 = vmatpush.msrb.mxu0 %v4593_v1  ;;  %5021 = vmatpush.msra.mxu2 %v4594_v46  ;;  %v4870_v33 = vpop.f32.mrf.mxu1  ;;  %v4801_v1 = vld [vmem:[#allocation2 + $0x478] sm:$0xff] }
 0x795   :  { %v4119_v12 = vsel %vm792_vm4, %v4110_v35, %v4112_v39  ;;  %vm12332_vm4 = vmmov %vm12331_vm15  ;;  %v10784_v46 = vadd.f32 %v4870_v33, %v4851_v48 }
 0x796   :  { %4133 = vst.msk [vmem:[#allocation2 + $0x308] sm:$0xff] %vm131_vm1, %v4119_v12  ;;  %3491 = vrot.lane.b32.xlu2 %v6853_v62, %s12258_s25  ;;  %v4802_v12 = vld [vmem:[#allocation2 + $0x480] sm:$0xff] }
 0x798   :  { %v10732_v44 = vpop.permute.xlu2 %4490  ;;  %4427 = vrot.lane.b32.xlu1 %v6853_v62, %s12321_s27 }
 0x79a   :  { %3539 = vrot.lane.b32.xlu0 %v6853_v62, %s12257_s11  ;;  %v10736_v51 = vpop.permute.xlu1 %3683 }
 0x79c   :  { %v3682_v7 = vpop.permute.xlu0 %3681 }
 0x79d   :  { %v3692_v15 = vsel %vm12331_vm15, %v10156_v49, %v3682_v7  ;;  %v10745_v59 = vsel %vm12332_vm4, %v3682_v7, %v10736_v51  ;;  %vm12337_vm15 = vcmask 769024   ;;  %vm12338_vm4 = vmmov %vm12335_vm13 }
 0x79e   :  { %3707 = vst [vmem:[#allocation2 + $0x138] sm:$0xff] %v10745_v59  ;;  %4963 = vmatpush.msra.mxu1 %v3692_v15  ;;  %4429 = vrot.lane.b32.xlu2 %v6980_v63, %s12321_s27 }
 0x7a0   :  { %v3845_v26 = vpop.permute.xlu2 %3844  ;;  %4321 = vrot.lane.b32.xlu1 %v6853_v62, %s12175_s23 }
 0x7a1   :  { %v10752_v35 = vsel %vm12333_vm10, %v10649_v43, %v3845_v26 }
 0x7a2   :  { %4374 = vrot.lane.b32.xlu0 %v6853_v62, %s12172_s18  ;;  %v4537_v18 = vpop.permute.xlu1 %4536 }
 0x7a3   :  { %v4545_v49 = vsel %vm210_vm5, %v12300_v25, %v4537_v18  ;;  %v4546_v61 = vsel %vm210_vm5, %v4537_v18, %v10696_v60 }
 0x7a4   :  { %4559 = vst [vmem:[#allocation2 + $0x4f0] sm:$0xff] %v4546_v61  ;;  %v4059_v57 = vpop.permute.xlu0 %4058  ;;  %4982 = vmatpush.msrb.mxu0 %v4545_v49  ;;  %5022 = vmatpush.msra.mxu2 %v4546_v61 }
 0x7a5   :  { %v4066_v38 = vsel %vm738_vm6, %v10593_v56, %v4059_v57 }
 0x7a6   :  { %4080 = vst.msk [vmem:[#allocation2 + $0x2d0] sm:$0xff] %vm131_vm1, %v4066_v38  ;;  %4323 = vrot.lane.b32.xlu2 %v6980_v63, %s12175_s23  ;;  %s12346_s23 = sld [smem:[#allocation29_spill]] }
 0x7a8   :  { %v10763_v43 = vpop.permute.xlu2 %3537  ;;  %4376 = vrot.lane.b32.xlu1 %v10268_v50, %s12172_s18 }
 0x7aa   :  { %4268 = vrot.lane.b32.xlu0 %v6853_v62, %s12177_s22  ;;  %v10768_v25 = vpop.permute.xlu1 %3633 }
 0x7ac   :  { %v3632_v40 = vpop.permute.xlu0 %3631 }
 0x7ad   :  { %v3640_v45 = vsel %vm131_vm1, %v10432_v23, %v3632_v40  ;;  %v10774_v56 = vsel %vm131_vm1, %v3632_v40, %v10768_v25 }
 0x7ae   :  { %3654 = vst [vmem:[#allocation2 + $0x100] sm:$0xff] %v10774_v56  ;;  %4964 = vmatpush.msra.mxu1 %v3640_v45 }
 0x7b0   :  { %v4424_v2 = vpop.permute.xlu2 %4423 }
 0x7b2   :  { %4270 = vrot.lane.b32.xlu0 %v10268_v50, %s12177_s22  ;;  %v4489_v62 = vpop.permute.xlu1 %4488  ;;  %v5113_v50 = vmax.f32 %v10784_v46, 0.0 }
 0x7b3   :  { %v4497_v41 = vsel %vm161_vm7, %v10158_v8, %v4489_v62  ;;  %v4498_v23 = vsel %vm161_vm7, %v4489_v62, %v10732_v44  ;;  %v4434_v8 = vsel %vm12335_vm13, %v10258_v4, %v4424_v2  ;;  %vm12340_vm13 = vcmask 236544  }
 0x7b4   :  { %4511 = vst [vmem:[#allocation2 + $0x4b8] sm:$0xff] %v4498_v23  ;;  %v4006_v39 = vpop.permute.xlu0 %4005  ;;  %4983 = vmatpush.msrb.mxu0 %v4497_v41  ;;  %5023 = vmatpush.msra.mxu2 %v4498_v23 }
 0x7b5   :  { %v4013_v63 = vsel %vm684_vm8, %v10634_v19, %v4006_v39  ;;  %vm12336_vm8 = vmmov %vm12333_vm10  ;;  %vm12339_vm10 = vcmask 777216  }
 0x7b6   :  { %4027 = vst.msk [vmem:[#allocation2 + $0x298] sm:$0xff] %vm131_vm1, %v4013_v63  ;;  %4984 = vmatpush.msrb.mxu0 %v4801_v1  ;;  %5024 = vmatpush.msra.mxu2 %v4802_v12 }
 0x7b8   :  { %v3488_v7 = vpop.permute.xlu2 %3487  ;;  %4985 = vmatpush.msrb.mxu0 %v4434_v8 }
 0x7b9   :  { %v3496_v45 = vsel %vm161_vm7, %v10573_v16, %v3488_v7 }
 0x7ba   :  { %5127 = vrot.lane.b32.xlu0 %v5113_v50, %s12258_s25  ;;  %v10795_v15 = vpop.permute.xlu1 %3585 }
 0x7bc   :  { %v3584_v18 = vpop.permute.xlu0 %3583 }
 0x7bd   :  { %v3592_v19 = vsel %vm259_vm3, %v10474_v34, %v3584_v18  ;;  %v10801_v49 = vsel %vm259_vm3, %v3584_v18, %v10795_v15 }
 0x7be   :  { %3606 = vst [vmem:[#allocation2 + $0xc8] sm:$0xff] %v10801_v49  ;;  %4965 = vmatpush.msra.mxu1 %v3592_v19 }
 0x7c0   :  { %v3847_v4 = vpop.permute.xlu2 %3846 }
 0x7c1   :  { %v3854_v61 = vsel %vm12336_vm8, %v3845_v26, %v3847_v4  ;;  %vm12341_vm8 = vmmov %vm12340_vm13 }
 0x7c2   :  { %3868 = vst.msk [vmem:[#allocation2 + $0x1f0] sm:$0xff] %vm131_vm1, %v3854_v61  ;;  %v3536_v57 = vpop.permute.xlu1 %3535 }
 0x7c3   :  { %v3544_v38 = vsel %vm210_vm5, %v10508_v54, %v3536_v57  ;;  %v10810_v40 = vsel %vm210_vm5, %v3536_v57, %v10763_v43 }
 0x7c4   :  { %3558 = vst [vmem:[#allocation2 + $0x90] sm:$0xff] %v10810_v40  ;;  %v3953_v34 = vpop.permute.xlu0 %3952  ;;  %4966 = vmatpush.msra.mxu1 %v3544_v38 }
 0x7c5   :  { %v3960_v26 = vsel %vm630_vm9, %v10678_v47, %v3953_v34 }
 0x7c6   :  { %3974 = vst.msk [vmem:[#allocation2 + $0x260] sm:$0xff] %vm131_vm1, %v3960_v26  ;;  %4967 = vmatpush.msra.mxu1 %v3496_v45 }
 0x7c8   :  { %v4589_v33 = vpop.permute.xlu2 %4588  ;;  %4968 = vmatpush.msra.mxu1 %v4661_v29 }
 0x7c9   :  { %v4595_v54 = vsel %vm259_vm3, %v10660_v22, %v4589_v33  ;;  %4609 = vst.msk [vmem:[#allocation2 + $0x538] sm:$0xff] %vm131_vm1, %v4589_v33  ;;  %4969 = vmatmul.f32.vlgmr.msra.gmra.mxu1 %v10348_v36 }
 0x7ca   :  { %v3900_v48 = vpop.permute.xlu1 %3899 }
 0x7cb   :  { %v3907_v16 = vsel %vm12330_vm12, %v10716_v14, %v3900_v48  ;;  %vm12342_vm12 = vcmask 244736   ;;  %v3383_v48 = vld [vmem:[%s12346_s23] sm:$0x1] }
 0x7cc   :  { %3921 = vst.msk [vmem:[#allocation2 + $0x228] sm:$0xff] %vm131_vm1, %v3907_v16  ;;  %v3792_v47 = vpop.permute.xlu0 %3791 }
 0x7cd   :  { %v10827_v62 = vsel %vm12337_vm15, %v10666_v52, %v3792_v47 }
 0x7d0   :  { %v4318_v41 = vpop.permute.xlu2 %4317 }
 0x7d2   :  { %v4637_v23 = vpop.permute.xlu1 %4636 }
 0x7d3   :  { %v4643_v22 = vsel %vm131_vm1, %v10617_v11, %v4637_v23  ;;  %4657 = vst.msk [vmem:[#allocation2 + $0x570] sm:$0xff] %vm131_vm1, %v4637_v23 }
 0x7d4   :  { %v10832_v1 = vpop.permute.xlu0 %4425  ;;  %5060 = vmatpush.msrb.mxu1 %v4643_v22 }
 0x7d5   :  { %v4435_v14 = vsel %vm12338_vm4, %v4424_v2, %v10832_v1  ;;  %v4659_v2 = vld [vmem:[#allocation2 + $0x8] sm:$0xff]  ;;  %vm12343_vm4 = vcmask 785408  }
 0x7d6   :  { %4449 = vst [vmem:[#allocation2 + $0x448] sm:$0xff] %v4435_v14  ;;  %5025 = vmatpush.msra.mxu2 %v4435_v14  ;;  %5061 = vmatpush.msrb.mxu1 %v4595_v54 }
 0x7d7   :  { %4888 = vmatpush.msra.mxu3 %v4659_v2  ;;  %v4767_v2 = vld [vmem:[#allocation2 + $0x368] sm:$0xff] }
 0x7d8   :  { %v3636_v39 = vpop.permute.xlu2 %3635 }
 0x7d9   :  { %v10838_v52 = vsel %vm131_vm1, %v10768_v25, %v3636_v39  ;;  %3656 = vst.msk [vmem:[#allocation2 + $0x110] sm:$0xff] %vm131_vm1, %v3636_v39 }
 0x7da   :  { %v3739_v12 = vpop.permute.xlu1 %3738 }
 0x7db   :  { %v10843_v11 = vsel %vm12339_vm10, %v10702_v3, %v3739_v12  ;;  %vm12344_vm10 = vmmov %vm12343_vm4 }
 0x7dc   :  { %v3490_v63 = vpop.permute.xlu0 %3489 }
 0x7dd   :  { %v10846_v8 = vsel %vm161_vm7, %v3488_v7, %v3490_v63  ;;  %v4328_v7 = vsel %vm12342_vm12, %v10442_v10, %v4318_v41 }
 0x7de   :  { %3510 = vst [vmem:[#allocation2 + $0x58] sm:$0xff] %v10846_v8 }
 0x7e0   :  { %v10849_v18 = vpop.permute.xlu2 %4266 }
 0x7e2   :  { %v10851_v19 = vpop.permute.xlu1 %4372 }
 0x7e4   :  { %v4371_v25 = vpop.permute.xlu0 %4370 }
 0x7e5   :  { %v4381_v4 = vsel %vm12340_vm13, %v10365_v53, %v4371_v25  ;;  %v4382_v3 = vsel %vm12341_vm8, %v4371_v25, %v10851_v19  ;;  %vm12345_vm13 = vmmov %vm12342_vm12  ;;  %vm12347_vm8 = vcmask 252928   ;;  %v4760_v25 = vld [vmem:[#allocation2 + $0x330] sm:$0xff] }
 0x7e6   :  { %4396 = vst [vmem:[#allocation2 + $0x410] sm:$0xff] %v4382_v3  ;;  %4986 = vmatpush.msrb.mxu0 %v4381_v4  ;;  %5026 = vmatpush.msra.mxu2 %v4382_v3  ;;  %vm12348_vm12 = vmmov %vm12347_vm8  ;;  %v4748_v3 = vld [vmem:[#allocation2 + $0x2d0] sm:$0xff] }
 0x7e8   :  { %v3688_v61 = vpop.permute.xlu2 %3687  ;;  %4987 = vmatpush.msrb.mxu0 %v4328_v7 }
 0x7ea   :  { %v3794_v57 = vpop.permute.xlu1 %3793 }
 0x7eb   :  { %v3801_v38 = vsel %vm12337_vm15, %v3792_v47, %v3794_v57  ;;  %vm3420_vm15 = vcmask 687104  }
 0x7ec   :  { %3815 = vst.msk [vmem:[#allocation2 + $0x1b8] sm:$0xff] %vm131_vm1, %v3801_v38  ;;  %v3686_v34 = vpop.permute.xlu0 %3685  ;;  %v4664_v38 = vld [vmem:[#allocation2 + $0x30] sm:$0xff] }
 0x7ed   :  { %v10863_v53 = vsel %vm12343_vm4, %v10736_v51, %v3686_v34  ;;  %v3695_v45 = vsel %vm12344_vm10, %v3686_v34, %v3688_v61  ;;  %vm12349_vm4 = vcmask 777216   ;;  %vm12350_vm10 = vcmask 588800   ;;  %v4734_v61 = vld [vmem:[#allocation2 + $0x260] sm:$0xff] }
 0x7ee   :  { %3709 = vst.msk [vmem:[#allocation2 + $0x148] sm:$0xff] %vm131_vm1, %v3695_v45  ;;  %v4662_v34 = vld [vmem:[#allocation2 + $0x20] sm:$0xff]  ;;  %v4825_v45 = vld [vmem:[#allocation2 + $0x538] sm:$0xff] }
 0x7f0   :  { %v3492_v26 = vpop.permute.xlu2 %3491 }
 0x7f1   :  { %v10868_v29 = vsel %vm161_vm7, %v3490_v63, %v3492_v26  ;;  %3512 = vst.msk [vmem:[#allocation2 + $0x68] sm:$0xff] %vm131_vm1, %v3492_v26 }
 0x7f2   :  { %v4541_v10 = vpop.permute.xlu1 %4540 }
 0x7f3   :  { %v4547_v33 = vsel %vm210_vm5, %v10696_v60, %v4541_v10  ;;  %4561 = vst.msk [vmem:[#allocation2 + $0x500] sm:$0xff] %vm131_vm1, %v4541_v10 }
 0x7f4   :  { %v10874_v54 = vpop.permute.xlu0 %4319  ;;  %5062 = vmatpush.msrb.mxu1 %v4547_v33  ;;  %v4804_v33 = vld [vmem:[#allocation2 + $0x490] sm:$0xff] }
 0x7f5   :  { %v4329_v51 = vsel %vm12345_vm13, %v4318_v41, %v10874_v54  ;;  %v4769_v41 = vld [vmem:[#allocation2 + $0x378] sm:$0xff]  ;;  %vm12351_vm13 = vmmov %vm12350_vm10 }
 0x7f6   :  { %4343 = vst [vmem:[#allocation2 + $0x3d8] sm:$0xff] %v4329_v51  ;;  %5027 = vmatpush.msra.mxu2 %v4329_v51 }
 0x7f9   :  { %v3404_v47 = vpop.f32.mrf.mxu2 }
 0x7fa   :  { %v4265_v16 = vpop.permute.xlu1 %4264  ;;  %v3405_v22 = vadd.f32 %v3404_v47, %v3383_v48  ;;  %v4910_v47 = vpop.f32.mrf.mxu1 }
 0x7fb   :  { %v4275_v23 = vsel %vm12347_vm8, %v10486_v0, %v4265_v16  ;;  %v4276_v60 = vsel %vm12348_vm12, %v4265_v16, %v10849_v18  ;;  %v4762_v0 = vld [vmem:[#allocation2 + $0x340] sm:$0xff]  ;;  %vm12354_vm12 = vcmask 244736  }
 0x7fc   :  { %4290 = vst [vmem:[#allocation2 + $0x3a0] sm:$0xff] %v4276_v60  ;;  %v3741_v14 = vpop.permute.xlu0 %3740  ;;  %4988 = vmatpush.msrb.mxu0 %v4275_v23  ;;  %5028 = vmatpush.msra.mxu2 %v4276_v60  ;;  %v3407_v63 = vmax.f32 %v3405_v22, 0.0  ;;  %v4950_v23 = vpop.f32.mrf.mxu0 }
 0x7fd   :  { %v3748_v39 = vsel %vm12349_vm4, %v3739_v12, %v3741_v14  ;;  %7019 = vmatmul.msk.f32.vlgmr.msrb.gmra.mxu0 %vm12350_vm10, %v10426_v27  ;;  %7020 = vmatmul.msk.f32.vlgmr.msra.gmra.mxu2 %vm12351_vm13, %v10426_v27  ;;  %v4755_v12 = vld [vmem:[#allocation2 + $0x308] sm:$0xff]  ;;  %vm12355_vm4 = vmmov %vm12354_vm12  ;;  %vm12356_vm10 = vcmask 236544  }
 0x7fe   :  { %5073 = vmatpush.msrb.mxu2 %v4769_v41  ;;  %3762 = vst.msk [vmem:[#allocation2 + $0x180] sm:$0xff] %vm131_vm1, %v3748_v39  ;;  %5033 = vmatpush.msra.mxu0 %v10604_v24  ;;  %vm12357_vm13 = vmmov %vm12356_vm10 }
 0x7ff   :  { %6825 = vmatmul.msk.f32.vlgmr.msrb.gmra.mxu3 %vm3420_vm15, %v3407_v63  ;;  %v3419_v63 = vld [vmem:[%s12362_s7] sm:$0x1] }
 0x800   :  { %5074 = vmatpush.msrb.mxu2 %v4762_v0  ;;  %4993 = vmatpush.msrb.mxu3 %v4767_v2 }
 0x801   :  { %5034 = vmatpush.msra.mxu0 %v10625_v21  ;;  %v4741_v21 = vld [vmem:[#allocation2 + $0x298] sm:$0xff] }
 0x802   :  { %5075 = vmatpush.msrb.mxu2 %v4755_v12  ;;  %v3588_v4 = vpop.permute.xlu1 %3587  ;;  %4994 = vmatpush.msrb.mxu3 %v4760_v25 }
 0x803   :  { %5035 = vmatpush.msra.mxu0 %v10647_v58  ;;  %v10897_v24 = vsel %vm259_vm3, %v10795_v15, %v3588_v4  ;;  %3608 = vst.msk [vmem:[#allocation2 + $0xd8] sm:$0xff] %vm131_vm1, %v3588_v4  ;;  %v4430_v58 = vpop.permute.xlu2 %4429  ;;  %v4803_v15 = vld [vmem:[#allocation2 + $0x488] sm:$0xff]  ;;  %vm12352_vm3 = vcmask 228352  }
 0x804   :  { %5076 = vmatpush.msrb.mxu2 %v4748_v3  ;;  %v4493_v27 = vpop.permute.xlu0 %4492  ;;  %4995 = vmatpush.msrb.mxu3 %v10465_v28  ;;  %v4727_v28 = vld [vmem:[#allocation2 + $0x228] sm:$0xff]  ;;  %vm12353_vm8 = vmmov %vm12352_vm3 }
 0x805   :  { %5036 = vmatpush.msra.mxu0 %v10600_v55  ;;  %v4499_v7 = vsel %vm161_vm7, %v10732_v44, %v4493_v27  ;;  %4513 = vst.msk [vmem:[#allocation2 + $0x4c8] sm:$0xff] %vm131_vm1, %v4493_v27  ;;  %v4930_v27 = vpop.f32.mrf.mxu2 }
 0x806   :  { %5077 = vmatpush.msrb.mxu2 %v4741_v21  ;;  %4996 = vmatpush.msrb.mxu3 %v10499_v30 }
 0x807   :  { %5063 = vmatpush.msrb.mxu1 %v4499_v7  ;;  %4889 = vmatmul.f32.vlgmr.msra.gmra.mxu3 %v10348_v36  ;;  %v4720_v36 = vld [vmem:[#allocation2 + $0x1f0] sm:$0xff] }
 0x808   :  { %5037 = vmatpush.msra.mxu0 %v10641_v32  ;;  %4997 = vmatpush.msrb.mxu3 %v10543_v17 }
 0x809   :  { %5078 = vmatpush.msrb.mxu2 %v4734_v61  ;;  %5064 = vmatpush.msrb.mxu1 %v4803_v15  ;;  %v4931_v15 = vadd.f32 %v4930_v27, %v12334_v37 }
 0x80a   :  { %5038 = vmatpush.msra.mxu0 %v10684_v13  ;;  %v4428_v55 = vpop.permute.xlu1 %4427  ;;  %4998 = vmatpush.msrb.mxu3 %v10611_v42  ;;  %v4713_v42 = vld [vmem:[#allocation2 + $0x1b8] sm:$0xff] }
 0x80b   :  { %5079 = vmatpush.msrb.mxu2 %v4727_v28  ;;  %v4436_v30 = vsel %vm12352_vm3, %v10832_v1, %v4428_v55  ;;  %v4437_v17 = vsel %vm12353_vm8, %v4428_v55, %v4430_v58  ;;  %v4324_v13 = vpop.permute.xlu2 %4323  ;;  %vm12358_vm3 = vcmask 252928   ;;  %vm12359_vm8 = vcmask 588800  }
 0x80c   :  { %5039 = vmatpush.msra.mxu0 %v10721_v6  ;;  %v3540_v44 = vpop.permute.xlu0 %3539  ;;  %4999 = vmatpush.msrb.mxu3 %v10629_v31  ;;  %4451 = vst.msk [vmem:[#allocation2 + $0x458] sm:$0xff] %vm131_vm1, %v4437_v17  ;;  %v4706_v31 = vld [vmem:[#allocation2 + $0x180] sm:$0xff]  ;;  %v4699_v6 = vld [vmem:[#allocation2 + $0x148] sm:$0xff] }
 0x80d   :  { %5080 = vmatpush.msrb.mxu2 %v4720_v36  ;;  %v3546_v32 = vsel %vm210_vm5, %v10763_v43, %v3540_v44  ;;  %3560 = vst.msk [vmem:[#allocation2 + $0xa0] sm:$0xff] %vm131_vm1, %v3540_v44  ;;  %5065 = vmatpush.msrb.mxu1 %v4436_v30  ;;  %v4811_v10 = vld [vmem:[#allocation2 + $0x4c8] sm:$0xff]  ;;  %v4951_v36 = vadd.f32 %v4950_v23, %v4931_v15 }
 0x80e   :  { %5040 = vmatpush.msra.mxu0 %v10752_v35  ;;  %5000 = vmatpush.msrb.mxu3 %v10654_v5 }
 0x80f   :  { %5081 = vmatpush.msrb.mxu2 %v4713_v42 }
 0x810   :  { %5041 = vmatpush.msra.mxu0 %v10827_v62  ;;  %5001 = vmatpush.msrb.mxu3 %v10672_v9  ;;  %v4692_v62 = vld [vmem:[#allocation2 + $0x110] sm:$0xff]  ;;  %v4685_v9 = vld [vmem:[#allocation2 + $0xd8] sm:$0xff] }
 0x811   :  { %5082 = vmatpush.msrb.mxu2 %v4706_v31 }
 0x812   :  { %5042 = vmatpush.msra.mxu0 %v10843_v11  ;;  %v4322_v43 = vpop.permute.xlu1 %4321  ;;  %5002 = vmatpush.msrb.mxu3 %v10708_v20 }
 0x813   :  { %5083 = vmatpush.msrb.mxu2 %v4699_v6  ;;  %v4330_v5 = vsel %vm12354_vm12, %v10874_v54, %v4322_v43  ;;  %v4331_v35 = vsel %vm12355_vm4, %v4322_v43, %v4324_v13  ;;  %vm12360_vm12 = vmmov %vm12358_vm3  ;;  %v4797_v54 = vld [vmem:[#allocation2 + $0x458] sm:$0xff] }
 0x814   :  { %5043 = vmatpush.msra.mxu0 %v10863_v53  ;;  %v4375_v1 = vpop.permute.xlu0 %4374  ;;  %5003 = vmatpush.msrb.mxu3 %v10745_v59  ;;  %4345 = vst.msk [vmem:[#allocation2 + $0x3e8] sm:$0xff] %vm131_vm1, %v4331_v35  ;;  %v4678_v20 = vld [vmem:[#allocation2 + $0xa0] sm:$0xff]  ;;  %v4671_v59 = vld [vmem:[#allocation2 + $0x68] sm:$0xff]  ;;  %v4832_v53 = vld [vmem:[#allocation2 + $0x570] sm:$0xff] }
 0x815   :  { %5084 = vmatpush.msrb.mxu2 %v4692_v62  ;;  %v4383_v11 = vsel %vm12356_vm10, %v10851_v19, %v4375_v1  ;;  %v4663_v19 = vld [vmem:[#allocation2 + $0x28] sm:$0xff]  ;;  %vm12361_vm4 = vmmov %vm12359_vm8  ;;  %vm3448_vm10 = vcmask 73728  }
 0x816   :  { %5044 = vmatpush.msra.mxu0 %v10838_v52  ;;  %5004 = vmatpush.msrb.mxu3 %v10774_v56 }
 0x817   :  { %5066 = vmatpush.msrb.mxu1 %v4383_v11  ;;  %5085 = vmatpush.msrb.mxu2 %v4685_v9 }
 0x818   :  { %5045 = vmatpush.msra.mxu0 %v10897_v24  ;;  %5005 = vmatpush.msrb.mxu3 %v10801_v49 }
 0x819   :  { %5067 = vmatpush.msrb.mxu1 %v4330_v5  ;;  %5086 = vmatpush.msrb.mxu2 %v4678_v20 }
 0x81a   :  { %5046 = vmatpush.msra.mxu0 %v3546_v32  ;;  %v4377_v57 = vpop.permute.xlu1 %4376  ;;  %5006 = vmatpush.msrb.mxu3 %v10810_v40  ;;  %v7213_v40 = vld [vmem:[%s12033_s1] sm:$0xff]  ;;  %v5115_v32 = vmax.f32 %v4951_v36, 0.0 }
 0x81b   :  { %v4384_v52 = vsel %vm12357_vm13, %v4375_v1, %v4377_v57  ;;  %5087 = vmatpush.msrb.mxu2 %v4671_v59  ;;  %v4783_v48 = vld [vmem:[#allocation2 + $0x3e8] sm:$0xff]  ;;  %vm12363_vm13 = vcmask 785408  }
 0x81c   :  { %5047 = vmatpush.msra.mxu0 %v10868_v29  ;;  %4398 = vst.msk [vmem:[#allocation2 + $0x420] sm:$0xff] %vm131_vm1, %v4384_v52  ;;  %v4269_v56 = vpop.permute.xlu0 %4268  ;;  %5007 = vmatpush.msrb.mxu3 %v10846_v8  ;;  %v7214_v8 = vld [vmem:[%s12033_s1 + $0x8] sm:$0xff] }
 0x81d   :  { %v4277_v49 = vsel %vm12358_vm3, %v10849_v18, %v4269_v56  ;;  %5088 = vmatpush.msrb.mxu2 %v4664_v38  ;;  %v4818_v18 = vld [vmem:[#allocation2 + $0x500] sm:$0xff] }
 0x81e   :  { %5048 = vmatpush.msra.mxu0 %v4663_v19  ;;  %5008 = vmatpush.msrb.mxu3 %v4662_v34 }
 0x81f   :  { %5049 = vmatmul.f32.vlgmr.msra.gmra.mxu0 %v7213_v40  ;;  %5009 = vmatmul.f32.vlgmr.msrb.gmra.mxu3 %v7213_v40 }
 0x820   :  { %5068 = vmatpush.msrb.mxu1 %v4277_v49  ;;  %5100 = vmatpush.msra.mxu3 %v4832_v53 }
 0x821   :  { %5089 = vmatmul.f32.vlgmr.msrb.gmra.mxu2 %v7213_v40  ;;  %7021 = vmatmul.msk.f32.vlgmr.msrb.gmra.mxu1 %vm12359_vm8, %v7214_v8 }
 0x822   :  { %5101 = vmatpush.msra.mxu3 %v4825_v45 }
 0x823   :  { %v4790_v51 = vld [vmem:[#allocation2 + $0x420] sm:$0xff] }
 0x824   :  { %v4271_v26 = vpop.permute.xlu0 %4270  ;;  %5102 = vmatpush.msra.mxu3 %v4818_v18 }
 0x825   :  { %v4278_v29 = vsel %vm12360_vm12, %v4269_v56, %v4271_v26 }
 0x826   :  { %4292 = vst.msk [vmem:[#allocation2 + $0x3b0] sm:$0xff] %vm131_vm1, %v4278_v29  ;;  %5103 = vmatpush.msra.mxu3 %v4811_v10 }
 0x828   :  { %5104 = vmatpush.msra.mxu3 %v4804_v33 }
 0x82a   :  { %5105 = vmatpush.msra.mxu3 %v4797_v54 }
 0x82c   :  { %5106 = vmatpush.msra.mxu3 %v4790_v51  ;;  %v5128_v5 = vpop.permute.xlu0 %5127 }
 0x82d   :  { %v4776_v16 = vld [vmem:[#allocation2 + $0x3b0] sm:$0xff] }
 0x82e   :  { %5107 = vmatpush.msra.mxu3 %v4783_v48 }
 0x830   :  { %5108 = vmatpush.msra.mxu3 %v4776_v16 }
 0x831   :  { %7022 = vmatmul.msk.f32.vlgmr.msra.gmra.mxu3 %vm12361_vm4, %v7214_v8 }
 0x846   :  { %v4970_v60 = vpop.f32.mrf.mxu1 }
 0x847   :  { %v4971_v22 = vadd.f32 %v4970_v60, %v12334_v37 }
 0x87a   :  { %v4990_v14 = vpop.f32.mrf.mxu0 }
 0x87b   :  { %v4991_v41 = vadd.f32 %v4990_v14, %v4971_v22 }
 0x87d   :  { %v5116_v39 = vmax.f32 %v4991_v41, 0.0 }
 0x87f   :  { %5133 = vrot.lane.b32.xlu0 %v5116_v39, %s12258_s25 }
 0x880   :  { %v5030_v30 = vpop.f32.mrf.mxu2 }
 0x882   :  { %v3445_v0 = vpop.f32.mrf.mxu3 }
 0x883   :  { %v3446_v2 = vadd.f32 %v3445_v0, %v3419_v63 }
 0x885   :  { %3449 = vst.msk [vmem:[#allocation3] sm:$0x1] %vm3448_vm10, %v3446_v2 }
 0x88a   :  { %v4890_v12 = vpop.f32.mrf.mxu3 }
 0x88b   :  { %v4891_v25 = vadd.f32 %v4890_v12, %v12334_v37 }
 0x88d   :  { %v4911_v4 = vadd.f32 %v4910_v47, %v4891_v25 }
 0x88f   :  { %v5114_v3 = vmax.f32 %v4911_v4, 0.0 }
 0x891   :  { %5129 = vrot.lane.b32.xlu1 %v5114_v3, %s12258_s25 }
 0x89c   :  { %v5050_v24 = vpop.f32.mrf.mxu0 }
 0x89d   :  { %v5051_v21 = vadd.f32 %v5050_v24, %v12334_v37 }
 0x89e   :  { %v5070_v7 = vpop.f32.mrf.mxu1 }
 0x89f   :  { %v5071_v58 = vadd.f32 %v5070_v7, %v5051_v21 }
 0x8a1   :  { %v5118_v61 = vmax.f32 %v5071_v58, 0.0 }
 0x8a2   :  { %v5010_v28 = vpop.f32.mrf.mxu3 }
 0x8a3   :  { %v5011_v55 = vadd.f32 %v5010_v28, %v12334_v37  ;;  %5137 = vrot.lane.b32.xlu2 %v5118_v61, %s12258_s25 }
 0x8a4   :  { %v5090_v42 = vpop.f32.mrf.mxu2 }
 0x8a5   :  { %v5031_v44 = vadd.f32 %v5030_v30, %v5011_v55  ;;  %v5091_v31 = vadd.f32 %v5090_v42, %v12334_v37 }
 0x8a7   :  { %v5117_v17 = vmax.f32 %v5031_v44, 0.0 }
 0x8a9   :  { %5135 = vrot.lane.b32.xlu1 %v5117_v17, %s12258_s25 }
 0x8ab   :  { %5131 = vrot.lane.b32.xlu2 %v5115_v32, %s12258_s25 }
 0x8b4   :  { %v5110_v13 = vpop.f32.mrf.mxu3 }
 0x8b5   :  { %v5111_v6 = vadd.f32 %v5110_v13, %v5091_v31 }
 0x8b7   :  { %v5119_v43 = vmax.f32 %v5111_v6, 0.0 }
 0x8b9   :  { %5139 = vrot.lane.b32.xlu1 %v5119_v43, %s12258_s25  ;;  %s12364_s25 = smov 120  }
 0x8f1   :  { %v5134_v1 = vpop.permute.xlu0 %5133 }
 0x8fd   :  { %v5138_v35 = vpop.permute.xlu2 %5137 }
 0x903   :  { %v5130_v62 = vpop.permute.xlu1 %5129 }
 0x904   :  { %v5141_v37 = vsel %vm161_vm7, %v5128_v5, %v5130_v62 }
 0x905   :  { %v5132_v9 = vpop.permute.xlu2 %5131  ;;  %v5154_v19 = vmax.f32 %v5113_v50, %v5141_v37 }
 0x906   :  { %v5142_v11 = vsel %vm161_vm7, %v5130_v62, %v5132_v9  ;;  %v5143_v20 = vsel %vm161_vm7, %v5132_v9, %v5134_v1 }
 0x907   :  { %v5155_v59 = vmax.f32 %v5114_v3, %v5142_v11  ;;  %v5156_v57 = vmax.f32 %v5115_v32, %v5143_v20 }
 0x909   :  { %5172 = vrot.lane.b32.xlu0 %v5156_v57, %s12313_s29  ;;  %5170 = vrot.lane.b32.xlu2 %v5155_v59, %s12313_s29 }
 0x911   :  { %5168 = vrot.lane.b32.xlu0 %v5154_v19, %s12313_s29 }
 0x91b   :  { %v5136_v38 = vpop.permute.xlu1 %5135 }
 0x91c   :  { %v5144_v52 = vsel %vm161_vm7, %v5134_v1, %v5136_v38  ;;  %v5145_v34 = vsel %vm161_vm7, %v5136_v38, %v5138_v35 }
 0x91d   :  { %v5157_v56 = vmax.f32 %v5116_v39, %v5144_v52  ;;  %v5158_v49 = vmax.f32 %v5117_v17, %v5145_v34 }
 0x91f   :  { %5176 = vrot.lane.b32.xlu2 %v5158_v49, %s12313_s29  ;;  %5174 = vrot.lane.b32.xlu1 %v5157_v56, %s12313_s29 }
 0x92b   :  { %v5140_v40 = vpop.permute.xlu1 %5139 }
 0x92c   :  { %v5146_v53 = vsel %vm161_vm7, %v5138_v35, %v5140_v40  ;;  %v5160_v45 = vmax.f32 %v5119_v43, %v5140_v40  ;;  %vm12366_vm7 = vmmov %vm12363_vm13 }
 0x92d   :  { %v5159_v8 = vmax.f32 %v5118_v61, %v5146_v53  ;;  %vm12369_vm3 = vmmov %vm12366_vm7 }
 0x92e   :  { %5180 = vrot.lane.b32.xlu2 %v5160_v45, %s12313_s29  ;;  %vm12370_vm8 = vmmov %vm12369_vm3 }
 0x92f   :  { %5178 = vrot.lane.b32.xlu1 %v5159_v8, %s12313_s29  ;;  %vm12371_vm12 = vmmov %vm12369_vm3 }
 0x930   :  { %vm12372_vm4 = vmmov %vm12369_vm3 }
 0x963   :  { %v5171_v46 = vpop.permute.xlu2 %5170 }
 0x979   :  { %v5177_v29 = vpop.permute.xlu2 %5176 }
 0x97b   :  { %v5173_v50 = vpop.permute.xlu0 %5172 }
 0x97c   :  { %v5183_v18 = vsel %vm12363_vm13, %v5171_v46, %v5173_v50  ;;  %vm12373_vm13 = vcmask 998400  }
 0x97d   :  { %v10987_v26 = vmax.f32 %v5155_v59, %v5183_v18 }
 0x97f   :  { %5203 = vst [vmem:[#allocation2 + $0x8] sm:$0xff] %v10987_v26  ;;  %5311 = vrot.lane.b32.xlu0 %v10987_v26, %s12187_s19  ;;  %5286 = vrot.lane.b32.xlu2 %v10987_v26, %s12364_s25 }
 0x980   :  { %5262 = vrot.lane.b32.xlu1 %v10987_v26, %s12365_s2 }
 0x983   :  { %v5169_v10 = vpop.permute.xlu0 %5168 }
 0x984   :  { %v5182_v33 = vsel %vm12366_vm7, %v5169_v10, %v5171_v46  ;;  %vm12374_vm7 = vcmask 457728  }
 0x985   :  { %v10997_v54 = vmax.f32 %v5154_v19, %v5182_v33 }
 0x987   :  { %5202 = vst [vmem:[#allocation2] sm:$0xff] %v10997_v54  ;;  %5417 = vrot.lane.b32.xlu0 %v10997_v54, %s12367_s16  ;;  %5336 = vrot.lane.b32.xlu2 %v10997_v54, %s12253_s4 }
 0x988   :  { %v5181_v51 = vpop.permute.xlu2 %5180  ;;  %5238 = vrot.lane.b32.xlu1 %v10987_v26, %s12252_s24 }
 0x989   :  { %v11006_v48 = vmax.f32 %v5160_v45, %v5181_v51 }
 0x98b   :  { %5539 = vst.msk [vmem:[#allocation2 + $0x480] sm:$0xff] %vm1901_vm14, %v11006_v48 }
 0x98f   :  { %5390 = vrot.lane.b32.xlu0 %v10997_v54, %s12368_s30 }
 0x990   :  { %5214 = vrot.lane.b32.xlu1 %v10987_v26, %s12257_s11 }
 0x991   :  { %v5175_v16 = vpop.permute.xlu1 %5174 }
 0x992   :  { %v5184_v47 = vsel %vm12369_vm3, %v5173_v50, %v5175_v16  ;;  %v5185_v23 = vsel %vm12370_vm8, %v5175_v16, %v5177_v29  ;;  %vm12375_vm3 = vmmov %vm12374_vm7  ;;  %vm12376_vm8 = vcmask 474112  }
 0x993   :  { %v11016_v60 = vmax.f32 %v5156_v57, %v5184_v47  ;;  %v11018_v22 = vmax.f32 %v5157_v56, %v5185_v23 }
 0x995   :  { %5204 = vst [vmem:[#allocation2 + $0x10] sm:$0xff] %v11016_v60  ;;  %5264 = vrot.lane.b32.xlu2 %v11016_v60, %s12365_s2 }
 0x996   :  { %5205 = vst [vmem:[#allocation2 + $0x18] sm:$0xff] %v11018_v22 }
 0x997   :  { %5363 = vrot.lane.b32.xlu0 %v10997_v54, %s12262_s12  ;;  %5535 = vst [vmem:[#allocation2 + $0x460] sm:$0xff] %v11016_v60 }
 0x998   :  { %5419 = vrot.lane.b32.xlu1 %v10987_v26, %s12367_s16  ;;  %5536 = vst [vmem:[#allocation2 + $0x468] sm:$0xff] %v11018_v22 }
 0x99d   :  { %5240 = vrot.lane.b32.xlu2 %v11016_v60, %s12252_s24 }
 0x99f   :  { %5338 = vrot.lane.b32.xlu0 %v10987_v26, %s12253_s4 }
 0x9a0   :  { %5392 = vrot.lane.b32.xlu1 %v10987_v26, %s12368_s30 }
 0x9a1   :  { %v5179_v14 = vpop.permute.xlu1 %5178 }
 0x9a2   :  { %v5186_v41 = vsel %vm12371_vm12, %v5177_v29, %v5179_v14  ;;  %v5187_v39 = vsel %vm12372_vm4, %v5179_v14, %v5181_v51  ;;  %vm12377_vm12 = vmmov %vm12373_vm13 }
 0x9a3   :  { %v11038_v63 = vmax.f32 %v5158_v49, %v5186_v41  ;;  %v11040_v0 = vmax.f32 %v5159_v8, %v5187_v39  ;;  %vm12378_vm4 = vmmov %vm12376_vm8 }
 0x9a5   :  { %5206 = vst.msk [vmem:[#allocation2 + $0x20] sm:$0xff] %vm1901_vm14, %v11038_v63  ;;  %5216 = vrot.lane.b32.xlu2 %v11016_v60, %s12257_s11 }
 0x9a6   :  { %5448 = vst.msk [vmem:[#allocation2 + $0x250] sm:$0xff] %vm1901_vm14, %v11040_v0 }
 0x9a7   :  { %5309 = vrot.lane.b32.xlu0 %v10997_v54, %s12187_s19  ;;  %5537 = vst [vmem:[#allocation2 + $0x470] sm:$0xff] %v11038_v63 }
 0x9a8   :  { %5365 = vrot.lane.b32.xlu1 %v10987_v26, %s12262_s12  ;;  %5538 = vst [vmem:[#allocation2 + $0x478] sm:$0xff] %v11040_v0 }
 0x9ad   :  { %5218 = vrot.lane.b32.xlu2 %v11018_v22, %s12257_s11 }
 0x9af   :  { %5236 = vrot.lane.b32.xlu0 %v10997_v54, %s12252_s24 }
 0x9b0   :  { %5284 = vrot.lane.b32.xlu1 %v10997_v54, %s12364_s25 }
 0x9b5   :  { %5421 = vrot.lane.b32.xlu2 %v11016_v60, %s12367_s16 }
 0x9b7   :  { %5212 = vrot.lane.b32.xlu0 %v10997_v54, %s12257_s11 }
 0x9b8   :  { %5260 = vrot.lane.b32.xlu1 %v10997_v54, %s12365_s2 }
 0x9bd   :  { %5340 = vrot.lane.b32.xlu2 %v11016_v60, %s12253_s4 }
 0x9bf   :  { %5288 = vrot.lane.b32.xlu0 %v11016_v60, %s12364_s25 }
 0x9c0   :  { %5313 = vrot.lane.b32.xlu1 %v11016_v60, %s12187_s19 }
 0x9c5   :  { %5369 = vrot.lane.b32.xlu2 %v11018_v22, %s12262_s12 }
 0x9c7   :  { %5315 = vrot.lane.b32.xlu0 %v11018_v22, %s12187_s19 }
 0x9c8   :  { %5242 = vrot.lane.b32.xlu1 %v11018_v22, %s12252_s24 }
 0x9cd   :  { %5570 = vrot.lane.b32.xlu2 %v11006_v48, %s12364_s25 }
 0x9cf   :  { %5290 = vrot.lane.b32.xlu0 %v11018_v22, %s12364_s25 }
 0x9d0   :  { %5394 = vrot.lane.b32.xlu1 %v11016_v60, %s12368_s30 }
 0x9d5   :  { %5317 = vrot.lane.b32.xlu2 %v11038_v63, %s12187_s19 }
 0x9d7   :  { %5266 = vrot.lane.b32.xlu0 %v11018_v22, %s12365_s2 }
 0x9d8   :  { %5367 = vrot.lane.b32.xlu1 %v11016_v60, %s12262_s12 }
 0x9d9   :  { %v11090_v2 = vpop.permute.xlu2 %5286 }
 0x9dd   :  { %5292 = vrot.lane.b32.xlu2 %v11038_v63, %s12364_s25 }
 0x9df   :  { %5490 = vrot.lane.b32.xlu0 %v11006_v48, %s12187_s19 }
 0x9e0   :  { %5423 = vrot.lane.b32.xlu1 %v11018_v22, %s12367_s16 }
 0x9e1   :  { %v5337_v12 = vpop.permute.xlu2 %5336 }
 0x9e5   :  { %5244 = vrot.lane.b32.xlu2 %v11038_v63, %s12252_s24 }
 0x9e7   :  { %5268 = vrot.lane.b32.xlu0 %v11038_v63, %s12365_s2 }
 0x9e8   :  { %5396 = vrot.lane.b32.xlu1 %v11018_v22, %s12368_s30 }
 0x9ed   :  { %5479 = vrot.lane.b32.xlu2 %v11040_v0, %s12364_s25 }
 0x9ef   :  { %v11106_v25 = vpop.permute.xlu2 %5264  ;;  %5220 = vrot.lane.b32.xlu0 %v11038_v63, %s12257_s11 }
 0x9f0   :  { %5342 = vrot.lane.b32.xlu1 %v11018_v22, %s12253_s4 }
 0x9f1   :  { %v11112_v4 = vpop.permute.xlu0 %5311 }
 0x9f2   :  { %v5263_v3 = vpop.permute.xlu1 %5262 }
 0x9f3   :  { %v11116_v24 = vsel %vm12373_vm13, %v5263_v3, %v11106_v25  ;;  %vm12379_vm13 = vmmov %vm12377_vm12 }
 0x9f5   :  { %5459 = vrot.lane.b32.xlu2 %v11040_v0, %s12252_s24 }
 0x9f7   :  { %v11120_v27 = vpop.permute.xlu2 %5240  ;;  %5469 = vrot.lane.b32.xlu0 %v11040_v0, %s12365_s2 }
 0x9f8   :  { %5319 = vrot.lane.b32.xlu1 %v11040_v0, %s12187_s19 }
 0x9f9   :  { %v5418_v21 = vpop.permute.xlu0 %5417 }
 0x9fa   :  { %v5239_v7 = vpop.permute.xlu1 %5238 }
 0x9fb   :  { %v11128_v58 = vsel %vm131_vm1, %v5239_v7, %v11120_v27 }
 0x9fd   :  { %5449 = vrot.lane.b32.xlu2 %v11040_v0, %s12257_s11 }
 0x9ff   :  { %v5217_v15 = vpop.permute.xlu2 %5216  ;;  %5425 = vrot.lane.b32.xlu0 %v11038_v63, %s12367_s16 }
 0xa00   :  { %5560 = vrot.lane.b32.xlu1 %v11006_v48, %s12365_s2 }
 0xa01   :  { %v5391_v61 = vpop.permute.xlu0 %5390 }
 0xa02   :  { %v5215_v28 = vpop.permute.xlu1 %5214 }
 0xa03   :  { %v11137_v55 = vsel %vm210_vm5, %v5215_v28, %v5217_v15 }
 0xa05   :  { %5398 = vrot.lane.b32.xlu2 %v11038_v63, %s12368_s30 }
 0xa07   :  { %v11141_v30 = vpop.permute.xlu2 %5218  ;;  %5344 = vrot.lane.b32.xlu0 %v11038_v63, %s12253_s4 }
 0xa08   :  { %v11147_v36 = vsel %vm210_vm5, %v5217_v15, %v11141_v30  ;;  %5371 = vrot.lane.b32.xlu1 %v11038_v63, %s12262_s12 }
 0xa09   :  { %v5364_v44 = vpop.permute.xlu0 %5363 }
 0xa0a   :  { %v5420_v17 = vpop.permute.xlu1 %5419 }
 0xa0b   :  { %v5429_v32 = vsel %vm12374_vm7, %v5418_v21, %v5420_v17  ;;  %vm12381_vm7 = vmmov %vm12375_vm3 }
 0xa0d   :  { %5550 = vrot.lane.b32.xlu2 %v11006_v48, %s12252_s24 }
 0xa0f   :  { %v11154_v42 = vpop.permute.xlu2 %5421  ;;  %5540 = vrot.lane.b32.xlu0 %v11006_v48, %s12257_s11 }
 0xa10   :  { %v11160_v31 = vsel %vm12375_vm3, %v5420_v17, %v11154_v42  ;;  %5427 = vrot.lane.b32.xlu1 %v11040_v0, %s12367_s16  ;;  %vm12382_vm3 = vmmov %vm12377_vm12 }
 0xa11   :  { %v5339_v13 = vpop.permute.xlu0 %5338 }
 0xa12   :  { %v5348_v6 = vsel %vm738_vm6, %v5337_v12, %v5339_v13  ;;  %v11165_v43 = vpop.permute.xlu1 %5392 }
 0xa13   :  { %v5402_v5 = vsel %vm12376_vm8, %v5391_v61, %v11165_v43  ;;  %vm12383_vm8 = vcmask 588800  }
 0xa15   :  { %5400 = vrot.lane.b32.xlu2 %v11040_v0, %s12368_s30 }
 0xa17   :  { %v11171_v35 = vpop.permute.xlu2 %5340  ;;  %5373 = vrot.lane.b32.xlu0 %v11040_v0, %s12262_s12 }
 0xa18   :  { %v11177_v62 = vsel %vm738_vm6, %v5339_v13, %v11171_v35  ;;  %5346 = vrot.lane.b32.xlu1 %v11040_v0, %s12253_s4 }
 0xa19   :  { %v5310_v1 = vpop.permute.xlu0 %5309 }
 0xa1a   :  { %v5321_v9 = vsel %vm630_vm9, %v5310_v1, %v11112_v4  ;;  %v11183_v11 = vpop.permute.xlu1 %5365 }
 0xa1b   :  { %v5375_v20 = vsel %vm846_vm2, %v5364_v44, %v11183_v11 }
 0xa1d   :  { %5526 = vrot.lane.b32.xlu2 %v11006_v48, %s12367_s16 }
 0xa1f   :  { %v11189_v59 = vpop.permute.xlu2 %5369  ;;  %5517 = vrot.lane.b32.xlu0 %v11006_v48, %s12368_s30 }
 0xa20   :  { %5508 = vrot.lane.b32.xlu1 %v11006_v48, %s12262_s12  ;;  %s12380_s12 = sld [smem:[#allocation26_spill]] }
 0xa21   :  { %v5237_v57 = vpop.permute.xlu0 %5236 }
 0xa22   :  { %v5246_v37 = vsel %vm131_vm1, %v5237_v57, %v5239_v7  ;;  %v5285_v19 = vpop.permute.xlu1 %5284 }
 0xa23   :  { %v5294_v38 = vsel %vm1991_vm11, %v5285_v19, %v11090_v2 }
 0xa25   :  { %5499 = vrot.lane.b32.xlu2 %v11006_v48, %s12253_s4 }
 0xa26   :  { %v11287_v17 = vld [vmem:[%s12380_s12] sm:$0xff] }
 0xa27   :  { %v5571_v52 = vpop.permute.xlu2 %5570 }
 0xa28   :  { %5579 = vst.msk [vmem:[#allocation2 + $0x560] sm:$0xff] %vm1901_vm14, %v5571_v52 }
 0xa29   :  { %v5213_v34 = vpop.permute.xlu0 %5212 }
 0xa2a   :  { %v5222_v56 = vsel %vm210_vm5, %v5213_v34, %v5215_v28  ;;  %v5261_v49 = vpop.permute.xlu1 %5260 }
 0xa2b   :  { %v5270_v40 = vsel %vm12377_vm12, %v5261_v49, %v5263_v3  ;;  %vm12384_vm12 = vmmov %vm12378_vm4 }
 0xa2f   :  { %v11203_v53 = vpop.permute.xlu2 %5317 }
 0xa31   :  { %v5289_v45 = vpop.permute.xlu0 %5288 }
 0xa32   :  { %v11207_v8 = vsel %vm1991_vm11, %v11090_v2, %v5289_v45  ;;  %v5314_v46 = vpop.permute.xlu1 %5313 }
 0xa33   :  { %v11211_v50 = vsel %vm630_vm9, %v11112_v4, %v5314_v46 }
 0xa34   :  { %5705 = vmatpush.msra.mxu1 %v11211_v50 }
 0xa36   :  { %5706 = vmatpush.msra.mxu1 %v11207_v8 }
 0xa37   :  { %v5293_v18 = vpop.permute.xlu2 %5292 }
 0xa38   :  { %5307 = vst.msk [vmem:[#allocation2 + $0x100] sm:$0xff] %vm1901_vm14, %v5293_v18  ;;  %5707 = vmatpush.msra.mxu1 %v11116_v24 }
 0xa39   :  { %v5316_v29 = vpop.permute.xlu0 %5315 }
 0xa3a   :  { %v11218_v10 = vsel %vm630_vm9, %v5314_v46, %v5316_v29  ;;  %v11222_v33 = vsel %vm630_vm9, %v5316_v29, %v11203_v53  ;;  %v5243_v51 = vpop.permute.xlu1 %5242  ;;  %5708 = vmatpush.msra.mxu1 %v11128_v58 }
 0xa3b   :  { %5751 = vmatpush.msrb.mxu3 %v11218_v10  ;;  %v11228_v48 = vsel %vm131_vm1, %v11120_v27, %v5243_v51  ;;  %5495 = vst [vmem:[#allocation2 + $0x350] sm:$0xff] %v11218_v10 }
 0xa3c   :  { %5709 = vmatpush.msra.mxu1 %v11137_v55 }
 0xa3e   :  { %5710 = vmatpush.msra.mxu1 %v10987_v26 }
 0xa3f   :  { %v5245_v16 = vpop.permute.xlu2 %5244 }
 0xa40   :  { %v11234_v47 = vsel %vm131_vm1, %v5243_v51, %v5245_v16  ;;  %5711 = vmatpush.msra.mxu1 %v5429_v32  ;;  %5259 = vst.msk [vmem:[#allocation2 + $0x90] sm:$0xff] %vm1901_vm14, %v5245_v16 }
 0xa41   :  { %v5291_v23 = vpop.permute.xlu0 %5290 }
 0xa42   :  { %v11237_v14 = vsel %vm1991_vm11, %v5289_v45, %v5291_v23  ;;  %v11240_v41 = vsel %vm1991_vm11, %v5291_v23, %v5293_v18  ;;  %v11242_v39 = vpop.permute.xlu1 %5394  ;;  %5712 = vmatpush.msra.mxu1 %v5402_v5  ;;  %v11312_v5 = vld [vmem:[%s12380_s12 + $0x8] sm:$0xff] }
 0xa43   :  { %5735 = vmatpush.msrb.mxu0 %v11237_v14  ;;  %5752 = vmatpush.msrb.mxu3 %v11237_v14  ;;  %v5403_v12 = vsel %vm12378_vm4, %v11165_v43, %v11242_v39  ;;  %5576 = vst [vmem:[#allocation2 + $0x548] sm:$0xff] %v11240_v41 }
 0xa44   :  { %5713 = vmatpush.msra.mxu1 %v5375_v20  ;;  %5781 = vmatpush.msra.mxu2 %v11240_v41 }
 0xa46   :  { %5714 = vmatpush.msra.mxu1 %v5348_v6 }
 0xa47   :  { %v5480_v2 = vpop.permute.xlu2 %5479 }
 0xa48   :  { %5715 = vmatpush.msra.mxu1 %v5321_v9  ;;  %v11257_v21 = vsel %vm1991_vm11, %v5293_v18, %v5480_v2  ;;  %v11264_v7 = vsel %vm1991_vm11, %v5480_v2, %v5571_v52  ;;  %5488 = vst.msk [vmem:[#allocation2 + $0x330] sm:$0xff] %vm1901_vm14, %v5480_v2  ;;  %v5704_v18 = vld [vmem:[#allocation2 + $0x560] sm:$0xff] }
 0xa49   :  { %v5267_v4 = vpop.permute.xlu0 %5266 }
 0xa4a   :  { %v11253_v3 = vsel %vm12379_vm13, %v11106_v25, %v5267_v4  ;;  %v5368_v27 = vpop.permute.xlu1 %5367  ;;  %5716 = vmatpush.msra.mxu1 %v5294_v38  ;;  %vm12385_vm13 = vmmov %vm12383_vm8 }
 0xa4b   :  { %5736 = vmatpush.msrb.mxu0 %v11253_v3  ;;  %5753 = vmatpush.msrb.mxu3 %v11253_v3  ;;  %v5376_v61 = vsel %vm846_vm2, %v11183_v11, %v5368_v27  ;;  %v11282_v44 = vsel %vm846_vm2, %v5368_v27, %v11189_v59 }
 0xa4c   :  { %5717 = vmatpush.msra.mxu1 %v5270_v40 }
 0xa4d   :  { %5737 = vmatpush.msrb.mxu0 %v11228_v48  ;;  %5754 = vmatpush.msrb.mxu3 %v11228_v48 }
 0xa4e   :  { %5718 = vmatpush.msra.mxu1 %v5246_v37 }
 0xa4f   :  { %v11267_v25 = vpop.permute.xlu2 %5459  ;;  %5738 = vmatpush.msrb.mxu0 %v11147_v36  ;;  %5755 = vmatpush.msrb.mxu3 %v11147_v36 }
 0xa50   :  { %5719 = vmatpush.msra.mxu1 %v5222_v56  ;;  %5468 = vst.msk [vmem:[#allocation2 + $0x2c0] sm:$0xff] %vm1901_vm14, %v11267_v25 }
 0xa51   :  { %v11271_v15 = vpop.permute.xlu0 %5490  ;;  %5739 = vmatpush.msrb.mxu0 %v11016_v60  ;;  %5756 = vmatpush.msrb.mxu3 %v11016_v60 }
 0xa52   :  { %v11277_v28 = vpop.permute.xlu1 %5423  ;;  %5720 = vmatpush.msra.mxu1 %v10997_v54  ;;  %v11295_v54 = vsel %vm131_vm1, %v5245_v16, %v11267_v25 }
 0xa53   :  { %5721 = vmatmul.f32.vlgmr.msra.gmra.mxu1 %v11287_v17  ;;  %5740 = vmatpush.msrb.mxu0 %v11160_v31  ;;  %v5431_v13 = vsel %vm12381_vm7, %v11154_v42, %v11277_v28  ;;  %v11319_v42 = vld [vmem:[%s12380_s12 + $0x10] sm:$0xff]  ;;  %vm12386_vm7 = vmmov %vm12382_vm3 }
 0xa54   :  { %5827 = vmatpush.msrb.mxu1 %v11257_v21  ;;  %5757 = vmatpush.msrb.mxu3 %v11160_v31 }
 0xa55   :  { %5741 = vmatpush.msrb.mxu0 %v5403_v12 }
 0xa56   :  { %5758 = vmatpush.msrb.mxu3 %v5403_v12 }
 0xa57   :  { %v11297_v32 = vpop.permute.xlu2 %5449  ;;  %5742 = vmatpush.msrb.mxu0 %v5376_v61 }
 0xa58   :  { %5759 = vmatpush.msrb.mxu3 %v5376_v61  ;;  %5458 = vst.msk [vmem:[#allocation2 + $0x288] sm:$0xff] %vm1901_vm14, %v11297_v32 }
 0xa59   :  { %v5269_v6 = vpop.permute.xlu0 %5268  ;;  %5743 = vmatpush.msrb.mxu0 %v11177_v62 }
 0xa5a   :  { %v11306_v31 = vsel %vm12382_vm3, %v5267_v4, %v5269_v6  ;;  %v5397_v43 = vpop.permute.xlu1 %5396  ;;  %5760 = vmatpush.msrb.mxu3 %v11177_v62  ;;  %7023 = vmatmul.msk.f32.vlgmr.msrb.gmra.mxu0 %vm12383_vm8, %v11312_v5  ;;  %5283 = vst.msk [vmem:[#allocation2 + $0xc8] sm:$0xff] %vm1901_vm14, %v5269_v6  ;;  %vm12387_vm3 = vmmov %vm12383_vm8 }
 0xa5b   :  { %5724 = vmatmul.f32.gmra.mxu1 %v11319_v42  ;;  %5797 = vmatpush.msra.mxu0 %v11222_v33  ;;  %v5404_v1 = vsel %vm12384_vm12, %v11242_v39, %v5397_v43  ;;  %5566 = vst [vmem:[#allocation2 + $0x510] sm:$0xff] %v11306_v31  ;;  %vm12389_vm8 = vmmov %vm12386_vm7  ;;  %v5644_v39 = vld [vmem:[#allocation2 + $0x2c0] sm:$0xff] }
 0xa5c   :  { %5761 = vmatpush.msrb.mxu3 %v11211_v50  ;;  %5782 = vmatpush.msra.mxu2 %v11306_v31  ;;  %vm12390_vm12 = vmmov %vm12378_vm4 }
 0xa5d   :  { %5798 = vmatpush.msra.mxu0 %v11240_v41 }
 0xa5e   :  { %5762 = vmatpush.msrb.mxu3 %v11207_v8  ;;  %5783 = vmatpush.msra.mxu2 %v11234_v47 }
 0xa5f   :  { %v5399_v62 = vpop.permute.xlu2 %5398  ;;  %5799 = vmatpush.msra.mxu0 %v11306_v31  ;;  %v5639_v2 = vld [vmem:[#allocation2 + $0x288] sm:$0xff] }
 0xa60   :  { %5763 = vmatpush.msrb.mxu3 %v11116_v24  ;;  %v11338_v11 = vsel %vm12378_vm4, %v5397_v43, %v5399_v62  ;;  %v11350_v24 = vld [vmem:[%s12380_s12 + $0x18] sm:$0xff]  ;;  %vm12391_vm4 = vmmov %vm12387_vm3 }
 0xa61   :  { %v5221_v9 = vpop.permute.xlu0 %5220  ;;  %5800 = vmatpush.msra.mxu0 %v11234_v47 }
 0xa62   :  { %v11342_v20 = vsel %vm210_vm5, %v11141_v30, %v5221_v9  ;;  %v11344_v57 = vpop.permute.xlu1 %5342  ;;  %5764 = vmatpush.msrb.mxu3 %v11128_v58  ;;  %7024 = vmatmul.msk.f32.gmra.mxu0 %vm12385_vm13, %v11350_v24  ;;  %v5451_v58 = vsel %vm210_vm5, %v5221_v9, %v11297_v32  ;;  %5235 = vst.msk [vmem:[#allocation2 + $0x58] sm:$0xff] %vm1901_vm14, %v5221_v9  ;;  %vm12392_vm13 = vmmov %vm12387_vm3  ;;  %v7223_v9 = vld [vmem:[%s12396_s0 + $0xe8] sm:$0xff] }
 0xa63   :  { %5784 = vmatpush.msra.mxu2 %v11342_v20  ;;  %5801 = vmatpush.msra.mxu0 %v11342_v20 }
 0xa64   :  { %5765 = vmatpush.msrb.mxu3 %v11137_v55 }
 0xa65   :  { %5785 = vmatpush.msra.mxu2 %v11018_v22  ;;  %5802 = vmatpush.msra.mxu0 %v11018_v22  ;;  %v5350_v22 = vsel %vm738_vm6, %v11171_v35, %v11344_v57 }
 0xa66   :  { %5766 = vmatpush.msrb.mxu3 %v10987_v26 }
 0xa67   :  { %v5551_v30 = vpop.permute.xlu2 %5550  ;;  %5767 = vmatmul.f32.vlgmr.msrb.gmra.mxu3 %v11287_v17  ;;  %5786 = vmatpush.msra.mxu2 %v5431_v13 }
 0xa68   :  { %5873 = vmatpush.msra.mxu3 %v11264_v7  ;;  %5803 = vmatpush.msra.mxu0 %v5431_v13  ;;  %v5552_v19 = vsel %vm131_vm1, %v11267_v25, %v5551_v30  ;;  %5559 = vst.msk [vmem:[#allocation2 + $0x4f0] sm:$0xff] %vm1901_vm14, %v5551_v30  ;;  %vm12388_vm1 = vcmask 457728   ;;  %v7226_v30 = vld [vmem:[%s12396_s0 + $0x60] sm:$0xff] }
 0xa69   :  { %v5470_v37 = vpop.permute.xlu0 %5469  ;;  %5787 = vmatpush.msra.mxu2 %v5404_v1 }
 0xa6a   :  { %v5471_v26 = vsel %vm12386_vm7, %v5269_v6, %v5470_v37  ;;  %v5320_v55 = vpop.permute.xlu1 %5319  ;;  %5804 = vmatpush.msra.mxu0 %v5404_v1  ;;  %5478 = vst.msk [vmem:[#allocation2 + $0x2f8] sm:$0xff] %vm1901_vm14, %v5470_v37  ;;  %vm12393_vm7 = vmmov %vm12388_vm1  ;;  %v7220_v6 = vld [vmem:[%s12396_s0 + $0x78] sm:$0xff]  ;;  %v7222_v1 = vld [vmem:[%s12396_s0 + $0x70] sm:$0xff] }
 0xa6b   :  { %5788 = vmatpush.msra.mxu2 %v11282_v44  ;;  %5828 = vmatpush.msrb.mxu1 %v5471_v26  ;;  %v5325_v38 = vsel %vm630_vm9, %v11203_v53, %v5320_v55  ;;  %v5492_v49 = vsel %vm630_vm9, %v5320_v55, %v11271_v15  ;;  %v7228_v55 = vld [vmem:[%s12396_s0 + $0x58] sm:$0xff] }
 0xa6c   :  { %5805 = vmatpush.msra.mxu0 %v11282_v44  ;;  %5335 = vst.msk [vmem:[#allocation2 + $0x138] sm:$0xff] %vm1901_vm14, %v5325_v38 }
 0xa6d   :  { %5789 = vmatpush.msra.mxu2 %v5350_v22  ;;  %5829 = vmatpush.msrb.mxu1 %v11295_v54  ;;  %5498 = vst.msk [vmem:[#allocation2 + $0x368] sm:$0xff] %vm1901_vm14, %v5492_v49  ;;  %v5589_v49 = vld [vmem:[#allocation2 + $0x58] sm:$0xff] }
 0xa6e   :  { %5806 = vmatpush.msra.mxu0 %v5350_v22  ;;  %7025 = vmatmul.msk.f32.vlgmr.msra.gmra.mxu2 %vm12387_vm3, %v11312_v5  ;;  %vm12394_vm3 = vmmov %vm12388_vm1 }
 0xa6f   :  { %5770 = vmatmul.f32.gmra.mxu3 %v11319_v42  ;;  %5843 = vmatpush.msrb.mxu2 %v5325_v38  ;;  %v11381_v35 = vpop.permute.xlu2 %5400 }
 0xa70   :  { %5807 = vmatpush.msra.mxu0 %v11218_v10  ;;  %5830 = vmatpush.msrb.mxu1 %v5451_v58  ;;  %v11395_v53 = vsel %vm12390_vm12, %v5399_v62, %v11381_v35  ;;  %v5654_v10 = vld [vmem:[#allocation2 + $0x330] sm:$0xff] }
 0xa71   :  { %v5426_v52 = vpop.permute.xlu0 %5425  ;;  %5844 = vmatpush.msrb.mxu2 %v11257_v21  ;;  %5416 = vst.msk [vmem:[#allocation2 + $0x1e0] sm:$0xff] %vm1901_vm14, %v11395_v53  ;;  %v5649_v23 = vld [vmem:[#allocation2 + $0x2f8] sm:$0xff]  ;;  %v5684_v21 = vld [vmem:[#allocation2 + $0x480] sm:$0xff] }
 0xa72   :  { %v5432_v34 = vsel %vm12388_vm1, %v11277_v28, %v5426_v52  ;;  %v5561_v56 = vpop.permute.xlu1 %5560  ;;  %5808 = vmatpush.msra.mxu0 %v11237_v14  ;;  %5831 = vmatpush.msrb.mxu1 %v11038_v63  ;;  %v5694_v14 = vld [vmem:[#allocation2 + $0x4f0] sm:$0xff]  ;;  %vm12395_vm1 = vmmov %vm12391_vm4  ;;  %v7219_v28 = vld [vmem:[%s12396_s0 + $0xf8] sm:$0xff] }
 0xa73   :  { %v5562_v40 = vsel %vm12389_vm8, %v5470_v37, %v5561_v56  ;;  %5845 = vmatpush.msrb.mxu2 %v5471_v26  ;;  %5569 = vst.msk [vmem:[#allocation2 + $0x528] sm:$0xff] %vm1901_vm14, %v5561_v56  ;;  %vm12398_vm8 = vmmov %vm12390_vm12  ;;  %v7227_v37 = vld [vmem:[%s12396_s0 + $0xd8] sm:$0xff]  ;;  %v5599_v26 = vld [vmem:[#allocation2 + $0xc8] sm:$0xff] }
 0xa74   :  { %5809 = vmatpush.msra.mxu0 %v11253_v3  ;;  %5832 = vmatpush.msrb.mxu1 %v5432_v34  ;;  %vm12401_vm12 = vmmov %vm12395_vm1 }
 0xa75   :  { %5874 = vmatpush.msra.mxu3 %v5562_v40  ;;  %5846 = vmatpush.msrb.mxu2 %v11295_v54  ;;  %v7232_v40 = vld [vmem:[%s12396_s0 + $0x48] sm:$0xff] }
 0xa76   :  { %5810 = vmatpush.msra.mxu0 %v11228_v48  ;;  %5833 = vmatpush.msrb.mxu1 %v11338_v11 }
 0xa77   :  { %5875 = vmatpush.msra.mxu3 %v5552_v19  ;;  %7026 = vmatmul.msk.f32.gmra.mxu2 %vm12391_vm4, %v11350_v24  ;;  %v7229_v19 = vld [vmem:[%s12396_s0 + $0xd0] sm:$0xff]  ;;  %vm12402_vm4 = vcmask 1040384  }
 0xa78   :  { %5847 = vmatpush.msrb.mxu2 %v5451_v58  ;;  %5811 = vmatpush.msra.mxu0 %v11147_v36  ;;  %v5624_v61 = vld [vmem:[#allocation2 + $0x1e0] sm:$0xff] }
 0xa79   :  { %v5345_v45 = vpop.permute.xlu0 %5344  ;;  %v5604_v58 = vld [vmem:[#allocation2 + $0x100] sm:$0xff] }
 0xa7a   :  { %v5351_v8 = vsel %vm738_vm6, %v11344_v57, %v5345_v45  ;;  %v5372_v46 = vpop.permute.xlu1 %5371  ;;  %5848 = vmatpush.msrb.mxu2 %v11038_v63  ;;  %5812 = vmatpush.msra.mxu0 %v11016_v60  ;;  %v5659_v63 = vld [vmem:[#allocation2 + $0x368] sm:$0xff]  ;;  %v5527_v60 = vpop.permute.xlu2 %5526  ;;  %v7225_v57 = vld [vmem:[%s12396_s0 + $0xe0] sm:$0xff] }
 0xa7b   :  { %v5378_v50 = vsel %vm846_vm2, %v11189_v59, %v5372_v46  ;;  %5813 = vmatmul.f32.vlgmr.msra.gmra.mxu0 %v11287_v17  ;;  %v5699_v16 = vld [vmem:[#allocation2 + $0x528] sm:$0xff] }
 0xa7c   :  { %5849 = vmatpush.msrb.mxu2 %v5432_v34  ;;  %5919 = vmatpush.msrb.mxu0 %v5704_v18  ;;  %v7231_v34 = vld [vmem:[%s12396_s0 + $0xc8] sm:$0xff]  ;;  %v7238_v18 = vld [vmem:[%s12396_s0 + $0x1f8] sm:$0xff] }
 0xa7d   :  { %5834 = vmatpush.msrb.mxu1 %v5378_v50 }
 0xa7e   :  { %5850 = vmatpush.msrb.mxu2 %v11338_v11  ;;  %5920 = vmatpush.msrb.mxu0 %v5699_v16  ;;  %v5609_v11 = vld [vmem:[#allocation2 + $0x138] sm:$0xff] }
 0xa7f   :  { %5835 = vmatpush.msrb.mxu1 %v5351_v8  ;;  %v7248_v16 = vld [vmem:[%s12396_s0 + $0x158] sm:$0xff] }
 0xa80   :  { %7027 = vmatmul.msk.f32.vlgmr.msrb.gmra.mxu1 %vm12392_vm13, %v11312_v5  ;;  %5851 = vmatpush.msrb.mxu2 %v5378_v50  ;;  %v7236_v50 = vld [vmem:[%s12396_s0 + $0x38] sm:$0xff] }
 0xa81   :  { %v5541_v36 = vpop.permute.xlu0 %5540  ;;  %5889 = vmatpush.msra.mxu1 %v5659_v63  ;;  %5921 = vmatpush.msrb.mxu0 %v5694_v14  ;;  %v7239_v63 = vld [vmem:[%s12396_s0 + $0x30] sm:$0xff] }
 0xa82   :  { %v5542_v59 = vsel %vm210_vm5, %v11297_v32, %v5541_v36  ;;  %5549 = vst.msk [vmem:[#allocation2 + $0x4b8] sm:$0xff] %vm1901_vm14, %v5541_v36  ;;  %v5428_v29 = vpop.permute.xlu1 %5427  ;;  %5852 = vmatpush.msrb.mxu2 %v5351_v8  ;;  %v5500_v27 = vpop.permute.xlu2 %5499  ;;  %v7234_v8 = vld [vmem:[%s12396_s0 + $0x40] sm:$0xff]  ;;  %v7242_v36 = vld [vmem:[%s12396_s0 + $0x1f0] sm:$0xff] }
 0xa83   :  { %v5433_v51 = vsel %vm12393_vm7, %v5426_v52, %v5428_v29  ;;  %v5528_v48 = vsel %vm12394_vm3, %v5428_v29, %v5527_v60  ;;  %5890 = vmatpush.msra.mxu1 %v5654_v10  ;;  %5816 = vmatmul.f32.gmra.mxu0 %v11319_v42  ;;  %v7230_v52 = vld [vmem:[%s12396_s0 + $0x50] sm:$0xff]  ;;  %v7241_v60 = vld [vmem:[%s12396_s0 + $0x168] sm:$0xff]  ;;  %v7245_v10 = vld [vmem:[%s12396_s0 + $0x160] sm:$0xff] }
 0xa84   :  { %5443 = vst.msk [vmem:[#allocation2 + $0x218] sm:$0xff] %vm1901_vm14, %v5433_v51  ;;  %5853 = vmatpush.msrb.mxu2 %v11222_v33  ;;  %5876 = vmatpush.msra.mxu3 %v5542_v59  ;;  %v7243_v59 = vld [vmem:[%s12396_s0 + $0x28] sm:$0xff]  ;;  %v7244_v29 = vld [vmem:[%s12396_s0 + $0xb0] sm:$0xff] }
 0xa85   :  { %5891 = vmatpush.msra.mxu1 %v5649_v23  ;;  %5534 = vst.msk [vmem:[#allocation2 + $0x448] sm:$0xff] %vm1901_vm14, %v5528_v48  ;;  %v7247_v48 = vld [vmem:[%s12396_s0 + $0x20] sm:$0xff]  ;;  %v7251_v14 = vld [vmem:[%s12396_s0 + $0x150] sm:$0xff] }
 0xa86   :  { %5854 = vmatpush.msrb.mxu2 %v11240_v41  ;;  %5877 = vmatpush.msra.mxu3 %v11040_v0  ;;  %v5634_v41 = vld [vmem:[#allocation2 + $0x250] sm:$0xff]  ;;  %v7249_v23 = vld [vmem:[%s12396_s0 + $0x1e0] sm:$0xff] }
 0xa87   :  { %5892 = vmatpush.msra.mxu1 %v5644_v39  ;;  %v7252_v39 = vld [vmem:[%s12396_s0 + $0x1d8] sm:$0xff] }
 0xa88   :  { %7028 = vmatmul.msk.f32.gmra.mxu1 %vm12395_vm1, %v11350_v24  ;;  %5855 = vmatpush.msrb.mxu2 %v11306_v31  ;;  %v7221_v31 = vld [vmem:[%s12396_s0 + $0xf0] sm:$0xff] }
 0xa89   :  { %v5374_v33 = vpop.permute.xlu0 %5373  ;;  %v5689_v12 = vld [vmem:[#allocation2 + $0x4b8] sm:$0xff]  ;;  %5893 = vmatpush.msra.mxu1 %v5639_v2  ;;  %5878 = vmatpush.msra.mxu3 %v5433_v51  ;;  %v7246_v51 = vld [vmem:[%s12396_s0 + $0x1e8] sm:$0xff]  ;;  %v7253_v2 = vld [vmem:[%s12396_s0 + $0x10] sm:$0xff] }
 0xa8a   :  { %v5379_v4 = vsel %vm846_vm2, %v5372_v46, %v5374_v33  ;;  %v5347_v3 = vpop.permute.xlu1 %5346  ;;  %5922 = vmatpush.msrb.mxu0 %v5689_v12  ;;  %5856 = vmatpush.msrb.mxu2 %v11234_v47  ;;  %v5583_v47 = vld [vmem:[#allocation2 + $0x18] sm:$0xff]  ;;  %v7256_v12 = vld [vmem:[%s12396_s0 + $0x1d0] sm:$0xff] }
 0xa8b   :  { %5389 = vst.msk [vmem:[#allocation2 + $0x1a8] sm:$0xff] %vm1901_vm14, %v5379_v4  ;;  %v5352_v0 = vsel %vm738_vm6, %v5345_v45, %v5347_v3  ;;  %5894 = vmatpush.msra.mxu1 %v5634_v41  ;;  %5879 = vmatpush.msra.mxu3 %v11395_v53  ;;  %v5629_v7 = vld [vmem:[#allocation2 + $0x218] sm:$0xff]  ;;  %v5501_v25 = vsel %vm738_vm6, %v5347_v3, %v5500_v27  ;;  %vm12397_vm6 = vmmov %vm12395_vm1  ;;  %v7233_v53 = vld [vmem:[%s12396_s0 + $0xc0] sm:$0xff] }
 0xa8c   :  { %5923 = vmatpush.msrb.mxu0 %v5684_v21  ;;  %5857 = vmatpush.msrb.mxu2 %v11342_v20  ;;  %5362 = vst.msk [vmem:[#allocation2 + $0x170] sm:$0xff] %vm1901_vm14, %v5352_v0  ;;  %v5679_v15 = vld [vmem:[#allocation2 + $0x448] sm:$0xff]  ;;  %v5584_v45 = vld [vmem:[#allocation2 + $0x20] sm:$0xff]  ;;  %v7235_v46 = vld [vmem:[%s12396_s0 + $0x178] sm:$0xff] }
 0xa8d   :  { %5895 = vmatpush.msra.mxu1 %v5629_v7  ;;  %5880 = vmatpush.msra.mxu3 %v5379_v4  ;;  %5507 = vst.msk [vmem:[#allocation2 + $0x3a0] sm:$0xff] %vm1901_vm14, %v5501_v25  ;;  %v7224_v20 = vld [vmem:[%s12396_s0 + $0x68] sm:$0xff]  ;;  %v7258_v3 = vld [vmem:[%s12396_s0 + $0xa0] sm:$0xff]  ;;  %v7262_v21 = vld [vmem:[%s12396_s0 + $0x98] sm:$0xff] }
 0xa8e   :  { %5924 = vmatpush.msrb.mxu0 %v5679_v15  ;;  %5858 = vmatpush.msrb.mxu2 %v5583_v47  ;;  %v7257_v4 = vld [vmem:[%s12396_s0 + $0x8] sm:$0xff]  ;;  %v7259_v41 = vld [vmem:[%s12396_s0 + $0x140] sm:$0xff]  ;;  %v7263_v7 = vld [vmem:[%s12396_s0 + $0x138] sm:$0xff] }
 0xa8f   :  { %5896 = vmatpush.msra.mxu1 %v5624_v61  ;;  %5859 = vmatmul.f32.vlgmr.msrb.gmra.mxu2 %v11287_v17  ;;  %v7260_v27 = vld [vmem:[%s12396_s0 + $0x1c8] sm:$0xff]  ;;  %v7264_v25 = vld [vmem:[%s12396_s0 + $0x1c0] sm:$0xff]  ;;  %v7265_v15 = vld [vmem:[%s12396_s0 + $0x210] sm:$0x1] }
 0xa90   :  { %5881 = vmatpush.msra.mxu3 %v5352_v0  ;;  %6090 = vmatpush.msra.mxu2 %v7219_v28  ;;  %v7261_v0 = vld [vmem:[%s12396_s0] sm:$0xff]  ;;  %v7266_v47 = vld [vmem:[%s12396_s0 + $0x90] sm:$0xff]  ;;  %v7268_v28 = vld [vmem:[%s12396_s0 + $0x1b8] sm:$0xff] }
 0xa91   :  { %v5518_v44 = vpop.permute.xlu0 %5517  ;;  %7029 = vmatmul.msk.f32.vlgmr.msra.gmra.mxu3 %vm12397_vm6, %v11312_v5  ;;  %v7267_v61 = vld [vmem:[%s12396_s0 + $0x130] sm:$0xff] }
 0xa92   :  { %v5519_v54 = vsel %vm12398_vm8, %v11381_v35, %v5518_v44  ;;  %v5509_v32 = vpop.permute.xlu1 %5508  ;;  %v5619_v13 = vld [vmem:[#allocation2 + $0x1a8] sm:$0xff]  ;;  %6067 = vmatpush.msrb.mxu3 %v7220_v6  ;;  %6091 = vmatpush.msra.mxu2 %v7221_v31  ;;  %v5594_v35 = vld [vmem:[#allocation2 + $0x90] sm:$0xff]  ;;  %v7273_v6 = vld [vmem:[%s12396_s0 + $0x80] sm:$0xff] }
 0xa93   :  { %5525 = vst.msk [vmem:[#allocation2 + $0x410] sm:$0xff] %vm1901_vm14, %v5519_v54  ;;  %v5510_v43 = vsel %vm846_vm2, %v5374_v33, %v5509_v32  ;;  %5897 = vmatpush.msra.mxu1 %v5619_v13  ;;  %v5614_v62 = vld [vmem:[#allocation2 + $0x170] sm:$0xff]  ;;  %vm12399_vm2 = vmmov %vm12395_vm1  ;;  %v7255_v33 = vld [vmem:[%s12396_s0 + $0x148] sm:$0xff] }
 0xa94   :  { %5516 = vst.msk [vmem:[#allocation2 + $0x3d8] sm:$0xff] %vm1901_vm14, %v5510_v43  ;;  %6068 = vmatpush.msrb.mxu3 %v7222_v1  ;;  %6092 = vmatpush.msra.mxu2 %v7223_v9  ;;  %v5664_v56 = vld [vmem:[#allocation2 + $0x3a0] sm:$0xff]  ;;  %vm12400_vm14 = vmmov %vm12395_vm1  ;;  %v7269_v44 = vld [vmem:[%s12396_s0 + $0x88] sm:$0xff] }
 0xa95   :  { %5898 = vmatpush.msra.mxu1 %v5614_v62  ;;  %v7270_v54 = vld [vmem:[%s12396_s0 + $0x208] sm:$0xff]  ;;  %v7272_v13 = vld [vmem:[%s12396_s0 + $0x1b0] sm:$0xff]  ;;  %v7274_v31 = vld [vmem:[%s12396_s0 + $0x200] sm:$0xff] }
 0xa96   :  { %6069 = vmatpush.msrb.mxu3 %v7224_v20  ;;  %6093 = vmatpush.msra.mxu2 %v7225_v57  ;;  %v7271_v32 = vld [vmem:[%s12396_s0 + $0x128] sm:$0xff]  ;;  %v7275_v43 = vld [vmem:[%s12396_s0 + $0x120] sm:$0xff]  ;;  %v7277_v1 = vld [vmem:[%s12396_s0 + $0x118] sm:$0xff] }
 0xa97   :  { %5899 = vmatpush.msra.mxu1 %v5609_v11  ;;  %5862 = vmatmul.f32.gmra.mxu2 %v11319_v42  ;;  %v7276_v62 = vld [vmem:[%s12396_s0 + $0x1a8] sm:$0xff]  ;;  %v7278_v9 = vld [vmem:[%s12396_s0 + $0x1a0] sm:$0xff]  ;;  %v7279_v11 = vld [vmem:[%s12396_s0 + $0x110] sm:$0xff] }
 0xa98   :  { %6070 = vmatpush.msrb.mxu3 %v7226_v30  ;;  %6094 = vmatpush.msra.mxu2 %v7227_v37  ;;  %v7280_v20 = vld [vmem:[%s12396_s0 + $0x198] sm:$0xff]  ;;  %v7281_v57 = vld [vmem:[%s12396_s0 + $0x108] sm:$0xff]  ;;  %v7283_v30 = vld [vmem:[%s12396_s0 + $0x100] sm:$0xff] }
 0xa99   :  { %5900 = vmatpush.msra.mxu1 %v5604_v58  ;;  %7030 = vmatmul.msk.f32.gmra.mxu3 %vm12399_vm2, %v11350_v24  ;;  %v7282_v58 = vld [vmem:[%s12396_s0 + $0x190] sm:$0xff]  ;;  %v7284_v37 = vld [vmem:[%s12396_s0 + $0x188] sm:$0xff] }
 0xa9a   :  { %v5674_v22 = vld [vmem:[#allocation2 + $0x410] sm:$0xff]  ;;  %6071 = vmatpush.msrb.mxu3 %v7228_v55  ;;  %6095 = vmatpush.msra.mxu2 %v7229_v19 }
 0xa9b   :  { %5925 = vmatpush.msrb.mxu0 %v5674_v22  ;;  %5901 = vmatpush.msra.mxu1 %v5599_v26  ;;  %v5669_v38 = vld [vmem:[#allocation2 + $0x3d8] sm:$0xff]  ;;  %v7285_v22 = vld [vmem:[%s12396_s0 + $0x180] sm:$0xff] }
 0xa9c   :  { %6072 = vmatpush.msrb.mxu3 %v7230_v52  ;;  %6096 = vmatpush.msra.mxu2 %v7231_v34 }
 0xa9d   :  { %5926 = vmatpush.msrb.mxu0 %v5669_v38  ;;  %5902 = vmatpush.msra.mxu1 %v5594_v35  ;;  %v12403_v38 = vld [vmem:[#allocation20_spill] sm:$0xff] }
 0xa9e   :  { %6073 = vmatpush.msrb.mxu3 %v7232_v40  ;;  %6097 = vmatpush.msra.mxu2 %v7233_v53 }
 0xa9f   :  { %5927 = vmatpush.msrb.mxu0 %v5664_v56  ;;  %5903 = vmatpush.msra.mxu1 %v5589_v49 }
 0xaa0   :  { %7031 = vmatmul.msk.f32.vlgmr.msrb.gmra.mxu0 %vm12400_vm14, %v11312_v5  ;;  %6074 = vmatpush.msrb.mxu3 %v7234_v8  ;;  %v7237_v5 = vld [vmem:[%s12396_s0 + $0x170] sm:$0xff] }
 0xaa1   :  { %5904 = vmatpush.msra.mxu1 %v5584_v45  ;;  %6113 = vmatpush.msra.mxu0 %v7235_v46 }
 0xaa2   :  { %5905 = vmatmul.f32.vlgmr.msra.gmra.mxu1 %v11287_v17  ;;  %6075 = vmatpush.msrb.mxu3 %v7236_v50  ;;  %v7240_v17 = vld [vmem:[%s12396_s0 + $0xb8] sm:$0xff] }
 0xaa3   :  { %6114 = vmatpush.msra.mxu0 %v7237_v5  ;;  %6136 = vmatpush.msrb.mxu1 %v7238_v18  ;;  %v12404_v5 = vld [vmem:[#allocation9_spill] sm:$0xff] }
 0xaa4   :  { %6076 = vmatpush.msrb.mxu3 %v7239_v63  ;;  %6098 = vmatpush.msra.mxu2 %v7240_v17 }
 0xaa5   :  { %6115 = vmatpush.msra.mxu0 %v7241_v60  ;;  %6137 = vmatpush.msrb.mxu1 %v7242_v36 }
 0xaa6   :  { %6077 = vmatpush.msrb.mxu3 %v7243_v59  ;;  %6099 = vmatpush.msra.mxu2 %v7244_v29 }
 0xaa7   :  { %6116 = vmatpush.msra.mxu0 %v7245_v10  ;;  %6138 = vmatpush.msrb.mxu1 %v7246_v51 }
 0xaa8   :  { %7032 = vmatmul.msk.f32.gmra.mxu0 %vm12401_vm12, %v11350_v24  ;;  %6078 = vmatpush.msrb.mxu3 %v7247_v48  ;;  %v7250_v24 = vld [vmem:[%s12396_s0 + $0x18] sm:$0xff] }
 0xaa9   :  { %6117 = vmatpush.msra.mxu0 %v7248_v16  ;;  %6139 = vmatpush.msrb.mxu1 %v7249_v23 }
 0xaaa   :  { %5908 = vmatmul.f32.gmra.mxu1 %v11319_v42  ;;  %6079 = vmatpush.msrb.mxu3 %v7250_v24  ;;  %v7254_v42 = vld [vmem:[%s12396_s0 + $0xa8] sm:$0xff] }
 0xaab   :  { %6118 = vmatpush.msra.mxu0 %v7251_v14  ;;  %6140 = vmatpush.msrb.mxu1 %v7252_v39 }
 0xaac   :  { %6080 = vmatpush.msrb.mxu3 %v7253_v2  ;;  %6100 = vmatpush.msra.mxu2 %v7254_v42 }
 0xaad   :  { %6119 = vmatpush.msra.mxu0 %v7255_v33  ;;  %6141 = vmatpush.msrb.mxu1 %v7256_v12 }
 0xaae   :  { %6081 = vmatpush.msrb.mxu3 %v7257_v4  ;;  %6101 = vmatpush.msra.mxu2 %v7258_v3 }
 0xaaf   :  { %6120 = vmatpush.msra.mxu0 %v7259_v41  ;;  %6142 = vmatpush.msrb.mxu1 %v7260_v27 }
 0xab0   :  { %6082 = vmatpush.msrb.mxu3 %v7261_v0  ;;  %6102 = vmatpush.msra.mxu2 %v7262_v21 }
 0xab1   :  { %6121 = vmatpush.msra.mxu0 %v7263_v7  ;;  %6143 = vmatpush.msrb.mxu1 %v7264_v25 }
 0xab2   :  { %7033 = vmatpush.msk.msra.mxu3 %vm12402_vm4, %v7265_v15  ;;  %6103 = vmatpush.msra.mxu2 %v7266_v47 }
 0xab3   :  { %6122 = vmatpush.msra.mxu0 %v7267_v61  ;;  %6144 = vmatpush.msrb.mxu1 %v7268_v28 }
 0xab4   :  { %6104 = vmatpush.msra.mxu2 %v7269_v44  ;;  %6173 = vmatpush.msra.mxu3 %v7270_v54 }
 0xab5   :  { %6123 = vmatpush.msra.mxu0 %v7271_v32  ;;  %6145 = vmatpush.msrb.mxu1 %v7272_v13 }
 0xab6   :  { %6105 = vmatpush.msra.mxu2 %v7273_v6  ;;  %6174 = vmatpush.msra.mxu3 %v7274_v31 }
 0xab7   :  { %6124 = vmatpush.msra.mxu0 %v7275_v43  ;;  %6146 = vmatpush.msrb.mxu1 %v7276_v62 }
 0xab9   :  { %6125 = vmatpush.msra.mxu0 %v7277_v1  ;;  %6147 = vmatpush.msrb.mxu1 %v7278_v9 }
 0xabb   :  { %6126 = vmatpush.msra.mxu0 %v7279_v11  ;;  %6148 = vmatpush.msrb.mxu1 %v7280_v20 }
 0xabd   :  { %6127 = vmatpush.msra.mxu0 %v7281_v57  ;;  %6149 = vmatpush.msrb.mxu1 %v7282_v58 }
 0xabf   :  { %6128 = vmatpush.msra.mxu0 %v7283_v30  ;;  %6150 = vmatpush.msrb.mxu1 %v7284_v37 }
 0xac1   :  { %6151 = vmatpush.msrb.mxu1 %v7285_v22 }
 0xad0   :  { %v5722_v55 = vpop.f32.mrf.mxu1 }
 0xad1   :  { %v5723_v35 = vadd.f32 %v5722_v55, %v12403_v38 }
 0xad7   :  { %v5745_v26 = vpop.f32.mrf.mxu0 }
 0xad8   :  { %v11661_v52 = vadd.f32 %v5745_v26, %v5723_v35  ;;  %v5725_v8 = vpop.f32.mrf.mxu1 }
 0xad9   :  { %v5726_v18 = vadd.f32 %v5725_v8, %v12404_v5 }
 0xada   :  { %v5935_v53 = vmax.f32 %v11661_v52, 0.0 }
 0xadf   :  { %v5748_v34 = vpop.f32.mrf.mxu0 }
 0xae0   :  { %v5749_v63 = vadd.f32 %v5748_v34, %v5726_v18 }
 0xae2   :  { %v5940_v29 = vmax.f32 %v5749_v63, 0.0 }
 0xaea   :  { %v5768_v19 = vpop.f32.mrf.mxu3 }
 0xaeb   :  { %v5769_v56 = vadd.f32 %v5768_v19, %v12403_v38 }
 0xaf1   :  { %v5791_v49 = vpop.f32.mrf.mxu2 }
 0xaf2   :  { %v11664_v40 = vadd.f32 %v5791_v49, %v5769_v56  ;;  %v5771_v59 = vpop.f32.mrf.mxu3 }
 0xaf3   :  { %v5772_v16 = vadd.f32 %v5771_v59, %v12404_v5 }
 0xaf4   :  { %v5936_v45 = vmax.f32 %v11664_v40, 0.0 }
 0xaf6   :  { %v7185_v46 = vpack.i.bf16 %v5936_v45, %v5935_v53 }
 0xaf8   :  { %v5814_v50 = vpop.f32.mrf.mxu0  ;;  %7186 = vrot.lane.b32.xlu0 %v7185_v46, %s12257_s11 }
 0xaf9   :  { %v5815_v17 = vadd.f32 %v5814_v50, %v12403_v38 }
 0xafa   :  { %v5794_v51 = vpop.f32.mrf.mxu2 }
 0xafb   :  { %v5795_v24 = vadd.f32 %v5794_v51, %v5772_v16 }
 0xafd   :  { %v5837_v60 = vpop.f32.mrf.mxu1  ;;  %v5941_v42 = vmax.f32 %v5795_v24, 0.0 }
 0xafe   :  { %v11675_v36 = vadd.f32 %v5837_v60, %v5815_v17 }
 0xb00   :  { %v5937_v10 = vmax.f32 %v11675_v36, 0.0  ;;  %v5817_v48 = vpop.f32.mrf.mxu0 }
 0xb01   :  { %v5818_v14 = vadd.f32 %v5817_v48, %v12404_v5 }
 0xb02   :  { %v7190_v23 = vpack.i.bf16 %v5940_v29, %v5937_v10 }
 0xb04   :  { %7191 = vrot.lane.b32.xlu1 %v7190_v23, %s12257_s11 }
 0xb05   :  { %v5840_v39 = vpop.f32.mrf.mxu1 }
 0xb06   :  { %v5841_v2 = vadd.f32 %v5840_v39, %v5818_v14 }
 0xb08   :  { %v5942_v33 = vmax.f32 %v5841_v2, 0.0 }
 0xb0a   :  { %v7195_v12 = vpack.i.bf16 %v5942_v33, %v5941_v42 }
 0xb0c   :  { %7196 = vrot.lane.b32.xlu2 %v7195_v12, %s12257_s11 }
 0xb12   :  { %v5860_v4 = vpop.f32.mrf.mxu2 }
 0xb13   :  { %v5861_v3 = vadd.f32 %v5860_v4, %v12403_v38 }
 0xb14   :  { %v5883_v41 = vpop.f32.mrf.mxu3 }
 0xb15   :  { %v5884_v27 = vadd.f32 %v5883_v41, %v5861_v3 }
 0xb17   :  { %v5938_v0 = vmax.f32 %v5884_v27, 0.0 }
 0xb19   :  { %5961 = vrot.lane.b32.xlu0 %v5938_v0, %s12257_s11 }
 0xb1a   :  { %v5863_v21 = vpop.f32.mrf.mxu2 }
 0xb1b   :  { %v5864_v7 = vadd.f32 %v5863_v21, %v12404_v5 }
 0xb1c   :  { %v5886_v25 = vpop.f32.mrf.mxu3 }
 0xb1d   :  { %v5887_v15 = vadd.f32 %v5886_v25, %v5864_v7  ;;  %v5929_v47 = vpop.f32.mrf.mxu0 }
 0xb1f   :  { %v5943_v61 = vmax.f32 %v5887_v15, 0.0  ;;  %v5906_v28 = vpop.f32.mrf.mxu1 }
 0xb20   :  { %v5907_v44 = vadd.f32 %v5906_v28, %v12403_v38 }
 0xb21   :  { %5971 = vrot.lane.b32.xlu2 %v5943_v61, %s12257_s11 }
 0xb22   :  { %v5930_v54 = vadd.f32 %v5929_v47, %v5907_v44 }
 0xb24   :  { %v5939_v32 = vmax.f32 %v5930_v54, 0.0 }
 0xb25   :  { %v5932_v6 = vpop.f32.mrf.mxu0 }
 0xb26   :  { %5963 = vrot.lane.b32.xlu1 %v5939_v32, %s12257_s11 }
 0xb27   :  { %v5909_v13 = vpop.f32.mrf.mxu1 }
 0xb28   :  { %v5910_v31 = vadd.f32 %v5909_v13, %v12404_v5 }
 0xb2a   :  { %v5933_v43 = vadd.f32 %v5932_v6, %v5910_v31 }
 0xb2c   :  { %v5944_v62 = vmax.f32 %v5933_v43, 0.0 }
 0xb2e   :  { %5973 = vrot.lane.b32.xlu0 %v5944_v62, %s12257_s11 }
 0xb66   :  { %v7197_v1 = vpop.permute.xlu2 %7196 }
 0xb67   :  { %v7199_v11 = vunpack.i.h.bf16 %v7197_v1  ;;  %v7198_v20 = vunpack.i.l.bf16 %v7197_v1  ;;  %v6185_v1 = vld [vmem:[%s12038_s6 + $0x10] sm:$0xff] }
 0xb69   :  { %v5980_v37 = vsel %vm210_vm5, %v7198_v20, %v7199_v11 }
 0xb6a   :  { %v7187_v9 = vpop.permute.xlu0 %7186  ;;  %v5999_v35 = vmax.f32 %v5941_v42, %v5980_v37  ;;  %v7049_v37 = vld [vmem:[%s12038_s6 + $0x70] sm:$0xff] }
 0xb6b   :  { %v7189_v57 = vunpack.i.h.bf16 %v7187_v9  ;;  %v7188_v58 = vunpack.i.l.bf16 %v7187_v9  ;;  %v6184_v9 = vld [vmem:[%s12038_s6 + $0x8] sm:$0xff] }
 0xb6d   :  { %v5975_v22 = vsel %vm210_vm5, %v7188_v58, %v7189_v57  ;;  %v6183_v58 = vld [vmem:[%s12038_s6] sm:$0xff] }
 0xb6e   :  { %v5993_v34 = vmax.f32 %v5935_v53, %v5975_v22  ;;  %v7054_v22 = vld [vmem:[%s12038_s6 + $0x90] sm:$0xff] }
 0xb76   :  { %v7192_v30 = vpop.permute.xlu1 %7191 }
 0xb77   :  { %v7194_v26 = vunpack.i.h.bf16 %v7192_v30  ;;  %v7193_v55 = vunpack.i.l.bf16 %v7192_v30  ;;  %v7044_v30 = vld [vmem:[%s12038_s6 + $0x50] sm:$0xff] }
 0xb79   :  { %v5979_v19 = vsel %vm210_vm5, %v7194_v26, %v7198_v20  ;;  %v5976_v38 = vsel %vm210_vm5, %v7189_v57, %v7193_v55  ;;  %v7050_v20 = vld [vmem:[%s12038_s6 + $0x78] sm:$0xff]  ;;  %v7043_v26 = vld [vmem:[%s12038_s6 + $0x48] sm:$0xff] }
 0xb7a   :  { %v5998_v56 = vmax.f32 %v5940_v29, %v5979_v19  ;;  %v5994_v49 = vmax.f32 %v5936_v45, %v5976_v38  ;;  %v7055_v57 = vld [vmem:[%s12038_s6 + $0x98] sm:$0xff]  ;;  %6286 = vmatpush.msrb.mxu0 %v7050_v20  ;;  %v7053_v19 = vld [vmem:[%s12038_s6 + $0x88] sm:$0xff] }
 0xb7b   :  { %v5972_v63 = vpop.permute.xlu2 %5971  ;;  %6314 = vmatpush.msra.mxu1 %v7055_v57  ;;  %v7040_v38 = vld [vmem:[%s12038_s6 + $0x38] sm:$0xff] }
 0xb7c   :  { %v7205_v8 = vpack.i.bf16 %v5999_v35, %v5998_v56  ;;  %v7200_v46 = vpack.i.bf16 %v5994_v49, %v5993_v34  ;;  %v5981_v52 = vsel %vm210_vm5, %v7199_v11, %v5972_v63  ;;  %v7045_v11 = vld [vmem:[%s12038_s6 + $0x58] sm:$0xff]  ;;  %6287 = vmatpush.msrb.mxu0 %v7049_v37  ;;  %v7092_v37 = vld [vmem:[%s12038_s6 + $0x180] sm:$0xff] }
 0xb7d   :  { %v6000_v53 = vmax.f32 %v5942_v33, %v5981_v52  ;;  %6315 = vmatpush.msra.mxu1 %v7054_v22  ;;  %v7074_v52 = vld [vmem:[%s12038_s6 + $0x110] sm:$0xff]  ;;  %v7080_v20 = vld [vmem:[%s12038_s6 + $0x138] sm:$0xff] }
 0xb7e   :  { %7206 = vrot.lane.b32.xlu2 %v7205_v8, %s12187_s19  ;;  %7201 = vrot.lane.b32.xlu1 %v7200_v46, %s12187_s19  ;;  %v7065_v8 = vld [vmem:[%s12038_s6 + $0xd8] sm:$0xff]  ;;  %v7079_v22 = vld [vmem:[%s12038_s6 + $0x130] sm:$0xff] }
 0xb7f   :  { %6316 = vmatpush.msra.mxu1 %v7053_v19  ;;  %v7070_v46 = vld [vmem:[%s12038_s6 + $0xf8] sm:$0xff]  ;;  %v7078_v19 = vld [vmem:[%s12038_s6 + $0x128] sm:$0xff] }
 0xb8b   :  { %v5962_v50 = vpop.permute.xlu0 %5961 }
 0xb8c   :  { %v5977_v5 = vsel %vm210_vm5, %v7193_v55, %v5962_v50  ;;  %v7048_v55 = vld [vmem:[%s12038_s6 + $0x68] sm:$0xff] }
 0xb8d   :  { %v5995_v18 = vmax.f32 %v5937_v10, %v5977_v5  ;;  %6288 = vmatpush.msrb.mxu0 %v7048_v55  ;;  %v7038_v5 = vld [vmem:[%s12038_s6 + $0x28] sm:$0xff]  ;;  %v7110_v55 = vld [vmem:[%s12038_s6 + $0x1f8] sm:$0xff] }
 0xb8f   :  { %6017 = vrot.lane.b32.xlu0 %v5995_v18, %s12187_s19 }
 0xb97   :  { %6027 = vrot.lane.b32.xlu0 %v6000_v53, %s12187_s19 }
 0xb98   :  { %v5964_v40 = vpop.permute.xlu1 %5963 }
 0xb99   :  { %v5978_v45 = vsel %vm210_vm5, %v5962_v50, %v5964_v40  ;;  %v5997_v17 = vmax.f32 %v5939_v32, %v5964_v40  ;;  %v7075_v50 = vld [vmem:[%s12038_s6 + $0x118] sm:$0xff]  ;;  %v7063_v40 = vld [vmem:[%s12038_s6 + $0xc8] sm:$0xff] }
 0xb9a   :  { %v5996_v60 = vmax.f32 %v5938_v0, %v5978_v45  ;;  %v7068_v45 = vld [vmem:[%s12038_s6 + $0xe8] sm:$0xff] }
 0xb9b   :  { %6021 = vrot.lane.b32.xlu1 %v5997_v17, %s12187_s19 }
 0xb9c   :  { %6019 = vrot.lane.b32.xlu2 %v5996_v60, %s12187_s19 }
 0xba0   :  { %v5974_v36 = vpop.permute.xlu0 %5973 }
 0xba1   :  { %v5982_v59 = vsel %vm210_vm5, %v5972_v63, %v5974_v36  ;;  %v6002_v29 = vmax.f32 %v5944_v62, %v5974_v36  ;;  %vm12405_vm5 = vcmask 138240   ;;  %v6186_v62 = vld [vmem:[%s12038_s6 + $0x18] sm:$0xff]  ;;  %v7069_v63 = vld [vmem:[%s12038_s6 + $0xf0] sm:$0xff]  ;;  %v7067_v36 = vld [vmem:[%s12038_s6 + $0xe0] sm:$0xff] }
 0xba2   :  { %v6001_v10 = vmax.f32 %v5943_v61, %v5982_v59  ;;  %vm12406_vm13 = vmmov %vm12405_vm5  ;;  %6202 = vmatpush.msrb.mxu2 %v6186_v62  ;;  %v7072_v59 = vld [vmem:[%s12038_s6 + $0x100] sm:$0xff]  ;;  %v7093_v62 = vld [vmem:[%s12038_s6 + $0x188] sm:$0xff] }
 0xba3   :  { %6031 = vrot.lane.b32.xlu1 %v6002_v29, %s12187_s19 }
 0xba4   :  { %6029 = vrot.lane.b32.xlu2 %v6001_v10, %s12187_s19  ;;  %6203 = vmatpush.msrb.mxu2 %v6185_v1 }
 0xba6   :  { %6204 = vmatpush.msrb.mxu2 %v6184_v9 }
 0xba8   :  { %6205 = vmatpush.msrb.mxu2 %v6183_v58  ;;  %v7082_v58 = vld [vmem:[%s12038_s6 + $0x140] sm:$0xff] }
 0xbd8   :  { %v7207_v23 = vpop.permute.xlu2 %7206 }
 0xbd9   :  { %v7209_v39 = vunpack.i.h.bf16 %v7207_v23  ;;  %v7208_v2 = vunpack.i.l.bf16 %v7207_v23 }
 0xbdb   :  { %v6037_v42 = vsel %vm630_vm9, %v7208_v2, %v7209_v39 }
 0xbdc   :  { %v6056_v33 = vmax.f32 %v5998_v56, %v6037_v42  ;;  %v7052_v56 = vld [vmem:[%s12038_s6 + $0x80] sm:$0xff] }
 0xbdd   :  { %6317 = vmatpush.msra.mxu1 %v7052_v56  ;;  %v7077_v56 = vld [vmem:[%s12038_s6 + $0x120] sm:$0xff] }
 0xbf0   :  { %v7202_v51 = vpop.permute.xlu1 %7201 }
 0xbf1   :  { %v7204_v48 = vunpack.i.h.bf16 %v7202_v51  ;;  %v7203_v16 = vunpack.i.l.bf16 %v7202_v51 }
 0xbf3   :  { %v6033_v24 = vsel %vm630_vm9, %v7203_v16, %v7204_v48 }
 0xbf4   :  { %v6051_v14 = vmax.f32 %v5993_v34, %v6033_v24  ;;  %v7047_v34 = vld [vmem:[%s12038_s6 + $0x60] sm:$0xff] }
 0xbf5   :  { %6289 = vmatpush.msrb.mxu0 %v7047_v34  ;;  %v7109_v34 = vld [vmem:[%s12038_s6 + $0x1f0] sm:$0xff] }
 0xbf6   :  { %6083 = vmatmul.f32.vlgmr.msrb.gmra.mxu3 %v6051_v14  ;;  %v6020_v12 = vpop.permute.xlu2 %6019 }
 0xbf7   :  { %6258 = vmatpush.msrb.mxu3 %v7045_v11 }
 0xbf9   :  { %6259 = vmatpush.msrb.mxu3 %v7044_v30  ;;  %v7087_v30 = vld [vmem:[%s12038_s6 + $0x160] sm:$0xff] }
 0xbfb   :  { %6260 = vmatpush.msrb.mxu3 %v7043_v26  ;;  %v7105_v26 = vld [vmem:[%s12038_s6 + $0x1d8] sm:$0xff] }
 0xbfe   :  { %6086 = vmatmul.f32.gmra.mxu3 %v6056_v33  ;;  %v6030_v21 = vpop.permute.xlu2 %6029  ;;  %v7060_v33 = vld [vmem:[%s12038_s6 + $0xb8] sm:$0xff] }
 0xc01   :  { %v6018_v4 = vpop.permute.xlu0 %6017 }
 0xc02   :  { %v6034_v3 = vsel %vm630_vm9, %v7204_v48, %v6018_v4  ;;  %v6035_v41 = vsel %vm630_vm9, %v6018_v4, %v6020_v12 }
 0xc03   :  { %v6052_v27 = vmax.f32 %v5994_v49, %v6034_v3  ;;  %v6053_v0 = vmax.f32 %v5995_v18, %v6035_v41  ;;  %v7039_v49 = vld [vmem:[%s12038_s6 + $0x30] sm:$0xff] }
 0xc04   :  { %v7064_v18 = vld [vmem:[%s12038_s6 + $0xd0] sm:$0xff] }
 0xc05   :  { %6106 = vmatmul.f32.vlgmr.msra.gmra.mxu2 %v6052_v27  ;;  %6129 = vmatmul.f32.vlgmr.msra.gmra.mxu0 %v6053_v0  ;;  %v7059_v41 = vld [vmem:[%s12038_s6 + $0xb0] sm:$0xff]  ;;  %v7085_v0 = vld [vmem:[%s12038_s6 + $0x158] sm:$0xff] }
 0xc06   :  { %6230 = vmatpush.msra.mxu2 %v7040_v38  ;;  %6398 = vmatpush.msra.mxu0 %v7070_v46  ;;  %v7104_v38 = vld [vmem:[%s12038_s6 + $0x1d0] sm:$0xff]  ;;  %v7103_v46 = vld [vmem:[%s12038_s6 + $0x1c8] sm:$0xff] }
 0xc08   :  { %6231 = vmatpush.msra.mxu2 %v7039_v49  ;;  %6399 = vmatpush.msra.mxu0 %v7069_v63  ;;  %v7102_v63 = vld [vmem:[%s12038_s6 + $0x1c0] sm:$0xff] }
 0xc09   :  { %v6028_v7 = vpop.permute.xlu0 %6027 }
 0xc0a   :  { %v6038_v25 = vsel %vm630_vm9, %v7209_v39, %v6028_v7  ;;  %v6039_v15 = vsel %vm630_vm9, %v6028_v7, %v6030_v21  ;;  %6232 = vmatpush.msra.mxu2 %v7038_v5  ;;  %6400 = vmatpush.msra.mxu0 %v7068_v45  ;;  %v7095_v7 = vld [vmem:[%s12038_s6 + $0x198] sm:$0xff]  ;;  %v7108_v5 = vld [vmem:[%s12038_s6 + $0x1e8] sm:$0xff] }
 0xc0b   :  { %v6058_v47 = vmax.f32 %v6000_v53, %v6039_v15  ;;  %v6057_v61 = vmax.f32 %v5999_v35, %v6038_v25  ;;  %v7042_v35 = vld [vmem:[%s12038_s6 + $0x40] sm:$0xff]  ;;  %v7058_v25 = vld [vmem:[%s12038_s6 + $0xa8] sm:$0xff]  ;;  %v7084_v15 = vld [vmem:[%s12038_s6 + $0x150] sm:$0xff] }
 0xc0c   :  { %6261 = vmatpush.msrb.mxu3 %v7042_v35  ;;  %v7037_v53 = vld [vmem:[%s12038_s6 + $0x20] sm:$0xff]  ;;  %6401 = vmatpush.msra.mxu0 %v7067_v36  ;;  %v7098_v45 = vld [vmem:[%s12038_s6 + $0x1a8] sm:$0xff] }
 0xc0d   :  { %v6022_v28 = vpop.permute.xlu1 %6021  ;;  %6109 = vmatmul.f32.gmra.mxu2 %v6057_v61  ;;  %6132 = vmatmul.f32.gmra.mxu0 %v6058_v47  ;;  %v7089_v47 = vld [vmem:[%s12038_s6 + $0x170] sm:$0xff]  ;;  %v7097_v36 = vld [vmem:[%s12038_s6 + $0x1a0] sm:$0xff] }
 0xc0e   :  { %v6036_v44 = vsel %vm630_vm9, %v6020_v12, %v6022_v28  ;;  %v6055_v54 = vmax.f32 %v5997_v17, %v6022_v28  ;;  %6233 = vmatpush.msra.mxu2 %v7037_v53  ;;  %v7073_v17 = vld [vmem:[%s12038_s6 + $0x108] sm:$0xff]  ;;  %v7099_v53 = vld [vmem:[%s12038_s6 + $0x1b0] sm:$0xff] }
 0xc0f   :  { %v6054_v32 = vmax.f32 %v5996_v60, %v6036_v44  ;;  %v7062_v60 = vld [vmem:[%s12038_s6 + $0xc0] sm:$0xff]  ;;  %v7094_v44 = vld [vmem:[%s12038_s6 + $0x190] sm:$0xff] }
 0xc10   :  { %7034 = vmatmul.msk.f32.vlgmr.msra.gmra.mxu3 %vm12405_vm5, %v6055_v54  ;;  %v7057_v54 = vld [vmem:[%s12038_s6 + $0xa0] sm:$0xff] }
 0xc11   :  { %6152 = vmatmul.f32.vlgmr.msrb.gmra.mxu1 %v6054_v32  ;;  %6370 = vmatpush.msra.mxu3 %v7065_v8 }
 0xc12   :  { %6426 = vmatpush.msrb.mxu1 %v7075_v50 }
 0xc13   :  { %6371 = vmatpush.msra.mxu3 %v7064_v18  ;;  %v7100_v18 = vld [vmem:[%s12038_s6 + $0x1b8] sm:$0xff] }
 0xc14   :  { %6427 = vmatpush.msrb.mxu1 %v7074_v52  ;;  %v7107_v52 = vld [vmem:[%s12038_s6 + $0x1e0] sm:$0xff] }
 0xc15   :  { %v6032_v13 = vpop.permute.xlu1 %6031  ;;  %6372 = vmatpush.msra.mxu3 %v7063_v40 }
 0xc16   :  { %v6040_v6 = vsel %vm630_vm9, %v6030_v21, %v6032_v13  ;;  %v6060_v31 = vmax.f32 %v6002_v29, %v6032_v13  ;;  %6428 = vmatpush.msrb.mxu1 %v7073_v17  ;;  %v7090_v21 = vld [vmem:[%s12038_s6 + $0x178] sm:$0xff]  ;;  %v7083_v13 = vld [vmem:[%s12038_s6 + $0x148] sm:$0xff] }
 0xc17   :  { %v6059_v43 = vmax.f32 %v6001_v10, %v6040_v6  ;;  %6373 = vmatpush.msra.mxu3 %v7062_v60 }
 0xc18   :  { %7035 = vmatmul.msk.f32.gmra.mxu3 %vm12406_vm13, %v6060_v31  ;;  %6429 = vmatpush.msrb.mxu1 %v7072_v59 }
 0xc19   :  { %6155 = vmatmul.f32.gmra.mxu1 %v6059_v43  ;;  %v7088_v43 = vld [vmem:[%s12038_s6 + $0x168] sm:$0xff]  ;;  %s6716_s6 = sshll.u32 %s7336_s3, 4  ;;  %s6717_s6 = int_to_ptr.vmem [resolvable:$true] %s6716_s6 }
 0xc79   :  { %v6084_v29 = vpop.f32.mrf.mxu3 }
 0xc81   :  { %v6087_v51 = vpop.f32.mrf.mxu3 }
 0xc82   :  { %v6130_v16 = vpop.f32.mrf.mxu0 }
 0xc88   :  { %v6107_v10 = vpop.f32.mrf.mxu2 }
 0xc89   :  { %v6108_v48 = vadd.f32 %v6107_v10, %v6084_v29  ;;  %v6646_v29 = vld [vmem:[%s12040_s8 + $0x70] sm:$0xff]  ;;  %v6645_v10 = vld [vmem:[%s12040_s8 + $0x68] sm:$0xff] }
 0xc8a   :  { %v6133_v61 = vpop.f32.mrf.mxu0 }
 0xc8b   :  { %v6131_v24 = vadd.f32 %v6130_v16, %v6108_v48  ;;  %v6643_v48 = vld [vmem:[%s12040_s8 + $0x58] sm:$0xff]  ;;  %v6642_v16 = vld [vmem:[%s12040_s8 + $0x50] sm:$0xff] }
 0xc8e   :  { %v6153_v23 = vpop.f32.mrf.mxu1 }
 0xc8f   :  { %v6154_v14 = vadd.f32 %v6153_v23, %v6131_v24  ;;  %v6641_v23 = vld [vmem:[%s12040_s8 + $0x48] sm:$0xff]  ;;  %v6640_v24 = vld [vmem:[%s12040_s8 + $0x40] sm:$0xff] }
 0xc90   :  { %v6110_v2 = vpop.f32.mrf.mxu2 }
 0xc91   :  { %v6111_v27 = vadd.f32 %v6110_v2, %v6087_v51  ;;  %v6644_v51 = vld [vmem:[%s12040_s8 + $0x60] sm:$0xff]  ;;  %v6637_v2 = vld [vmem:[%s12040_s8 + $0x28] sm:$0xff] }
 0xc93   :  { %v6176_v39 = vpop.f32.mrf.mxu3  ;;  %v6134_v32 = vadd.f32 %v6133_v61, %v6111_v27  ;;  %v6635_v27 = vld [vmem:[%s12040_s8 + $0x18] sm:$0xff] }
 0xc94   :  { %v11816_v42 = vadd.f32 %v6176_v39, %v6154_v14  ;;  %v6639_v14 = vld [vmem:[%s12040_s8 + $0x38] sm:$0xff]  ;;  %v6638_v39 = vld [vmem:[%s12040_s8 + $0x30] sm:$0xff] }
 0xc96   :  { %7036 = vmatmul.msk.f32.vlgmr.msrb.gmra.mxu2 %vm900_vm0, %v11816_v42  ;;  %v6243_v12 = vrot.slane %v11816_v42, 2  ;;  %v6271_v4 = vrot.slane %v11816_v42, 3  ;;  %v6299_v3 = vrot.slane %v11816_v42, 4  ;;  %v6156_v28 = vpop.f32.mrf.mxu1  ;;  %v6215_v31 = vrot.slane %v11816_v42, 1 }
 0xc97   :  { %6342 = vmatpush.msrb.mxu2 %v7060_v33  ;;  %v6157_v1 = vadd.f32 %v6156_v28, %v6134_v32  ;;  %v6355_v9 = vrot.slane %v11816_v42, 6  ;;  %v6383_v11 = vrot.slane %v11816_v42, 7  ;;  %v6327_v35 = vrot.slane %v11816_v42, 5  ;;  %v6182_v33 = vld [vmem:[%s12316_s28] sm:$0x1]  ;;  %v6633_v28 = vld [vmem:[%s12040_s8 + $0x8] sm:$0xff] }
 0xc98   :  { %7046 = vmatmul.msk.f32.vlgmr.msrb.gmra.mxu3 %vm900_vm0, %v6243_v12  ;;  %7051 = vmatmul.msk.f32.vlgmr.msrb.gmra.mxu0 %vm900_vm0, %v6271_v4  ;;  %v6632_v32 = vld [vmem:[%s12040_s8] sm:$0xff] }
 0xc99   :  { %7056 = vmatmul.msk.f32.vlgmr.msra.gmra.mxu1 %vm900_vm0, %v6299_v3  ;;  %6343 = vmatpush.msrb.mxu2 %v7059_v41  ;;  %v6636_v41 = vld [vmem:[%s12040_s8 + $0x20] sm:$0xff] }
 0xc9a   :  { %6482 = vmatpush.msrb.mxu3 %v7085_v0  ;;  %6510 = vmatpush.msrb.mxu0 %v7090_v21 }
 0xc9b   :  { %6538 = vmatpush.msra.mxu1 %v7095_v7  ;;  %6344 = vmatpush.msrb.mxu2 %v7058_v25  ;;  %v6179_v6 = vpop.f32.mrf.mxu3  ;;  %v6634_v7 = vld [vmem:[%s12040_s8 + $0x10] sm:$0xff] }
 0xc9c   :  { %6483 = vmatpush.msrb.mxu3 %v7084_v15  ;;  %6511 = vmatpush.msrb.mxu0 %v7089_v47  ;;  %v6180_v57 = vadd.f32 %v6179_v6, %v6157_v1  ;;  %v6682_v25 = vld [vmem:[%s12042_s10 + $0x50] sm:$0xf]  ;;  %v6681_v15 = vld [vmem:[%s12042_s10 + $0x48] sm:$0xff] }
 0xc9d   :  { %6539 = vmatpush.msra.mxu1 %v7094_v44  ;;  %6345 = vmatpush.msrb.mxu2 %v7057_v54  ;;  %v6680_v44 = vld [vmem:[%s12042_s10 + $0x40] sm:$0xff] }
 0xc9e   :  { %7041 = vmatmul.msk.f32.vlgmr.msra.gmra.mxu2 %vm900_vm0, %v6215_v31  ;;  %6484 = vmatpush.msrb.mxu3 %v7083_v13  ;;  %v6467_v49 = vrot.slane %v6180_v57, 2  ;;  %v6495_v8 = vrot.slane %v6180_v57, 3  ;;  %v6523_v50 = vrot.slane %v6180_v57, 4  ;;  %v6439_v40 = vrot.slane %v6180_v57, 1  ;;  %v6679_v13 = vld [vmem:[%s12042_s10 + $0x38] sm:$0xff] }
 0xc9f   :  { %6512 = vmatpush.msrb.mxu0 %v7088_v43  ;;  %6540 = vmatpush.msra.mxu1 %v7093_v62  ;;  %v6579_v17 = vrot.slane %v6180_v57, 6  ;;  %v6607_v60 = vrot.slane %v6180_v57, 7  ;;  %v6551_v59 = vrot.slane %v6180_v57, 5  ;;  %v6678_v43 = vld [vmem:[%s12042_s10 + $0x30] sm:$0xff] }
 0xca0   :  { %7066 = vmatmul.msk.f32.vlgmr.msra.gmra.mxu3 %vm900_vm0, %v6355_v9  ;;  %7071 = vmatmul.msk.f32.vlgmr.msra.gmra.mxu0 %vm900_vm0, %v6383_v11  ;;  %v6677_v11 = vld [vmem:[%s12042_s10 + $0x28] sm:$0xff] }
 0xca1   :  { %7076 = vmatmul.msk.f32.vlgmr.msrb.gmra.mxu1 %vm900_vm0, %v6180_v57  ;;  %6454 = vmatpush.msra.mxu2 %v7080_v20  ;;  %v6676_v57 = vld [vmem:[%s12042_s10 + $0x20] sm:$0xff] }
 0xca2   :  { %6485 = vmatpush.msrb.mxu3 %v7082_v58  ;;  %6513 = vmatpush.msrb.mxu0 %v7087_v30 }
 0xca3   :  { %6541 = vmatpush.msra.mxu1 %v7092_v37  ;;  %6455 = vmatpush.msra.mxu2 %v7079_v22  ;;  %v6675_v37 = vld [vmem:[%s12042_s10 + $0x18] sm:$0xff] }
 0xca4   :  { %6594 = vmatpush.msra.mxu3 %v7105_v26  ;;  %6622 = vmatpush.msra.mxu0 %v7110_v55 }
 0xca5   :  { %6456 = vmatpush.msra.mxu2 %v7078_v19  ;;  %6652 = vmatpush.msrb.mxu1 %v6646_v29  ;;  %v6683_v29 = vld [vmem:[%s12362_s7] sm:$0x1] }
 0xca6   :  { %7061 = vmatmul.msk.f32.vlgmr.msrb.gmra.mxu2 %vm900_vm0, %v6327_v35  ;;  %6595 = vmatpush.msra.mxu3 %v7104_v38 }
 0xca7   :  { %6623 = vmatpush.msra.mxu0 %v7109_v34  ;;  %6457 = vmatpush.msra.mxu2 %v7077_v56 }
 0xca8   :  { %7086 = vmatmul.msk.f32.vlgmr.msrb.gmra.mxu3 %vm900_vm0, %v6467_v49  ;;  %7091 = vmatmul.msk.f32.vlgmr.msrb.gmra.mxu0 %vm900_vm0, %v6495_v8 }
 0xca9   :  { %7096 = vmatmul.msk.f32.vlgmr.msra.gmra.mxu1 %vm900_vm0, %v6523_v50  ;;  %6596 = vmatpush.msra.mxu3 %v7103_v46 }
 0xcaa   :  { %6624 = vmatpush.msra.mxu0 %v7108_v5  ;;  %6566 = vmatpush.msrb.mxu2 %v7100_v18 }
 0xcab   :  { %6597 = vmatpush.msra.mxu3 %v7102_v63  ;;  %6653 = vmatpush.msrb.mxu1 %v6645_v10 }
 0xcac   :  { %6625 = vmatpush.msra.mxu0 %v7107_v52  ;;  %6567 = vmatpush.msrb.mxu2 %v7099_v53  ;;  %v6674_v53 = vld [vmem:[%s12042_s10 + $0x10] sm:$0xff] }
 0xcad   :  { %6654 = vmatpush.msrb.mxu1 %v6644_v51 }
 0xcae   :  { %7081 = vmatmul.msk.f32.vlgmr.msra.gmra.mxu2 %vm900_vm0, %v6439_v40  ;;  %v6673_v40 = vld [vmem:[%s12042_s10 + $0x8] sm:$0xff] }
 0xcaf   :  { %6568 = vmatpush.msrb.mxu2 %v7098_v45  ;;  %6655 = vmatpush.msrb.mxu1 %v6643_v48  ;;  %v6672_v45 = vld [vmem:[%s12042_s10] sm:$0xff]  ;;  %s12408_s10 = sld [smem:[#allocation31_spill]] }
 0xcb0   :  { %7106 = vmatmul.msk.f32.vlgmr.msra.gmra.mxu3 %vm900_vm0, %v6579_v17  ;;  %7111 = vmatmul.msk.f32.vlgmr.msra.gmra.mxu0 %vm900_vm0, %v6607_v60  ;;  %v6647_v17 = vld [vmem:[%s12346_s23] sm:$0x1] }
 0xcb1   :  { %6569 = vmatpush.msrb.mxu2 %v7097_v36  ;;  %6656 = vmatpush.msrb.mxu1 %v6642_v16 }
 0xcb3   :  { %6657 = vmatpush.msrb.mxu1 %v6641_v23 }
 0xcb5   :  { %6658 = vmatpush.msrb.mxu1 %v6640_v24  ;;  %s6718_s9 = sshll.u32 %s12408_s10, 4  ;;  %s6719_s9 = int_to_ptr.hbm [resolvable:$true] %s6718_s9 }
 0xcb6   :  { %7101 = vmatmul.msk.f32.vlgmr.msrb.gmra.mxu2 %vm900_vm0, %v6551_v59  ;;  %vm12407_vm0 = vcmask 1043456  }
 0xcb7   :  { %6659 = vmatpush.msrb.mxu1 %v6639_v14  ;;  %7113 = vmatpush.msk.msra.mxu2 %vm12407_vm0, %v6682_v25 }
 0xcb9   :  { %6660 = vmatpush.msrb.mxu1 %v6638_v39  ;;  %6696 = vmatpush.msra.mxu2 %v6681_v15 }
 0xcbb   :  { %6661 = vmatpush.msrb.mxu1 %v6637_v2  ;;  %6697 = vmatpush.msra.mxu2 %v6680_v44 }
 0xcbd   :  { %6662 = vmatpush.msrb.mxu1 %v6636_v41  ;;  %6698 = vmatpush.msra.mxu2 %v6679_v13 }
 0xcbf   :  { %6663 = vmatpush.msrb.mxu1 %v6635_v27  ;;  %6699 = vmatpush.msra.mxu2 %v6678_v43 }
 0xcc1   :  { %6664 = vmatpush.msrb.mxu1 %v6634_v7  ;;  %6700 = vmatpush.msra.mxu2 %v6677_v11 }
 0xcc3   :  { %6665 = vmatpush.msrb.mxu1 %v6633_v28  ;;  %6701 = vmatpush.msra.mxu2 %v6676_v57 }
 0xcc5   :  { %6666 = vmatpush.msrb.mxu1 %v6632_v32  ;;  %6702 = vmatpush.msra.mxu2 %v6675_v37 }
 0xcc7   :  { %6703 = vmatpush.msra.mxu2 %v6674_v53 }
 0xcc9   :  { %6704 = vmatpush.msra.mxu2 %v6673_v40 }
 0xccb   :  { %6705 = vmatpush.msra.mxu2 %v6672_v45 }
 0xd15   :  { %v6291_v4 = vpop.f32.mrf.mxu0 }
 0xd16   :  { %v6319_v47 = vpop.f32.mrf.mxu1 }
 0xd19   :  { %v6207_v42 = vpop.f32.mrf.mxu2 }
 0xd1a   :  { %v6210_v3 = vadd.f32 %v6207_v42, %v6182_v33 }
 0xd1b   :  { %v6263_v12 = vpop.f32.mrf.mxu3 }
 0xd1d   :  { %v6403_v62 = vpop.f32.mrf.mxu0 }
 0xd1e   :  { %v6431_v58 = vpop.f32.mrf.mxu1 }
 0xd21   :  { %v6235_v0 = vpop.f32.mrf.mxu2 }
 0xd22   :  { %v6238_v21 = vadd.f32 %v6235_v0, %v6210_v3 }
 0xd23   :  { %v6375_v6 = vpop.f32.mrf.mxu3 }
 0xd24   :  { %v6266_v61 = vadd.f32 %v6263_v12, %v6238_v21 }
 0xd25   :  { %v6515_v38 = vpop.f32.mrf.mxu0 }
 0xd26   :  { %v6294_v54 = vadd.f32 %v6291_v4, %v6266_v61  ;;  %v6543_v56 = vpop.f32.mrf.mxu1 }
 0xd28   :  { %v6322_v31 = vadd.f32 %v6319_v47, %v6294_v54 }
 0xd29   :  { %v6347_v1 = vpop.f32.mrf.mxu2 }
 0xd2a   :  { %v6350_v9 = vadd.f32 %v6347_v1, %v6322_v31 }
 0xd2b   :  { %v6487_v26 = vpop.f32.mrf.mxu3 }
 0xd2c   :  { %v6378_v20 = vadd.f32 %v6375_v6, %v6350_v9 }
 0xd2d   :  { %v6627_v18 = vpop.f32.mrf.mxu0 }
 0xd2e   :  { %v6406_v30 = vadd.f32 %v6403_v62, %v6378_v20 }
 0xd30   :  { %v6434_v22 = vadd.f32 %v6431_v58, %v6406_v30 }
 0xd31   :  { %v6459_v55 = vpop.f32.mrf.mxu2 }
 0xd32   :  { %v6462_v19 = vadd.f32 %v6459_v55, %v6434_v22 }
 0xd33   :  { %v6599_v50 = vpop.f32.mrf.mxu3 }
 0xd34   :  { %v6490_v35 = vadd.f32 %v6487_v26, %v6462_v19 }
 0xd36   :  { %v6518_v34 = vadd.f32 %v6515_v38, %v6490_v35 }
 0xd38   :  { %v6546_v49 = vadd.f32 %v6543_v56, %v6518_v34 }
 0xd39   :  { %v6571_v8 = vpop.f32.mrf.mxu2 }
 0xd3a   :  { %v6574_v46 = vadd.f32 %v6571_v8, %v6546_v49 }
 0xd3c   :  { %v6602_v5 = vadd.f32 %v6599_v50, %v6574_v46 }
 0xd3e   :  { %v6630_v63 = vadd.f32 %v6627_v18, %v6602_v5 }
 0xd40   :  { %v6631_v52 = vmax.f32 %v6630_v63, 0.0 }
 0xd42   :  { %7112 = vmatmul.msk.f32.vlgmr.msrb.gmra.mxu1 %vm1991_vm11, %v6631_v52 }
 0xdbf   :  { %v6668_v60 = vpop.f32.mrf.mxu1 }
 0xdc0   :  { %v6669_v36 = vadd.f32 %v6668_v60, %v6647_v17 }
 0xdc2   :  { %v6671_v59 = vmax.f32 %v6669_v36, 0.0 }
 0xdc4   :  { %7114 = vmatmul.msk.f32.vlgmr.msra.gmra.mxu2 %vm3420_vm15, %v6671_v59 }
 0xe47   :  { %v6707_v10 = vpop.f32.mrf.mxu2 }
 0xe48   :  { %v6708_v51 = vadd.f32 %v6707_v10, %v6683_v29 }
 0xe4a   :  { %6710 = vst.msk [vmem:[#allocation3 + $0x1] sm:$0x1] %vm3448_vm10, %v6708_v51 }
 0xe4b   :  { %6721 = dma.vmem_to_hbm [thread:$0]  %s6717_s6, 32, %s6719_s9, [#allocation4]  }
 0xe4c   :  { %7310 = dma.done.wait [#allocation4], 32  }
 0xe4d   :  { %7311 = vsyncadd [#allocation4], 4294967264 }
 0xe4e   :  { %6726 = vsyncpa [#allocation4], 1 }

</bundles_post_ra>
